<compile_context>
chip_gen: v7x
topology: tpu7x:2x2x1
jax: 0.10.0
libtpu: 0.0.40
codegen_flags: <defaults>
</compile_context>

<pallas_src>
import functools
import jax
import jax.numpy as jnp
from jax.experimental import pallas as pl
from jax.experimental.pallas import tpu as pltpu

LEAKY_SLOPE = 0.2

# Tile over M. VMEM per step ~= 2*TM*Kc*2B (bf16 patches, double-buffered)
#                             + Kc*Npad*2B  (resident bf16 weight)
#                             + 2*TM*Npad*4B (f32 output, double-buffered).
# Worst layer (Kc=4096, Npad=512) at TM=512 is ~14 MiB -> safe on v5e/v6e/v7x.
# (v5e/v6e have headroom to sweep TM up to 1024-2048 if desired.)
TM_MAX = 512
VMEM_LIMIT_BYTES = 48 * 1024 * 1024


def _round_up(x, m):
    return ((x + m - 1) // m) * m


# ----------------------------- Pallas kernels ------------------------------

def _mm_lrelu_kernel(p_ref, w_ref, o_ref):
    acc = jnp.dot(p_ref[...], w_ref[...], preferred_element_type=jnp.float32)
    o_ref[...] = jnp.where(acc >= 0, acc, LEAKY_SLOPE * acc)


def _mm_lrelu_sigmoid_kernel(p_ref, w_ref, feat_ref, sig_ref):
    acc = jnp.dot(p_ref[...], w_ref[...], preferred_element_type=jnp.float32)
    feat = jnp.where(acc >= 0, acc, LEAKY_SLOPE * acc)
    feat_ref[...] = feat
    sig_ref[...] = jax.nn.sigmoid(feat)


def _conv_matmul(patches, w_mat, with_sigmoid):
    """LeakyReLU(patches @ w_mat) [+ fused sigmoid for the last layer].

    patches: (M, Kc), w_mat: (Kc, N). Inputs are cast to bf16, accumulation is f32.
    M is padded to a multiple of the tile, N is zero-padded to a multiple of 128
    (lane-dense stores); padding is sliced off before returning.
    """
    M, Kc = patches.shape
    _, N = w_mat.shape

    n_pad = _round_up(N, 128)                 # lane-dense output stores
    tm = min(TM_MAX, _round_up(M, 16))        # bf16 sublane packing -> multiple of 16
    m_pad = _round_up(M, tm)

    p = patches.astype(jnp.bfloat16)
    w = w_mat.astype(jnp.bfloat16)
    if m_pad != M:
        p = jnp.pad(p, ((0, m_pad - M), (0, 0)))
    if n_pad != N:
        w = jnp.pad(w, ((0, 0), (0, n_pad - N)))

    grid = (m_pad // tm,)
    in_specs = [
        pl.BlockSpec((tm, Kc), lambda i: (i, 0)),      # streamed, double-buffered
        pl.BlockSpec((Kc, n_pad), lambda i: (0, 0)),   # constant index -> VMEM-resident
    ]
    out_spec = pl.BlockSpec((tm, n_pad), lambda i: (i, 0))
    cparams = pltpu.CompilerParams(
        dimension_semantics=("parallel",),             # megacore sharding on v7x
        vmem_limit_bytes=VMEM_LIMIT_BYTES,
    )

    if with_sigmoid:
        feat, sig = pl.pallas_call(
            _mm_lrelu_sigmoid_kernel,
            out_shape=(jax.ShapeDtypeStruct((m_pad, n_pad), jnp.float32),
                       jax.ShapeDtypeStruct((m_pad, n_pad), jnp.float32)),
            grid=grid,
            in_specs=in_specs,
            out_specs=(out_spec, out_spec),
            compiler_params=cparams,
        )(p, w)
        return feat[:M, :N], sig[:M, :N]

    y = pl.pallas_call(
        _mm_lrelu_kernel,
        out_shape=jax.ShapeDtypeStruct((m_pad, n_pad), jnp.float32),
        grid=grid,
        in_specs=in_specs,
        out_specs=out_spec,
        compiler_params=cparams,
    )(p, w)
    return y[:M, :N]


# --------------------------- plain-JAX glue ---------------------------------

def reflect_pad_nhwc(x, p=1):
    # nn.ReflectionPad2d(1) equivalent (NHWC)
    return jnp.pad(x, ((0, 0), (p, p), (p, p), (0, 0)), mode="reflect")


def im2col_nhwc(x, k, stride):
    """x: (B, H, W, C) already padded -> (B*OH*OW, k*k*C) with (ky,kx,ci) ordering."""
    B, H, W, C = x.shape
    OH = (H - k) // stride + 1
    OW = (W - k) // stride + 1
    taps = []
    for ky in range(k):
        for kx in range(k):
            taps.append(
                x[:, ky:ky + stride * (OH - 1) + 1:stride,
                     kx:kx + stride * (OW - 1) + 1:stride, :])
    p = jnp.stack(taps, axis=3)                     # (B, OH, OW, k*k, C)
    return p.reshape(B * OH * OW, k * k * C), (B, OH, OW)


def weight_to_matmul(w):
    """PyTorch conv weight (Cout, Cin, KH, KW) -> (KH*KW*Cin, Cout) matching im2col order."""
    cout, cin, kh, kw = w.shape
    return jnp.transpose(w, (2, 3, 1, 0)).reshape(kh * kw * cin, cout)


def spectral_normalize(w, n_iters=10):
    """Deterministic power iteration (nn.utils.spectral_norm semantics, bias-free)."""
    # TODO(synk): torch keeps a persistent random `u` with 1 iteration/forward; this uses a
    # fixed init + 10 iterations, so sigma differs slightly from the stateful PyTorch module.
    cout = w.shape[0]
    w_mat = w.reshape(cout, -1)
    u = jnp.ones((cout,), jnp.float32) / jnp.sqrt(jnp.float32(cout))
    v = jnp.zeros((w_mat.shape[1],), jnp.float32)
    for _ in range(n_iters):
        v = w_mat.T @ u
        v = v / (jnp.linalg.norm(v) + 1e-12)
        u = w_mat @ v
        u = u / (jnp.linalg.norm(u) + 1e-12)
    sigma = u @ (w_mat @ v)
    return w / sigma


def init_discriminator_params(key, in_channels):
    """init_weights('normal', gain=0.02); spectral norm -> no conv biases."""
    specs = [(in_channels, 64, 2), (64, 128, 2), (128, 256, 2),
             (256, 512, 1), (512, 1, 1)]
    params = []
    for (cin, cout, stride) in specs:
        key, sub = jax.random.split(key)
        w = 0.02 * jax.random.normal(sub, (cout, cin, 4, 4), jnp.float32)
        w = spectral_normalize(w)
        params.append({"w_mat": weight_to_matmul(w), "stride": stride})
    return params


# ------------------------------ forward pass --------------------------------

@jax.jit
def discriminator_forward(x_nchw, w1, w2, w3, w4, w5):
    """Returns (outputs, [conv1..conv5]) in NCHW, matching the PyTorch forward."""
    strides = (2, 2, 2, 1, 1)
    w_mats = (w1, w2, w3, w4, w5)

    # NCHW -> NHWC; carry activations through pad/im2col in bf16 (halves gather traffic).
    x = jnp.transpose(x_nchw, (0, 2, 3, 1)).astype(jnp.bfloat16)
    feats_nhwc = []
    outputs_nhwc = None
    for layer_idx in range(5):
        xp = reflect_pad_nhwc(x, 1)
        patches, (B, OH, OW) = im2col_nhwc(xp, 4, strides[layer_idx])
        if layer_idx < 4:
            y = _conv_matmul(patches, w_mats[layer_idx], with_sigmoid=False)
            y = y.reshape(B, OH, OW, -1)          # f32 feature (returned)
            feats_nhwc.append(y)
            x = y.astype(jnp.bfloat16)            # bf16 activation for the next layer
        else:
            feat, sig = _conv_matmul(patches, w_mats[layer_idx], with_sigmoid=True)
            feats_nhwc.append(feat.reshape(B, OH, OW, -1))
            outputs_nhwc = sig.reshape(B, OH, OW, -1)

    to_nchw = lambda t: jnp.transpose(t, (0, 3, 1, 2))
    feats = [to_nchw(f) for f in feats_nhwc]
    outputs = to_nchw(outputs_nhwc)
    return outputs, feats


# TODO(synk): cal_loss / backward (AdversarialLoss, PerceptualLoss, ImagePool, Adam)
# are training-time machinery, not part of the forward pass, and are not implemented.

if __name__ == "__main__":
    B, C_IN, H, W = 2, 4, 32, 32  # H,W must be >= 24 so conv5 has a valid spatial extent
    key = jax.random.PRNGKey(0)
    key, xkey = jax.random.split(key)
    x = jax.random.normal(xkey, (B, C_IN, H, W), jnp.float32)

    params = init_discriminator_params(key, C_IN)
    w_mats = tuple(p["w_mat"] for p in params)

    outputs, feats = discriminator_forward(x, *w_mats)
    jax.block_until_ready(outputs)
    for f in feats:
        jax.block_until_ready(f)

    expected = [(B, 64, 16, 16), (B, 128, 8, 8), (B, 256, 4, 4),
                (B, 512, 3, 3), (B, 1, 2, 2)]
    assert [tuple(f.shape) for f in feats] == expected, [f.shape for f in feats]
    assert tuple(outputs.shape) == (B, 1, 2, 2)
    assert bool(jnp.all((outputs >= 0.0) & (outputs <= 1.0)))
    print("KERNEL_OK")
</pallas_src>

<mosaic_0001>
module attributes {stable_mosaic.version = 11 : i64} {
  func.func @_mm_lrelu_kernel(%arg0: i32, %arg1: memref<512x64xbf16, #tpu.memory_space<vmem>>, %arg2: memref<64x128xbf16, #tpu.memory_space<vmem>>, %arg3: memref<512x128xf32, #tpu.memory_space<vmem>>) attributes {dimension_semantics = [#tpu.dimension_semantics<parallel>], iteration_bounds = array<i64: 1>, scalar_prefetch = 0 : i64, scratch_operands = 0 : i64, tpu.core_type = #tpu.core_type<tc>, window_params = [{transform_indices = @transform_0, window_bounds = array<i64: 512, 64>}, {pipeline_mode = #tpu.pipeline_mode<synchronous>, transform_indices = @transform_1, window_bounds = array<i64: 64, 128>}, {transform_indices = @transform_2, window_bounds = array<i64: 512, 128>}]} {
    %c0 = arith.constant 0 : index
    %c0_0 = arith.constant 0 : index
    %0 = vector.load %arg1[%c0, %c0_0] : memref<512x64xbf16, #tpu.memory_space<vmem>>, vector<512x64xbf16>
    %c0_1 = arith.constant 0 : index
    %c0_2 = arith.constant 0 : index
    %1 = vector.load %arg2[%c0_1, %c0_2] : memref<64x128xbf16, #tpu.memory_space<vmem>>, vector<64x128xbf16>
    %cst = arith.constant dense<0.000000e+00> : vector<512x128xf32>
    %2 = tpu.matmul %0, %1, %cst {dimension_numbers = #tpu.dot_dimension_numbers<[1], [0], [0], [1], [0, 0, 1, 1], [], []>} : vector<512x64xbf16>, vector<64x128xbf16>, vector<512x128xf32> -> vector<512x128xf32>
    %cst_3 = arith.constant 0.000000e+00 : f32
    %3 = vector.broadcast %cst_3 : f32 to vector<512x128xf32>
    %4 = arith.cmpf oge, %2, %3 : vector<512x128xf32>
    %cst_4 = arith.constant 2.000000e-01 : f32
    %5 = vector.broadcast %cst_4 : f32 to vector<512x128xf32>
    %6 = arith.mulf %5, %2 : vector<512x128xf32>
    %7 = arith.select %4, %2, %6 : vector<512x128xi1>, vector<512x128xf32>
    %c0_5 = arith.constant 0 : index
    %c0_6 = arith.constant 0 : index
    %8 = vector.load %arg3[%c0_5, %c0_6] : memref<512x128xf32, #tpu.memory_space<vmem>>, vector<512x128xf32>
    tpu.vector_store %arg3[%c0_5, %c0_6], %7 {strides = array<i32>} : memref<512x128xf32, #tpu.memory_space<vmem>>, vector<512x128xf32>,
    return
  }
  func.func @transform_0(%arg0: i32) -> (i32, i32) {
    %c0_i32 = arith.constant 0 : i32
    %c0_i32_0 = arith.constant 0 : i32
    return %arg0, %c0_i32 : i32, i32
  }
  func.func @transform_1(%arg0: i32) -> (i32, i32) {
    %c0_i32 = arith.constant 0 : i32
    %c0_i32_0 = arith.constant 0 : i32
    %c0_i32_1 = arith.constant 0 : i32
    return %c0_i32, %c0_i32_0 : i32, i32
  }
  func.func @transform_2(%arg0: i32) -> (i32, i32) {
    %c0_i32 = arith.constant 0 : i32
    %c0_i32_0 = arith.constant 0 : i32
    return %arg0, %c0_i32 : i32, i32
  }
}

module attributes {stable_mosaic.version = 11 : i64} {
  func.func @_mm_lrelu_kernel(%arg0: i32, %arg1: memref<128x1024xbf16, #tpu.memory_space<vmem>>, %arg2: memref<1024x128xbf16, #tpu.memory_space<vmem>>, %arg3: memref<128x128xf32, #tpu.memory_space<vmem>>) attributes {dimension_semantics = [#tpu.dimension_semantics<parallel>], iteration_bounds = array<i64: 1>, scalar_prefetch = 0 : i64, scratch_operands = 0 : i64, tpu.core_type = #tpu.core_type<tc>, window_params = [{transform_indices = @transform_0, window_bounds = array<i64: 128, 1024>}, {pipeline_mode = #tpu.pipeline_mode<synchronous>, transform_indices = @transform_1, window_bounds = array<i64: 1024, 128>}, {transform_indices = @transform_2, window_bounds = array<i64: 128, 128>}]} {
    %c0 = arith.constant 0 : index
    %c0_0 = arith.constant 0 : index
    %0 = vector.load %arg1[%c0, %c0_0] : memref<128x1024xbf16, #tpu.memory_space<vmem>>, vector<128x1024xbf16>
    %c0_1 = arith.constant 0 : index
    %c0_2 = arith.constant 0 : index
    %1 = vector.load %arg2[%c0_1, %c0_2] : memref<1024x128xbf16, #tpu.memory_space<vmem>>, vector<1024x128xbf16>
    %cst = arith.constant dense<0.000000e+00> : vector<128x128xf32>
    %2 = tpu.matmul %0, %1, %cst {dimension_numbers = #tpu.dot_dimension_numbers<[1], [0], [0], [1], [0, 0, 1, 1], [], []>} : vector<128x1024xbf16>, vector<1024x128xbf16>, vector<128x128xf32> -> vector<128x128xf32>
    %cst_3 = arith.constant 0.000000e+00 : f32
    %3 = vector.broadcast %cst_3 : f32 to vector<128x128xf32>
    %4 = arith.cmpf oge, %2, %3 : vector<128x128xf32>
    %cst_4 = arith.constant 2.000000e-01 : f32
    %5 = vector.broadcast %cst_4 : f32 to vector<128x128xf32>
    %6 = arith.mulf %5, %2 : vector<128x128xf32>
    %7 = arith.select %4, %2, %6 : vector<128x128xi1>, vector<128x128xf32>
    %c0_5 = arith.constant 0 : index
    %c0_6 = arith.constant 0 : index
    %8 = vector.load %arg3[%c0_5, %c0_6] : memref<128x128xf32, #tpu.memory_space<vmem>>, vector<128x128xf32>
    tpu.vector_store %arg3[%c0_5, %c0_6], %7 {strides = array<i32>} : memref<128x128xf32, #tpu.memory_space<vmem>>, vector<128x128xf32>,
    return
  }
  func.func @transform_0(%arg0: i32) -> (i32, i32) {
    %c0_i32 = arith.constant 0 : i32
    %c0_i32_0 = arith.constant 0 : i32
    return %arg0, %c0_i32 : i32, i32
  }
  func.func @transform_1(%arg0: i32) -> (i32, i32) {
    %c0_i32 = arith.constant 0 : i32
    %c0_i32_0 = arith.constant 0 : i32
    %c0_i32_1 = arith.constant 0 : i32
    return %c0_i32, %c0_i32_0 : i32, i32
  }
  func.func @transform_2(%arg0: i32) -> (i32, i32) {
    %c0_i32 = arith.constant 0 : i32
    %c0_i32_0 = arith.constant 0 : i32
    return %arg0, %c0_i32 : i32, i32
  }
}

module attributes {stable_mosaic.version = 11 : i64} {
  func.func @_mm_lrelu_kernel(%arg0: i32, %arg1: memref<32x2048xbf16, #tpu.memory_space<vmem>>, %arg2: memref<2048x256xbf16, #tpu.memory_space<vmem>>, %arg3: memref<32x256xf32, #tpu.memory_space<vmem>>) attributes {dimension_semantics = [#tpu.dimension_semantics<parallel>], iteration_bounds = array<i64: 1>, scalar_prefetch = 0 : i64, scratch_operands = 0 : i64, tpu.core_type = #tpu.core_type<tc>, window_params = [{transform_indices = @transform_0, window_bounds = array<i64: 32, 2048>}, {pipeline_mode = #tpu.pipeline_mode<synchronous>, transform_indices = @transform_1, window_bounds = array<i64: 2048, 256>}, {transform_indices = @transform_2, window_bounds = array<i64: 32, 256>}]} {
    %c0 = arith.constant 0 : index
    %c0_0 = arith.constant 0 : index
    %0 = vector.load %arg1[%c0, %c0_0] : memref<32x2048xbf16, #tpu.memory_space<vmem>>, vector<32x2048xbf16>
    %c0_1 = arith.constant 0 : index
    %c0_2 = arith.constant 0 : index
    %1 = vector.load %arg2[%c0_1, %c0_2] : memref<2048x256xbf16, #tpu.memory_space<vmem>>, vector<2048x256xbf16>
    %cst = arith.constant dense<0.000000e+00> : vector<32x256xf32>
    %2 = tpu.matmul %0, %1, %cst {dimension_numbers = #tpu.dot_dimension_numbers<[1], [0], [0], [1], [0, 0, 1, 1], [], []>} : vector<32x2048xbf16>, vector<2048x256xbf16>, vector<32x256xf32> -> vector<32x256xf32>
    %cst_3 = arith.constant 0.000000e+00 : f32
    %3 = vector.broadcast %cst_3 : f32 to vector<32x256xf32>
    %4 = arith.cmpf oge, %2, %3 : vector<32x256xf32>
    %cst_4 = arith.constant 2.000000e-01 : f32
    %5 = vector.broadcast %cst_4 : f32 to vector<32x256xf32>
    %6 = arith.mulf %5, %2 : vector<32x256xf32>
    %7 = arith.select %4, %2, %6 : vector<32x256xi1>, vector<32x256xf32>
    %c0_5 = arith.constant 0 : index
    %c0_6 = arith.constant 0 : index
    %8 = vector.load %arg3[%c0_5, %c0_6] : memref<32x256xf32, #tpu.memory_space<vmem>>, vector<32x256xf32>
    tpu.vector_store %arg3[%c0_5, %c0_6], %7 {strides = array<i32>} : memref<32x256xf32, #tpu.memory_space<vmem>>, vector<32x256xf32>,
    return
  }
  func.func @transform_0(%arg0: i32) -> (i32, i32) {
    %c0_i32 = arith.constant 0 : i32
    %c0_i32_0 = arith.constant 0 : i32
    return %arg0, %c0_i32 : i32, i32
  }
  func.func @transform_1(%arg0: i32) -> (i32, i32) {
    %c0_i32 = arith.constant 0 : i32
    %c0_i32_0 = arith.constant 0 : i32
    %c0_i32_1 = arith.constant 0 : i32
    return %c0_i32, %c0_i32_0 : i32, i32
  }
  func.func @transform_2(%arg0: i32) -> (i32, i32) {
    %c0_i32 = arith.constant 0 : i32
    %c0_i32_0 = arith.constant 0 : i32
    return %arg0, %c0_i32 : i32, i32
  }
}

module attributes {stable_mosaic.version = 11 : i64} {
  func.func @_mm_lrelu_kernel(%arg0: i32, %arg1: memref<32x4096xbf16, #tpu.memory_space<vmem>>, %arg2: memref<4096x512xbf16, #tpu.memory_space<vmem>>, %arg3: memref<32x512xf32, #tpu.memory_space<vmem>>) attributes {dimension_semantics = [#tpu.dimension_semantics<parallel>], iteration_bounds = array<i64: 1>, scalar_prefetch = 0 : i64, scratch_operands = 0 : i64, tpu.core_type = #tpu.core_type<tc>, window_params = [{transform_indices = @transform_0, window_bounds = array<i64: 32, 4096>}, {pipeline_mode = #tpu.pipeline_mode<synchronous>, transform_indices = @transform_1, window_bounds = array<i64: 4096, 512>}, {transform_indices = @transform_2, window_bounds = array<i64: 32, 512>}]} {
    %c0 = arith.constant 0 : index
    %c0_0 = arith.constant 0 : index
    %0 = vector.load %arg1[%c0, %c0_0] : memref<32x4096xbf16, #tpu.memory_space<vmem>>, vector<32x4096xbf16>
    %c0_1 = arith.constant 0 : index
    %c0_2 = arith.constant 0 : index
    %1 = vector.load %arg2[%c0_1, %c0_2] : memref<4096x512xbf16, #tpu.memory_space<vmem>>, vector<4096x512xbf16>
    %cst = arith.constant dense<0.000000e+00> : vector<32x512xf32>
    %2 = tpu.matmul %0, %1, %cst {dimension_numbers = #tpu.dot_dimension_numbers<[1], [0], [0], [1], [0, 0, 1, 1], [], []>} : vector<32x4096xbf16>, vector<4096x512xbf16>, vector<32x512xf32> -> vector<32x512xf32>
    %cst_3 = arith.constant 0.000000e+00 : f32
    %3 = vector.broadcast %cst_3 : f32 to vector<32x512xf32>
    %4 = arith.cmpf oge, %2, %3 : vector<32x512xf32>
    %cst_4 = arith.constant 2.000000e-01 : f32
    %5 = vector.broadcast %cst_4 : f32 to vector<32x512xf32>
    %6 = arith.mulf %5, %2 : vector<32x512xf32>
    %7 = arith.select %4, %2, %6 : vector<32x512xi1>, vector<32x512xf32>
    %c0_5 = arith.constant 0 : index
    %c0_6 = arith.constant 0 : index
    %8 = vector.load %arg3[%c0_5, %c0_6] : memref<32x512xf32, #tpu.memory_space<vmem>>, vector<32x512xf32>
    tpu.vector_store %arg3[%c0_5, %c0_6], %7 {strides = array<i32>} : memref<32x512xf32, #tpu.memory_space<vmem>>, vector<32x512xf32>,
    return
  }
  func.func @transform_0(%arg0: i32) -> (i32, i32) {
    %c0_i32 = arith.constant 0 : i32
    %c0_i32_0 = arith.constant 0 : i32
    return %arg0, %c0_i32 : i32, i32
  }
  func.func @transform_1(%arg0: i32) -> (i32, i32) {
    %c0_i32 = arith.constant 0 : i32
    %c0_i32_0 = arith.constant 0 : i32
    %c0_i32_1 = arith.constant 0 : i32
    return %c0_i32, %c0_i32_0 : i32, i32
  }
  func.func @transform_2(%arg0: i32) -> (i32, i32) {
    %c0_i32 = arith.constant 0 : i32
    %c0_i32_0 = arith.constant 0 : i32
    return %arg0, %c0_i32 : i32, i32
  }
}

module attributes {stable_mosaic.version = 11 : i64} {
  func.func @_mm_lrelu_sigmoid_kernel(%arg0: i32, %arg1: memref<16x8192xbf16, #tpu.memory_space<vmem>>, %arg2: memref<8192x128xbf16, #tpu.memory_space<vmem>>, %arg3: memref<16x128xf32, #tpu.memory_space<vmem>>, %arg4: memref<16x128xf32, #tpu.memory_space<vmem>>) attributes {dimension_semantics = [#tpu.dimension_semantics<parallel>], iteration_bounds = array<i64: 1>, scalar_prefetch = 0 : i64, scratch_operands = 0 : i64, tpu.core_type = #tpu.core_type<tc>, window_params = [{transform_indices = @transform_0, window_bounds = array<i64: 16, 8192>}, {pipeline_mode = #tpu.pipeline_mode<synchronous>, transform_indices = @transform_1, window_bounds = array<i64: 8192, 128>}, {transform_indices = @transform_2, window_bounds = array<i64: 16, 128>}, {transform_indices = @transform_3, window_bounds = array<i64: 16, 128>}]} {
    %c0 = arith.constant 0 : index
    %c0_0 = arith.constant 0 : index
    %0 = vector.load %arg1[%c0, %c0_0] : memref<16x8192xbf16, #tpu.memory_space<vmem>>, vector<16x8192xbf16>
    %c0_1 = arith.constant 0 : index
    %c0_2 = arith.constant 0 : index
    %1 = vector.load %arg2[%c0_1, %c0_2] : memref<8192x128xbf16, #tpu.memory_space<vmem>>, vector<8192x128xbf16>
    %cst = arith.constant dense<0.000000e+00> : vector<16x128xf32>
    %2 = tpu.matmul %0, %1, %cst {dimension_numbers = #tpu.dot_dimension_numbers<[1], [0], [0], [1], [0, 0, 1, 1], [], []>} : vector<16x8192xbf16>, vector<8192x128xbf16>, vector<16x128xf32> -> vector<16x128xf32>
    %cst_3 = arith.constant 0.000000e+00 : f32
    %3 = vector.broadcast %cst_3 : f32 to vector<16x128xf32>
    %4 = arith.cmpf oge, %2, %3 : vector<16x128xf32>
    %cst_4 = arith.constant 2.000000e-01 : f32
    %5 = vector.broadcast %cst_4 : f32 to vector<16x128xf32>
    %6 = arith.mulf %5, %2 : vector<16x128xf32>
    %7 = arith.select %4, %2, %6 : vector<16x128xi1>, vector<16x128xf32>
    %c0_5 = arith.constant 0 : index
    %c0_6 = arith.constant 0 : index
    %8 = vector.load %arg3[%c0_5, %c0_6] : memref<16x128xf32, #tpu.memory_space<vmem>>, vector<16x128xf32>
    tpu.vector_store %arg3[%c0_5, %c0_6], %7 {strides = array<i32>} : memref<16x128xf32, #tpu.memory_space<vmem>>, vector<16x128xf32>,
    %9 = arith.negf %7 : vector<16x128xf32>
    %10 = math.exp %9 : vector<16x128xf32>
    %cst_7 = arith.constant 1.000000e+00 : f32
    %11 = vector.broadcast %cst_7 : f32 to vector<16x128xf32>
    %12 = arith.addf %11, %10 : vector<16x128xf32>
    %13 = arith.divf %11, %12 : vector<16x128xf32>
    %c0_8 = arith.constant 0 : index
    %c0_9 = arith.constant 0 : index
    %14 = vector.load %arg4[%c0_8, %c0_9] : memref<16x128xf32, #tpu.memory_space<vmem>>, vector<16x128xf32>
    tpu.vector_store %arg4[%c0_8, %c0_9], %13 {strides = array<i32>} : memref<16x128xf32, #tpu.memory_space<vmem>>, vector<16x128xf32>,
    return
  }
  func.func @transform_0(%arg0: i32) -> (i32, i32) {
    %c0_i32 = arith.constant 0 : i32
    %c0_i32_0 = arith.constant 0 : i32
    return %arg0, %c0_i32 : i32, i32
  }
  func.func @transform_1(%arg0: i32) -> (i32, i32) {
    %c0_i32 = arith.constant 0 : i32
    %c0_i32_0 = arith.constant 0 : i32
    %c0_i32_1 = arith.constant 0 : i32
    return %c0_i32, %c0_i32_0 : i32, i32
  }
  func.func @transform_2(%arg0: i32) -> (i32, i32) {
    %c0_i32 = arith.constant 0 : i32
    %c0_i32_0 = arith.constant 0 : i32
    return %arg0, %c0_i32 : i32, i32
  }
  func.func @transform_3(%arg0: i32) -> (i32, i32) {
    %c0_i32 = arith.constant 0 : i32
    %c0_i32_0 = arith.constant 0 : i32
    return %arg0, %c0_i32 : i32, i32
  }
}

</mosaic_0001>

<bundles_post_ra>
// kernel: discriminator_forward.5
= control target key start
LH: loop header
LB: loop body
LE: loop exit
PB: predicated region body
PF: predicated region fallthrough
CT: control target
= control target key end

     0   :  { %vm268_vm0 = vcmask 523264   ;;  %s1481_s1 = inlined_call_operand.vmem [shape: bf16[64,128], index: 1, kind: input, shape index: {}]   ;;  %s1482_s0 = inlined_call_operand.vmem [shape: bf16[512,64], index: 0, kind: input, shape index: {}]   ;;  %s1483_s2 = inlined_call_operand.vmem [shape: f32[512,128], index: 2, kind: output, shape index: {}]  }
   0x1   :  { %v1098_v0 = vld [vmem:[%s1481_s1] sm:$0xff]   ;;  %v1099_v1 = vld [vmem:[%s1481_s1 + $0x8] sm:$0xff]   ;;  %v1100_v2 = vld [vmem:[%s1481_s1 + $0x10] sm:$0xff]  }
   0x2   :  { %1018 = vmatprep.subr.bf16.mxu0 %v1098_v0  ;;  %1090 = vmatprep.subr.bf16.mxu1 %v1098_v0  ;;  %v1102_v3 = vld [vmem:[%s1482_s0] sm:$0xff]   ;;  %v1101_v5 = vld [vmem:[%s1481_s1 + $0x18] sm:$0xff]   ;;  %v1104_v6 = vld [vmem:[%s1482_s0 + $0x8] sm:$0xff]  }
   0x3   :  { %1019 = vmatpush3.bf16.msra.mxu0 %v1098_v0  ;;  %1094 = vmatpush3.bf16.msra.mxu1 %v1098_v0  ;;  %v1103_v4 = vld [vmem:[%s1482_s0 + $0x80] sm:$0xff]   ;;  %v1105_v7 = vld [vmem:[%s1482_s0 + $0x88] sm:$0xff]   ;;  %v1106_v8 = vld [vmem:[%s1482_s0 + $0x10] sm:$0xff]  }
   0x4   :  { %1020 = vmatprep.subr.bf16.mxu0 %v1099_v1  ;;  %1091 = vmatprep.subr.bf16.mxu1 %v1099_v1  ;;  %v1107_v9 = vld [vmem:[%s1482_s0 + $0x90] sm:$0xff]   ;;  %v1108_v10 = vld [vmem:[%s1482_s0 + $0x18] sm:$0xff]   ;;  %v1110_v12 = vld [vmem:[%s1482_s0 + $0x20] sm:$0xff]  }
   0x5   :  { %1026 = vmatprep.mubr.msk.bf16.mxu0 %vm268_vm0, %v1102_v3  ;;  %1058 = vmatprep.mubr.msk.bf16.mxu1 %vm268_vm0, %v1103_v4  ;;  %v1109_v11 = vld [vmem:[%s1482_s0 + $0x98] sm:$0xff]   ;;  %v1111_v13 = vld [vmem:[%s1482_s0 + $0xa0] sm:$0xff]   ;;  %v1112_v14 = vld [vmem:[%s1482_s0 + $0x28] sm:$0xff]  }
   0x6   :  { %v1113_v15 = vld [vmem:[%s1482_s0 + $0xa8] sm:$0xff]   ;;  %v1114_v16 = vld [vmem:[%s1482_s0 + $0x30] sm:$0xff]   ;;  %v1116_v18 = vld [vmem:[%s1482_s0 + $0x38] sm:$0xff]  }
   0x7   :  { %1021 = vmatpush3.bf16.msra.mxu0 %v1099_v1  ;;  %1095 = vmatpush3.bf16.msra.mxu1 %v1099_v1  ;;  %v1115_v17 = vld [vmem:[%s1482_s0 + $0xb0] sm:$0xff]   ;;  %v1117_v19 = vld [vmem:[%s1482_s0 + $0xb8] sm:$0xff]   ;;  %v1118_v20 = vld [vmem:[%s1482_s0 + $0x40] sm:$0xff]  }
   0x8   :  { %1022 = vmatprep.subr.bf16.mxu0 %v1100_v2  ;;  %1092 = vmatprep.subr.bf16.mxu1 %v1100_v2  ;;  %v1119_v21 = vld [vmem:[%s1482_s0 + $0xc0] sm:$0xff]   ;;  %v1120_v22 = vld [vmem:[%s1482_s0 + $0x48] sm:$0xff]   ;;  %v1122_v24 = vld [vmem:[%s1482_s0 + $0x50] sm:$0xff]  }
   0x9   :  { %v1121_v23 = vld [vmem:[%s1482_s0 + $0xc8] sm:$0xff]   ;;  %v1123_v25 = vld [vmem:[%s1482_s0 + $0xd0] sm:$0xff]   ;;  %v1124_v26 = vld [vmem:[%s1482_s0 + $0x58] sm:$0xff]  }
   0xa   :  { %v1125_v27 = vld [vmem:[%s1482_s0 + $0xd8] sm:$0xff]   ;;  %v1126_v28 = vld [vmem:[%s1482_s0 + $0x60] sm:$0xff]   ;;  %v1128_v30 = vld [vmem:[%s1482_s0 + $0x68] sm:$0xff]  }
   0xb   :  { %1023 = vmatpush3.bf16.msra.mxu0 %v1100_v2  ;;  %1096 = vmatpush3.bf16.msra.mxu1 %v1100_v2  ;;  %v1127_v29 = vld [vmem:[%s1482_s0 + $0xe0] sm:$0xff]   ;;  %v1129_v31 = vld [vmem:[%s1482_s0 + $0xe8] sm:$0xff]   ;;  %v1130_v32 = vld [vmem:[%s1482_s0 + $0x70] sm:$0xff]  }
   0xc   :  { %1024 = vmatprep.subr.bf16.mxu0 %v1101_v5  ;;  %1093 = vmatprep.subr.bf16.mxu1 %v1101_v5  ;;  %v1131_v33 = vld [vmem:[%s1482_s0 + $0xf0] sm:$0xff]   ;;  %v1132_v34 = vld [vmem:[%s1482_s0 + $0x78] sm:$0xff]  }
   0xd   :  { %v1133_v35 = vld [vmem:[%s1482_s0 + $0xf8] sm:$0xff]  }
   0xf   :  { %1025 = vmatpush3.bf16.msra.mxu0 %v1101_v5  ;;  %1097 = vmatpush3.bf16.msra.mxu1 %v1101_v5 }
  0x12   :  { %1027 = vmatmul.mubr.msk.bf16.vlgmr.msra.gmra.mrb[0].mxu0 %vm268_vm0, %v1104_v6  ;;  %1059 = vmatmul.mubr.msk.bf16.vlgmr.msra.gmra.mrb[0].mxu1 %vm268_vm0, %v1105_v7 }
  0x13   :  { %1030 = vmatprep.mubr.msk.bf16.mxu0 %vm268_vm0, %v1106_v8  ;;  %1062 = vmatprep.mubr.msk.bf16.mxu1 %vm268_vm0, %v1107_v9 }
  0x1a   :  { %1031 = vmatmul.mubr.msk.bf16.gmra.mrb[4].mxu0 %vm268_vm0, %v1108_v10  ;;  %1063 = vmatmul.mubr.msk.bf16.gmra.mrb[4].mxu1 %vm268_vm0, %v1109_v11 }
  0x1b   :  { %1034 = vmatprep.mubr.msk.bf16.mxu0 %vm268_vm0, %v1110_v12  ;;  %1066 = vmatprep.mubr.msk.bf16.mxu1 %vm268_vm0, %v1111_v13 }
  0x22   :  { %1035 = vmatmul.mubr.msk.bf16.gmra.mrb[8].mxu0 %vm268_vm0, %v1112_v14  ;;  %1067 = vmatmul.mubr.msk.bf16.gmra.mrb[8].mxu1 %vm268_vm0, %v1113_v15 }
  0x23   :  { %1038 = vmatprep.mubr.msk.bf16.mxu0 %vm268_vm0, %v1114_v16  ;;  %1070 = vmatprep.mubr.msk.bf16.mxu1 %vm268_vm0, %v1115_v17 }
  0x2a   :  { %1039 = vmatmul.mubr.msk.bf16.gmra.mrb[12].mxu0 %vm268_vm0, %v1116_v18  ;;  %1071 = vmatmul.mubr.msk.bf16.gmra.mrb[12].mxu1 %vm268_vm0, %v1117_v19 }
  0x2b   :  { %1042 = vmatprep.mubr.msk.bf16.mxu0 %vm268_vm0, %v1118_v20  ;;  %1074 = vmatprep.mubr.msk.bf16.mxu1 %vm268_vm0, %v1119_v21 }
  0x32   :  { %1043 = vmatmul.mubr.msk.bf16.gmra.mrb[16].mxu0 %vm268_vm0, %v1120_v22  ;;  %1075 = vmatmul.mubr.msk.bf16.gmra.mrb[16].mxu1 %vm268_vm0, %v1121_v23 }
  0x33   :  { %1046 = vmatprep.mubr.msk.bf16.mxu0 %vm268_vm0, %v1122_v24  ;;  %1078 = vmatprep.mubr.msk.bf16.mxu1 %vm268_vm0, %v1123_v25 }
  0x3a   :  { %1047 = vmatmul.mubr.msk.bf16.gmra.mrb[20].mxu0 %vm268_vm0, %v1124_v26  ;;  %1079 = vmatmul.mubr.msk.bf16.gmra.mrb[20].mxu1 %vm268_vm0, %v1125_v27 }
  0x3b   :  { %1050 = vmatprep.mubr.msk.bf16.mxu0 %vm268_vm0, %v1126_v28  ;;  %1082 = vmatprep.mubr.msk.bf16.mxu1 %vm268_vm0, %v1127_v29 }
  0x42   :  { %1051 = vmatmul.mubr.msk.bf16.gmra.mrb[24].mxu0 %vm268_vm0, %v1128_v30  ;;  %1083 = vmatmul.mubr.msk.bf16.gmra.mrb[24].mxu1 %vm268_vm0, %v1129_v31 }
  0x43   :  { %1054 = vmatprep.mubr.msk.bf16.mxu0 %vm268_vm0, %v1130_v32  ;;  %1086 = vmatprep.mubr.msk.bf16.mxu1 %vm268_vm0, %v1131_v33 }
  0x4a   :  { %1055 = vmatmul.mubr.msk.bf16.gmra.mrb[28].mxu0 %vm268_vm0, %v1132_v34  ;;  %1087 = vmatmul.mubr.msk.bf16.gmra.mrb[28].mxu1 %vm268_vm0, %v1133_v35 }
  0xe5   :  { %v1028_v36 = vpop.f32.mrb[0].mxu0  ;;  %v1060_v37 = vpop.f32.mrb[0].mxu1 }
  0xe6   :  { %vm656_vm1 = vcmp.ge.f32.partialorder %v1028_v36, 0.0  ;;  %v720_v38 = vmul.f32 0.2, %v1028_v36  ;;  %vm688_vm2 = vcmp.ge.f32.partialorder %v1060_v37, 0.0  ;;  %v752_v39 = vmul.f32 0.2, %v1060_v37 }
  0xe7   :  { %v399_v40 = vpop.f32.mrb[1].mxu0  ;;  %v527_v41 = vpop.f32.mrb[1].mxu1 }
  0xe8   :  { %v784_v42 = vsel %vm656_vm1, %v1028_v36, %v720_v38  ;;  %v816_v43 = vsel %vm688_vm2, %v1060_v37, %v752_v39  ;;  %vm654_vm3 = vcmp.ge.f32.partialorder %v399_v40, 0.0  ;;  %v718_v44 = vmul.f32 0.2, %v399_v40  ;;  %v1029_v45 = vpop.f32.mrb[2].mxu0  ;;  %v1061_v46 = vpop.f32.mrb[2].mxu1 }
  0xe9   :  { %848 = vst [vmem:[%s1483_s2 + $0x10] sm:$0xff] %v784_v42  ;;  %880 = vst [vmem:[%s1483_s2 + $0x110] sm:$0xff] %v816_v43  ;;  %vm686_vm4 = vcmp.ge.f32.partialorder %v527_v41, 0.0  ;;  %v750_v47 = vmul.f32 0.2, %v527_v41  ;;  %vm657_vm5 = vcmp.ge.f32.partialorder %v1029_v45, 0.0 }
  0xea   :  { %v721_v48 = vmul.f32 0.2, %v1029_v45  ;;  %v782_v49 = vsel %vm654_vm3, %v399_v40, %v718_v44  ;;  %vm689_vm6 = vcmp.ge.f32.partialorder %v1061_v46, 0.0  ;;  %v753_v50 = vmul.f32 0.2, %v1061_v46  ;;  %v402_v51 = vpop.f32.mrb[3].mxu0 }
  0xeb   :  { %v530_v52 = vpop.f32.mrb[3].mxu1  ;;  %846 = vst [vmem:[%s1483_s2] sm:$0xff] %v782_v49  ;;  %v814_v53 = vsel %vm686_vm4, %v527_v41, %v750_v47  ;;  %vm655_vm7 = vcmp.ge.f32.partialorder %v402_v51, 0.0  ;;  %v719_v55 = vmul.f32 0.2, %v402_v51 }
  0xec   :  { %v785_v54 = vsel %vm657_vm5, %v1029_v45, %v721_v48  ;;  %878 = vst [vmem:[%s1483_s2 + $0x100] sm:$0xff] %v814_v53  ;;  %v817_v56 = vsel %vm689_vm6, %v1061_v46, %v753_v50  ;;  %vm687_vm8 = vcmp.ge.f32.partialorder %v530_v52, 0.0  ;;  %v751_v57 = vmul.f32 0.2, %v530_v52 }
  0xed   :  { %849 = vst [vmem:[%s1483_s2 + $0x18] sm:$0xff] %v785_v54  ;;  %881 = vst [vmem:[%s1483_s2 + $0x118] sm:$0xff] %v817_v56  ;;  %v783_v58 = vsel %vm655_vm7, %v402_v51, %v719_v55  ;;  %v1032_v59 = vpop.f32.mrb[4].mxu0  ;;  %v1064_v60 = vpop.f32.mrb[4].mxu1 }
  0xee   :  { %847 = vst [vmem:[%s1483_s2 + $0x8] sm:$0xff] %v783_v58  ;;  %v815_v61 = vsel %vm687_vm8, %v530_v52, %v751_v57  ;;  %vm660_vm9 = vcmp.ge.f32.partialorder %v1032_v59, 0.0  ;;  %v724_v62 = vmul.f32 0.2, %v1032_v59  ;;  %vm692_vm10 = vcmp.ge.f32.partialorder %v1064_v60, 0.0  ;;  %v415_v63 = vpop.f32.mrb[5].mxu0 }
  0xef   :  { %v543_v0 = vpop.f32.mrb[5].mxu1  ;;  %879 = vst [vmem:[%s1483_s2 + $0x108] sm:$0xff] %v815_v61  ;;  %v756_v1 = vmul.f32 0.2, %v1064_v60  ;;  %vm658_vm11 = vcmp.ge.f32.partialorder %v415_v63, 0.0  ;;  %v1033_v5 = vpop.f32.mrb[6].mxu0 }
  0xf0   :  { %v722_v2 = vmul.f32 0.2, %v415_v63  ;;  %vm690_vm12 = vcmp.ge.f32.partialorder %v543_v0, 0.0  ;;  %v788_v3 = vsel %vm660_vm9, %v1032_v59, %v724_v62  ;;  %v754_v4 = vmul.f32 0.2, %v543_v0  ;;  %v1065_v6 = vpop.f32.mrb[6].mxu1 }
  0xf1   :  { %852 = vst [vmem:[%s1483_s2 + $0x30] sm:$0xff] %v788_v3  ;;  %v820_v7 = vsel %vm692_vm10, %v1064_v60, %v756_v1  ;;  %vm661_vm13 = vcmp.ge.f32.partialorder %v1033_v5, 0.0  ;;  %v725_v9 = vmul.f32 0.2, %v1033_v5  ;;  %v418_v10 = vpop.f32.mrb[7].mxu0  ;;  %v546_v11 = vpop.f32.mrb[7].mxu1 }
  0xf2   :  { %v786_v8 = vsel %vm658_vm11, %v415_v63, %v722_v2  ;;  %884 = vst [vmem:[%s1483_s2 + $0x130] sm:$0xff] %v820_v7  ;;  %v818_v12 = vsel %vm690_vm12, %v543_v0, %v754_v4  ;;  %vm693_vm14 = vcmp.ge.f32.partialorder %v1065_v6, 0.0  ;;  %v757_v13 = vmul.f32 0.2, %v1065_v6 }
  0xf3   :  { %850 = vst [vmem:[%s1483_s2 + $0x20] sm:$0xff] %v786_v8  ;;  %vm659_vm15 = vcmp.ge.f32.partialorder %v418_v10, 0.0  ;;  %882 = vst [vmem:[%s1483_s2 + $0x120] sm:$0xff] %v818_v12  ;;  %v789_v14 = vsel %vm661_vm13, %v1033_v5, %v725_v9  ;;  %v723_v15 = vmul.f32 0.2, %v418_v10  ;;  %vm691_vm0 = vcmp.ge.f32.partialorder %v546_v11, 0.0 }
  0xf4   :  { %v755_v16 = vmul.f32 0.2, %v546_v11  ;;  %853 = vst [vmem:[%s1483_s2 + $0x38] sm:$0xff] %v789_v14  ;;  %v821_v17 = vsel %vm693_vm14, %v1065_v6, %v757_v13 }
  0xf5   :  { %885 = vst [vmem:[%s1483_s2 + $0x138] sm:$0xff] %v821_v17  ;;  %v787_v18 = vsel %vm659_vm15, %v418_v10, %v723_v15  ;;  %v1036_v20 = vpop.f32.mrb[8].mxu0  ;;  %v1068_v21 = vpop.f32.mrb[8].mxu1 }
  0xf6   :  { %v819_v19 = vsel %vm691_vm0, %v546_v11, %v755_v16  ;;  %851 = vst [vmem:[%s1483_s2 + $0x28] sm:$0xff] %v787_v18  ;;  %vm664_vm1 = vcmp.ge.f32.partialorder %v1036_v20, 0.0  ;;  %v728_v22 = vmul.f32 0.2, %v1036_v20  ;;  %vm696_vm2 = vcmp.ge.f32.partialorder %v1068_v21, 0.0  ;;  %v431_v24 = vpop.f32.mrb[9].mxu0 }
  0xf7   :  { %883 = vst [vmem:[%s1483_s2 + $0x128] sm:$0xff] %v819_v19  ;;  %v760_v23 = vmul.f32 0.2, %v1068_v21  ;;  %v559_v25 = vpop.f32.mrb[9].mxu1  ;;  %vm662_vm3 = vcmp.ge.f32.partialorder %v431_v24, 0.0  ;;  %v1037_v29 = vpop.f32.mrb[10].mxu0 }
  0xf8   :  { %v792_v26 = vsel %vm664_vm1, %v1036_v20, %v728_v22  ;;  %v726_v28 = vmul.f32 0.2, %v431_v24  ;;  %v1069_v30 = vpop.f32.mrb[10].mxu1  ;;  %vm694_vm4 = vcmp.ge.f32.partialorder %v559_v25, 0.0  ;;  %v758_v31 = vmul.f32 0.2, %v559_v25 }
  0xf9   :  { %v824_v27 = vsel %vm696_vm2, %v1068_v21, %v760_v23  ;;  %856 = vst [vmem:[%s1483_s2 + $0x50] sm:$0xff] %v792_v26  ;;  %vm665_vm5 = vcmp.ge.f32.partialorder %v1037_v29, 0.0  ;;  %v729_v32 = vmul.f32 0.2, %v1037_v29  ;;  %vm697_vm6 = vcmp.ge.f32.partialorder %v1069_v30, 0.0  ;;  %v434_v35 = vpop.f32.mrb[11].mxu0 }
  0xfa   :  { %888 = vst [vmem:[%s1483_s2 + $0x150] sm:$0xff] %v824_v27  ;;  %v790_v33 = vsel %vm662_vm3, %v431_v24, %v726_v28  ;;  %v761_v34 = vmul.f32 0.2, %v1069_v30  ;;  %v562_v36 = vpop.f32.mrb[11].mxu1  ;;  %v822_v37 = vsel %vm694_vm4, %v559_v25, %v758_v31  ;;  %vm663_vm7 = vcmp.ge.f32.partialorder %v434_v35, 0.0 }
  0xfb   :  { %854 = vst [vmem:[%s1483_s2 + $0x40] sm:$0xff] %v790_v33  ;;  %v793_v38 = vsel %vm665_vm5, %v1037_v29, %v729_v32  ;;  %v727_v39 = vmul.f32 0.2, %v434_v35  ;;  %886 = vst [vmem:[%s1483_s2 + $0x140] sm:$0xff] %v822_v37  ;;  %vm695_vm8 = vcmp.ge.f32.partialorder %v562_v36, 0.0 }
  0xfc   :  { %857 = vst [vmem:[%s1483_s2 + $0x58] sm:$0xff] %v793_v38  ;;  %v825_v40 = vsel %vm697_vm6, %v1069_v30, %v761_v34  ;;  %v759_v41 = vmul.f32 0.2, %v562_v36 }
  0xfd   :  { %889 = vst [vmem:[%s1483_s2 + $0x158] sm:$0xff] %v825_v40  ;;  %v791_v42 = vsel %vm663_vm7, %v434_v35, %v727_v39  ;;  %v1040_v43 = vpop.f32.mrb[12].mxu0  ;;  %v1072_v44 = vpop.f32.mrb[12].mxu1 }
  0xfe   :  { %855 = vst [vmem:[%s1483_s2 + $0x48] sm:$0xff] %v791_v42  ;;  %v823_v45 = vsel %vm695_vm8, %v562_v36, %v759_v41  ;;  %vm668_vm9 = vcmp.ge.f32.partialorder %v1040_v43, 0.0  ;;  %v732_v46 = vmul.f32 0.2, %v1040_v43  ;;  %vm700_vm10 = vcmp.ge.f32.partialorder %v1072_v44, 0.0  ;;  %v447_v47 = vpop.f32.mrb[13].mxu0 }
  0xff   :  { %v575_v48 = vpop.f32.mrb[13].mxu1  ;;  %887 = vst [vmem:[%s1483_s2 + $0x148] sm:$0xff] %v823_v45  ;;  %v764_v49 = vmul.f32 0.2, %v1072_v44  ;;  %vm666_vm11 = vcmp.ge.f32.partialorder %v447_v47, 0.0  ;;  %v1041_v53 = vpop.f32.mrb[14].mxu0 }
 0x100   :  { %v730_v50 = vmul.f32 0.2, %v447_v47  ;;  %vm698_vm12 = vcmp.ge.f32.partialorder %v575_v48, 0.0  ;;  %v796_v51 = vsel %vm668_vm9, %v1040_v43, %v732_v46  ;;  %v762_v52 = vmul.f32 0.2, %v575_v48  ;;  %v1073_v54 = vpop.f32.mrb[14].mxu1 }
 0x101   :  { %860 = vst [vmem:[%s1483_s2 + $0x70] sm:$0xff] %v796_v51  ;;  %v828_v55 = vsel %vm700_vm10, %v1072_v44, %v764_v49  ;;  %vm669_vm13 = vcmp.ge.f32.partialorder %v1041_v53, 0.0  ;;  %v733_v57 = vmul.f32 0.2, %v1041_v53  ;;  %v450_v58 = vpop.f32.mrb[15].mxu0  ;;  %v578_v59 = vpop.f32.mrb[15].mxu1 }
 0x102   :  { %v794_v56 = vsel %vm666_vm11, %v447_v47, %v730_v50  ;;  %892 = vst [vmem:[%s1483_s2 + $0x170] sm:$0xff] %v828_v55  ;;  %v826_v60 = vsel %vm698_vm12, %v575_v48, %v762_v52  ;;  %vm701_vm14 = vcmp.ge.f32.partialorder %v1073_v54, 0.0  ;;  %v765_v61 = vmul.f32 0.2, %v1073_v54 }
 0x103   :  { %858 = vst [vmem:[%s1483_s2 + $0x60] sm:$0xff] %v794_v56  ;;  %vm667_vm15 = vcmp.ge.f32.partialorder %v450_v58, 0.0  ;;  %890 = vst [vmem:[%s1483_s2 + $0x160] sm:$0xff] %v826_v60  ;;  %v797_v62 = vsel %vm669_vm13, %v1041_v53, %v733_v57  ;;  %v731_v63 = vmul.f32 0.2, %v450_v58  ;;  %vm699_vm0 = vcmp.ge.f32.partialorder %v578_v59, 0.0 }
 0x104   :  { %v763_v0 = vmul.f32 0.2, %v578_v59  ;;  %861 = vst [vmem:[%s1483_s2 + $0x78] sm:$0xff] %v797_v62  ;;  %v829_v1 = vsel %vm701_vm14, %v1073_v54, %v765_v61 }
 0x105   :  { %893 = vst [vmem:[%s1483_s2 + $0x178] sm:$0xff] %v829_v1  ;;  %v795_v2 = vsel %vm667_vm15, %v450_v58, %v731_v63  ;;  %v1044_v4 = vpop.f32.mrb[16].mxu0  ;;  %v1076_v5 = vpop.f32.mrb[16].mxu1 }
 0x106   :  { %v827_v3 = vsel %vm699_vm0, %v578_v59, %v763_v0  ;;  %859 = vst [vmem:[%s1483_s2 + $0x68] sm:$0xff] %v795_v2  ;;  %vm672_vm1 = vcmp.ge.f32.partialorder %v1044_v4, 0.0  ;;  %v736_v6 = vmul.f32 0.2, %v1044_v4  ;;  %vm704_vm2 = vcmp.ge.f32.partialorder %v1076_v5, 0.0  ;;  %v463_v8 = vpop.f32.mrb[17].mxu0 }
 0x107   :  { %891 = vst [vmem:[%s1483_s2 + $0x168] sm:$0xff] %v827_v3  ;;  %v768_v7 = vmul.f32 0.2, %v1076_v5  ;;  %v591_v9 = vpop.f32.mrb[17].mxu1  ;;  %vm670_vm3 = vcmp.ge.f32.partialorder %v463_v8, 0.0  ;;  %v1045_v13 = vpop.f32.mrb[18].mxu0 }
 0x108   :  { %v800_v10 = vsel %vm672_vm1, %v1044_v4, %v736_v6  ;;  %v734_v12 = vmul.f32 0.2, %v463_v8  ;;  %v1077_v14 = vpop.f32.mrb[18].mxu1  ;;  %vm702_vm4 = vcmp.ge.f32.partialorder %v591_v9, 0.0  ;;  %v766_v15 = vmul.f32 0.2, %v591_v9 }
 0x109   :  { %v832_v11 = vsel %vm704_vm2, %v1076_v5, %v768_v7  ;;  %864 = vst [vmem:[%s1483_s2 + $0x90] sm:$0xff] %v800_v10  ;;  %vm673_vm5 = vcmp.ge.f32.partialorder %v1045_v13, 0.0  ;;  %v737_v16 = vmul.f32 0.2, %v1045_v13  ;;  %vm705_vm6 = vcmp.ge.f32.partialorder %v1077_v14, 0.0  ;;  %v466_v19 = vpop.f32.mrb[19].mxu0 }
 0x10a   :  { %896 = vst [vmem:[%s1483_s2 + $0x190] sm:$0xff] %v832_v11  ;;  %v798_v17 = vsel %vm670_vm3, %v463_v8, %v734_v12  ;;  %v769_v18 = vmul.f32 0.2, %v1077_v14  ;;  %v594_v20 = vpop.f32.mrb[19].mxu1  ;;  %v830_v21 = vsel %vm702_vm4, %v591_v9, %v766_v15  ;;  %vm671_vm7 = vcmp.ge.f32.partialorder %v466_v19, 0.0 }
 0x10b   :  { %862 = vst [vmem:[%s1483_s2 + $0x80] sm:$0xff] %v798_v17  ;;  %v801_v22 = vsel %vm673_vm5, %v1045_v13, %v737_v16  ;;  %v735_v23 = vmul.f32 0.2, %v466_v19  ;;  %894 = vst [vmem:[%s1483_s2 + $0x180] sm:$0xff] %v830_v21  ;;  %vm703_vm8 = vcmp.ge.f32.partialorder %v594_v20, 0.0 }
 0x10c   :  { %865 = vst [vmem:[%s1483_s2 + $0x98] sm:$0xff] %v801_v22  ;;  %v833_v24 = vsel %vm705_vm6, %v1077_v14, %v769_v18  ;;  %v767_v25 = vmul.f32 0.2, %v594_v20 }
 0x10d   :  { %897 = vst [vmem:[%s1483_s2 + $0x198] sm:$0xff] %v833_v24  ;;  %v799_v26 = vsel %vm671_vm7, %v466_v19, %v735_v23  ;;  %v1048_v27 = vpop.f32.mrb[20].mxu0  ;;  %v1080_v28 = vpop.f32.mrb[20].mxu1 }
 0x10e   :  { %863 = vst [vmem:[%s1483_s2 + $0x88] sm:$0xff] %v799_v26  ;;  %v831_v29 = vsel %vm703_vm8, %v594_v20, %v767_v25  ;;  %vm676_vm9 = vcmp.ge.f32.partialorder %v1048_v27, 0.0  ;;  %v740_v30 = vmul.f32 0.2, %v1048_v27  ;;  %vm708_vm10 = vcmp.ge.f32.partialorder %v1080_v28, 0.0  ;;  %v479_v31 = vpop.f32.mrb[21].mxu0 }
 0x10f   :  { %v607_v32 = vpop.f32.mrb[21].mxu1  ;;  %895 = vst [vmem:[%s1483_s2 + $0x188] sm:$0xff] %v831_v29  ;;  %v772_v33 = vmul.f32 0.2, %v1080_v28  ;;  %vm674_vm11 = vcmp.ge.f32.partialorder %v479_v31, 0.0  ;;  %v1049_v37 = vpop.f32.mrb[22].mxu0 }
 0x110   :  { %v738_v34 = vmul.f32 0.2, %v479_v31  ;;  %vm706_vm12 = vcmp.ge.f32.partialorder %v607_v32, 0.0  ;;  %v804_v35 = vsel %vm676_vm9, %v1048_v27, %v740_v30  ;;  %v770_v36 = vmul.f32 0.2, %v607_v32  ;;  %v1081_v38 = vpop.f32.mrb[22].mxu1 }
 0x111   :  { %868 = vst [vmem:[%s1483_s2 + $0xb0] sm:$0xff] %v804_v35  ;;  %v836_v39 = vsel %vm708_vm10, %v1080_v28, %v772_v33  ;;  %vm677_vm13 = vcmp.ge.f32.partialorder %v1049_v37, 0.0  ;;  %v741_v41 = vmul.f32 0.2, %v1049_v37  ;;  %v482_v42 = vpop.f32.mrb[23].mxu0  ;;  %v610_v43 = vpop.f32.mrb[23].mxu1 }
 0x112   :  { %v802_v40 = vsel %vm674_vm11, %v479_v31, %v738_v34  ;;  %900 = vst [vmem:[%s1483_s2 + $0x1b0] sm:$0xff] %v836_v39  ;;  %v834_v44 = vsel %vm706_vm12, %v607_v32, %v770_v36  ;;  %vm709_vm14 = vcmp.ge.f32.partialorder %v1081_v38, 0.0  ;;  %v773_v45 = vmul.f32 0.2, %v1081_v38 }
 0x113   :  { %866 = vst [vmem:[%s1483_s2 + $0xa0] sm:$0xff] %v802_v40  ;;  %vm675_vm15 = vcmp.ge.f32.partialorder %v482_v42, 0.0  ;;  %898 = vst [vmem:[%s1483_s2 + $0x1a0] sm:$0xff] %v834_v44  ;;  %v805_v46 = vsel %vm677_vm13, %v1049_v37, %v741_v41  ;;  %v739_v47 = vmul.f32 0.2, %v482_v42  ;;  %vm707_vm0 = vcmp.ge.f32.partialorder %v610_v43, 0.0 }
 0x114   :  { %v771_v48 = vmul.f32 0.2, %v610_v43  ;;  %869 = vst [vmem:[%s1483_s2 + $0xb8] sm:$0xff] %v805_v46  ;;  %v837_v49 = vsel %vm709_vm14, %v1081_v38, %v773_v45 }
 0x115   :  { %901 = vst [vmem:[%s1483_s2 + $0x1b8] sm:$0xff] %v837_v49  ;;  %v803_v50 = vsel %vm675_vm15, %v482_v42, %v739_v47  ;;  %v1052_v52 = vpop.f32.mrb[24].mxu0  ;;  %v1084_v53 = vpop.f32.mrb[24].mxu1 }
 0x116   :  { %v835_v51 = vsel %vm707_vm0, %v610_v43, %v771_v48  ;;  %867 = vst [vmem:[%s1483_s2 + $0xa8] sm:$0xff] %v803_v50  ;;  %vm680_vm1 = vcmp.ge.f32.partialorder %v1052_v52, 0.0  ;;  %v744_v54 = vmul.f32 0.2, %v1052_v52  ;;  %vm712_vm2 = vcmp.ge.f32.partialorder %v1084_v53, 0.0  ;;  %v495_v56 = vpop.f32.mrb[25].mxu0 }
 0x117   :  { %899 = vst [vmem:[%s1483_s2 + $0x1a8] sm:$0xff] %v835_v51  ;;  %v776_v55 = vmul.f32 0.2, %v1084_v53  ;;  %v623_v57 = vpop.f32.mrb[25].mxu1  ;;  %vm678_vm3 = vcmp.ge.f32.partialorder %v495_v56, 0.0  ;;  %v1053_v61 = vpop.f32.mrb[26].mxu0 }
 0x118   :  { %v808_v58 = vsel %vm680_vm1, %v1052_v52, %v744_v54  ;;  %v742_v60 = vmul.f32 0.2, %v495_v56  ;;  %v1085_v62 = vpop.f32.mrb[26].mxu1  ;;  %vm710_vm4 = vcmp.ge.f32.partialorder %v623_v57, 0.0  ;;  %v774_v63 = vmul.f32 0.2, %v623_v57 }
 0x119   :  { %v840_v59 = vsel %vm712_vm2, %v1084_v53, %v776_v55  ;;  %872 = vst [vmem:[%s1483_s2 + $0xd0] sm:$0xff] %v808_v58  ;;  %vm681_vm5 = vcmp.ge.f32.partialorder %v1053_v61, 0.0  ;;  %v745_v0 = vmul.f32 0.2, %v1053_v61  ;;  %vm713_vm6 = vcmp.ge.f32.partialorder %v1085_v62, 0.0  ;;  %v498_v3 = vpop.f32.mrb[27].mxu0 }
 0x11a   :  { %904 = vst [vmem:[%s1483_s2 + $0x1d0] sm:$0xff] %v840_v59  ;;  %v806_v1 = vsel %vm678_vm3, %v495_v56, %v742_v60  ;;  %v777_v2 = vmul.f32 0.2, %v1085_v62  ;;  %v626_v4 = vpop.f32.mrb[27].mxu1  ;;  %v838_v5 = vsel %vm710_vm4, %v623_v57, %v774_v63  ;;  %vm679_vm7 = vcmp.ge.f32.partialorder %v498_v3, 0.0 }
 0x11b   :  { %870 = vst [vmem:[%s1483_s2 + $0xc0] sm:$0xff] %v806_v1  ;;  %v809_v6 = vsel %vm681_vm5, %v1053_v61, %v745_v0  ;;  %v743_v7 = vmul.f32 0.2, %v498_v3  ;;  %902 = vst [vmem:[%s1483_s2 + $0x1c0] sm:$0xff] %v838_v5  ;;  %vm711_vm8 = vcmp.ge.f32.partialorder %v626_v4, 0.0 }
 0x11c   :  { %873 = vst [vmem:[%s1483_s2 + $0xd8] sm:$0xff] %v809_v6  ;;  %v841_v8 = vsel %vm713_vm6, %v1085_v62, %v777_v2  ;;  %v775_v9 = vmul.f32 0.2, %v626_v4 }
 0x11d   :  { %905 = vst [vmem:[%s1483_s2 + $0x1d8] sm:$0xff] %v841_v8  ;;  %v807_v10 = vsel %vm679_vm7, %v498_v3, %v743_v7  ;;  %v1056_v11 = vpop.f32.mrb[28].mxu0  ;;  %v1088_v12 = vpop.f32.mrb[28].mxu1 }
 0x11e   :  { %871 = vst [vmem:[%s1483_s2 + $0xc8] sm:$0xff] %v807_v10  ;;  %v839_v13 = vsel %vm711_vm8, %v626_v4, %v775_v9  ;;  %vm684_vm9 = vcmp.ge.f32.partialorder %v1056_v11, 0.0  ;;  %v748_v14 = vmul.f32 0.2, %v1056_v11  ;;  %vm716_vm10 = vcmp.ge.f32.partialorder %v1088_v12, 0.0  ;;  %v511_v15 = vpop.f32.mrb[29].mxu0 }
 0x11f   :  { %v639_v16 = vpop.f32.mrb[29].mxu1  ;;  %903 = vst [vmem:[%s1483_s2 + $0x1c8] sm:$0xff] %v839_v13  ;;  %v780_v17 = vmul.f32 0.2, %v1088_v12  ;;  %vm682_vm11 = vcmp.ge.f32.partialorder %v511_v15, 0.0  ;;  %v1057_v21 = vpop.f32.mrb[30].mxu0 }
 0x120   :  { %v746_v18 = vmul.f32 0.2, %v511_v15  ;;  %vm714_vm12 = vcmp.ge.f32.partialorder %v639_v16, 0.0  ;;  %v812_v19 = vsel %vm684_vm9, %v1056_v11, %v748_v14  ;;  %v778_v20 = vmul.f32 0.2, %v639_v16  ;;  %v1089_v22 = vpop.f32.mrb[30].mxu1 }
 0x121   :  { %876 = vst [vmem:[%s1483_s2 + $0xf0] sm:$0xff] %v812_v19  ;;  %v844_v23 = vsel %vm716_vm10, %v1088_v12, %v780_v17  ;;  %vm685_vm13 = vcmp.ge.f32.partialorder %v1057_v21, 0.0  ;;  %v749_v25 = vmul.f32 0.2, %v1057_v21  ;;  %v514_v26 = vpop.f32.mrb[31].mxu0  ;;  %v642_v27 = vpop.f32.mrb[31].mxu1 }
 0x122   :  { %v810_v24 = vsel %vm682_vm11, %v511_v15, %v746_v18  ;;  %908 = vst [vmem:[%s1483_s2 + $0x1f0] sm:$0xff] %v844_v23  ;;  %v842_v28 = vsel %vm714_vm12, %v639_v16, %v778_v20  ;;  %vm717_vm14 = vcmp.ge.f32.partialorder %v1089_v22, 0.0  ;;  %v781_v29 = vmul.f32 0.2, %v1089_v22 }
 0x123   :  { %874 = vst [vmem:[%s1483_s2 + $0xe0] sm:$0xff] %v810_v24  ;;  %vm683_vm15 = vcmp.ge.f32.partialorder %v514_v26, 0.0  ;;  %906 = vst [vmem:[%s1483_s2 + $0x1e0] sm:$0xff] %v842_v28  ;;  %v813_v30 = vsel %vm685_vm13, %v1057_v21, %v749_v25  ;;  %v747_v31 = vmul.f32 0.2, %v514_v26  ;;  %vm715_vm0 = vcmp.ge.f32.partialorder %v642_v27, 0.0 }
 0x124   :  { %v779_v32 = vmul.f32 0.2, %v642_v27  ;;  %877 = vst [vmem:[%s1483_s2 + $0xf8] sm:$0xff] %v813_v30  ;;  %v845_v33 = vsel %vm717_vm14, %v1089_v22, %v781_v29 }
 0x125   :  { %909 = vst [vmem:[%s1483_s2 + $0x1f8] sm:$0xff] %v845_v33  ;;  %v811_v34 = vsel %vm683_vm15, %v514_v26, %v747_v31 }
 0x126   :  { %v843_v35 = vsel %vm715_vm0, %v642_v27, %v779_v32  ;;  %875 = vst [vmem:[%s1483_s2 + $0xe8] sm:$0xff] %v811_v34 }
 0x127   :  { %907 = vst [vmem:[%s1483_s2 + $0x1e8] sm:$0xff] %v843_v35 }

// kernel: discriminator_forward.6
= control target key start
LH: loop header
LB: loop body
LE: loop exit
PB: predicated region body
PF: predicated region fallthrough
CT: control target
= control target key end

     0   :  { %s2307_s1 = inlined_call_operand.vmem [shape: bf16[1024,128], index: 1, kind: input, shape index: {}]   ;;  %s2308_s0 = inlined_call_operand.vmem [shape: bf16[128,1024], index: 0, kind: input, shape index: {}]   ;;  %s2309_s2 = inlined_call_operand.vmem [shape: f32[128,128], index: 2, kind: output, shape index: {}]  }
   0x1   :  { %v1748_v0 = vld [vmem:[%s2307_s1 + $0x40] sm:$0xff]   ;;  %v1752_v4 = vld [vmem:[%s2307_s1 + $0x48] sm:$0xff]   ;;  %v1756_v8 = vld [vmem:[%s2307_s1 + $0x50] sm:$0xff]  }
   0x2   :  { %v1749_v1 = vld [vmem:[%s2307_s1 + $0xc0] sm:$0xff]   ;;  %1492 = vmatprep.subr.bf16.mxu0 %v1748_v0  ;;  %v1753_v5 = vld [vmem:[%s2307_s1 + $0xc8] sm:$0xff]   ;;  %v1757_v9 = vld [vmem:[%s2307_s1 + $0xd0] sm:$0xff]  }
   0x3   :  { %v1750_v2 = vld [vmem:[%s2307_s1] sm:$0xff]   ;;  %1556 = vmatprep.subr.bf16.mxu1 %v1749_v1  ;;  %v1754_v6 = vld [vmem:[%s2307_s1 + $0x8] sm:$0xff]   ;;  %v1758_v10 = vld [vmem:[%s2307_s1 + $0x10] sm:$0xff]  }
   0x4   :  { %v1751_v3 = vld [vmem:[%s2307_s1 + $0x80] sm:$0xff]   ;;  %1493 = vmatpush3.bf16.msra.mxu0 %v1750_v2  ;;  %v1755_v7 = vld [vmem:[%s2307_s1 + $0x88] sm:$0xff]   ;;  %v1759_v11 = vld [vmem:[%s2307_s1 + $0x90] sm:$0xff]  }
   0x5   :  { %1557 = vmatpush3.bf16.msra.mxu1 %v1751_v3  ;;  %1494 = vmatprep.subr.bf16.mxu0 %v1752_v4  ;;  %v1760_v12 = vld [vmem:[%s2307_s1 + $0x58] sm:$0xff]   ;;  %v1764_v16 = vld [vmem:[%s2307_s1 + $0x60] sm:$0xff]   ;;  %v1768_v20 = vld [vmem:[%s2307_s1 + $0x68] sm:$0xff]  }
   0x6   :  { %1558 = vmatprep.subr.bf16.mxu1 %v1753_v5  ;;  %v1761_v13 = vld [vmem:[%s2307_s1 + $0xd8] sm:$0xff]   ;;  %v1765_v17 = vld [vmem:[%s2307_s1 + $0xe0] sm:$0xff]   ;;  %v1769_v21 = vld [vmem:[%s2307_s1 + $0xe8] sm:$0xff]  }
   0x7   :  { %v1762_v14 = vld [vmem:[%s2307_s1 + $0x18] sm:$0xff]   ;;  %v1766_v18 = vld [vmem:[%s2307_s1 + $0x20] sm:$0xff]   ;;  %v1770_v22 = vld [vmem:[%s2307_s1 + $0x28] sm:$0xff]  }
   0x8   :  { %1495 = vmatpush3.bf16.msra.mxu0 %v1754_v6  ;;  %v1763_v15 = vld [vmem:[%s2307_s1 + $0x98] sm:$0xff]   ;;  %v1767_v19 = vld [vmem:[%s2307_s1 + $0xa0] sm:$0xff]   ;;  %v1771_v23 = vld [vmem:[%s2307_s1 + $0xa8] sm:$0xff]  }
   0x9   :  { %1559 = vmatpush3.bf16.msra.mxu1 %v1755_v7  ;;  %1496 = vmatprep.subr.bf16.mxu0 %v1756_v8  ;;  %v1772_v24 = vld [vmem:[%s2307_s1 + $0x70] sm:$0xff]   ;;  %v1776_v28 = vld [vmem:[%s2307_s1 + $0x78] sm:$0xff]   ;;  %v12_v32 = vld [vmem:[%s2308_s0] sm:$0xff] }
   0xa   :  { %1560 = vmatprep.subr.bf16.mxu1 %v1757_v9  ;;  %v1773_v25 = vld [vmem:[%s2307_s1 + $0xf0] sm:$0xff]   ;;  %v1777_v29 = vld [vmem:[%s2307_s1 + $0xf8] sm:$0xff]   ;;  %v16_v33 = vld [vmem:[%s2308_s0 + $0x20] sm:$0xff] }
   0xb   :  { %v1774_v26 = vld [vmem:[%s2307_s1 + $0x30] sm:$0xff]   ;;  %v1778_v30 = vld [vmem:[%s2307_s1 + $0x38] sm:$0xff]   ;;  %v13_v34 = vld [vmem:[%s2308_s0 + $0x8] sm:$0xff]  ;;  %v1364_v35 = vcombine.low %v12_v32, %v16_v33  ;;  %v1365_v36 = vcombine.high %v12_v32, %v16_v33 }
   0xc   :  { %1497 = vmatpush3.bf16.msra.mxu0 %v1758_v10  ;;  %v1775_v27 = vld [vmem:[%s2307_s1 + $0xb0] sm:$0xff]   ;;  %v1779_v31 = vld [vmem:[%s2307_s1 + $0xb8] sm:$0xff]   ;;  %v17_v37 = vld [vmem:[%s2308_s0 + $0x28] sm:$0xff] }
   0xd   :  { %1561 = vmatpush3.bf16.msra.mxu1 %v1759_v11  ;;  %1498 = vmatprep.subr.bf16.mxu0 %v1760_v12  ;;  %v1366_v38 = vcombine.low %v13_v34, %v17_v37  ;;  %v1367_v39 = vcombine.high %v13_v34, %v17_v37  ;;  %v1780_v40 = vld [vmem:[%s2307_s1 + $0x140] sm:$0xff]   ;;  %v21_v47 = vld [vmem:[%s2308_s0 + $0x48] sm:$0xff]  ;;  %v1788_v62 = vld [vmem:[%s2307_s1 + $0x150] sm:$0xff]  }
   0xe   :  { %1562 = vmatprep.subr.bf16.mxu1 %v1761_v13  ;;  %940 = vmatprep.mubr.bf16.mxu0 %v1365_v36  ;;  %v1781_v41 = vld [vmem:[%s2307_s1 + $0x100] sm:$0xff]   ;;  %v25_v48 = vld [vmem:[%s2308_s0 + $0x68] sm:$0xff]  ;;  %v1789_v63 = vld [vmem:[%s2307_s1 + $0x110] sm:$0xff]  }
   0xf   :  { %1037 = vmatprep.mubr.bf16.mxu1 %v1367_v39  ;;  %v1782_v42 = vld [vmem:[%s2307_s1 + $0x1c0] sm:$0xff]   ;;  %v1375_v49 = vcombine.high %v21_v47, %v25_v48  ;;  %v1784_v50 = vld [vmem:[%s2307_s1 + $0x148] sm:$0xff]   ;;  %v1374_v53 = vcombine.low %v21_v47, %v25_v48  ;;  %v1790_v0 = vld [vmem:[%s2307_s1 + $0x1d0] sm:$0xff]  }
  0x10   :  { %1499 = vmatpush3.bf16.msra.mxu0 %v1762_v14  ;;  %v1783_v43 = vld [vmem:[%s2307_s1 + $0x180] sm:$0xff]   ;;  %v1785_v52 = vld [vmem:[%s2307_s1 + $0x108] sm:$0xff]   ;;  %v1791_v1 = vld [vmem:[%s2307_s1 + $0x190] sm:$0xff]  }
  0x11   :  { %1563 = vmatpush3.bf16.msra.mxu1 %v1763_v15  ;;  %1500 = vmatprep.subr.bf16.mxu0 %v1764_v16  ;;  %v20_v44 = vld [vmem:[%s2308_s0 + $0x40] sm:$0xff]  ;;  %v1786_v54 = vld [vmem:[%s2307_s1 + $0x1c8] sm:$0xff]   ;;  %v1792_v10 = vld [vmem:[%s2307_s1 + $0x158] sm:$0xff]  }
  0x12   :  { %1564 = vmatprep.subr.bf16.mxu1 %v1765_v17  ;;  %v24_v45 = vld [vmem:[%s2308_s0 + $0x60] sm:$0xff]  ;;  %v1787_v55 = vld [vmem:[%s2307_s1 + $0x188] sm:$0xff]   ;;  %v1793_v11 = vld [vmem:[%s2307_s1 + $0x118] sm:$0xff]  }
  0x13   :  { %v1373_v46 = vcombine.high %v20_v44, %v24_v45  ;;  %v1372_v51 = vcombine.low %v20_v44, %v24_v45  ;;  %v28_v56 = vld [vmem:[%s2308_s0 + $0x80] sm:$0xff]  ;;  %v29_v58 = vld [vmem:[%s2308_s0 + $0x88] sm:$0xff]  ;;  %v1794_v12 = vld [vmem:[%s2307_s1 + $0x1d8] sm:$0xff]  }
  0x14   :  { %1501 = vmatpush3.bf16.msra.mxu0 %v1766_v18  ;;  %v32_v57 = vld [vmem:[%s2308_s0 + $0xa0] sm:$0xff]  ;;  %v33_v59 = vld [vmem:[%s2308_s0 + $0xa8] sm:$0xff]  ;;  %v1795_v13 = vld [vmem:[%s2307_s1 + $0x198] sm:$0xff]  }
  0x15   :  { %1565 = vmatpush3.bf16.msra.mxu1 %v1767_v19  ;;  %1502 = vmatprep.subr.bf16.mxu0 %v1768_v20  ;;  %v1381_v60 = vcombine.high %v28_v56, %v32_v57  ;;  %v1383_v61 = vcombine.high %v29_v58, %v33_v59  ;;  %v1380_v2 = vcombine.low %v28_v56, %v32_v57  ;;  %v36_v3 = vld [vmem:[%s2308_s0 + $0xc0] sm:$0xff]  ;;  %v37_v5 = vld [vmem:[%s2308_s0 + $0xc8] sm:$0xff]  ;;  %v1805_v39 = vld [vmem:[%s2307_s1 + $0x130] sm:$0xff]  }
  0x16   :  { %1566 = vmatprep.subr.bf16.mxu1 %v1769_v21  ;;  %v40_v4 = vld [vmem:[%s2308_s0 + $0xe0] sm:$0xff]  ;;  %v1382_v6 = vcombine.low %v29_v58, %v33_v59  ;;  %v41_v8 = vld [vmem:[%s2308_s0 + $0xe8] sm:$0xff]  ;;  %v1809_v48 = vld [vmem:[%s2307_s1 + $0x138] sm:$0xff]  }
  0x17   :  { %v1389_v7 = vcombine.high %v36_v3, %v40_v4  ;;  %v1391_v9 = vcombine.high %v37_v5, %v41_v8  ;;  %v44_v14 = vld [vmem:[%s2308_s0 + $0x100] sm:$0xff]  ;;  %v45_v16 = vld [vmem:[%s2308_s0 + $0x108] sm:$0xff]  ;;  %v1388_v19 = vcombine.low %v36_v3, %v40_v4  ;;  %v1390_v21 = vcombine.low %v37_v5, %v41_v8  ;;  %v23_v8 = vld [vmem:[%s2308_s0 + $0x58] sm:$0xff] }
  0x18   :  { %1503 = vmatpush3.bf16.msra.mxu0 %v1770_v22  ;;  %v48_v15 = vld [vmem:[%s2308_s0 + $0x120] sm:$0xff]  ;;  %v49_v17 = vld [vmem:[%s2308_s0 + $0x128] sm:$0xff] }
  0x19   :  { %1567 = vmatpush3.bf16.msra.mxu1 %v1771_v23  ;;  %1504 = vmatprep.subr.bf16.mxu0 %v1772_v24  ;;  %v1796_v18 = vld [vmem:[%s2307_s1 + $0x160] sm:$0xff]   ;;  %v1397_v22 = vcombine.high %v44_v14, %v48_v15  ;;  %v1399_v24 = vcombine.high %v45_v16, %v49_v17  ;;  %v1802_v32 = vld [vmem:[%s2307_s1 + $0x1e8] sm:$0xff]   ;;  %v1396_v34 = vcombine.low %v44_v14, %v48_v15  ;;  %v30_v14 = vld [vmem:[%s2308_s0 + $0x90] sm:$0xff] }
  0x1a   :  { %1568 = vmatprep.subr.bf16.mxu1 %v1773_v25  ;;  %v1797_v20 = vld [vmem:[%s2307_s1 + $0x120] sm:$0xff]   ;;  %v1803_v33 = vld [vmem:[%s2307_s1 + $0x1a8] sm:$0xff]   ;;  %v34_v15 = vld [vmem:[%s2308_s0 + $0xb0] sm:$0xff] }
  0x1b   :  { %v1798_v23 = vld [vmem:[%s2307_s1 + $0x1e0] sm:$0xff]   ;;  %v61_v44 = vld [vmem:[%s2308_s0 + $0x188] sm:$0xff] }
  0x1c   :  { %1505 = vmatpush3.bf16.msra.mxu0 %v1774_v26  ;;  %v1799_v25 = vld [vmem:[%s2307_s1 + $0x1a0] sm:$0xff]   ;;  %v65_v45 = vld [vmem:[%s2308_s0 + $0x1a8] sm:$0xff] }
  0x1d   :  { %1569 = vmatpush3.bf16.msra.mxu1 %v1775_v27  ;;  %1506 = vmatprep.subr.bf16.mxu0 %v1776_v28  ;;  %v52_v26 = vld [vmem:[%s2308_s0 + $0x140] sm:$0xff]  ;;  %v1800_v28 = vld [vmem:[%s2307_s1 + $0x168] sm:$0xff]   ;;  %v1414_v59 = vcombine.low %v61_v44, %v65_v45 }
  0x1e   :  { %1570 = vmatprep.subr.bf16.mxu1 %v1777_v29  ;;  %v56_v27 = vld [vmem:[%s2308_s0 + $0x160] sm:$0xff]  ;;  %v53_v29 = vld [vmem:[%s2308_s0 + $0x148] sm:$0xff] }
  0x1f   :  { %v1405_v36 = vcombine.high %v52_v26, %v56_v27  ;;  %v1404_v47 = vcombine.low %v52_v26, %v56_v27  ;;  %v69_v56 = vld [vmem:[%s2308_s0 + $0x1c8] sm:$0xff]  ;;  %v1384_v26 = vcombine.low %v30_v14, %v34_v15 }
  0x20   :  { %1507 = vmatpush3.bf16.msra.mxu0 %v1778_v30  ;;  %v57_v30 = vld [vmem:[%s2308_s0 + $0x168] sm:$0xff] }
  0x21   :  { %1571 = vmatpush3.bf16.msra.mxu1 %v1779_v31  ;;  %1620 = vmatprep.subr.bf16.mxu0 %v1780_v40  ;;  %v1801_v31 = vld [vmem:[%s2307_s1 + $0x128] sm:$0xff]   ;;  %v1407_v37 = vcombine.high %v53_v29, %v57_v30  ;;  %v1806_v40 = vld [vmem:[%s2307_s1 + $0x1f0] sm:$0xff]  }
  0x22   :  { %1684 = vmatprep.subr.bf16.mxu1 %v1782_v42  ;;  %v64_v42 = vld [vmem:[%s2308_s0 + $0x1a0] sm:$0xff]  ;;  %v73_v57 = vld [vmem:[%s2308_s0 + $0x1e8] sm:$0xff] }
  0x23   :  { %941 = vmatmul.mubr.bf16.vlgmr.msra.gmra.mrb[0].mxu0 %v1364_v35  ;;  %v1398_v35 = vcombine.low %v45_v16, %v49_v17  ;;  %v1422_v3 = vcombine.low %v69_v56, %v73_v57  ;;  %v31_v16 = vld [vmem:[%s2308_s0 + $0x98] sm:$0xff] }
  0x24   :  { %1038 = vmatmul.mubr.bf16.vlgmr.msra.gmra.mrb[0].mxu1 %v1366_v38  ;;  %1621 = vmatpush3.bf16.msra.mxu0 %v1781_v41  ;;  %v1804_v38 = vld [vmem:[%s2307_s1 + $0x170] sm:$0xff]   ;;  %v60_v41 = vld [vmem:[%s2308_s0 + $0x180] sm:$0xff]  ;;  %v35_v17 = vld [vmem:[%s2308_s0 + $0xb8] sm:$0xff] }
  0x25   :  { %1685 = vmatpush3.bf16.msra.mxu1 %v1783_v43  ;;  %948 = vmatprep.mubr.bf16.mxu0 %v1373_v46  ;;  %v1807_v43 = vld [vmem:[%s2307_s1 + $0x1b0] sm:$0xff]   ;;  %v1808_v46 = vld [vmem:[%s2307_s1 + $0x178] sm:$0xff]   ;;  %v1412_v58 = vcombine.low %v60_v41, %v64_v42  ;;  %v1386_v27 = vcombine.low %v31_v16, %v35_v17 }
  0x26   :  { %1045 = vmatprep.mubr.bf16.mxu1 %v1375_v49  ;;  %1622 = vmatprep.subr.bf16.mxu0 %v1784_v50  ;;  %v1406_v49 = vcombine.low %v53_v29, %v57_v30  ;;  %v1413_v50 = vcombine.high %v60_v41, %v64_v42  ;;  %v46_v30 = vld [vmem:[%s2308_s0 + $0x110] sm:$0xff]  ;;  %v59_v41 = vld [vmem:[%s2308_s0 + $0x178] sm:$0xff] }
  0x27   :  { %1686 = vmatprep.subr.bf16.mxu1 %v1786_v54  ;;  %v68_v54 = vld [vmem:[%s2308_s0 + $0x1c0] sm:$0xff] }
  0x28   :  { %1623 = vmatpush3.bf16.msra.mxu0 %v1785_v52  ;;  %v1415_v52 = vcombine.high %v61_v44, %v65_v45 }
  0x29   :  { %1687 = vmatpush3.bf16.msra.mxu1 %v1787_v55  ;;  %1624 = vmatprep.subr.bf16.mxu0 %v1788_v62  ;;  %v72_v55 = vld [vmem:[%s2308_s0 + $0x1e0] sm:$0xff]  ;;  %v14_v62 = vld [vmem:[%s2308_s0 + $0x10] sm:$0xff] }
  0x2a   :  { %1688 = vmatprep.subr.bf16.mxu1 %v1790_v0  ;;  %v15_v0 = vld [vmem:[%s2308_s0 + $0x18] sm:$0xff] }
  0x2b   :  { %949 = vmatmul.mubr.bf16.gmra.mrb[4].mxu0 %v1372_v51  ;;  %v1810_v51 = vld [vmem:[%s2307_s1 + $0x1f8] sm:$0xff]  }
  0x2c   :  { %1046 = vmatmul.mubr.bf16.gmra.mrb[4].mxu1 %v1374_v53  ;;  %956 = vmatprep.mubr.bf16.mxu0 %v1381_v60  ;;  %v1811_v53 = vld [vmem:[%s2307_s1 + $0x1b8] sm:$0xff]   ;;  %v1421_v60 = vcombine.high %v68_v54, %v72_v55 }
  0x2d   :  { %1053 = vmatprep.mubr.bf16.mxu1 %v1383_v61  ;;  %1625 = vmatpush3.bf16.msra.mxu0 %v1789_v63  ;;  %v1423_v61 = vcombine.high %v69_v56, %v73_v57  ;;  %v18_v63 = vld [vmem:[%s2308_s0 + $0x30] sm:$0xff]  ;;  %v71_v56 = vld [vmem:[%s2308_s0 + $0x1d8] sm:$0xff] }
  0x2e   :  { %1689 = vmatpush3.bf16.msra.mxu1 %v1791_v1  ;;  %1626 = vmatprep.subr.bf16.mxu0 %v1792_v10  ;;  %v19_v1 = vld [vmem:[%s2308_s0 + $0x38] sm:$0xff]  ;;  %v1369_v4 = vcombine.high %v14_v62, %v18_v63  ;;  %v1368_v10 = vcombine.low %v14_v62, %v18_v63 }
  0x2f   :  { %1690 = vmatprep.subr.bf16.mxu1 %v1794_v12  ;;  %v1371_v5 = vcombine.high %v15_v0, %v19_v1  ;;  %v75_v57 = vld [vmem:[%s2308_s0 + $0x1f8] sm:$0xff] }
  0x30   :  { %v1426_v63 = vcombine.low %v71_v56, %v75_v57 }
  0x31   :  { %1627 = vmatpush3.bf16.msra.mxu0 %v1793_v11  ;;  %v1370_v11 = vcombine.low %v15_v0, %v19_v1 }
  0x32   :  { %1691 = vmatpush3.bf16.msra.mxu1 %v1795_v13  ;;  %1628 = vmatprep.subr.bf16.mxu0 %v1796_v18 }
  0x33   :  { %957 = vmatmul.mubr.bf16.gmra.mrb[8].mxu0 %v1380_v2  ;;  %1692 = vmatprep.subr.bf16.mxu1 %v1798_v23  ;;  %v1420_v2 = vcombine.low %v68_v54, %v72_v55  ;;  %v42_v23 = vld [vmem:[%s2308_s0 + $0xf0] sm:$0xff] }
  0x34   :  { %1054 = vmatmul.mubr.bf16.gmra.mrb[8].mxu1 %v1382_v6  ;;  %964 = vmatprep.mubr.bf16.mxu0 %v1389_v7  ;;  %v22_v6 = vld [vmem:[%s2308_s0 + $0x50] sm:$0xff] }
  0x35   :  { %1061 = vmatprep.mubr.bf16.mxu1 %v1391_v9  ;;  %1629 = vmatpush3.bf16.msra.mxu0 %v1797_v20  ;;  %v26_v7 = vld [vmem:[%s2308_s0 + $0x70] sm:$0xff]  ;;  %v27_v9 = vld [vmem:[%s2308_s0 + $0x78] sm:$0xff]  ;;  %v1385_v20 = vcombine.high %v30_v14, %v34_v15 }
  0x36   :  { %1693 = vmatpush3.bf16.msra.mxu1 %v1799_v25  ;;  %1630 = vmatprep.subr.bf16.mxu0 %v1800_v28  ;;  %v1377_v12 = vcombine.high %v22_v6, %v26_v7  ;;  %v1379_v13 = vcombine.high %v23_v8, %v27_v9  ;;  %v1376_v18 = vcombine.low %v22_v6, %v26_v7  ;;  %v43_v25 = vld [vmem:[%s2308_s0 + $0xf8] sm:$0xff]  ;;  %v70_v54 = vld [vmem:[%s2308_s0 + $0x1d0] sm:$0xff] }
  0x37   :  { %1694 = vmatprep.subr.bf16.mxu1 %v1802_v32  ;;  %v47_v32 = vld [vmem:[%s2308_s0 + $0x118] sm:$0xff]  ;;  %v74_v55 = vld [vmem:[%s2308_s0 + $0x1f0] sm:$0xff] }
  0x38   :  { %v1424_v62 = vcombine.low %v70_v54, %v74_v55 }
  0x39   :  { %1631 = vmatpush3.bf16.msra.mxu0 %v1801_v31  ;;  %v50_v31 = vld [vmem:[%s2308_s0 + $0x130] sm:$0xff] }
  0x3a   :  { %1695 = vmatpush3.bf16.msra.mxu1 %v1803_v33  ;;  %1632 = vmatprep.subr.bf16.mxu0 %v1804_v38  ;;  %v51_v33 = vld [vmem:[%s2308_s0 + $0x138] sm:$0xff]  ;;  %v54_v38 = vld [vmem:[%s2308_s0 + $0x150] sm:$0xff]  ;;  %v1400_v42 = vcombine.low %v46_v30, %v50_v31 }
  0x3b   :  { %965 = vmatmul.mubr.bf16.gmra.mrb[12].mxu0 %v1388_v19  ;;  %1696 = vmatprep.subr.bf16.mxu1 %v1806_v40  ;;  %v1378_v19 = vcombine.low %v23_v8, %v27_v9  ;;  %v55_v40 = vld [vmem:[%s2308_s0 + $0x158] sm:$0xff] }
  0x3c   :  { %1062 = vmatmul.mubr.bf16.gmra.mrb[12].mxu1 %v1390_v21  ;;  %972 = vmatprep.mubr.bf16.mxu0 %v1397_v22  ;;  %v1387_v21 = vcombine.high %v31_v16, %v35_v17  ;;  %v38_v22 = vld [vmem:[%s2308_s0 + $0xd0] sm:$0xff]  ;;  %v1411_v45 = vcombine.high %v55_v40, %v59_v41 }
  0x3d   :  { %1069 = vmatprep.mubr.bf16.mxu1 %v1399_v24  ;;  %1633 = vmatpush3.bf16.msra.mxu0 %v1805_v39  ;;  %v39_v24 = vld [vmem:[%s2308_s0 + $0xd8] sm:$0xff]  ;;  %v1393_v28 = vcombine.high %v38_v22, %v42_v23  ;;  %v58_v39 = vld [vmem:[%s2308_s0 + $0x170] sm:$0xff] }
  0x3e   :  { %1697 = vmatpush3.bf16.msra.mxu1 %v1807_v43  ;;  %1634 = vmatprep.subr.bf16.mxu0 %v1808_v46  ;;  %v1395_v29 = vcombine.high %v39_v24, %v43_v25  ;;  %v1402_v43 = vcombine.low %v47_v32, %v51_v33  ;;  %v1409_v44 = vcombine.high %v54_v38, %v58_v39  ;;  %v62_v46 = vld [vmem:[%s2308_s0 + $0x190] sm:$0xff] }
  0x3f   :  { %1698 = vmatprep.subr.bf16.mxu1 %v1810_v51  ;;  %v1410_v51 = vcombine.low %v55_v40, %v59_v41 }
  0x41   :  { %1635 = vmatpush3.bf16.msra.mxu0 %v1809_v48  ;;  %v63_v48 = vld [vmem:[%s2308_s0 + $0x198] sm:$0xff] }
  0x42   :  { %1699 = vmatpush3.bf16.msra.mxu1 %v1811_v53 }
  0x43   :  { %973 = vmatmul.mubr.bf16.gmra.mrb[16].mxu0 %v1396_v34  ;;  %v1392_v34 = vcombine.low %v38_v22, %v42_v23 }
  0x44   :  { %1070 = vmatmul.mubr.bf16.gmra.mrb[16].mxu1 %v1398_v35  ;;  %980 = vmatprep.mubr.bf16.mxu0 %v1405_v36  ;;  %v1394_v35 = vcombine.low %v39_v24, %v43_v25  ;;  %v1401_v36 = vcombine.high %v46_v30, %v50_v31 }
  0x45   :  { %1077 = vmatprep.mubr.bf16.mxu1 %v1407_v37  ;;  %v1403_v37 = vcombine.high %v47_v32, %v51_v33 }
  0x4b   :  { %981 = vmatmul.mubr.bf16.gmra.mrb[20].mxu0 %v1404_v47  ;;  %v66_v47 = vld [vmem:[%s2308_s0 + $0x1b0] sm:$0xff] }
  0x4c   :  { %1078 = vmatmul.mubr.bf16.gmra.mrb[20].mxu1 %v1406_v49  ;;  %988 = vmatprep.mubr.bf16.mxu0 %v1413_v50  ;;  %v67_v49 = vld [vmem:[%s2308_s0 + $0x1b8] sm:$0xff]  ;;  %v1408_v50 = vcombine.low %v54_v38, %v58_v39 }
  0x4d   :  { %1085 = vmatprep.mubr.bf16.mxu1 %v1415_v52  ;;  %v1417_v52 = vcombine.high %v62_v46, %v66_v47  ;;  %v1419_v53 = vcombine.high %v63_v48, %v67_v49 }
  0x53   :  { %989 = vmatmul.mubr.bf16.gmra.mrb[24].mxu0 %v1412_v58  ;;  %v1416_v58 = vcombine.low %v62_v46, %v66_v47 }
  0x54   :  { %1086 = vmatmul.mubr.bf16.gmra.mrb[24].mxu1 %v1414_v59  ;;  %996 = vmatprep.mubr.bf16.mxu0 %v1421_v60  ;;  %v1418_v59 = vcombine.low %v63_v48, %v67_v49  ;;  %v1425_v60 = vcombine.high %v70_v54, %v74_v55 }
  0x55   :  { %1093 = vmatprep.mubr.bf16.mxu1 %v1423_v61  ;;  %v1427_v61 = vcombine.high %v71_v56, %v75_v57 }
  0x5b   :  { %997 = vmatmul.mubr.bf16.gmra.mrb[28].mxu0 %v1420_v2 }
  0x5c   :  { %1094 = vmatmul.mubr.bf16.gmra.mrb[28].mxu1 %v1422_v3  ;;  %1134 = vmatprep.mubr.bf16.mxu0 %v1369_v4 }
  0x5d   :  { %1231 = vmatprep.mubr.bf16.mxu1 %v1371_v5 }
  0x63   :  { %1135 = vmatmul.mubr.bf16.vlgmr.msra.gmra.mrb[32].mxu0 %v1368_v10 }
  0x64   :  { %1232 = vmatmul.mubr.bf16.vlgmr.msra.gmra.mrb[32].mxu1 %v1370_v11  ;;  %1142 = vmatprep.mubr.bf16.mxu0 %v1377_v12 }
  0x65   :  { %1239 = vmatprep.mubr.bf16.mxu1 %v1379_v13 }
  0x6b   :  { %1143 = vmatmul.mubr.bf16.gmra.mrb[36].mxu0 %v1376_v18 }
  0x6c   :  { %1240 = vmatmul.mubr.bf16.gmra.mrb[36].mxu1 %v1378_v19  ;;  %1150 = vmatprep.mubr.bf16.mxu0 %v1385_v20 }
  0x6d   :  { %1247 = vmatprep.mubr.bf16.mxu1 %v1387_v21 }
  0x73   :  { %1151 = vmatmul.mubr.bf16.gmra.mrb[40].mxu0 %v1384_v26 }
  0x74   :  { %1248 = vmatmul.mubr.bf16.gmra.mrb[40].mxu1 %v1386_v27  ;;  %1158 = vmatprep.mubr.bf16.mxu0 %v1393_v28 }
  0x75   :  { %1255 = vmatprep.mubr.bf16.mxu1 %v1395_v29 }
  0x7b   :  { %1159 = vmatmul.mubr.bf16.gmra.mrb[44].mxu0 %v1392_v34 }
  0x7c   :  { %1256 = vmatmul.mubr.bf16.gmra.mrb[44].mxu1 %v1394_v35  ;;  %1166 = vmatprep.mubr.bf16.mxu0 %v1401_v36 }
  0x7d   :  { %1263 = vmatprep.mubr.bf16.mxu1 %v1403_v37 }
  0x83   :  { %1167 = vmatmul.mubr.bf16.gmra.mrb[48].mxu0 %v1400_v42 }
  0x84   :  { %1264 = vmatmul.mubr.bf16.gmra.mrb[48].mxu1 %v1402_v43  ;;  %1174 = vmatprep.mubr.bf16.mxu0 %v1409_v44 }
  0x85   :  { %1271 = vmatprep.mubr.bf16.mxu1 %v1411_v45 }
  0x8b   :  { %1175 = vmatmul.mubr.bf16.gmra.mrb[52].mxu0 %v1408_v50 }
  0x8c   :  { %1272 = vmatmul.mubr.bf16.gmra.mrb[52].mxu1 %v1410_v51  ;;  %1182 = vmatprep.mubr.bf16.mxu0 %v1417_v52 }
  0x8d   :  { %1279 = vmatprep.mubr.bf16.mxu1 %v1419_v53 }
  0x93   :  { %1183 = vmatmul.mubr.bf16.gmra.mrb[56].mxu0 %v1416_v58 }
  0x94   :  { %1280 = vmatmul.mubr.bf16.gmra.mrb[56].mxu1 %v1418_v59  ;;  %1190 = vmatprep.mubr.bf16.mxu0 %v1425_v60 }
  0x95   :  { %1287 = vmatprep.mubr.bf16.mxu1 %v1427_v61 }
  0x9b   :  { %1191 = vmatmul.mubr.bf16.gmra.mrb[60].mxu0 %v1424_v62 }
  0x9c   :  { %1288 = vmatmul.mubr.bf16.gmra.mrb[60].mxu1 %v1426_v63 }
  0xf6   :  { %v1508_v0 = vpop.f32.mrb[0].mxu0 }
  0xf7   :  { %v1572_v1 = vpop.f32.mrb[0].mxu1  ;;  %v1509_v2 = vpop.f32.mrb[1].mxu0 }
  0xf8   :  { %v1510_v3 = vadd.f32 %v1509_v2, %v1508_v0  ;;  %v1573_v4 = vpop.f32.mrb[1].mxu1  ;;  %v1511_v5 = vpop.f32.mrb[2].mxu0 }
  0xf9   :  { %v1574_v6 = vadd.f32 %v1573_v4, %v1572_v1  ;;  %v1575_v7 = vpop.f32.mrb[2].mxu1  ;;  %v1512_v8 = vpop.f32.mrb[3].mxu0 }
  0xfa   :  { %v1513_v9 = vadd.f32 %v1512_v8, %v1511_v5  ;;  %v1576_v10 = vpop.f32.mrb[3].mxu1 }
  0xfb   :  { %v2211_v11 = vadd.f32 %v1574_v6, %v1510_v3  ;;  %v1577_v12 = vadd.f32 %v1576_v10, %v1575_v7 }
  0xfd   :  { %v2213_v13 = vadd.f32 %v1577_v12, %v1513_v9 }
  0xfe   :  { %v1514_v14 = vpop.f32.mrb[4].mxu0 }
  0xff   :  { %v1578_v15 = vpop.f32.mrb[4].mxu1  ;;  %v1515_v16 = vpop.f32.mrb[5].mxu0 }
 0x100   :  { %v1516_v17 = vadd.f32 %v1515_v16, %v1514_v14  ;;  %v1579_v18 = vpop.f32.mrb[5].mxu1  ;;  %v1517_v19 = vpop.f32.mrb[6].mxu0 }
 0x101   :  { %v1580_v20 = vadd.f32 %v1579_v18, %v1578_v15  ;;  %v1581_v21 = vpop.f32.mrb[6].mxu1  ;;  %v1518_v22 = vpop.f32.mrb[7].mxu0 }
 0x102   :  { %v1519_v23 = vadd.f32 %v1518_v22, %v1517_v19  ;;  %v1582_v24 = vpop.f32.mrb[7].mxu1 }
 0x103   :  { %v2215_v25 = vadd.f32 %v1580_v20, %v1516_v17  ;;  %v1583_v26 = vadd.f32 %v1582_v24, %v1581_v21 }
 0x105   :  { %v2217_v27 = vadd.f32 %v1583_v26, %v1519_v23 }
 0x106   :  { %v1520_v28 = vpop.f32.mrb[8].mxu0 }
 0x107   :  { %v1584_v29 = vpop.f32.mrb[8].mxu1  ;;  %v1521_v30 = vpop.f32.mrb[9].mxu0 }
 0x108   :  { %v1522_v31 = vadd.f32 %v1521_v30, %v1520_v28  ;;  %v1585_v32 = vpop.f32.mrb[9].mxu1  ;;  %v1523_v33 = vpop.f32.mrb[10].mxu0 }
 0x109   :  { %v1586_v34 = vadd.f32 %v1585_v32, %v1584_v29  ;;  %v1587_v35 = vpop.f32.mrb[10].mxu1  ;;  %v1524_v36 = vpop.f32.mrb[11].mxu0 }
 0x10a   :  { %v1525_v37 = vadd.f32 %v1524_v36, %v1523_v33  ;;  %v1588_v38 = vpop.f32.mrb[11].mxu1 }
 0x10b   :  { %v2219_v39 = vadd.f32 %v1586_v34, %v1522_v31  ;;  %v1589_v40 = vadd.f32 %v1588_v38, %v1587_v35 }
 0x10d   :  { %v2221_v41 = vadd.f32 %v1589_v40, %v1525_v37 }
 0x10e   :  { %v1526_v42 = vpop.f32.mrb[12].mxu0 }
 0x10f   :  { %v1590_v43 = vpop.f32.mrb[12].mxu1  ;;  %v1527_v44 = vpop.f32.mrb[13].mxu0 }
 0x110   :  { %v1528_v45 = vadd.f32 %v1527_v44, %v1526_v42  ;;  %v1591_v46 = vpop.f32.mrb[13].mxu1  ;;  %v1529_v47 = vpop.f32.mrb[14].mxu0 }
 0x111   :  { %v1592_v48 = vadd.f32 %v1591_v46, %v1590_v43  ;;  %v1593_v49 = vpop.f32.mrb[14].mxu1  ;;  %v1530_v50 = vpop.f32.mrb[15].mxu0 }
 0x112   :  { %v1531_v51 = vadd.f32 %v1530_v50, %v1529_v47  ;;  %v1594_v52 = vpop.f32.mrb[15].mxu1 }
 0x113   :  { %v2223_v53 = vadd.f32 %v1592_v48, %v1528_v45  ;;  %v1595_v54 = vadd.f32 %v1594_v52, %v1593_v49 }
 0x115   :  { %v2225_v55 = vadd.f32 %v1595_v54, %v1531_v51 }
 0x116   :  { %v1532_v56 = vpop.f32.mrb[16].mxu0 }
 0x117   :  { %v1596_v57 = vpop.f32.mrb[16].mxu1  ;;  %v1533_v58 = vpop.f32.mrb[17].mxu0 }
 0x118   :  { %v1534_v59 = vadd.f32 %v1533_v58, %v1532_v56  ;;  %v1597_v60 = vpop.f32.mrb[17].mxu1  ;;  %v1535_v61 = vpop.f32.mrb[18].mxu0 }
 0x119   :  { %v1598_v62 = vadd.f32 %v1597_v60, %v1596_v57  ;;  %v1599_v63 = vpop.f32.mrb[18].mxu1  ;;  %v1536_v0 = vpop.f32.mrb[19].mxu0 }
 0x11a   :  { %v1537_v1 = vadd.f32 %v1536_v0, %v1535_v61  ;;  %v1600_v2 = vpop.f32.mrb[19].mxu1 }
 0x11b   :  { %v2227_v3 = vadd.f32 %v1598_v62, %v1534_v59  ;;  %v1601_v4 = vadd.f32 %v1600_v2, %v1599_v63 }
 0x11d   :  { %v2229_v5 = vadd.f32 %v1601_v4, %v1537_v1 }
 0x11e   :  { %v1538_v6 = vpop.f32.mrb[20].mxu0 }
 0x11f   :  { %v1602_v7 = vpop.f32.mrb[20].mxu1  ;;  %v1539_v8 = vpop.f32.mrb[21].mxu0 }
 0x120   :  { %v1540_v9 = vadd.f32 %v1539_v8, %v1538_v6  ;;  %v1603_v10 = vpop.f32.mrb[21].mxu1  ;;  %v1541_v12 = vpop.f32.mrb[22].mxu0 }
 0x121   :  { %v1604_v14 = vadd.f32 %v1603_v10, %v1602_v7  ;;  %v1605_v15 = vpop.f32.mrb[22].mxu1  ;;  %v1542_v16 = vpop.f32.mrb[23].mxu0 }
 0x122   :  { %v1543_v17 = vadd.f32 %v1542_v16, %v1541_v12  ;;  %v1606_v18 = vpop.f32.mrb[23].mxu1 }
 0x123   :  { %v2231_v19 = vadd.f32 %v1604_v14, %v1540_v9  ;;  %v1607_v20 = vadd.f32 %v1606_v18, %v1605_v15 }
 0x125   :  { %v2233_v21 = vadd.f32 %v1607_v20, %v1543_v17 }
 0x126   :  { %v1544_v22 = vpop.f32.mrb[24].mxu0 }
 0x127   :  { %v1608_v23 = vpop.f32.mrb[24].mxu1  ;;  %v1545_v24 = vpop.f32.mrb[25].mxu0 }
 0x128   :  { %v1546_v26 = vadd.f32 %v1545_v24, %v1544_v22  ;;  %v1609_v28 = vpop.f32.mrb[25].mxu1  ;;  %v1547_v29 = vpop.f32.mrb[26].mxu0 }
 0x129   :  { %v1610_v30 = vadd.f32 %v1609_v28, %v1608_v23  ;;  %v1611_v31 = vpop.f32.mrb[26].mxu1  ;;  %v1548_v32 = vpop.f32.mrb[27].mxu0 }
 0x12a   :  { %v1549_v33 = vadd.f32 %v1548_v32, %v1547_v29  ;;  %v1612_v34 = vpop.f32.mrb[27].mxu1 }
 0x12b   :  { %v2235_v35 = vadd.f32 %v1610_v30, %v1546_v26  ;;  %v1613_v36 = vadd.f32 %v1612_v34, %v1611_v31 }
 0x12d   :  { %v2237_v37 = vadd.f32 %v1613_v36, %v1549_v33 }
 0x12e   :  { %v1550_v38 = vpop.f32.mrb[28].mxu0 }
 0x12f   :  { %v1614_v40 = vpop.f32.mrb[28].mxu1  ;;  %v1551_v42 = vpop.f32.mrb[29].mxu0 }
 0x130   :  { %v1552_v43 = vadd.f32 %v1551_v42, %v1550_v38  ;;  %v1615_v44 = vpop.f32.mrb[29].mxu1  ;;  %v1553_v45 = vpop.f32.mrb[30].mxu0 }
 0x131   :  { %v1616_v46 = vadd.f32 %v1615_v44, %v1614_v40  ;;  %v1617_v47 = vpop.f32.mrb[30].mxu1  ;;  %v1554_v48 = vpop.f32.mrb[31].mxu0 }
 0x132   :  { %v1555_v49 = vadd.f32 %v1554_v48, %v1553_v45  ;;  %v1618_v50 = vpop.f32.mrb[31].mxu1 }
 0x133   :  { %v2239_v51 = vadd.f32 %v1616_v46, %v1552_v43  ;;  %v1619_v52 = vadd.f32 %v1618_v50, %v1617_v47 }
 0x135   :  { %v2241_v54 = vadd.f32 %v1619_v52, %v1555_v49 }
 0x136   :  { %v1636_v56 = vpop.f32.mrb[32].mxu0 }
 0x137   :  { %v1700_v57 = vpop.f32.mrb[32].mxu1  ;;  %v1637_v58 = vpop.f32.mrb[33].mxu0 }
 0x138   :  { %v1638_v59 = vadd.f32 %v1637_v58, %v1636_v56  ;;  %v1701_v60 = vpop.f32.mrb[33].mxu1  ;;  %v1639_v61 = vpop.f32.mrb[34].mxu0 }
 0x139   :  { %v1702_v62 = vadd.f32 %v1701_v60, %v1700_v57  ;;  %v1703_v63 = vpop.f32.mrb[34].mxu1  ;;  %v1640_v0 = vpop.f32.mrb[35].mxu0 }
 0x13a   :  { %v1137_v1 = vadd.f32 %v1638_v59, %v2211_v11  ;;  %v1641_v2 = vadd.f32 %v1640_v0, %v1639_v61  ;;  %v1704_v4 = vpop.f32.mrb[35].mxu1 }
 0x13b   :  { %v1705_v6 = vadd.f32 %v1704_v4, %v1703_v63 }
 0x13c   :  { %v1234_v7 = vadd.f32 %v1702_v62, %v1137_v1  ;;  %v1140_v8 = vadd.f32 %v1641_v2, %v2213_v13 }
 0x13e   :  { %vm1296_vm0 = vcmp.ge.f32.partialorder %v1234_v7, 0.0  ;;  %v1312_v9 = vmul.f32 0.2, %v1234_v7  ;;  %v1237_v10 = vadd.f32 %v1705_v6, %v1140_v8  ;;  %v1642_v12 = vpop.f32.mrb[36].mxu0 }
 0x13f   :  { %v1706_v14 = vpop.f32.mrb[36].mxu1  ;;  %v1643_v15 = vpop.f32.mrb[37].mxu0 }
 0x140   :  { %v1328_v16 = vsel %vm1296_vm0, %v1234_v7, %v1312_v9  ;;  %vm1297_vm1 = vcmp.ge.f32.partialorder %v1237_v10, 0.0  ;;  %v1313_v17 = vmul.f32 0.2, %v1237_v10  ;;  %v1644_v18 = vadd.f32 %v1643_v15, %v1642_v12  ;;  %v1707_v20 = vpop.f32.mrb[37].mxu1  ;;  %v1645_v22 = vpop.f32.mrb[38].mxu0 }
 0x141   :  { %1344 = vst [vmem:[%s2309_s2] sm:$0xff] %v1328_v16  ;;  %v1708_v11 = vadd.f32 %v1707_v20, %v1706_v14  ;;  %v1709_v23 = vpop.f32.mrb[38].mxu1  ;;  %v1646_v24 = vpop.f32.mrb[39].mxu0 }
 0x142   :  { %v1329_v13 = vsel %vm1297_vm1, %v1237_v10, %v1313_v17  ;;  %v1145_v26 = vadd.f32 %v1644_v18, %v2215_v25  ;;  %v1647_v28 = vadd.f32 %v1646_v24, %v1645_v22  ;;  %v1710_v29 = vpop.f32.mrb[39].mxu1 }
 0x143   :  { %1345 = vst [vmem:[%s2309_s2 + $0x8] sm:$0xff] %v1329_v13  ;;  %v1711_v30 = vadd.f32 %v1710_v29, %v1709_v23 }
 0x144   :  { %v1242_v31 = vadd.f32 %v1708_v11, %v1145_v26  ;;  %v1148_v32 = vadd.f32 %v1647_v28, %v2217_v27 }
 0x146   :  { %vm1298_vm2 = vcmp.ge.f32.partialorder %v1242_v31, 0.0  ;;  %v1314_v33 = vmul.f32 0.2, %v1242_v31  ;;  %v1245_v34 = vadd.f32 %v1711_v30, %v1148_v32  ;;  %v1648_v36 = vpop.f32.mrb[40].mxu0 }
 0x147   :  { %v1712_v38 = vpop.f32.mrb[40].mxu1  ;;  %v1649_v40 = vpop.f32.mrb[41].mxu0 }
 0x148   :  { %v1330_v42 = vsel %vm1298_vm2, %v1242_v31, %v1314_v33  ;;  %vm1299_vm3 = vcmp.ge.f32.partialorder %v1245_v34, 0.0  ;;  %v1315_v43 = vmul.f32 0.2, %v1245_v34  ;;  %v1650_v25 = vadd.f32 %v1649_v40, %v1648_v36  ;;  %v1713_v44 = vpop.f32.mrb[41].mxu1  ;;  %v1651_v45 = vpop.f32.mrb[42].mxu0 }
 0x149   :  { %1346 = vst [vmem:[%s2309_s2 + $0x10] sm:$0xff] %v1330_v42  ;;  %v1714_v46 = vadd.f32 %v1713_v44, %v1712_v38  ;;  %v1715_v47 = vpop.f32.mrb[42].mxu1  ;;  %v1652_v48 = vpop.f32.mrb[43].mxu0 }
 0x14a   :  { %v1331_v27 = vsel %vm1299_vm3, %v1245_v34, %v1315_v43  ;;  %v1153_v49 = vadd.f32 %v1650_v25, %v2219_v39  ;;  %v1653_v50 = vadd.f32 %v1652_v48, %v1651_v45  ;;  %v1716_v52 = vpop.f32.mrb[43].mxu1 }
 0x14b   :  { %1347 = vst [vmem:[%s2309_s2 + $0x18] sm:$0xff] %v1331_v27  ;;  %v1717_v56 = vadd.f32 %v1716_v52, %v1715_v47 }
 0x14c   :  { %v1250_v57 = vadd.f32 %v1714_v46, %v1153_v49  ;;  %v1156_v58 = vadd.f32 %v1653_v50, %v2221_v41 }
 0x14e   :  { %vm1300_vm4 = vcmp.ge.f32.partialorder %v1250_v57, 0.0  ;;  %v1316_v59 = vmul.f32 0.2, %v1250_v57  ;;  %v1253_v60 = vadd.f32 %v1717_v56, %v1156_v58  ;;  %v1654_v61 = vpop.f32.mrb[44].mxu0 }
 0x14f   :  { %v1718_v62 = vpop.f32.mrb[44].mxu1  ;;  %v1655_v63 = vpop.f32.mrb[45].mxu0 }
 0x150   :  { %v1332_v0 = vsel %vm1300_vm4, %v1250_v57, %v1316_v59  ;;  %vm1301_vm5 = vcmp.ge.f32.partialorder %v1253_v60, 0.0  ;;  %v1317_v1 = vmul.f32 0.2, %v1253_v60  ;;  %v1656_v39 = vadd.f32 %v1655_v63, %v1654_v61  ;;  %v1719_v2 = vpop.f32.mrb[45].mxu1  ;;  %v1657_v4 = vpop.f32.mrb[46].mxu0 }
 0x151   :  { %1348 = vst [vmem:[%s2309_s2 + $0x20] sm:$0xff] %v1332_v0  ;;  %v1720_v6 = vadd.f32 %v1719_v2, %v1718_v62  ;;  %v1721_v7 = vpop.f32.mrb[46].mxu1  ;;  %v1658_v8 = vpop.f32.mrb[47].mxu0 }
 0x152   :  { %v1333_v41 = vsel %vm1301_vm5, %v1253_v60, %v1317_v1  ;;  %v1161_v9 = vadd.f32 %v1656_v39, %v2223_v53  ;;  %v1659_v10 = vadd.f32 %v1658_v8, %v1657_v4  ;;  %v1722_v12 = vpop.f32.mrb[47].mxu1 }
 0x153   :  { %1349 = vst [vmem:[%s2309_s2 + $0x28] sm:$0xff] %v1333_v41  ;;  %v1723_v14 = vadd.f32 %v1722_v12, %v1721_v7 }
 0x154   :  { %v1258_v15 = vadd.f32 %v1720_v6, %v1161_v9  ;;  %v1164_v16 = vadd.f32 %v1659_v10, %v2225_v55 }
 0x156   :  { %vm1302_vm6 = vcmp.ge.f32.partialorder %v1258_v15, 0.0  ;;  %v1318_v17 = vmul.f32 0.2, %v1258_v15  ;;  %v1261_v18 = vadd.f32 %v1723_v14, %v1164_v16  ;;  %v1660_v20 = vpop.f32.mrb[48].mxu0 }
 0x157   :  { %v1724_v22 = vpop.f32.mrb[48].mxu1  ;;  %v1661_v11 = vpop.f32.mrb[49].mxu0 }
 0x158   :  { %v1334_v23 = vsel %vm1302_vm6, %v1258_v15, %v1318_v17  ;;  %vm1303_vm7 = vcmp.ge.f32.partialorder %v1261_v18, 0.0  ;;  %v1319_v24 = vmul.f32 0.2, %v1261_v18  ;;  %v1662_v53 = vadd.f32 %v1661_v11, %v1660_v20  ;;  %v1725_v13 = vpop.f32.mrb[49].mxu1  ;;  %v1663_v26 = vpop.f32.mrb[50].mxu0 }
 0x159   :  { %1350 = vst [vmem:[%s2309_s2 + $0x30] sm:$0xff] %v1334_v23  ;;  %v1726_v28 = vadd.f32 %v1725_v13, %v1724_v22  ;;  %v1727_v29 = vpop.f32.mrb[50].mxu1  ;;  %v1664_v30 = vpop.f32.mrb[51].mxu0 }
 0x15a   :  { %v1335_v55 = vsel %vm1303_vm7, %v1261_v18, %v1319_v24  ;;  %v1169_v31 = vadd.f32 %v1662_v53, %v2227_v3  ;;  %v1665_v32 = vadd.f32 %v1664_v30, %v1663_v26  ;;  %v1728_v33 = vpop.f32.mrb[51].mxu1 }
 0x15b   :  { %1351 = vst [vmem:[%s2309_s2 + $0x38] sm:$0xff] %v1335_v55  ;;  %v1729_v34 = vadd.f32 %v1728_v33, %v1727_v29 }
 0x15c   :  { %v1266_v36 = vadd.f32 %v1726_v28, %v1169_v31  ;;  %v1172_v38 = vadd.f32 %v1665_v32, %v2229_v5 }
 0x15e   :  { %vm1304_vm8 = vcmp.ge.f32.partialorder %v1266_v36, 0.0  ;;  %v1320_v40 = vmul.f32 0.2, %v1266_v36  ;;  %v1269_v42 = vadd.f32 %v1729_v34, %v1172_v38  ;;  %v1666_v43 = vpop.f32.mrb[52].mxu0 }
 0x15f   :  { %v1730_v25 = vpop.f32.mrb[52].mxu1  ;;  %v1667_v44 = vpop.f32.mrb[53].mxu0 }
 0x160   :  { %v1336_v45 = vsel %vm1304_vm8, %v1266_v36, %v1320_v40  ;;  %vm1305_vm9 = vcmp.ge.f32.partialorder %v1269_v42, 0.0  ;;  %v1321_v46 = vmul.f32 0.2, %v1269_v42  ;;  %v1668_v3 = vadd.f32 %v1667_v44, %v1666_v43  ;;  %v1731_v47 = vpop.f32.mrb[53].mxu1  ;;  %v1669_v48 = vpop.f32.mrb[54].mxu0 }
 0x161   :  { %1352 = vst [vmem:[%s2309_s2 + $0x40] sm:$0xff] %v1336_v45  ;;  %v1732_v27 = vadd.f32 %v1731_v47, %v1730_v25  ;;  %v1733_v49 = vpop.f32.mrb[54].mxu1  ;;  %v1670_v50 = vpop.f32.mrb[55].mxu0 }
 0x162   :  { %v1337_v5 = vsel %vm1305_vm9, %v1269_v42, %v1321_v46  ;;  %v1177_v52 = vadd.f32 %v1668_v3, %v2231_v19  ;;  %v1671_v56 = vadd.f32 %v1670_v50, %v1669_v48  ;;  %v1734_v57 = vpop.f32.mrb[55].mxu1 }
 0x163   :  { %1353 = vst [vmem:[%s2309_s2 + $0x48] sm:$0xff] %v1337_v5  ;;  %v1735_v58 = vadd.f32 %v1734_v57, %v1733_v49 }
 0x164   :  { %v1274_v59 = vadd.f32 %v1732_v27, %v1177_v52  ;;  %v1180_v60 = vadd.f32 %v1671_v56, %v2233_v21 }
 0x166   :  { %vm1306_vm10 = vcmp.ge.f32.partialorder %v1274_v59, 0.0  ;;  %v1322_v61 = vmul.f32 0.2, %v1274_v59  ;;  %v1277_v62 = vadd.f32 %v1735_v58, %v1180_v60  ;;  %v1672_v63 = vpop.f32.mrb[56].mxu0 }
 0x167   :  { %v1736_v0 = vpop.f32.mrb[56].mxu1  ;;  %v1673_v1 = vpop.f32.mrb[57].mxu0 }
 0x168   :  { %v1338_v39 = vsel %vm1306_vm10, %v1274_v59, %v1322_v61  ;;  %vm1307_vm11 = vcmp.ge.f32.partialorder %v1277_v62, 0.0  ;;  %v1323_v2 = vmul.f32 0.2, %v1277_v62  ;;  %v1674_v19 = vadd.f32 %v1673_v1, %v1672_v63  ;;  %v1737_v4 = vpop.f32.mrb[57].mxu1  ;;  %v1675_v6 = vpop.f32.mrb[58].mxu0 }
 0x169   :  { %1354 = vst [vmem:[%s2309_s2 + $0x50] sm:$0xff] %v1338_v39  ;;  %v1738_v7 = vadd.f32 %v1737_v4, %v1736_v0  ;;  %v1739_v8 = vpop.f32.mrb[58].mxu1  ;;  %v1676_v41 = vpop.f32.mrb[59].mxu0 }
 0x16a   :  { %v1339_v21 = vsel %vm1307_vm11, %v1277_v62, %v1323_v2  ;;  %v1185_v9 = vadd.f32 %v1674_v19, %v2235_v35  ;;  %v1677_v10 = vadd.f32 %v1676_v41, %v1675_v6  ;;  %v1740_v12 = vpop.f32.mrb[59].mxu1 }
 0x16b   :  { %1355 = vst [vmem:[%s2309_s2 + $0x58] sm:$0xff] %v1339_v21  ;;  %v1741_v14 = vadd.f32 %v1740_v12, %v1739_v8 }
 0x16c   :  { %v1282_v15 = vadd.f32 %v1738_v7, %v1185_v9  ;;  %v1188_v16 = vadd.f32 %v1677_v10, %v2237_v37 }
 0x16e   :  { %vm1308_vm12 = vcmp.ge.f32.partialorder %v1282_v15, 0.0  ;;  %v1324_v17 = vmul.f32 0.2, %v1282_v15  ;;  %v1285_v18 = vadd.f32 %v1741_v14, %v1188_v16  ;;  %v1678_v20 = vpop.f32.mrb[60].mxu0 }
 0x16f   :  { %v1742_v22 = vpop.f32.mrb[60].mxu1  ;;  %v1679_v11 = vpop.f32.mrb[61].mxu0 }
 0x170   :  { %v1340_v23 = vsel %vm1308_vm12, %v1282_v15, %v1324_v17  ;;  %vm1309_vm13 = vcmp.ge.f32.partialorder %v1285_v18, 0.0  ;;  %v1325_v24 = vmul.f32 0.2, %v1285_v18  ;;  %v1680_v35 = vadd.f32 %v1679_v11, %v1678_v20  ;;  %v1743_v53 = vpop.f32.mrb[61].mxu1  ;;  %v1681_v13 = vpop.f32.mrb[62].mxu0 }
 0x171   :  { %1356 = vst [vmem:[%s2309_s2 + $0x60] sm:$0xff] %v1340_v23  ;;  %v1744_v26 = vadd.f32 %v1743_v53, %v1742_v22  ;;  %v1745_v28 = vpop.f32.mrb[62].mxu1  ;;  %v1682_v29 = vpop.f32.mrb[63].mxu0 }
 0x172   :  { %v1341_v37 = vsel %vm1309_vm13, %v1285_v18, %v1325_v24  ;;  %v1193_v30 = vadd.f32 %v1680_v35, %v2239_v51  ;;  %v1683_v55 = vadd.f32 %v1682_v29, %v1681_v13  ;;  %v1746_v31 = vpop.f32.mrb[63].mxu1 }
 0x173   :  { %1357 = vst [vmem:[%s2309_s2 + $0x68] sm:$0xff] %v1341_v37  ;;  %v1747_v32 = vadd.f32 %v1746_v31, %v1745_v28 }
 0x174   :  { %v1290_v33 = vadd.f32 %v1744_v26, %v1193_v30  ;;  %v1196_v34 = vadd.f32 %v1683_v55, %v2241_v54 }
 0x176   :  { %vm1310_vm14 = vcmp.ge.f32.partialorder %v1290_v33, 0.0  ;;  %v1326_v36 = vmul.f32 0.2, %v1290_v33  ;;  %v1293_v38 = vadd.f32 %v1747_v32, %v1196_v34 }
 0x178   :  { %v1342_v40 = vsel %vm1310_vm14, %v1290_v33, %v1326_v36  ;;  %vm1311_vm15 = vcmp.ge.f32.partialorder %v1293_v38, 0.0  ;;  %v1327_v42 = vmul.f32 0.2, %v1293_v38 }
 0x179   :  { %1358 = vst [vmem:[%s2309_s2 + $0x70] sm:$0xff] %v1342_v40 }
 0x17a   :  { %v1343_v51 = vsel %vm1311_vm15, %v1293_v38, %v1327_v42 }
 0x17b   :  { %1359 = vst [vmem:[%s2309_s2 + $0x78] sm:$0xff] %v1343_v51 }

// kernel: discriminator_forward.7
= control target key start
LH: loop header
LB: loop body
LE: loop exit
PB: predicated region body
PF: predicated region fallthrough
CT: control target
= control target key end

     0   :  { %s3878_s1 = inlined_call_operand.vmem [shape: bf16[2048,256], index: 1, kind: input, shape index: {}]   ;;  %s3879_s0 = inlined_call_operand.vmem [shape: bf16[32,2048], index: 0, kind: input, shape index: {}]   ;;  %s3880_s2 = inlined_call_operand.vmem [shape: f32[32,256], index: 2, kind: output, shape index: {}]  }
   0x1   :  { %v2543_v0 = vld [vmem:[%s3878_s1 + $0x4] ss:$8 sps:$4 sm:$0xff]   ;;  %v2547_v2 = vld [vmem:[%s3878_s1] ss:$8 sps:$4 sm:$0xff]   ;;  %v2549_v4 = vld [vmem:[%s3878_s1 + $0x14] ss:$8 sps:$4 sm:$0xff]  }
   0x2   :  { %v2545_v1 = vld [vmem:[%s3878_s1 + $0x404] ss:$8 sps:$4 sm:$0xff]   ;;  %1739 = vmatprep.subr.bf16.mxu1 %v2543_v0  ;;  %v2548_v3 = vld [vmem:[%s3878_s1 + $0x400] ss:$8 sps:$4 sm:$0xff]   ;;  %v2551_v5 = vld [vmem:[%s3878_s1 + $0x414] ss:$8 sps:$4 sm:$0xff]  }
   0x3   :  { %1951 = vmatprep.subr.bf16.mxu0 %v2545_v1  ;;  %1740 = vmatpush1.bf16.msra.mxu1 %v2547_v2  ;;  %v2553_v6 = vld [vmem:[%s3878_s1 + $0x10] ss:$8 sps:$4 sm:$0xff]   ;;  %v2555_v8 = vld [vmem:[%s3878_s1 + $0x24] ss:$8 sps:$4 sm:$0xff]   ;;  %v2559_v10 = vld [vmem:[%s3878_s1 + $0x20] ss:$8 sps:$4 sm:$0xff]  }
   0x4   :  { %1952 = vmatpush1.bf16.msra.mxu0 %v2548_v3  ;;  %1741 = vmatprep.subr.bf16.mxu1 %v2549_v4  ;;  %v2554_v7 = vld [vmem:[%s3878_s1 + $0x410] ss:$8 sps:$4 sm:$0xff]   ;;  %v2557_v9 = vld [vmem:[%s3878_s1 + $0x424] ss:$8 sps:$4 sm:$0xff]   ;;  %v2560_v11 = vld [vmem:[%s3878_s1 + $0x420] ss:$8 sps:$4 sm:$0xff]  }
   0x5   :  { %1953 = vmatprep.subr.bf16.mxu0 %v2551_v5  ;;  %v2561_v12 = vld [vmem:[%s3878_s1 + $0x34] ss:$8 sps:$4 sm:$0xff]   ;;  %v2565_v14 = vld [vmem:[%s3878_s1 + $0x30] ss:$8 sps:$4 sm:$0xff]   ;;  %v2567_v16 = vld [vmem:[%s3878_s1 + $0x44] ss:$8 sps:$4 sm:$0xff]  }
   0x6   :  { %v2563_v13 = vld [vmem:[%s3878_s1 + $0x434] ss:$8 sps:$4 sm:$0xff]   ;;  %v2566_v15 = vld [vmem:[%s3878_s1 + $0x430] ss:$8 sps:$4 sm:$0xff]   ;;  %v2569_v17 = vld [vmem:[%s3878_s1 + $0x444] ss:$8 sps:$4 sm:$0xff]  }
   0x7   :  { %1742 = vmatpush1.bf16.msra.mxu1 %v2553_v6  ;;  %v2571_v18 = vld [vmem:[%s3878_s1 + $0x40] ss:$8 sps:$4 sm:$0xff]   ;;  %v2573_v20 = vld [vmem:[%s3878_s1 + $0x54] ss:$8 sps:$4 sm:$0xff]   ;;  %v2577_v22 = vld [vmem:[%s3878_s1 + $0x50] ss:$8 sps:$4 sm:$0xff]  }
   0x8   :  { %1954 = vmatpush1.bf16.msra.mxu0 %v2554_v7  ;;  %1743 = vmatprep.subr.bf16.mxu1 %v2555_v8  ;;  %v2572_v19 = vld [vmem:[%s3878_s1 + $0x440] ss:$8 sps:$4 sm:$0xff]   ;;  %v2575_v21 = vld [vmem:[%s3878_s1 + $0x454] ss:$8 sps:$4 sm:$0xff]   ;;  %v2578_v23 = vld [vmem:[%s3878_s1 + $0x450] ss:$8 sps:$4 sm:$0xff]  }
   0x9   :  { %1955 = vmatprep.subr.bf16.mxu0 %v2557_v9  ;;  %v2579_v24 = vld [vmem:[%s3878_s1 + $0x64] ss:$8 sps:$4 sm:$0xff]   ;;  %v2583_v26 = vld [vmem:[%s3878_s1 + $0x60] ss:$8 sps:$4 sm:$0xff]   ;;  %v2585_v28 = vld [vmem:[%s3878_s1 + $0x74] ss:$8 sps:$4 sm:$0xff]  }
   0xa   :  { %v2581_v25 = vld [vmem:[%s3878_s1 + $0x464] ss:$8 sps:$4 sm:$0xff]   ;;  %v2584_v27 = vld [vmem:[%s3878_s1 + $0x460] ss:$8 sps:$4 sm:$0xff]   ;;  %v2587_v29 = vld [vmem:[%s3878_s1 + $0x474] ss:$8 sps:$4 sm:$0xff]  }
   0xb   :  { %1744 = vmatpush1.bf16.msra.mxu1 %v2559_v10  ;;  %v2589_v30 = vld [vmem:[%s3878_s1 + $0x70] ss:$8 sps:$4 sm:$0xff]   ;;  %v2591_v32 = vld [vmem:[%s3878_s1 + $0x84] ss:$8 sps:$4 sm:$0xff]   ;;  %v2595_v34 = vld [vmem:[%s3878_s1 + $0x80] ss:$8 sps:$4 sm:$0xff]  }
   0xc   :  { %1956 = vmatpush1.bf16.msra.mxu0 %v2560_v11  ;;  %1745 = vmatprep.subr.bf16.mxu1 %v2561_v12  ;;  %v2590_v31 = vld [vmem:[%s3878_s1 + $0x470] ss:$8 sps:$4 sm:$0xff]   ;;  %v2593_v33 = vld [vmem:[%s3878_s1 + $0x484] ss:$8 sps:$4 sm:$0xff]   ;;  %v2596_v35 = vld [vmem:[%s3878_s1 + $0x480] ss:$8 sps:$4 sm:$0xff]  }
   0xd   :  { %1957 = vmatprep.subr.bf16.mxu0 %v2563_v13  ;;  %v2597_v36 = vld [vmem:[%s3878_s1 + $0x94] ss:$8 sps:$4 sm:$0xff]   ;;  %v2601_v38 = vld [vmem:[%s3878_s1 + $0x90] ss:$8 sps:$4 sm:$0xff]   ;;  %v2603_v40 = vld [vmem:[%s3878_s1 + $0xa4] ss:$8 sps:$4 sm:$0xff]  }
   0xe   :  { %v2599_v37 = vld [vmem:[%s3878_s1 + $0x494] ss:$8 sps:$4 sm:$0xff]   ;;  %v2602_v39 = vld [vmem:[%s3878_s1 + $0x490] ss:$8 sps:$4 sm:$0xff]   ;;  %v2605_v41 = vld [vmem:[%s3878_s1 + $0x4a4] ss:$8 sps:$4 sm:$0xff]  }
   0xf   :  { %1746 = vmatpush1.bf16.msra.mxu1 %v2565_v14  ;;  %v2607_v42 = vld [vmem:[%s3878_s1 + $0xa0] ss:$8 sps:$4 sm:$0xff]   ;;  %v2609_v44 = vld [vmem:[%s3878_s1 + $0xb4] ss:$8 sps:$4 sm:$0xff]   ;;  %v2613_v46 = vld [vmem:[%s3878_s1 + $0xb0] ss:$8 sps:$4 sm:$0xff]  }
  0x10   :  { %1958 = vmatpush1.bf16.msra.mxu0 %v2566_v15  ;;  %1747 = vmatprep.subr.bf16.mxu1 %v2567_v16  ;;  %v2608_v43 = vld [vmem:[%s3878_s1 + $0x4a0] ss:$8 sps:$4 sm:$0xff]   ;;  %v2611_v45 = vld [vmem:[%s3878_s1 + $0x4b4] ss:$8 sps:$4 sm:$0xff]   ;;  %v2614_v47 = vld [vmem:[%s3878_s1 + $0x4b0] ss:$8 sps:$4 sm:$0xff]  }
  0x11   :  { %1959 = vmatprep.subr.bf16.mxu0 %v2569_v17  ;;  %v11_v48 = vld [vmem:[%s3879_s0] sm:$0xff]  ;;  %v2621_v58 = vld [vmem:[%s3878_s1 + $0xd4] ss:$8 sps:$4 sm:$0xff]   ;;  %v2625_v60 = vld [vmem:[%s3878_s1 + $0xd0] ss:$8 sps:$4 sm:$0xff]  }
  0x12   :  { %v19_v49 = vld [vmem:[%s3879_s0 + $0x40] sm:$0xff]  ;;  %v2623_v59 = vld [vmem:[%s3878_s1 + $0x4d4] ss:$8 sps:$4 sm:$0xff]   ;;  %v2626_v61 = vld [vmem:[%s3878_s1 + $0x4d0] ss:$8 sps:$4 sm:$0xff]  }
  0x13   :  { %1748 = vmatpush1.bf16.msra.mxu1 %v2571_v18  ;;  %v2615_v50 = vld [vmem:[%s3878_s1 + $0xc4] ss:$8 sps:$4 sm:$0xff]   ;;  %v2200_v52 = vcombine.high %v11_v48, %v19_v49  ;;  %v2619_v56 = vld [vmem:[%s3878_s1 + $0xc0] ss:$8 sps:$4 sm:$0xff]   ;;  %v2633_v2 = vld [vmem:[%s3878_s1 + $0xf4] ss:$8 sps:$4 sm:$0xff]   ;;  %v2199_v8 = vcombine.low %v11_v48, %v19_v49 }
  0x14   :  { %1960 = vmatpush1.bf16.msra.mxu0 %v2572_v19  ;;  %1749 = vmatprep.subr.bf16.mxu1 %v2573_v20  ;;  %v2617_v51 = vld [vmem:[%s3878_s1 + $0x4c4] ss:$8 sps:$4 sm:$0xff]   ;;  %v2620_v57 = vld [vmem:[%s3878_s1 + $0x4c0] ss:$8 sps:$4 sm:$0xff]   ;;  %v2635_v3 = vld [vmem:[%s3878_s1 + $0x4f4] ss:$8 sps:$4 sm:$0xff]  }
  0x15   :  { %1961 = vmatprep.subr.bf16.mxu0 %v2575_v21  ;;  %v15_v53 = vld [vmem:[%s3879_s0 + $0x20] sm:$0xff]  ;;  %1771 = vmatprep.mubr.bf16.mxu1 %v2200_v52  ;;  %v2637_v4 = vld [vmem:[%s3878_s1 + $0xf0] ss:$8 sps:$4 sm:$0xff]   ;;  %v2647_v12 = vld [vmem:[%s3878_s1 + $0x114] ss:$8 sps:$4 sm:$0xff]  }
  0x16   :  { %v23_v54 = vld [vmem:[%s3879_s0 + $0x60] sm:$0xff]  ;;  %v2638_v5 = vld [vmem:[%s3878_s1 + $0x4f0] ss:$8 sps:$4 sm:$0xff]   ;;  %v2650_v13 = vld [vmem:[%s3878_s1 + $0x514] ss:$8 sps:$4 sm:$0xff]  }
  0x17   :  { %1750 = vmatpush1.bf16.msra.mxu1 %v2577_v22  ;;  %v2208_v55 = vcombine.high %v15_v53, %v23_v54  ;;  %v2627_v62 = vld [vmem:[%s3878_s1 + $0xe4] ss:$8 sps:$4 sm:$0xff]   ;;  %v2631_v0 = vld [vmem:[%s3878_s1 + $0xe0] ss:$8 sps:$4 sm:$0xff]   ;;  %v2207_v10 = vcombine.low %v15_v53, %v23_v54  ;;  %v2645_v14 = vld [vmem:[%s3878_s1 + $0x110] ss:$8 sps:$4 sm:$0xff]  }
  0x18   :  { %1962 = vmatpush1.bf16.msra.mxu0 %v2578_v23  ;;  %1751 = vmatprep.subr.bf16.mxu1 %v2579_v24  ;;  %v2629_v63 = vld [vmem:[%s3878_s1 + $0x4e4] ss:$8 sps:$4 sm:$0xff]   ;;  %v2632_v1 = vld [vmem:[%s3878_s1 + $0x4e0] ss:$8 sps:$4 sm:$0xff]   ;;  %v2648_v15 = vld [vmem:[%s3878_s1 + $0x510] ss:$8 sps:$4 sm:$0xff]  }
  0x19   :  { %1963 = vmatprep.subr.bf16.mxu0 %v2581_v25  ;;  %1983 = vmatprep.mubr.bf16.mxu0 %v2208_v55  ;;  %v2641_v6 = vld [vmem:[%s3878_s1 + $0x104] ss:$8 sps:$4 sm:$0xff]   ;;  %v2639_v9 = vld [vmem:[%s3878_s1 + $0x100] ss:$8 sps:$4 sm:$0xff]   ;;  %v2659_v20 = vld [vmem:[%s3878_s1 + $0x134] ss:$8 sps:$4 sm:$0xff]  }
  0x1a   :  { %v2644_v7 = vld [vmem:[%s3878_s1 + $0x504] ss:$8 sps:$4 sm:$0xff]   ;;  %v2642_v11 = vld [vmem:[%s3878_s1 + $0x500] ss:$8 sps:$4 sm:$0xff]   ;;  %v2662_v21 = vld [vmem:[%s3878_s1 + $0x534] ss:$8 sps:$4 sm:$0xff]  }
  0x1b   :  { %1752 = vmatpush1.bf16.msra.mxu1 %v2583_v26  ;;  %v2653_v16 = vld [vmem:[%s3878_s1 + $0x124] ss:$8 sps:$4 sm:$0xff]   ;;  %v2651_v18 = vld [vmem:[%s3878_s1 + $0x120] ss:$8 sps:$4 sm:$0xff]   ;;  %v2657_v22 = vld [vmem:[%s3878_s1 + $0x130] ss:$8 sps:$4 sm:$0xff]  }
  0x1c   :  { %1964 = vmatpush1.bf16.msra.mxu0 %v2584_v27  ;;  %1753 = vmatprep.subr.bf16.mxu1 %v2585_v28  ;;  %v2656_v17 = vld [vmem:[%s3878_s1 + $0x524] ss:$8 sps:$4 sm:$0xff]   ;;  %v2654_v19 = vld [vmem:[%s3878_s1 + $0x520] ss:$8 sps:$4 sm:$0xff]   ;;  %v2660_v23 = vld [vmem:[%s3878_s1 + $0x530] ss:$8 sps:$4 sm:$0xff]  }
  0x1d   :  { %1965 = vmatprep.subr.bf16.mxu0 %v2587_v29  ;;  %v2665_v24 = vld [vmem:[%s3878_s1 + $0x144] ss:$8 sps:$4 sm:$0xff]   ;;  %v2663_v26 = vld [vmem:[%s3878_s1 + $0x140] ss:$8 sps:$4 sm:$0xff]   ;;  %v2671_v28 = vld [vmem:[%s3878_s1 + $0x154] ss:$8 sps:$4 sm:$0xff]  }
  0x1e   :  { %v2668_v25 = vld [vmem:[%s3878_s1 + $0x544] ss:$8 sps:$4 sm:$0xff]   ;;  %v2666_v27 = vld [vmem:[%s3878_s1 + $0x540] ss:$8 sps:$4 sm:$0xff]   ;;  %v2674_v29 = vld [vmem:[%s3878_s1 + $0x554] ss:$8 sps:$4 sm:$0xff]  }
  0x1f   :  { %1754 = vmatpush1.bf16.msra.mxu1 %v2589_v30  ;;  %v27_v30 = vld [vmem:[%s3879_s0 + $0x80] sm:$0xff]  ;;  %v3263_v49 = vld [vmem:[%s3879_s0 + $0x28] sm:$0xff]  ;;  %v2684_v52 = vld [vmem:[%s3878_s1 + $0x570] ss:$8 sps:$4 sm:$0xff]  }
  0x20   :  { %1966 = vmatpush1.bf16.msra.mxu0 %v2590_v31  ;;  %1755 = vmatprep.subr.bf16.mxu1 %v2591_v32  ;;  %v35_v31 = vld [vmem:[%s3879_s0 + $0xc0] sm:$0xff]  ;;  %v2669_v32 = vld [vmem:[%s3878_s1 + $0x150] ss:$8 sps:$4 sm:$0xff]  }
  0x21   :  { %1967 = vmatprep.subr.bf16.mxu0 %v2593_v33  ;;  %v2216_v33 = vcombine.high %v27_v30, %v35_v31  ;;  %v2689_v54 = vld [vmem:[%s3878_s1 + $0x184] ss:$8 sps:$4 sm:$0xff]  }
  0x22   :  { %v2692_v55 = vld [vmem:[%s3878_s1 + $0x584] ss:$8 sps:$4 sm:$0xff]  }
  0x23   :  { %1756 = vmatpush1.bf16.msra.mxu1 %v2595_v34  ;;  %v2672_v34 = vld [vmem:[%s3878_s1 + $0x550] ss:$8 sps:$4 sm:$0xff]  }
  0x24   :  { %1968 = vmatpush1.bf16.msra.mxu0 %v2596_v35  ;;  %1757 = vmatprep.subr.bf16.mxu1 %v2597_v36  ;;  %v31_v35 = vld [vmem:[%s3879_s0 + $0xa0] sm:$0xff] }
  0x25   :  { %1969 = vmatprep.subr.bf16.mxu0 %v2599_v37  ;;  %v39_v36 = vld [vmem:[%s3879_s0 + $0xe0] sm:$0xff]  ;;  %v2215_v37 = vcombine.low %v27_v30, %v35_v31  ;;  %v2743_v30 = vld [vmem:[%s3878_s1 + $0x214] ss:$8 sps:$4 sm:$0xff]  }
  0x26   :  { %v2746_v31 = vld [vmem:[%s3878_s1 + $0x614] ss:$8 sps:$4 sm:$0xff]  }
  0x27   :  { %1758 = vmatpush1.bf16.msra.mxu1 %v2601_v38  ;;  %v2677_v38 = vld [vmem:[%s3878_s1 + $0x164] ss:$8 sps:$4 sm:$0xff]  }
  0x28   :  { %1970 = vmatpush1.bf16.msra.mxu0 %v2602_v39  ;;  %1759 = vmatprep.subr.bf16.mxu1 %v2603_v40  ;;  %v2224_v39 = vcombine.high %v31_v35, %v39_v36  ;;  %v2223_v40 = vcombine.low %v31_v35, %v39_v36  ;;  %v2741_v36 = vld [vmem:[%s3878_s1 + $0x210] ss:$8 sps:$4 sm:$0xff]  }
  0x29   :  { %1971 = vmatprep.subr.bf16.mxu0 %v2605_v41  ;;  %v2680_v41 = vld [vmem:[%s3878_s1 + $0x564] ss:$8 sps:$4 sm:$0xff]  }
  0x2b   :  { %1760 = vmatpush1.bf16.msra.mxu1 %v2607_v42  ;;  %v2675_v42 = vld [vmem:[%s3878_s1 + $0x160] ss:$8 sps:$4 sm:$0xff]  }
  0x2c   :  { %1972 = vmatpush1.bf16.msra.mxu0 %v2608_v43  ;;  %1761 = vmatprep.subr.bf16.mxu1 %v2609_v44  ;;  %v2678_v43 = vld [vmem:[%s3878_s1 + $0x560] ss:$8 sps:$4 sm:$0xff]  }
  0x2d   :  { %1973 = vmatprep.subr.bf16.mxu0 %v2611_v45  ;;  %v3245_v44 = vld [vmem:[%s3879_s0 + $0x8] sm:$0xff] }
  0x2e   :  { %v3250_v45 = vld [vmem:[%s3879_s0 + $0x48] sm:$0xff] }
  0x2f   :  { %1762 = vmatpush1.bf16.msra.mxu1 %v2613_v46  ;;  %v2683_v46 = vld [vmem:[%s3878_s1 + $0x174] ss:$8 sps:$4 sm:$0xff]   ;;  %v2202_v48 = vcombine.high %v3245_v44, %v3250_v45 }
  0x30   :  { %1974 = vmatpush1.bf16.msra.mxu0 %v2614_v47  ;;  %1763 = vmatprep.subr.bf16.mxu1 %v2615_v50  ;;  %v2686_v47 = vld [vmem:[%s3878_s1 + $0x574] ss:$8 sps:$4 sm:$0xff]   ;;  %v3268_v50 = vld [vmem:[%s3879_s0 + $0x68] sm:$0xff] }
  0x31   :  { %1975 = vmatprep.subr.bf16.mxu0 %v2617_v51  ;;  %v2681_v51 = vld [vmem:[%s3878_s1 + $0x170] ss:$8 sps:$4 sm:$0xff]   ;;  %v2210_v53 = vcombine.high %v3263_v49, %v3268_v50 }
  0x33   :  { %1764 = vmatpush1.bf16.msra.mxu1 %v2619_v56  ;;  %v2687_v56 = vld [vmem:[%s3878_s1 + $0x180] ss:$8 sps:$4 sm:$0xff]  }
  0x34   :  { %1976 = vmatpush1.bf16.msra.mxu0 %v2620_v57  ;;  %1765 = vmatprep.subr.bf16.mxu1 %v2621_v58  ;;  %v2690_v57 = vld [vmem:[%s3878_s1 + $0x580] ss:$8 sps:$4 sm:$0xff]   ;;  %v2695_v58 = vld [vmem:[%s3878_s1 + $0x194] ss:$8 sps:$4 sm:$0xff]  }
  0x35   :  { %1977 = vmatprep.subr.bf16.mxu0 %v2623_v59  ;;  %v2698_v59 = vld [vmem:[%s3878_s1 + $0x594] ss:$8 sps:$4 sm:$0xff]  }
  0x37   :  { %1766 = vmatpush1.bf16.msra.mxu1 %v2625_v60  ;;  %v2693_v60 = vld [vmem:[%s3878_s1 + $0x190] ss:$8 sps:$4 sm:$0xff]  }
  0x38   :  { %1978 = vmatpush1.bf16.msra.mxu0 %v2626_v61  ;;  %1767 = vmatprep.subr.bf16.mxu1 %v2627_v62  ;;  %v2696_v61 = vld [vmem:[%s3878_s1 + $0x590] ss:$8 sps:$4 sm:$0xff]   ;;  %v2701_v62 = vld [vmem:[%s3878_s1 + $0x1a4] ss:$8 sps:$4 sm:$0xff]  }
  0x39   :  { %1979 = vmatprep.subr.bf16.mxu0 %v2629_v63  ;;  %v2704_v63 = vld [vmem:[%s3878_s1 + $0x5a4] ss:$8 sps:$4 sm:$0xff]  }
  0x3b   :  { %1768 = vmatpush1.bf16.msra.mxu1 %v2631_v0  ;;  %v2699_v0 = vld [vmem:[%s3878_s1 + $0x1a0] ss:$8 sps:$4 sm:$0xff]  }
  0x3c   :  { %1980 = vmatpush1.bf16.msra.mxu0 %v2632_v1  ;;  %1769 = vmatprep.subr.bf16.mxu1 %v2633_v2  ;;  %v2702_v1 = vld [vmem:[%s3878_s1 + $0x5a0] ss:$8 sps:$4 sm:$0xff]   ;;  %v2707_v2 = vld [vmem:[%s3878_s1 + $0x1b4] ss:$8 sps:$4 sm:$0xff]  }
  0x3d   :  { %1981 = vmatprep.subr.bf16.mxu0 %v2635_v3  ;;  %v2710_v3 = vld [vmem:[%s3878_s1 + $0x5b4] ss:$8 sps:$4 sm:$0xff]  }
  0x3f   :  { %1770 = vmatpush1.bf16.msra.mxu1 %v2637_v4  ;;  %v2705_v4 = vld [vmem:[%s3878_s1 + $0x1b0] ss:$8 sps:$4 sm:$0xff]  }
  0x40   :  { %1982 = vmatpush1.bf16.msra.mxu0 %v2638_v5  ;;  %1792 = vmatprep.subr.bf16.mxu1 %v2641_v6  ;;  %v2708_v5 = vld [vmem:[%s3878_s1 + $0x5b0] ss:$8 sps:$4 sm:$0xff]   ;;  %v2713_v6 = vld [vmem:[%s3878_s1 + $0x1c4] ss:$8 sps:$4 sm:$0xff]  }
  0x41   :  { %2004 = vmatprep.subr.bf16.mxu0 %v2644_v7  ;;  %v2716_v7 = vld [vmem:[%s3878_s1 + $0x5c4] ss:$8 sps:$4 sm:$0xff]  }
  0x42   :  { %1772 = vmatmul.mubr.bf16.vlgmr.msra.gmra.mrb[0].mxu1 %v2199_v8  ;;  %v2711_v8 = vld [vmem:[%s3878_s1 + $0x1c0] ss:$8 sps:$4 sm:$0xff]  }
  0x43   :  { %1984 = vmatmul.mubr.bf16.vlgmr.msra.gmra.mrb[0].mxu0 %v2207_v10  ;;  %1793 = vmatpush1.bf16.msra.mxu1 %v2639_v9  ;;  %v2714_v9 = vld [vmem:[%s3878_s1 + $0x5c0] ss:$8 sps:$4 sm:$0xff]   ;;  %v2719_v10 = vld [vmem:[%s3878_s1 + $0x1d4] ss:$8 sps:$4 sm:$0xff]  }
  0x44   :  { %2005 = vmatpush1.bf16.msra.mxu0 %v2642_v11  ;;  %1794 = vmatprep.subr.bf16.mxu1 %v2647_v12  ;;  %v2722_v11 = vld [vmem:[%s3878_s1 + $0x5d4] ss:$8 sps:$4 sm:$0xff]   ;;  %v2717_v12 = vld [vmem:[%s3878_s1 + $0x1d0] ss:$8 sps:$4 sm:$0xff]  }
  0x45   :  { %2006 = vmatprep.subr.bf16.mxu0 %v2650_v13  ;;  %1781 = vmatprep.mubr.bf16.mxu1 %v2216_v33  ;;  %v2720_v13 = vld [vmem:[%s3878_s1 + $0x5d0] ss:$8 sps:$4 sm:$0xff]   ;;  %v40_v33 = vld [vmem:[%s3879_s0 + $0xe8] sm:$0xff] }
  0x46   :  { %1993 = vmatprep.mubr.bf16.mxu0 %v2224_v39  ;;  %v2752_v39 = vld [vmem:[%s3878_s1 + $0x624] ss:$8 sps:$4 sm:$0xff]  }
  0x47   :  { %1795 = vmatpush1.bf16.msra.mxu1 %v2645_v14  ;;  %v2725_v14 = vld [vmem:[%s3878_s1 + $0x1e4] ss:$8 sps:$4 sm:$0xff]  }
  0x48   :  { %2007 = vmatpush1.bf16.msra.mxu0 %v2648_v15  ;;  %1796 = vmatprep.subr.bf16.mxu1 %v2653_v16  ;;  %v2728_v15 = vld [vmem:[%s3878_s1 + $0x5e4] ss:$8 sps:$4 sm:$0xff]   ;;  %v2723_v16 = vld [vmem:[%s3878_s1 + $0x1e0] ss:$8 sps:$4 sm:$0xff]  }
  0x49   :  { %2008 = vmatprep.subr.bf16.mxu0 %v2656_v17  ;;  %v2726_v17 = vld [vmem:[%s3878_s1 + $0x5e0] ss:$8 sps:$4 sm:$0xff]  }
  0x4a   :  { %1782 = vmatmul.mubr.bf16.gmra.mrb[4].mxu1 %v2215_v37  ;;  %v2744_v37 = vld [vmem:[%s3878_s1 + $0x610] ss:$8 sps:$4 sm:$0xff]  }
  0x4b   :  { %1797 = vmatpush1.bf16.msra.mxu1 %v2651_v18  ;;  %1994 = vmatmul.mubr.bf16.gmra.mrb[4].mxu0 %v2223_v40  ;;  %v2731_v18 = vld [vmem:[%s3878_s1 + $0x1f4] ss:$8 sps:$4 sm:$0xff]   ;;  %v2747_v40 = vld [vmem:[%s3878_s1 + $0x220] ss:$8 sps:$4 sm:$0xff]  }
  0x4c   :  { %2009 = vmatpush1.bf16.msra.mxu0 %v2654_v19  ;;  %1798 = vmatprep.subr.bf16.mxu1 %v2659_v20  ;;  %v2734_v19 = vld [vmem:[%s3878_s1 + $0x5f4] ss:$8 sps:$4 sm:$0xff]   ;;  %v2729_v20 = vld [vmem:[%s3878_s1 + $0x1f0] ss:$8 sps:$4 sm:$0xff]  }
  0x4d   :  { %2010 = vmatprep.subr.bf16.mxu0 %v2662_v21  ;;  %1824 = vmatprep.mubr.bf16.mxu1 %v2202_v48  ;;  %v2732_v21 = vld [vmem:[%s3878_s1 + $0x5f0] ss:$8 sps:$4 sm:$0xff]   ;;  %v2755_v48 = vld [vmem:[%s3878_s1 + $0x234] ss:$8 sps:$4 sm:$0xff]  }
  0x4e   :  { %2036 = vmatprep.mubr.bf16.mxu0 %v2210_v53  ;;  %v2756_v53 = vld [vmem:[%s3878_s1 + $0x630] ss:$8 sps:$4 sm:$0xff]  }
  0x4f   :  { %1799 = vmatpush1.bf16.msra.mxu1 %v2657_v22  ;;  %v2737_v22 = vld [vmem:[%s3878_s1 + $0x204] ss:$8 sps:$4 sm:$0xff]  }
  0x50   :  { %2011 = vmatpush1.bf16.msra.mxu0 %v2660_v23  ;;  %1800 = vmatprep.subr.bf16.mxu1 %v2665_v24  ;;  %v2740_v23 = vld [vmem:[%s3878_s1 + $0x604] ss:$8 sps:$4 sm:$0xff]   ;;  %v2735_v24 = vld [vmem:[%s3878_s1 + $0x200] ss:$8 sps:$4 sm:$0xff]  }
  0x51   :  { %2012 = vmatprep.subr.bf16.mxu0 %v2668_v25  ;;  %v2738_v25 = vld [vmem:[%s3878_s1 + $0x600] ss:$8 sps:$4 sm:$0xff]  }
  0x53   :  { %1801 = vmatpush1.bf16.msra.mxu1 %v2663_v26  ;;  %v28_v26 = vld [vmem:[%s3879_s0 + $0x88] sm:$0xff] }
  0x54   :  { %2013 = vmatpush1.bf16.msra.mxu0 %v2666_v27  ;;  %1802 = vmatprep.subr.bf16.mxu1 %v2671_v28  ;;  %v2201_v27 = vcombine.low %v3245_v44, %v3250_v45  ;;  %v2209_v28 = vcombine.low %v3263_v49, %v3268_v50  ;;  %v3434_v45 = vld [vmem:[%s3879_s0 + $0x50] sm:$0xff] }
  0x55   :  { %2014 = vmatprep.subr.bf16.mxu0 %v2674_v29  ;;  %v36_v29 = vld [vmem:[%s3879_s0 + $0xc8] sm:$0xff]  ;;  %v2758_v49 = vld [vmem:[%s3878_s1 + $0x634] ss:$8 sps:$4 sm:$0xff]  }
  0x57   :  { %1803 = vmatpush1.bf16.msra.mxu1 %v2669_v32  ;;  %v32_v32 = vld [vmem:[%s3879_s0 + $0xa8] sm:$0xff] }
  0x58   :  { %2015 = vmatpush1.bf16.msra.mxu0 %v2672_v34  ;;  %1804 = vmatprep.subr.bf16.mxu1 %v2677_v38  ;;  %v2218_v34 = vcombine.high %v28_v26, %v36_v29  ;;  %v2226_v35 = vcombine.high %v32_v32, %v40_v33  ;;  %v2749_v38 = vld [vmem:[%s3878_s1 + $0x224] ss:$8 sps:$4 sm:$0xff]   ;;  %v2225_v44 = vcombine.low %v32_v32, %v40_v33  ;;  %v2819_v32 = vld [vmem:[%s3878_s1 + $0x2e0] ss:$8 sps:$4 sm:$0xff]  }
  0x59   :  { %2016 = vmatprep.subr.bf16.mxu0 %v2680_v41  ;;  %v2750_v41 = vld [vmem:[%s3878_s1 + $0x620] ss:$8 sps:$4 sm:$0xff]  }
  0x5a   :  { %v2822_v33 = vld [vmem:[%s3878_s1 + $0x6e0] ss:$8 sps:$4 sm:$0xff]  }
  0x5b   :  { %1805 = vmatpush1.bf16.msra.mxu1 %v2675_v42  ;;  %v3429_v42 = vld [vmem:[%s3879_s0 + $0x10] sm:$0xff] }
  0x5c   :  { %2017 = vmatpush1.bf16.msra.mxu0 %v2678_v43  ;;  %1806 = vmatprep.subr.bf16.mxu1 %v2683_v46  ;;  %v2217_v43 = vcombine.low %v28_v26, %v36_v29  ;;  %v3439_v46 = vld [vmem:[%s3879_s0 + $0x30] sm:$0xff]  ;;  %v2204_v50 = vcombine.high %v3429_v42, %v3434_v45 }
  0x5d   :  { %2018 = vmatprep.subr.bf16.mxu0 %v2686_v47  ;;  %v3444_v47 = vld [vmem:[%s3879_s0 + $0x70] sm:$0xff] }
  0x5e   :  { %v2815_v26 = vld [vmem:[%s3878_s1 + $0x2d4] ss:$8 sps:$4 sm:$0xff]   ;;  %v2816_v29 = vld [vmem:[%s3878_s1 + $0x6d0] ss:$8 sps:$4 sm:$0xff]  }
  0x5f   :  { %1807 = vmatpush1.bf16.msra.mxu1 %v2681_v51  ;;  %v2212_v51 = vcombine.high %v3439_v46, %v3444_v47 }
  0x60   :  { %2019 = vmatpush1.bf16.msra.mxu0 %v2684_v52  ;;  %1808 = vmatprep.subr.bf16.mxu1 %v2689_v54  ;;  %v2753_v52 = vld [vmem:[%s3878_s1 + $0x230] ss:$8 sps:$4 sm:$0xff]   ;;  %v2761_v54 = vld [vmem:[%s3878_s1 + $0x244] ss:$8 sps:$4 sm:$0xff]  }
  0x61   :  { %2020 = vmatprep.subr.bf16.mxu0 %v2692_v55  ;;  %v2764_v55 = vld [vmem:[%s3878_s1 + $0x644] ss:$8 sps:$4 sm:$0xff]  }
  0x63   :  { %1809 = vmatpush1.bf16.msra.mxu1 %v2687_v56  ;;  %v2759_v56 = vld [vmem:[%s3878_s1 + $0x240] ss:$8 sps:$4 sm:$0xff]  }
  0x64   :  { %2021 = vmatpush1.bf16.msra.mxu0 %v2690_v57  ;;  %1810 = vmatprep.subr.bf16.mxu1 %v2695_v58  ;;  %v2762_v57 = vld [vmem:[%s3878_s1 + $0x640] ss:$8 sps:$4 sm:$0xff]   ;;  %v2767_v58 = vld [vmem:[%s3878_s1 + $0x254] ss:$8 sps:$4 sm:$0xff]  }
  0x65   :  { %2022 = vmatprep.subr.bf16.mxu0 %v2698_v59  ;;  %v2770_v59 = vld [vmem:[%s3878_s1 + $0x654] ss:$8 sps:$4 sm:$0xff]  }
  0x67   :  { %1811 = vmatpush1.bf16.msra.mxu1 %v2693_v60  ;;  %v2765_v60 = vld [vmem:[%s3878_s1 + $0x250] ss:$8 sps:$4 sm:$0xff]  }
  0x68   :  { %2023 = vmatpush1.bf16.msra.mxu0 %v2696_v61  ;;  %1812 = vmatprep.subr.bf16.mxu1 %v2701_v62  ;;  %v2768_v61 = vld [vmem:[%s3878_s1 + $0x650] ss:$8 sps:$4 sm:$0xff]   ;;  %v2773_v62 = vld [vmem:[%s3878_s1 + $0x264] ss:$8 sps:$4 sm:$0xff]  }
  0x69   :  { %2024 = vmatprep.subr.bf16.mxu0 %v2704_v63  ;;  %v2776_v63 = vld [vmem:[%s3878_s1 + $0x664] ss:$8 sps:$4 sm:$0xff]  }
  0x6b   :  { %1813 = vmatpush1.bf16.msra.mxu1 %v2699_v0  ;;  %v2771_v0 = vld [vmem:[%s3878_s1 + $0x260] ss:$8 sps:$4 sm:$0xff]  }
  0x6c   :  { %2025 = vmatpush1.bf16.msra.mxu0 %v2702_v1  ;;  %1814 = vmatprep.subr.bf16.mxu1 %v2707_v2  ;;  %v2774_v1 = vld [vmem:[%s3878_s1 + $0x660] ss:$8 sps:$4 sm:$0xff]   ;;  %v2779_v2 = vld [vmem:[%s3878_s1 + $0x274] ss:$8 sps:$4 sm:$0xff]  }
  0x6d   :  { %2026 = vmatprep.subr.bf16.mxu0 %v2710_v3  ;;  %v2782_v3 = vld [vmem:[%s3878_s1 + $0x674] ss:$8 sps:$4 sm:$0xff]  }
  0x6f   :  { %1815 = vmatpush1.bf16.msra.mxu1 %v2705_v4  ;;  %v2777_v4 = vld [vmem:[%s3878_s1 + $0x270] ss:$8 sps:$4 sm:$0xff]  }
  0x70   :  { %2027 = vmatpush1.bf16.msra.mxu0 %v2708_v5  ;;  %1816 = vmatprep.subr.bf16.mxu1 %v2713_v6  ;;  %v2780_v5 = vld [vmem:[%s3878_s1 + $0x670] ss:$8 sps:$4 sm:$0xff]   ;;  %v2785_v6 = vld [vmem:[%s3878_s1 + $0x284] ss:$8 sps:$4 sm:$0xff]  }
  0x71   :  { %2028 = vmatprep.subr.bf16.mxu0 %v2716_v7  ;;  %v2788_v7 = vld [vmem:[%s3878_s1 + $0x684] ss:$8 sps:$4 sm:$0xff]  }
  0x73   :  { %1817 = vmatpush1.bf16.msra.mxu1 %v2711_v8  ;;  %v2783_v8 = vld [vmem:[%s3878_s1 + $0x280] ss:$8 sps:$4 sm:$0xff]  }
  0x74   :  { %2029 = vmatpush1.bf16.msra.mxu0 %v2714_v9  ;;  %1818 = vmatprep.subr.bf16.mxu1 %v2719_v10  ;;  %v2786_v9 = vld [vmem:[%s3878_s1 + $0x680] ss:$8 sps:$4 sm:$0xff]   ;;  %v2791_v10 = vld [vmem:[%s3878_s1 + $0x294] ss:$8 sps:$4 sm:$0xff]  }
  0x75   :  { %2030 = vmatprep.subr.bf16.mxu0 %v2722_v11  ;;  %v2794_v11 = vld [vmem:[%s3878_s1 + $0x694] ss:$8 sps:$4 sm:$0xff]  }
  0x77   :  { %1819 = vmatpush1.bf16.msra.mxu1 %v2717_v12  ;;  %v2789_v12 = vld [vmem:[%s3878_s1 + $0x290] ss:$8 sps:$4 sm:$0xff]  }
  0x78   :  { %2031 = vmatpush1.bf16.msra.mxu0 %v2720_v13  ;;  %1820 = vmatprep.subr.bf16.mxu1 %v2725_v14  ;;  %v2792_v13 = vld [vmem:[%s3878_s1 + $0x690] ss:$8 sps:$4 sm:$0xff]   ;;  %v2797_v14 = vld [vmem:[%s3878_s1 + $0x2a4] ss:$8 sps:$4 sm:$0xff]  }
  0x79   :  { %2032 = vmatprep.subr.bf16.mxu0 %v2728_v15  ;;  %v2800_v15 = vld [vmem:[%s3878_s1 + $0x6a4] ss:$8 sps:$4 sm:$0xff]  }
  0x7b   :  { %1821 = vmatpush1.bf16.msra.mxu1 %v2723_v16  ;;  %v2795_v16 = vld [vmem:[%s3878_s1 + $0x2a0] ss:$8 sps:$4 sm:$0xff]  }
  0x7c   :  { %2033 = vmatpush1.bf16.msra.mxu0 %v2726_v17  ;;  %1822 = vmatprep.subr.bf16.mxu1 %v2731_v18  ;;  %v2798_v17 = vld [vmem:[%s3878_s1 + $0x6a0] ss:$8 sps:$4 sm:$0xff]   ;;  %v2803_v18 = vld [vmem:[%s3878_s1 + $0x2b4] ss:$8 sps:$4 sm:$0xff]  }
  0x7d   :  { %2034 = vmatprep.subr.bf16.mxu0 %v2734_v19  ;;  %v2806_v19 = vld [vmem:[%s3878_s1 + $0x6b4] ss:$8 sps:$4 sm:$0xff]  }
  0x7f   :  { %1823 = vmatpush1.bf16.msra.mxu1 %v2729_v20  ;;  %v2801_v20 = vld [vmem:[%s3878_s1 + $0x2b0] ss:$8 sps:$4 sm:$0xff]  }
  0x80   :  { %2035 = vmatpush1.bf16.msra.mxu0 %v2732_v21  ;;  %1845 = vmatprep.subr.bf16.mxu1 %v2737_v22  ;;  %v2804_v21 = vld [vmem:[%s3878_s1 + $0x6b0] ss:$8 sps:$4 sm:$0xff]   ;;  %v2809_v22 = vld [vmem:[%s3878_s1 + $0x2c4] ss:$8 sps:$4 sm:$0xff]  }
  0x81   :  { %2057 = vmatprep.subr.bf16.mxu0 %v2740_v23  ;;  %v2812_v23 = vld [vmem:[%s3878_s1 + $0x6c4] ss:$8 sps:$4 sm:$0xff]  }
  0x82   :  { %1825 = vmatmul.mubr.bf16.vlgmr.msra.gmra.mrb[0].mxu1 %v2201_v27  ;;  %v2818_v27 = vld [vmem:[%s3878_s1 + $0x6d4] ss:$8 sps:$4 sm:$0xff]  }
  0x83   :  { %2037 = vmatmul.mubr.bf16.vlgmr.msra.gmra.mrb[0].mxu0 %v2209_v28  ;;  %1846 = vmatpush1.bf16.msra.mxu1 %v2735_v24  ;;  %v2807_v24 = vld [vmem:[%s3878_s1 + $0x2c0] ss:$8 sps:$4 sm:$0xff]   ;;  %v2813_v28 = vld [vmem:[%s3878_s1 + $0x2d0] ss:$8 sps:$4 sm:$0xff]  }
  0x84   :  { %2058 = vmatpush1.bf16.msra.mxu0 %v2738_v25  ;;  %1847 = vmatprep.subr.bf16.mxu1 %v2743_v30  ;;  %v2810_v25 = vld [vmem:[%s3878_s1 + $0x6c0] ss:$8 sps:$4 sm:$0xff]   ;;  %v2821_v30 = vld [vmem:[%s3878_s1 + $0x2e4] ss:$8 sps:$4 sm:$0xff]  }
  0x85   :  { %2059 = vmatprep.subr.bf16.mxu0 %v2746_v31  ;;  %1834 = vmatprep.mubr.bf16.mxu1 %v2218_v34  ;;  %v2824_v31 = vld [vmem:[%s3878_s1 + $0x6e4] ss:$8 sps:$4 sm:$0xff]   ;;  %v2827_v34 = vld [vmem:[%s3878_s1 + $0x2f4] ss:$8 sps:$4 sm:$0xff]  }
  0x86   :  { %2046 = vmatprep.mubr.bf16.mxu0 %v2226_v35  ;;  %v2830_v35 = vld [vmem:[%s3878_s1 + $0x6f4] ss:$8 sps:$4 sm:$0xff]  }
  0x87   :  { %1848 = vmatpush1.bf16.msra.mxu1 %v2741_v36  ;;  %v2825_v36 = vld [vmem:[%s3878_s1 + $0x2f0] ss:$8 sps:$4 sm:$0xff]  }
  0x88   :  { %2060 = vmatpush1.bf16.msra.mxu0 %v2744_v37  ;;  %1849 = vmatprep.subr.bf16.mxu1 %v2749_v38  ;;  %v2828_v37 = vld [vmem:[%s3878_s1 + $0x6f0] ss:$8 sps:$4 sm:$0xff]   ;;  %v2833_v38 = vld [vmem:[%s3878_s1 + $0x304] ss:$8 sps:$4 sm:$0xff]  }
  0x89   :  { %2061 = vmatprep.subr.bf16.mxu0 %v2752_v39  ;;  %v2836_v39 = vld [vmem:[%s3878_s1 + $0x704] ss:$8 sps:$4 sm:$0xff]  }
  0x8a   :  { %1835 = vmatmul.mubr.bf16.gmra.mrb[4].mxu1 %v2217_v43  ;;  %v2211_v43 = vcombine.low %v3439_v46, %v3444_v47  ;;  %v2839_v46 = vld [vmem:[%s3878_s1 + $0x314] ss:$8 sps:$4 sm:$0xff]  }
  0x8b   :  { %2047 = vmatmul.mubr.bf16.gmra.mrb[4].mxu0 %v2225_v44  ;;  %1850 = vmatpush1.bf16.msra.mxu1 %v2747_v40  ;;  %v29_v40 = vld [vmem:[%s3879_s0 + $0x90] sm:$0xff] }
  0x8c   :  { %2062 = vmatpush1.bf16.msra.mxu0 %v2750_v41  ;;  %1851 = vmatprep.subr.bf16.mxu1 %v2755_v48  ;;  %v2203_v41 = vcombine.low %v3429_v42, %v3434_v45  ;;  %v37_v44 = vld [vmem:[%s3879_s0 + $0xd0] sm:$0xff]  ;;  %v2831_v42 = vld [vmem:[%s3878_s1 + $0x300] ss:$8 sps:$4 sm:$0xff]  }
  0x8d   :  { %2063 = vmatprep.subr.bf16.mxu0 %v2758_v49  ;;  %1877 = vmatprep.mubr.bf16.mxu1 %v2204_v50  ;;  %v33_v48 = vld [vmem:[%s3879_s0 + $0xb0] sm:$0xff]  ;;  %v2834_v45 = vld [vmem:[%s3878_s1 + $0x700] ss:$8 sps:$4 sm:$0xff]   ;;  %v2220_v50 = vcombine.high %v29_v40, %v37_v44 }
  0x8e   :  { %2089 = vmatprep.mubr.bf16.mxu0 %v2212_v51  ;;  %v41_v49 = vld [vmem:[%s3879_s0 + $0xf0] sm:$0xff] }
  0x8f   :  { %1852 = vmatpush1.bf16.msra.mxu1 %v2753_v52  ;;  %v2842_v47 = vld [vmem:[%s3878_s1 + $0x714] ss:$8 sps:$4 sm:$0xff]   ;;  %v2228_v51 = vcombine.high %v33_v48, %v41_v49  ;;  %v2837_v52 = vld [vmem:[%s3878_s1 + $0x310] ss:$8 sps:$4 sm:$0xff]  }
  0x90   :  { %2064 = vmatpush1.bf16.msra.mxu0 %v2756_v53  ;;  %1853 = vmatprep.subr.bf16.mxu1 %v2761_v54  ;;  %v2840_v53 = vld [vmem:[%s3878_s1 + $0x710] ss:$8 sps:$4 sm:$0xff]   ;;  %v2845_v54 = vld [vmem:[%s3878_s1 + $0x324] ss:$8 sps:$4 sm:$0xff]  }
  0x91   :  { %2065 = vmatprep.subr.bf16.mxu0 %v2764_v55  ;;  %v2848_v55 = vld [vmem:[%s3878_s1 + $0x724] ss:$8 sps:$4 sm:$0xff]  }
  0x93   :  { %1854 = vmatpush1.bf16.msra.mxu1 %v2759_v56  ;;  %v3655_v56 = vld [vmem:[%s3879_s0 + $0x18] sm:$0xff] }
  0x94   :  { %2066 = vmatpush1.bf16.msra.mxu0 %v2762_v57  ;;  %1855 = vmatprep.subr.bf16.mxu1 %v2767_v58  ;;  %v2219_v57 = vcombine.low %v29_v40, %v37_v44  ;;  %v2227_v58 = vcombine.low %v33_v48, %v41_v49  ;;  %v2903_v40 = vld [vmem:[%s3878_s1 + $0x3c0] ss:$8 sps:$4 sm:$0xff]   ;;  %v2914_v44 = vld [vmem:[%s3878_s1 + $0x7d4] ss:$8 sps:$4 sm:$0xff]   ;;  %v2909_v48 = vld [vmem:[%s3878_s1 + $0x3d0] ss:$8 sps:$4 sm:$0xff]  }
  0x95   :  { %2067 = vmatprep.subr.bf16.mxu0 %v2770_v59  ;;  %v3660_v59 = vld [vmem:[%s3879_s0 + $0x58] sm:$0xff] }
  0x96   :  { %v2912_v49 = vld [vmem:[%s3878_s1 + $0x7d0] ss:$8 sps:$4 sm:$0xff]  }
  0x97   :  { %1856 = vmatpush1.bf16.msra.mxu1 %v2765_v60  ;;  %v3665_v60 = vld [vmem:[%s3879_s0 + $0x38] sm:$0xff] }
  0x98   :  { %2068 = vmatpush1.bf16.msra.mxu0 %v2768_v61  ;;  %1857 = vmatprep.subr.bf16.mxu1 %v2773_v62  ;;  %v3670_v61 = vld [vmem:[%s3879_s0 + $0x78] sm:$0xff]  ;;  %v2843_v62 = vld [vmem:[%s3878_s1 + $0x320] ss:$8 sps:$4 sm:$0xff]  }
  0x99   :  { %2069 = vmatprep.subr.bf16.mxu0 %v2776_v63  ;;  %v2846_v63 = vld [vmem:[%s3878_s1 + $0x720] ss:$8 sps:$4 sm:$0xff]  }
  0x9b   :  { %1858 = vmatpush1.bf16.msra.mxu1 %v2771_v0  ;;  %v2851_v0 = vld [vmem:[%s3878_s1 + $0x334] ss:$8 sps:$4 sm:$0xff]  }
  0x9c   :  { %2070 = vmatpush1.bf16.msra.mxu0 %v2774_v1  ;;  %1859 = vmatprep.subr.bf16.mxu1 %v2779_v2  ;;  %v2854_v1 = vld [vmem:[%s3878_s1 + $0x734] ss:$8 sps:$4 sm:$0xff]   ;;  %v2206_v2 = vcombine.high %v3655_v56, %v3660_v59 }
  0x9d   :  { %2071 = vmatprep.subr.bf16.mxu0 %v2782_v3  ;;  %v2214_v3 = vcombine.high %v3665_v60, %v3670_v61 }
  0x9f   :  { %1860 = vmatpush1.bf16.msra.mxu1 %v2777_v4  ;;  %v2849_v4 = vld [vmem:[%s3878_s1 + $0x330] ss:$8 sps:$4 sm:$0xff]  }
  0xa0   :  { %2072 = vmatpush1.bf16.msra.mxu0 %v2780_v5  ;;  %1861 = vmatprep.subr.bf16.mxu1 %v2785_v6  ;;  %v2852_v5 = vld [vmem:[%s3878_s1 + $0x730] ss:$8 sps:$4 sm:$0xff]   ;;  %v2857_v6 = vld [vmem:[%s3878_s1 + $0x344] ss:$8 sps:$4 sm:$0xff]  }
  0xa1   :  { %2073 = vmatprep.subr.bf16.mxu0 %v2788_v7  ;;  %v2860_v7 = vld [vmem:[%s3878_s1 + $0x744] ss:$8 sps:$4 sm:$0xff]  }
  0xa3   :  { %1862 = vmatpush1.bf16.msra.mxu1 %v2783_v8  ;;  %v2855_v8 = vld [vmem:[%s3878_s1 + $0x340] ss:$8 sps:$4 sm:$0xff]  }
  0xa4   :  { %2074 = vmatpush1.bf16.msra.mxu0 %v2786_v9  ;;  %1863 = vmatprep.subr.bf16.mxu1 %v2791_v10  ;;  %v2858_v9 = vld [vmem:[%s3878_s1 + $0x740] ss:$8 sps:$4 sm:$0xff]   ;;  %v2863_v10 = vld [vmem:[%s3878_s1 + $0x354] ss:$8 sps:$4 sm:$0xff]  }
  0xa5   :  { %2075 = vmatprep.subr.bf16.mxu0 %v2794_v11  ;;  %v2866_v11 = vld [vmem:[%s3878_s1 + $0x754] ss:$8 sps:$4 sm:$0xff]  }
  0xa7   :  { %1864 = vmatpush1.bf16.msra.mxu1 %v2789_v12  ;;  %v2861_v12 = vld [vmem:[%s3878_s1 + $0x350] ss:$8 sps:$4 sm:$0xff]  }
  0xa8   :  { %2076 = vmatpush1.bf16.msra.mxu0 %v2792_v13  ;;  %1865 = vmatprep.subr.bf16.mxu1 %v2797_v14  ;;  %v2864_v13 = vld [vmem:[%s3878_s1 + $0x750] ss:$8 sps:$4 sm:$0xff]   ;;  %v2869_v14 = vld [vmem:[%s3878_s1 + $0x364] ss:$8 sps:$4 sm:$0xff]  }
  0xa9   :  { %2077 = vmatprep.subr.bf16.mxu0 %v2800_v15  ;;  %v2872_v15 = vld [vmem:[%s3878_s1 + $0x764] ss:$8 sps:$4 sm:$0xff]  }
  0xab   :  { %1866 = vmatpush1.bf16.msra.mxu1 %v2795_v16  ;;  %v2867_v16 = vld [vmem:[%s3878_s1 + $0x360] ss:$8 sps:$4 sm:$0xff]  }
  0xac   :  { %2078 = vmatpush1.bf16.msra.mxu0 %v2798_v17  ;;  %1867 = vmatprep.subr.bf16.mxu1 %v2803_v18  ;;  %v2870_v17 = vld [vmem:[%s3878_s1 + $0x760] ss:$8 sps:$4 sm:$0xff]   ;;  %v2875_v18 = vld [vmem:[%s3878_s1 + $0x374] ss:$8 sps:$4 sm:$0xff]  }
  0xad   :  { %2079 = vmatprep.subr.bf16.mxu0 %v2806_v19  ;;  %v2878_v19 = vld [vmem:[%s3878_s1 + $0x774] ss:$8 sps:$4 sm:$0xff]  }
  0xaf   :  { %1868 = vmatpush1.bf16.msra.mxu1 %v2801_v20  ;;  %v2873_v20 = vld [vmem:[%s3878_s1 + $0x370] ss:$8 sps:$4 sm:$0xff]  }
  0xb0   :  { %2080 = vmatpush1.bf16.msra.mxu0 %v2804_v21  ;;  %1869 = vmatprep.subr.bf16.mxu1 %v2809_v22  ;;  %v2876_v21 = vld [vmem:[%s3878_s1 + $0x770] ss:$8 sps:$4 sm:$0xff]   ;;  %v2881_v22 = vld [vmem:[%s3878_s1 + $0x384] ss:$8 sps:$4 sm:$0xff]  }
  0xb1   :  { %2081 = vmatprep.subr.bf16.mxu0 %v2812_v23  ;;  %v2884_v23 = vld [vmem:[%s3878_s1 + $0x784] ss:$8 sps:$4 sm:$0xff]  }
  0xb3   :  { %1870 = vmatpush1.bf16.msra.mxu1 %v2807_v24  ;;  %v2879_v24 = vld [vmem:[%s3878_s1 + $0x380] ss:$8 sps:$4 sm:$0xff]  }
  0xb4   :  { %2082 = vmatpush1.bf16.msra.mxu0 %v2810_v25  ;;  %1871 = vmatprep.subr.bf16.mxu1 %v2815_v26  ;;  %v2882_v25 = vld [vmem:[%s3878_s1 + $0x780] ss:$8 sps:$4 sm:$0xff]   ;;  %v2887_v26 = vld [vmem:[%s3878_s1 + $0x394] ss:$8 sps:$4 sm:$0xff]  }
  0xb5   :  { %2083 = vmatprep.subr.bf16.mxu0 %v2818_v27  ;;  %v2890_v27 = vld [vmem:[%s3878_s1 + $0x794] ss:$8 sps:$4 sm:$0xff]  }
  0xb7   :  { %1872 = vmatpush1.bf16.msra.mxu1 %v2813_v28  ;;  %v2885_v28 = vld [vmem:[%s3878_s1 + $0x390] ss:$8 sps:$4 sm:$0xff]  }
  0xb8   :  { %2084 = vmatpush1.bf16.msra.mxu0 %v2816_v29  ;;  %1873 = vmatprep.subr.bf16.mxu1 %v2821_v30  ;;  %v2888_v29 = vld [vmem:[%s3878_s1 + $0x790] ss:$8 sps:$4 sm:$0xff]   ;;  %v2893_v30 = vld [vmem:[%s3878_s1 + $0x3a4] ss:$8 sps:$4 sm:$0xff]  }
  0xb9   :  { %2085 = vmatprep.subr.bf16.mxu0 %v2824_v31  ;;  %v2896_v31 = vld [vmem:[%s3878_s1 + $0x7a4] ss:$8 sps:$4 sm:$0xff]  }
  0xbb   :  { %1874 = vmatpush1.bf16.msra.mxu1 %v2819_v32  ;;  %v2891_v32 = vld [vmem:[%s3878_s1 + $0x3a0] ss:$8 sps:$4 sm:$0xff]  }
  0xbc   :  { %2086 = vmatpush1.bf16.msra.mxu0 %v2822_v33  ;;  %1875 = vmatprep.subr.bf16.mxu1 %v2827_v34  ;;  %v2894_v33 = vld [vmem:[%s3878_s1 + $0x7a0] ss:$8 sps:$4 sm:$0xff]   ;;  %v2899_v34 = vld [vmem:[%s3878_s1 + $0x3b4] ss:$8 sps:$4 sm:$0xff]  }
  0xbd   :  { %2087 = vmatprep.subr.bf16.mxu0 %v2830_v35  ;;  %v2902_v35 = vld [vmem:[%s3878_s1 + $0x7b4] ss:$8 sps:$4 sm:$0xff]  }
  0xbf   :  { %1876 = vmatpush1.bf16.msra.mxu1 %v2825_v36  ;;  %v2897_v36 = vld [vmem:[%s3878_s1 + $0x3b0] ss:$8 sps:$4 sm:$0xff]  }
  0xc0   :  { %2088 = vmatpush1.bf16.msra.mxu0 %v2828_v37  ;;  %1898 = vmatprep.subr.bf16.mxu1 %v2833_v38  ;;  %v2900_v37 = vld [vmem:[%s3878_s1 + $0x7b0] ss:$8 sps:$4 sm:$0xff]   ;;  %v2905_v38 = vld [vmem:[%s3878_s1 + $0x3c4] ss:$8 sps:$4 sm:$0xff]  }
  0xc1   :  { %2110 = vmatprep.subr.bf16.mxu0 %v2836_v39  ;;  %v2908_v39 = vld [vmem:[%s3878_s1 + $0x7c4] ss:$8 sps:$4 sm:$0xff]  }
  0xc2   :  { %1878 = vmatmul.mubr.bf16.vlgmr.msra.gmra.mrb[0].mxu1 %v2203_v41  ;;  %v2906_v41 = vld [vmem:[%s3878_s1 + $0x7c0] ss:$8 sps:$4 sm:$0xff]  }
  0xc3   :  { %2090 = vmatmul.mubr.bf16.vlgmr.msra.gmra.mrb[0].mxu0 %v2211_v43  ;;  %1899 = vmatpush1.bf16.msra.mxu1 %v2831_v42  ;;  %v2911_v43 = vld [vmem:[%s3878_s1 + $0x3d4] ss:$8 sps:$4 sm:$0xff]   ;;  %v2917_v42 = vld [vmem:[%s3878_s1 + $0x3e4] ss:$8 sps:$4 sm:$0xff]  }
  0xc4   :  { %2111 = vmatpush1.bf16.msra.mxu0 %v2834_v45  ;;  %1900 = vmatprep.subr.bf16.mxu1 %v2839_v46  ;;  %v2920_v45 = vld [vmem:[%s3878_s1 + $0x7e4] ss:$8 sps:$4 sm:$0xff]   ;;  %v2915_v46 = vld [vmem:[%s3878_s1 + $0x3e0] ss:$8 sps:$4 sm:$0xff]  }
  0xc5   :  { %2112 = vmatprep.subr.bf16.mxu0 %v2842_v47  ;;  %1887 = vmatprep.mubr.bf16.mxu1 %v2220_v50  ;;  %v2918_v47 = vld [vmem:[%s3878_s1 + $0x7e0] ss:$8 sps:$4 sm:$0xff]   ;;  %v2923_v50 = vld [vmem:[%s3878_s1 + $0x3f4] ss:$8 sps:$4 sm:$0xff]  }
  0xc6   :  { %2099 = vmatprep.mubr.bf16.mxu0 %v2228_v51  ;;  %v2926_v51 = vld [vmem:[%s3878_s1 + $0x7f4] ss:$8 sps:$4 sm:$0xff]  }
  0xc7   :  { %1901 = vmatpush1.bf16.msra.mxu1 %v2837_v52  ;;  %v2921_v52 = vld [vmem:[%s3878_s1 + $0x3f0] ss:$8 sps:$4 sm:$0xff]  }
  0xc8   :  { %2113 = vmatpush1.bf16.msra.mxu0 %v2840_v53  ;;  %1902 = vmatprep.subr.bf16.mxu1 %v2845_v54  ;;  %v2924_v53 = vld [vmem:[%s3878_s1 + $0x7f0] ss:$8 sps:$4 sm:$0xff]  }
  0xc9   :  { %2114 = vmatprep.subr.bf16.mxu0 %v2848_v55  ;;  %v30_v54 = vld [vmem:[%s3879_s0 + $0x98] sm:$0xff] }
  0xca   :  { %1888 = vmatmul.mubr.bf16.gmra.mrb[4].mxu1 %v2219_v57  ;;  %v38_v55 = vld [vmem:[%s3879_s0 + $0xd8] sm:$0xff] }
  0xcb   :  { %2100 = vmatmul.mubr.bf16.gmra.mrb[4].mxu0 %v2227_v58  ;;  %1903 = vmatpush1.bf16.msra.mxu1 %v2843_v62  ;;  %v34_v57 = vld [vmem:[%s3879_s0 + $0xb8] sm:$0xff]  ;;  %v2205_v62 = vcombine.low %v3655_v56, %v3660_v59 }
  0xcc   :  { %2115 = vmatpush1.bf16.msra.mxu0 %v2846_v63  ;;  %1904 = vmatprep.subr.bf16.mxu1 %v2851_v0  ;;  %v42_v58 = vld [vmem:[%s3879_s0 + $0xf8] sm:$0xff]  ;;  %v2213_v63 = vcombine.low %v3665_v60, %v3670_v61  ;;  %v2222_v0 = vcombine.high %v30_v54, %v38_v55 }
  0xcd   :  { %2116 = vmatprep.subr.bf16.mxu0 %v2854_v1  ;;  %1930 = vmatprep.mubr.bf16.mxu1 %v2206_v2  ;;  %v2230_v1 = vcombine.high %v34_v57, %v42_v58  ;;  %v2221_v2 = vcombine.low %v30_v54, %v38_v55 }
  0xce   :  { %2142 = vmatprep.mubr.bf16.mxu0 %v2214_v3  ;;  %v2229_v3 = vcombine.low %v34_v57, %v42_v58 }
  0xcf   :  { %1905 = vmatpush1.bf16.msra.mxu1 %v2849_v4 }
  0xd0   :  { %2117 = vmatpush1.bf16.msra.mxu0 %v2852_v5  ;;  %1906 = vmatprep.subr.bf16.mxu1 %v2857_v6 }
  0xd1   :  { %2118 = vmatprep.subr.bf16.mxu0 %v2860_v7 }
  0xd3   :  { %1907 = vmatpush1.bf16.msra.mxu1 %v2855_v8 }
  0xd4   :  { %2119 = vmatpush1.bf16.msra.mxu0 %v2858_v9  ;;  %1908 = vmatprep.subr.bf16.mxu1 %v2863_v10 }
  0xd5   :  { %2120 = vmatprep.subr.bf16.mxu0 %v2866_v11 }
  0xd7   :  { %1909 = vmatpush1.bf16.msra.mxu1 %v2861_v12 }
  0xd8   :  { %2121 = vmatpush1.bf16.msra.mxu0 %v2864_v13  ;;  %1910 = vmatprep.subr.bf16.mxu1 %v2869_v14 }
  0xd9   :  { %2122 = vmatprep.subr.bf16.mxu0 %v2872_v15 }
  0xdb   :  { %1911 = vmatpush1.bf16.msra.mxu1 %v2867_v16 }
  0xdc   :  { %2123 = vmatpush1.bf16.msra.mxu0 %v2870_v17  ;;  %1912 = vmatprep.subr.bf16.mxu1 %v2875_v18 }
  0xdd   :  { %2124 = vmatprep.subr.bf16.mxu0 %v2878_v19 }
  0xdf   :  { %1913 = vmatpush1.bf16.msra.mxu1 %v2873_v20 }
  0xe0   :  { %2125 = vmatpush1.bf16.msra.mxu0 %v2876_v21  ;;  %1914 = vmatprep.subr.bf16.mxu1 %v2881_v22 }
  0xe1   :  { %2126 = vmatprep.subr.bf16.mxu0 %v2884_v23 }
  0xe3   :  { %1915 = vmatpush1.bf16.msra.mxu1 %v2879_v24 }
  0xe4   :  { %2127 = vmatpush1.bf16.msra.mxu0 %v2882_v25  ;;  %1916 = vmatprep.subr.bf16.mxu1 %v2887_v26 }
  0xe5   :  { %2128 = vmatprep.subr.bf16.mxu0 %v2890_v27 }
  0xe7   :  { %1917 = vmatpush1.bf16.msra.mxu1 %v2885_v28 }
  0xe8   :  { %2129 = vmatpush1.bf16.msra.mxu0 %v2888_v29  ;;  %1918 = vmatprep.subr.bf16.mxu1 %v2893_v30 }
  0xe9   :  { %2130 = vmatprep.subr.bf16.mxu0 %v2896_v31 }
  0xeb   :  { %1919 = vmatpush1.bf16.msra.mxu1 %v2891_v32 }
  0xec   :  { %2131 = vmatpush1.bf16.msra.mxu0 %v2894_v33  ;;  %1920 = vmatprep.subr.bf16.mxu1 %v2899_v34 }
  0xed   :  { %2132 = vmatprep.subr.bf16.mxu0 %v2902_v35 }
  0xef   :  { %1921 = vmatpush1.bf16.msra.mxu1 %v2897_v36 }
  0xf0   :  { %2133 = vmatpush1.bf16.msra.mxu0 %v2900_v37  ;;  %1922 = vmatprep.subr.bf16.mxu1 %v2905_v38 }
  0xf1   :  { %2134 = vmatprep.subr.bf16.mxu0 %v2908_v39 }
  0xf3   :  { %1923 = vmatpush1.bf16.msra.mxu1 %v2903_v40 }
  0xf4   :  { %2135 = vmatpush1.bf16.msra.mxu0 %v2906_v41  ;;  %1924 = vmatprep.subr.bf16.mxu1 %v2911_v43 }
  0xf5   :  { %2136 = vmatprep.subr.bf16.mxu0 %v2914_v44 }
  0xf7   :  { %1925 = vmatpush1.bf16.msra.mxu1 %v2909_v48 }
  0xf8   :  { %2137 = vmatpush1.bf16.msra.mxu0 %v2912_v49  ;;  %1926 = vmatprep.subr.bf16.mxu1 %v2917_v42 }
  0xf9   :  { %2138 = vmatprep.subr.bf16.mxu0 %v2920_v45 }
  0xfb   :  { %1927 = vmatpush1.bf16.msra.mxu1 %v2915_v46 }
  0xfc   :  { %2139 = vmatpush1.bf16.msra.mxu0 %v2918_v47  ;;  %1928 = vmatprep.subr.bf16.mxu1 %v2923_v50 }
  0xfd   :  { %2140 = vmatprep.subr.bf16.mxu0 %v2926_v51 }
  0xff   :  { %1929 = vmatpush1.bf16.msra.mxu1 %v2921_v52 }
 0x100   :  { %2141 = vmatpush1.bf16.msra.mxu0 %v2924_v53 }
 0x102   :  { %1931 = vmatmul.mubr.bf16.vlgmr.msra.gmra.mrb[0].mxu1 %v2205_v62 }
 0x103   :  { %2143 = vmatmul.mubr.bf16.vlgmr.msra.gmra.mrb[0].mxu0 %v2213_v63  ;;  %1940 = vmatprep.mubr.bf16.mxu1 %v2222_v0 }
 0x104   :  { %2152 = vmatprep.mubr.bf16.mxu0 %v2230_v1 }
 0x10a   :  { %1941 = vmatmul.mubr.bf16.gmra.mrb[4].mxu1 %v2221_v2 }
 0x10b   :  { %2153 = vmatmul.mubr.bf16.gmra.mrb[4].mxu0 %v2229_v3 }
 0x1d5   :  { %v1932_v4 = vpop.f32.mrb[0].mxu1 }
 0x1d6   :  { %v2144_v5 = vpop.f32.mrb[0].mxu0  ;;  %v1934_v7 = vpop.f32.mrb[1].mxu1 }
 0x1d7   :  { %v2487_v6 = vadd.f32 %v2144_v5, %v1932_v4  ;;  %v2146_v56 = vpop.f32.mrb[1].mxu0  ;;  %v1936_v8 = vpop.f32.mrb[2].mxu1 }
 0x1d8   :  { %v2488_v59 = vadd.f32 %v2146_v56, %v1934_v7  ;;  %v2148_v60 = vpop.f32.mrb[2].mxu0  ;;  %v1938_v10 = vpop.f32.mrb[3].mxu1 }
 0x1d9   :  { %vm2163_vm0 = vcmp.ge.f32.partialorder %v2487_v6, 0.0  ;;  %v2171_v61 = vmul.f32 0.2, %v2487_v6  ;;  %v2489_v9 = vadd.f32 %v2148_v60, %v1936_v8  ;;  %v2150_v11 = vpop.f32.mrb[3].mxu0 }
 0x1da   :  { %vm2164_vm1 = vcmp.ge.f32.partialorder %v2488_v59, 0.0  ;;  %v2172_v12 = vmul.f32 0.2, %v2488_v59  ;;  %v2490_v13 = vadd.f32 %v2150_v11, %v1938_v10 }
 0x1db   :  { %v2179_v14 = vsel %vm2163_vm0, %v2487_v6, %v2171_v61  ;;  %vm2165_vm2 = vcmp.ge.f32.partialorder %v2489_v9, 0.0  ;;  %v2173_v15 = vmul.f32 0.2, %v2489_v9 }
 0x1dc   :  { %2187 = vst [vmem:[%s3880_s2] sm:$0xff] %v2179_v14  ;;  %v2180_v16 = vsel %vm2164_vm1, %v2488_v59, %v2172_v12  ;;  %vm2166_vm3 = vcmp.ge.f32.partialorder %v2490_v13, 0.0  ;;  %v2174_v17 = vmul.f32 0.2, %v2490_v13 }
 0x1dd   :  { %2188 = vst [vmem:[%s3880_s2 + $0x8] sm:$0xff] %v2180_v16  ;;  %v2181_v18 = vsel %vm2165_vm2, %v2489_v9, %v2173_v15  ;;  %v1942_v20 = vpop.f32.mrb[4].mxu1 }
 0x1de   :  { %2189 = vst [vmem:[%s3880_s2 + $0x10] sm:$0xff] %v2181_v18  ;;  %v2182_v19 = vsel %vm2166_vm3, %v2490_v13, %v2174_v17  ;;  %v2154_v21 = vpop.f32.mrb[4].mxu0  ;;  %v1944_v23 = vpop.f32.mrb[5].mxu1 }
 0x1df   :  { %2190 = vst [vmem:[%s3880_s2 + $0x18] sm:$0xff] %v2182_v19  ;;  %v2491_v22 = vadd.f32 %v2154_v21, %v1942_v20  ;;  %v2156_v24 = vpop.f32.mrb[5].mxu0  ;;  %v1946_v26 = vpop.f32.mrb[6].mxu1 }
 0x1e0   :  { %v2492_v25 = vadd.f32 %v2156_v24, %v1944_v23  ;;  %v2158_v27 = vpop.f32.mrb[6].mxu0  ;;  %v1948_v30 = vpop.f32.mrb[7].mxu1 }
 0x1e1   :  { %vm2167_vm4 = vcmp.ge.f32.partialorder %v2491_v22, 0.0  ;;  %v2175_v28 = vmul.f32 0.2, %v2491_v22  ;;  %v2493_v29 = vadd.f32 %v2158_v27, %v1946_v26  ;;  %v2160_v31 = vpop.f32.mrb[7].mxu0 }
 0x1e2   :  { %vm2168_vm5 = vcmp.ge.f32.partialorder %v2492_v25, 0.0  ;;  %v2176_v32 = vmul.f32 0.2, %v2492_v25  ;;  %v2494_v33 = vadd.f32 %v2160_v31, %v1948_v30 }
 0x1e3   :  { %v2183_v34 = vsel %vm2167_vm4, %v2491_v22, %v2175_v28  ;;  %vm2169_vm6 = vcmp.ge.f32.partialorder %v2493_v29, 0.0  ;;  %v2177_v35 = vmul.f32 0.2, %v2493_v29 }
 0x1e4   :  { %2191 = vst [vmem:[%s3880_s2 + $0x20] sm:$0xff] %v2183_v34  ;;  %v2184_v36 = vsel %vm2168_vm5, %v2492_v25, %v2176_v32  ;;  %vm2170_vm7 = vcmp.ge.f32.partialorder %v2494_v33, 0.0  ;;  %v2178_v37 = vmul.f32 0.2, %v2494_v33 }
 0x1e5   :  { %2192 = vst [vmem:[%s3880_s2 + $0x28] sm:$0xff] %v2184_v36  ;;  %v2185_v38 = vsel %vm2169_vm6, %v2493_v29, %v2177_v35 }
 0x1e6   :  { %2193 = vst [vmem:[%s3880_s2 + $0x30] sm:$0xff] %v2185_v38  ;;  %v2186_v39 = vsel %vm2170_vm7, %v2494_v33, %v2178_v37 }
 0x1e7   :  { %2194 = vst [vmem:[%s3880_s2 + $0x38] sm:$0xff] %v2186_v39 }

// kernel: discriminator_forward.8
= control target key start
LH: loop header
LB: loop body
LE: loop exit
PB: predicated region body
PF: predicated region fallthrough
CT: control target
= control target key end

     0   :  { %s14614_s1 = inlined_call_operand.vmem [shape: bf16[4096,512], index: 1, kind: input, shape index: {}]   ;;  %s14615_s0 = inlined_call_operand.vmem [shape: bf16[32,4096], index: 0, kind: input, shape index: {}]   ;;  %s14616_s2 = inlined_call_operand.vmem [shape: f32[32,512], index: 2, kind: output, shape index: {}]  }
   0x1   :  { %v9631_v0 = vld [vmem:[%s14614_s1 + $0x4] ss:$16 sps:$4 sm:$0xff]   ;;  %v9633_v1 = vld [vmem:[%s14614_s1 + $0xc] ss:$16 sps:$4 sm:$0xff]   ;;  %v9635_v2 = vld [vmem:[%s14614_s1] ss:$16 sps:$4 sm:$0xff]  }
   0x2   :  { %6539 = vmatprep.subr.bf16.mxu0 %v9631_v0  ;;  %v9636_v3 = vld [vmem:[%s14614_s1 + $0x8] ss:$16 sps:$4 sm:$0xff]   ;;  %7387 = vmatprep.subr.bf16.mxu1 %v9633_v1  ;;  %v9637_v4 = vld [vmem:[%s14614_s1 + $0x24] ss:$16 sps:$4 sm:$0xff]   ;;  %v9639_v5 = vld [vmem:[%s14614_s1 + $0x2c] ss:$16 sps:$4 sm:$0xff]  }
   0x3   :  { %6540 = vmatpush1.bf16.msra.mxu0 %v9635_v2  ;;  %7388 = vmatpush1.bf16.msra.mxu1 %v9636_v3  ;;  %v9641_v6 = vld [vmem:[%s14614_s1 + $0x20] ss:$16 sps:$4 sm:$0xff]   ;;  %v9642_v7 = vld [vmem:[%s14614_s1 + $0x28] ss:$16 sps:$4 sm:$0xff]   ;;  %v9643_v8 = vld [vmem:[%s14614_s1 + $0x44] ss:$16 sps:$4 sm:$0xff]  }
   0x4   :  { %6541 = vmatprep.subr.bf16.mxu0 %v9637_v4  ;;  %7389 = vmatprep.subr.bf16.mxu1 %v9639_v5  ;;  %v9645_v9 = vld [vmem:[%s14614_s1 + $0x4c] ss:$16 sps:$4 sm:$0xff]   ;;  %v9647_v10 = vld [vmem:[%s14614_s1 + $0x40] ss:$16 sps:$4 sm:$0xff]   ;;  %v9648_v11 = vld [vmem:[%s14614_s1 + $0x48] ss:$16 sps:$4 sm:$0xff]  }
   0x5   :  { %v9649_v12 = vld [vmem:[%s14614_s1 + $0x64] ss:$16 sps:$4 sm:$0xff]   ;;  %v9651_v13 = vld [vmem:[%s14614_s1 + $0x6c] ss:$16 sps:$4 sm:$0xff]   ;;  %v9653_v14 = vld [vmem:[%s14614_s1 + $0x60] ss:$16 sps:$4 sm:$0xff]  }
   0x6   :  { %v9654_v15 = vld [vmem:[%s14614_s1 + $0x68] ss:$16 sps:$4 sm:$0xff]   ;;  %v9655_v16 = vld [vmem:[%s14614_s1 + $0x84] ss:$16 sps:$4 sm:$0xff]   ;;  %v9657_v17 = vld [vmem:[%s14614_s1 + $0x8c] ss:$16 sps:$4 sm:$0xff]  }
   0x7   :  { %6542 = vmatpush1.bf16.msra.mxu0 %v9641_v6  ;;  %7390 = vmatpush1.bf16.msra.mxu1 %v9642_v7  ;;  %v9659_v18 = vld [vmem:[%s14614_s1 + $0x80] ss:$16 sps:$4 sm:$0xff]   ;;  %v9660_v19 = vld [vmem:[%s14614_s1 + $0x88] ss:$16 sps:$4 sm:$0xff]   ;;  %v9661_v20 = vld [vmem:[%s14614_s1 + $0xa4] ss:$16 sps:$4 sm:$0xff]  }
   0x8   :  { %6543 = vmatprep.subr.bf16.mxu0 %v9643_v8  ;;  %7391 = vmatprep.subr.bf16.mxu1 %v9645_v9  ;;  %v9663_v21 = vld [vmem:[%s14614_s1 + $0xac] ss:$16 sps:$4 sm:$0xff]   ;;  %v9665_v22 = vld [vmem:[%s14614_s1 + $0xa0] ss:$16 sps:$4 sm:$0xff]   ;;  %v9666_v23 = vld [vmem:[%s14614_s1 + $0xa8] ss:$16 sps:$4 sm:$0xff]  }
   0x9   :  { %v9667_v24 = vld [vmem:[%s14614_s1 + $0xc4] ss:$16 sps:$4 sm:$0xff]   ;;  %v9669_v25 = vld [vmem:[%s14614_s1 + $0xcc] ss:$16 sps:$4 sm:$0xff]   ;;  %v9671_v26 = vld [vmem:[%s14614_s1 + $0xc0] ss:$16 sps:$4 sm:$0xff]  }
   0xa   :  { %v9672_v27 = vld [vmem:[%s14614_s1 + $0xc8] ss:$16 sps:$4 sm:$0xff]   ;;  %v9673_v28 = vld [vmem:[%s14614_s1 + $0xe4] ss:$16 sps:$4 sm:$0xff]   ;;  %v9675_v29 = vld [vmem:[%s14614_s1 + $0xec] ss:$16 sps:$4 sm:$0xff]  }
   0xb   :  { %6544 = vmatpush1.bf16.msra.mxu0 %v9647_v10  ;;  %7392 = vmatpush1.bf16.msra.mxu1 %v9648_v11  ;;  %v9677_v30 = vld [vmem:[%s14614_s1 + $0xe0] ss:$16 sps:$4 sm:$0xff]   ;;  %v9678_v31 = vld [vmem:[%s14614_s1 + $0xe8] ss:$16 sps:$4 sm:$0xff]   ;;  %v9679_v32 = vld [vmem:[%s14614_s1 + $0x104] ss:$16 sps:$4 sm:$0xff]  }
   0xc   :  { %6545 = vmatprep.subr.bf16.mxu0 %v9649_v12  ;;  %7393 = vmatprep.subr.bf16.mxu1 %v9651_v13  ;;  %v9681_v33 = vld [vmem:[%s14614_s1 + $0x10c] ss:$16 sps:$4 sm:$0xff]   ;;  %v9683_v34 = vld [vmem:[%s14614_s1 + $0x100] ss:$16 sps:$4 sm:$0xff]   ;;  %v9684_v35 = vld [vmem:[%s14614_s1 + $0x108] ss:$16 sps:$4 sm:$0xff]  }
   0xd   :  { %v9685_v36 = vld [vmem:[%s14614_s1 + $0x124] ss:$16 sps:$4 sm:$0xff]   ;;  %v9687_v37 = vld [vmem:[%s14614_s1 + $0x12c] ss:$16 sps:$4 sm:$0xff]   ;;  %v9689_v38 = vld [vmem:[%s14614_s1 + $0x120] ss:$16 sps:$4 sm:$0xff]  }
   0xe   :  { %v9690_v39 = vld [vmem:[%s14614_s1 + $0x128] ss:$16 sps:$4 sm:$0xff]   ;;  %v9691_v40 = vld [vmem:[%s14614_s1 + $0x144] ss:$16 sps:$4 sm:$0xff]   ;;  %v9693_v41 = vld [vmem:[%s14614_s1 + $0x14c] ss:$16 sps:$4 sm:$0xff]  }
   0xf   :  { %6546 = vmatpush1.bf16.msra.mxu0 %v9653_v14  ;;  %7394 = vmatpush1.bf16.msra.mxu1 %v9654_v15  ;;  %v9695_v42 = vld [vmem:[%s14614_s1 + $0x140] ss:$16 sps:$4 sm:$0xff]   ;;  %v9696_v43 = vld [vmem:[%s14614_s1 + $0x148] ss:$16 sps:$4 sm:$0xff]   ;;  %v9697_v44 = vld [vmem:[%s14614_s1 + $0x164] ss:$16 sps:$4 sm:$0xff]  }
  0x10   :  { %6547 = vmatprep.subr.bf16.mxu0 %v9655_v16  ;;  %7395 = vmatprep.subr.bf16.mxu1 %v9657_v17  ;;  %v9699_v45 = vld [vmem:[%s14614_s1 + $0x16c] ss:$16 sps:$4 sm:$0xff]   ;;  %v11_v46 = vld [vmem:[%s14615_s0] sm:$0xff]  ;;  %v9702_v49 = vld [vmem:[%s14614_s1 + $0x168] ss:$16 sps:$4 sm:$0xff]  }
  0x11   :  { %v27_v47 = vld [vmem:[%s14615_s0 + $0x80] sm:$0xff]  ;;  %v9705_v52 = vld [vmem:[%s14614_s1 + $0x18c] ss:$16 sps:$4 sm:$0xff]   ;;  %v9708_v54 = vld [vmem:[%s14614_s1 + $0x188] ss:$16 sps:$4 sm:$0xff]  }
  0x12   :  { %v9701_v48 = vld [vmem:[%s14614_s1 + $0x160] ss:$16 sps:$4 sm:$0xff]   ;;  %v8304_v50 = vcombine.high %v11_v46, %v27_v47  ;;  %v9703_v51 = vld [vmem:[%s14614_s1 + $0x184] ss:$16 sps:$4 sm:$0xff]   ;;  %v9711_v56 = vld [vmem:[%s14614_s1 + $0x1ac] ss:$16 sps:$4 sm:$0xff]   ;;  %v8303_v5 = vcombine.low %v11_v46, %v27_v47 }
  0x13   :  { %6548 = vmatpush1.bf16.msra.mxu0 %v9659_v18  ;;  %7396 = vmatpush1.bf16.msra.mxu1 %v9660_v19  ;;  %v9707_v53 = vld [vmem:[%s14614_s1 + $0x180] ss:$16 sps:$4 sm:$0xff]   ;;  %v9709_v55 = vld [vmem:[%s14614_s1 + $0x1a4] ss:$16 sps:$4 sm:$0xff]   ;;  %v9714_v58 = vld [vmem:[%s14614_s1 + $0x1a8] ss:$16 sps:$4 sm:$0xff]  }
  0x14   :  { %6549 = vmatprep.subr.bf16.mxu0 %v9661_v20  ;;  %7397 = vmatprep.subr.bf16.mxu1 %v9663_v21  ;;  %v9713_v57 = vld [vmem:[%s14614_s1 + $0x1a0] ss:$16 sps:$4 sm:$0xff]   ;;  %v9715_v59 = vld [vmem:[%s14614_s1 + $0x1c4] ss:$16 sps:$4 sm:$0xff]   ;;  %v9717_v60 = vld [vmem:[%s14614_s1 + $0x1cc] ss:$16 sps:$4 sm:$0xff]  }
  0x15   :  { %6571 = vmatprep.mubr.bf16.mxu0 %v8304_v50  ;;  %7419 = vmatprep.mubr.bf16.mxu1 %v8304_v50  ;;  %v9719_v61 = vld [vmem:[%s14614_s1 + $0x1c0] ss:$16 sps:$4 sm:$0xff]   ;;  %v9720_v62 = vld [vmem:[%s14614_s1 + $0x1c8] ss:$16 sps:$4 sm:$0xff]   ;;  %v9721_v63 = vld [vmem:[%s14614_s1 + $0x1e4] ss:$16 sps:$4 sm:$0xff]  }
  0x16   :  { %v9723_v0 = vld [vmem:[%s14614_s1 + $0x1ec] ss:$16 sps:$4 sm:$0xff]   ;;  %v9725_v1 = vld [vmem:[%s14614_s1 + $0x1e0] ss:$16 sps:$4 sm:$0xff]   ;;  %v9726_v2 = vld [vmem:[%s14614_s1 + $0x1e8] ss:$16 sps:$4 sm:$0xff]  }
  0x17   :  { %6550 = vmatpush1.bf16.msra.mxu0 %v9665_v22  ;;  %7398 = vmatpush1.bf16.msra.mxu1 %v9666_v23  ;;  %v9729_v3 = vld [vmem:[%s14614_s1 + $0x204] ss:$16 sps:$4 sm:$0xff]   ;;  %v9732_v4 = vld [vmem:[%s14614_s1 + $0x20c] ss:$16 sps:$4 sm:$0xff]   ;;  %v9727_v6 = vld [vmem:[%s14614_s1 + $0x200] ss:$16 sps:$4 sm:$0xff]  }
  0x18   :  { %6551 = vmatprep.subr.bf16.mxu0 %v9667_v24  ;;  %7399 = vmatprep.subr.bf16.mxu1 %v9669_v25  ;;  %v9730_v7 = vld [vmem:[%s14614_s1 + $0x208] ss:$16 sps:$4 sm:$0xff]   ;;  %v9735_v8 = vld [vmem:[%s14614_s1 + $0x224] ss:$16 sps:$4 sm:$0xff]   ;;  %v9738_v9 = vld [vmem:[%s14614_s1 + $0x22c] ss:$16 sps:$4 sm:$0xff]  }
  0x19   :  { %v9733_v10 = vld [vmem:[%s14614_s1 + $0x220] ss:$16 sps:$4 sm:$0xff]   ;;  %v9736_v11 = vld [vmem:[%s14614_s1 + $0x228] ss:$16 sps:$4 sm:$0xff]   ;;  %v9741_v12 = vld [vmem:[%s14614_s1 + $0x244] ss:$16 sps:$4 sm:$0xff]  }
  0x1a   :  { %v9744_v13 = vld [vmem:[%s14614_s1 + $0x24c] ss:$16 sps:$4 sm:$0xff]   ;;  %v9739_v14 = vld [vmem:[%s14614_s1 + $0x240] ss:$16 sps:$4 sm:$0xff]   ;;  %v9742_v15 = vld [vmem:[%s14614_s1 + $0x248] ss:$16 sps:$4 sm:$0xff]  }
  0x1b   :  { %6552 = vmatpush1.bf16.msra.mxu0 %v9671_v26  ;;  %7400 = vmatpush1.bf16.msra.mxu1 %v9672_v27  ;;  %v9747_v16 = vld [vmem:[%s14614_s1 + $0x264] ss:$16 sps:$4 sm:$0xff]   ;;  %v9750_v17 = vld [vmem:[%s14614_s1 + $0x26c] ss:$16 sps:$4 sm:$0xff]   ;;  %v9745_v18 = vld [vmem:[%s14614_s1 + $0x260] ss:$16 sps:$4 sm:$0xff]  }
  0x1c   :  { %6553 = vmatprep.subr.bf16.mxu0 %v9673_v28  ;;  %7401 = vmatprep.subr.bf16.mxu1 %v9675_v29  ;;  %v9748_v19 = vld [vmem:[%s14614_s1 + $0x268] ss:$16 sps:$4 sm:$0xff]   ;;  %v9753_v20 = vld [vmem:[%s14614_s1 + $0x284] ss:$16 sps:$4 sm:$0xff]   ;;  %v9756_v21 = vld [vmem:[%s14614_s1 + $0x28c] ss:$16 sps:$4 sm:$0xff]  }
  0x1d   :  { %v9751_v22 = vld [vmem:[%s14614_s1 + $0x280] ss:$16 sps:$4 sm:$0xff]   ;;  %v9754_v23 = vld [vmem:[%s14614_s1 + $0x288] ss:$16 sps:$4 sm:$0xff]   ;;  %v9759_v24 = vld [vmem:[%s14614_s1 + $0x2a4] ss:$16 sps:$4 sm:$0xff]  }
  0x1e   :  { %v9762_v25 = vld [vmem:[%s14614_s1 + $0x2ac] ss:$16 sps:$4 sm:$0xff]   ;;  %v43_v26 = vld [vmem:[%s14615_s0 + $0x100] sm:$0xff]  ;;  %v9778_v46 = vld [vmem:[%s14614_s1 + $0x308] ss:$16 sps:$4 sm:$0xff]  }
  0x1f   :  { %6554 = vmatpush1.bf16.msra.mxu0 %v9677_v30  ;;  %7402 = vmatpush1.bf16.msra.mxu1 %v9678_v31  ;;  %v59_v27 = vld [vmem:[%s14615_s0 + $0x180] sm:$0xff]  ;;  %v9760_v30 = vld [vmem:[%s14614_s1 + $0x2a8] ss:$16 sps:$4 sm:$0xff]  }
  0x20   :  { %6555 = vmatprep.subr.bf16.mxu0 %v9679_v32  ;;  %7403 = vmatprep.subr.bf16.mxu1 %v9681_v33  ;;  %v8336_v28 = vcombine.high %v43_v26, %v59_v27  ;;  %v9757_v29 = vld [vmem:[%s14614_s1 + $0x2a0] ss:$16 sps:$4 sm:$0xff]   ;;  %v8335_v31 = vcombine.low %v43_v26, %v59_v27  ;;  %v9765_v32 = vld [vmem:[%s14614_s1 + $0x2c4] ss:$16 sps:$4 sm:$0xff]   ;;  %v9768_v33 = vld [vmem:[%s14614_s1 + $0x2cc] ss:$16 sps:$4 sm:$0xff]  }
  0x21   :  { %v9783_v47 = vld [vmem:[%s14614_s1 + $0x324] ss:$16 sps:$4 sm:$0xff]   ;;  %v9784_v50 = vld [vmem:[%s14614_s1 + $0x328] ss:$16 sps:$4 sm:$0xff]  }
  0x22   :  { %v11636_v27 = vld [vmem:[%s14615_s0 + $0x90] sm:$0xff] }
  0x23   :  { %6556 = vmatpush1.bf16.msra.mxu0 %v9683_v34  ;;  %7404 = vmatpush1.bf16.msra.mxu1 %v9684_v35  ;;  %v11467_v34 = vld [vmem:[%s14615_s0 + $0x8] sm:$0xff] }
  0x24   :  { %6557 = vmatprep.subr.bf16.mxu0 %v9685_v36  ;;  %7405 = vmatprep.subr.bf16.mxu1 %v9687_v37  ;;  %v11472_v35 = vld [vmem:[%s14615_s0 + $0x88] sm:$0xff]  ;;  %v9763_v36 = vld [vmem:[%s14614_s1 + $0x2c0] ss:$16 sps:$4 sm:$0xff]  }
  0x25   :  { %v9766_v37 = vld [vmem:[%s14614_s1 + $0x2c8] ss:$16 sps:$4 sm:$0xff]  }
  0x27   :  { %6558 = vmatpush1.bf16.msra.mxu0 %v9689_v38  ;;  %7406 = vmatpush1.bf16.msra.mxu1 %v9690_v39  ;;  %v8306_v38 = vcombine.high %v11467_v34, %v11472_v35  ;;  %v9771_v39 = vld [vmem:[%s14614_s1 + $0x2e4] ss:$16 sps:$4 sm:$0xff]  }
  0x28   :  { %6559 = vmatprep.subr.bf16.mxu0 %v9691_v40  ;;  %7407 = vmatprep.subr.bf16.mxu1 %v9693_v41  ;;  %v9774_v40 = vld [vmem:[%s14614_s1 + $0x2ec] ss:$16 sps:$4 sm:$0xff]   ;;  %v9769_v41 = vld [vmem:[%s14614_s1 + $0x2e0] ss:$16 sps:$4 sm:$0xff]  }
  0x2b   :  { %6560 = vmatpush1.bf16.msra.mxu0 %v9695_v42  ;;  %7408 = vmatpush1.bf16.msra.mxu1 %v9696_v43  ;;  %v9772_v42 = vld [vmem:[%s14614_s1 + $0x2e8] ss:$16 sps:$4 sm:$0xff]   ;;  %v9777_v43 = vld [vmem:[%s14614_s1 + $0x304] ss:$16 sps:$4 sm:$0xff]  }
  0x2c   :  { %6561 = vmatprep.subr.bf16.mxu0 %v9697_v44  ;;  %7409 = vmatprep.subr.bf16.mxu1 %v9699_v45  ;;  %v9780_v44 = vld [vmem:[%s14614_s1 + $0x30c] ss:$16 sps:$4 sm:$0xff]   ;;  %v9775_v45 = vld [vmem:[%s14614_s1 + $0x300] ss:$16 sps:$4 sm:$0xff]  }
  0x2f   :  { %6562 = vmatpush1.bf16.msra.mxu0 %v9701_v48  ;;  %7410 = vmatpush1.bf16.msra.mxu1 %v9702_v49  ;;  %v9786_v48 = vld [vmem:[%s14614_s1 + $0x32c] ss:$16 sps:$4 sm:$0xff]   ;;  %v9781_v49 = vld [vmem:[%s14614_s1 + $0x320] ss:$16 sps:$4 sm:$0xff]  }
  0x30   :  { %6563 = vmatprep.subr.bf16.mxu0 %v9703_v51  ;;  %7411 = vmatprep.subr.bf16.mxu1 %v9705_v52  ;;  %v9789_v51 = vld [vmem:[%s14614_s1 + $0x344] ss:$16 sps:$4 sm:$0xff]   ;;  %v9792_v52 = vld [vmem:[%s14614_s1 + $0x34c] ss:$16 sps:$4 sm:$0xff]  }
  0x33   :  { %6564 = vmatpush1.bf16.msra.mxu0 %v9707_v53  ;;  %7412 = vmatpush1.bf16.msra.mxu1 %v9708_v54  ;;  %v9787_v53 = vld [vmem:[%s14614_s1 + $0x340] ss:$16 sps:$4 sm:$0xff]   ;;  %v9790_v54 = vld [vmem:[%s14614_s1 + $0x348] ss:$16 sps:$4 sm:$0xff]  }
  0x34   :  { %6565 = vmatprep.subr.bf16.mxu0 %v9709_v55  ;;  %7413 = vmatprep.subr.bf16.mxu1 %v9711_v56  ;;  %v9795_v55 = vld [vmem:[%s14614_s1 + $0x364] ss:$16 sps:$4 sm:$0xff]   ;;  %v9798_v56 = vld [vmem:[%s14614_s1 + $0x36c] ss:$16 sps:$4 sm:$0xff]  }
  0x37   :  { %6566 = vmatpush1.bf16.msra.mxu0 %v9713_v57  ;;  %7414 = vmatpush1.bf16.msra.mxu1 %v9714_v58  ;;  %v9793_v57 = vld [vmem:[%s14614_s1 + $0x360] ss:$16 sps:$4 sm:$0xff]   ;;  %v9796_v58 = vld [vmem:[%s14614_s1 + $0x368] ss:$16 sps:$4 sm:$0xff]  }
  0x38   :  { %6567 = vmatprep.subr.bf16.mxu0 %v9715_v59  ;;  %7415 = vmatprep.subr.bf16.mxu1 %v9717_v60  ;;  %v9801_v59 = vld [vmem:[%s14614_s1 + $0x384] ss:$16 sps:$4 sm:$0xff]   ;;  %v9804_v60 = vld [vmem:[%s14614_s1 + $0x38c] ss:$16 sps:$4 sm:$0xff]  }
  0x3b   :  { %6568 = vmatpush1.bf16.msra.mxu0 %v9719_v61  ;;  %7416 = vmatpush1.bf16.msra.mxu1 %v9720_v62  ;;  %v9799_v61 = vld [vmem:[%s14614_s1 + $0x380] ss:$16 sps:$4 sm:$0xff]   ;;  %v9802_v62 = vld [vmem:[%s14614_s1 + $0x388] ss:$16 sps:$4 sm:$0xff]  }
  0x3c   :  { %6569 = vmatprep.subr.bf16.mxu0 %v9721_v63  ;;  %7417 = vmatprep.subr.bf16.mxu1 %v9723_v0  ;;  %v9807_v63 = vld [vmem:[%s14614_s1 + $0x3a4] ss:$16 sps:$4 sm:$0xff]   ;;  %v9810_v0 = vld [vmem:[%s14614_s1 + $0x3ac] ss:$16 sps:$4 sm:$0xff]  }
  0x3f   :  { %6570 = vmatpush1.bf16.msra.mxu0 %v9725_v1  ;;  %7418 = vmatpush1.bf16.msra.mxu1 %v9726_v2  ;;  %v9805_v1 = vld [vmem:[%s14614_s1 + $0x3a0] ss:$16 sps:$4 sm:$0xff]   ;;  %v9808_v2 = vld [vmem:[%s14614_s1 + $0x3a8] ss:$16 sps:$4 sm:$0xff]  }
  0x40   :  { %6592 = vmatprep.subr.bf16.mxu0 %v9729_v3  ;;  %7440 = vmatprep.subr.bf16.mxu1 %v9732_v4  ;;  %v9813_v3 = vld [vmem:[%s14614_s1 + $0x3c4] ss:$16 sps:$4 sm:$0xff]   ;;  %v9816_v4 = vld [vmem:[%s14614_s1 + $0x3cc] ss:$16 sps:$4 sm:$0xff]  }
  0x42   :  { %6572 = vmatmul.mubr.bf16.vlgmr.msra.gmra.mrb[0].mxu0 %v8303_v5  ;;  %7420 = vmatmul.mubr.bf16.vlgmr.msra.gmra.mrb[0].mxu1 %v8303_v5  ;;  %v9811_v5 = vld [vmem:[%s14614_s1 + $0x3c0] ss:$16 sps:$4 sm:$0xff]  }
  0x43   :  { %6593 = vmatpush1.bf16.msra.mxu0 %v9727_v6  ;;  %7441 = vmatpush1.bf16.msra.mxu1 %v9730_v7  ;;  %v9814_v6 = vld [vmem:[%s14614_s1 + $0x3c8] ss:$16 sps:$4 sm:$0xff]   ;;  %v9819_v7 = vld [vmem:[%s14614_s1 + $0x3e4] ss:$16 sps:$4 sm:$0xff]  }
  0x44   :  { %6594 = vmatprep.subr.bf16.mxu0 %v9735_v8  ;;  %7442 = vmatprep.subr.bf16.mxu1 %v9738_v9  ;;  %v9822_v8 = vld [vmem:[%s14614_s1 + $0x3ec] ss:$16 sps:$4 sm:$0xff]   ;;  %v9817_v9 = vld [vmem:[%s14614_s1 + $0x3e0] ss:$16 sps:$4 sm:$0xff]  }
  0x45   :  { %6581 = vmatprep.mubr.bf16.mxu0 %v8336_v28  ;;  %7429 = vmatprep.mubr.bf16.mxu1 %v8336_v28  ;;  %v9835_v28 = vld [vmem:[%s14614_s1 + $0x440] ss:$16 sps:$4 sm:$0xff]  }
  0x47   :  { %6595 = vmatpush1.bf16.msra.mxu0 %v9733_v10  ;;  %7443 = vmatpush1.bf16.msra.mxu1 %v9736_v11  ;;  %v9820_v10 = vld [vmem:[%s14614_s1 + $0x3e8] ss:$16 sps:$4 sm:$0xff]   ;;  %v9825_v11 = vld [vmem:[%s14614_s1 + $0x404] ss:$16 sps:$4 sm:$0xff]  }
  0x48   :  { %6596 = vmatprep.subr.bf16.mxu0 %v9741_v12  ;;  %7444 = vmatprep.subr.bf16.mxu1 %v9744_v13  ;;  %v9828_v12 = vld [vmem:[%s14614_s1 + $0x40c] ss:$16 sps:$4 sm:$0xff]   ;;  %v9823_v13 = vld [vmem:[%s14614_s1 + $0x400] ss:$16 sps:$4 sm:$0xff]  }
  0x4a   :  { %6582 = vmatmul.mubr.bf16.gmra.mrb[4].mxu0 %v8335_v31  ;;  %7430 = vmatmul.mubr.bf16.gmra.mrb[4].mxu1 %v8335_v31  ;;  %v9846_v31 = vld [vmem:[%s14614_s1 + $0x46c] ss:$16 sps:$4 sm:$0xff]  }
  0x4b   :  { %6597 = vmatpush1.bf16.msra.mxu0 %v9739_v14  ;;  %7445 = vmatpush1.bf16.msra.mxu1 %v9742_v15  ;;  %v9826_v14 = vld [vmem:[%s14614_s1 + $0x408] ss:$16 sps:$4 sm:$0xff]   ;;  %v8305_v15 = vcombine.low %v11467_v34, %v11472_v35  ;;  %v9849_v35 = vld [vmem:[%s14614_s1 + $0x484] ss:$16 sps:$4 sm:$0xff]  }
  0x4c   :  { %6598 = vmatprep.subr.bf16.mxu0 %v9747_v16  ;;  %7446 = vmatprep.subr.bf16.mxu1 %v9750_v17  ;;  %v44_v16 = vld [vmem:[%s14615_s0 + $0x108] sm:$0xff] }
  0x4d   :  { %6624 = vmatprep.mubr.bf16.mxu0 %v8306_v38  ;;  %7472 = vmatprep.mubr.bf16.mxu1 %v8306_v38  ;;  %v60_v17 = vld [vmem:[%s14615_s0 + $0x188] sm:$0xff] }
  0x4e   :  { %v8337_v26 = vcombine.low %v44_v16, %v60_v17  ;;  %v9844_v34 = vld [vmem:[%s14614_s1 + $0x468] ss:$16 sps:$4 sm:$0xff]  }
  0x4f   :  { %6599 = vmatpush1.bf16.msra.mxu0 %v9745_v18  ;;  %7447 = vmatpush1.bf16.msra.mxu1 %v9748_v19  ;;  %v9831_v18 = vld [vmem:[%s14614_s1 + $0x424] ss:$16 sps:$4 sm:$0xff]   ;;  %v9834_v19 = vld [vmem:[%s14614_s1 + $0x42c] ss:$16 sps:$4 sm:$0xff]   ;;  %v9850_v38 = vld [vmem:[%s14614_s1 + $0x488] ss:$16 sps:$4 sm:$0xff]  }
  0x50   :  { %6600 = vmatprep.subr.bf16.mxu0 %v9753_v20  ;;  %7448 = vmatprep.subr.bf16.mxu1 %v9756_v21  ;;  %v8338_v20 = vcombine.high %v44_v16, %v60_v17  ;;  %v9829_v21 = vld [vmem:[%s14614_s1 + $0x420] ss:$16 sps:$4 sm:$0xff]   ;;  %v9918_v16 = vld [vmem:[%s14614_s1 + $0x5ec] ss:$16 sps:$4 sm:$0xff]  }
  0x51   :  { %v9913_v17 = vld [vmem:[%s14614_s1 + $0x5e0] ss:$16 sps:$4 sm:$0xff]  }
  0x53   :  { %6601 = vmatpush1.bf16.msra.mxu0 %v9751_v22  ;;  %7449 = vmatpush1.bf16.msra.mxu1 %v9754_v23  ;;  %v9832_v22 = vld [vmem:[%s14614_s1 + $0x428] ss:$16 sps:$4 sm:$0xff]   ;;  %v9837_v23 = vld [vmem:[%s14614_s1 + $0x444] ss:$16 sps:$4 sm:$0xff]  }
  0x54   :  { %6602 = vmatprep.subr.bf16.mxu0 %v9759_v24  ;;  %7450 = vmatprep.subr.bf16.mxu1 %v9762_v25  ;;  %v9840_v24 = vld [vmem:[%s14614_s1 + $0x44c] ss:$16 sps:$4 sm:$0xff]   ;;  %v11631_v25 = vld [vmem:[%s14615_s0 + $0x10] sm:$0xff] }
  0x57   :  { %6603 = vmatpush1.bf16.msra.mxu0 %v9757_v29  ;;  %7451 = vmatpush1.bf16.msra.mxu1 %v9760_v30  ;;  %v9838_v29 = vld [vmem:[%s14614_s1 + $0x448] ss:$16 sps:$4 sm:$0xff]   ;;  %v9843_v30 = vld [vmem:[%s14614_s1 + $0x464] ss:$16 sps:$4 sm:$0xff]  }
  0x58   :  { %6604 = vmatprep.subr.bf16.mxu0 %v9765_v32  ;;  %7452 = vmatprep.subr.bf16.mxu1 %v9768_v33  ;;  %v8308_v32 = vcombine.high %v11631_v25, %v11636_v27  ;;  %v9841_v33 = vld [vmem:[%s14614_s1 + $0x460] ss:$16 sps:$4 sm:$0xff]  }
  0x5b   :  { %6605 = vmatpush1.bf16.msra.mxu0 %v9763_v36  ;;  %7453 = vmatpush1.bf16.msra.mxu1 %v9766_v37  ;;  %v9852_v36 = vld [vmem:[%s14614_s1 + $0x48c] ss:$16 sps:$4 sm:$0xff]   ;;  %v9847_v37 = vld [vmem:[%s14614_s1 + $0x480] ss:$16 sps:$4 sm:$0xff]  }
  0x5c   :  { %6606 = vmatprep.subr.bf16.mxu0 %v9771_v39  ;;  %7454 = vmatprep.subr.bf16.mxu1 %v9774_v40  ;;  %v9855_v39 = vld [vmem:[%s14614_s1 + $0x4a4] ss:$16 sps:$4 sm:$0xff]   ;;  %v9858_v40 = vld [vmem:[%s14614_s1 + $0x4ac] ss:$16 sps:$4 sm:$0xff]  }
  0x5f   :  { %6607 = vmatpush1.bf16.msra.mxu0 %v9769_v41  ;;  %7455 = vmatpush1.bf16.msra.mxu1 %v9772_v42  ;;  %v9853_v41 = vld [vmem:[%s14614_s1 + $0x4a0] ss:$16 sps:$4 sm:$0xff]   ;;  %v9856_v42 = vld [vmem:[%s14614_s1 + $0x4a8] ss:$16 sps:$4 sm:$0xff]  }
  0x60   :  { %6608 = vmatprep.subr.bf16.mxu0 %v9777_v43  ;;  %7456 = vmatprep.subr.bf16.mxu1 %v9780_v44  ;;  %v9861_v43 = vld [vmem:[%s14614_s1 + $0x4c4] ss:$16 sps:$4 sm:$0xff]   ;;  %v9864_v44 = vld [vmem:[%s14614_s1 + $0x4cc] ss:$16 sps:$4 sm:$0xff]  }
  0x63   :  { %6609 = vmatpush1.bf16.msra.mxu0 %v9775_v45  ;;  %7457 = vmatpush1.bf16.msra.mxu1 %v9778_v46  ;;  %v9859_v45 = vld [vmem:[%s14614_s1 + $0x4c0] ss:$16 sps:$4 sm:$0xff]   ;;  %v9862_v46 = vld [vmem:[%s14614_s1 + $0x4c8] ss:$16 sps:$4 sm:$0xff]  }
  0x64   :  { %6610 = vmatprep.subr.bf16.mxu0 %v9783_v47  ;;  %7458 = vmatprep.subr.bf16.mxu1 %v9786_v48  ;;  %v9867_v47 = vld [vmem:[%s14614_s1 + $0x4e4] ss:$16 sps:$4 sm:$0xff]   ;;  %v9870_v48 = vld [vmem:[%s14614_s1 + $0x4ec] ss:$16 sps:$4 sm:$0xff]  }
  0x67   :  { %6611 = vmatpush1.bf16.msra.mxu0 %v9781_v49  ;;  %7459 = vmatpush1.bf16.msra.mxu1 %v9784_v50  ;;  %v9865_v49 = vld [vmem:[%s14614_s1 + $0x4e0] ss:$16 sps:$4 sm:$0xff]   ;;  %v9868_v50 = vld [vmem:[%s14614_s1 + $0x4e8] ss:$16 sps:$4 sm:$0xff]  }
  0x68   :  { %6612 = vmatprep.subr.bf16.mxu0 %v9789_v51  ;;  %7460 = vmatprep.subr.bf16.mxu1 %v9792_v52  ;;  %v9873_v51 = vld [vmem:[%s14614_s1 + $0x504] ss:$16 sps:$4 sm:$0xff]   ;;  %v9876_v52 = vld [vmem:[%s14614_s1 + $0x50c] ss:$16 sps:$4 sm:$0xff]  }
  0x6b   :  { %6613 = vmatpush1.bf16.msra.mxu0 %v9787_v53  ;;  %7461 = vmatpush1.bf16.msra.mxu1 %v9790_v54  ;;  %v9871_v53 = vld [vmem:[%s14614_s1 + $0x500] ss:$16 sps:$4 sm:$0xff]   ;;  %v9874_v54 = vld [vmem:[%s14614_s1 + $0x508] ss:$16 sps:$4 sm:$0xff]  }
  0x6c   :  { %6614 = vmatprep.subr.bf16.mxu0 %v9795_v55  ;;  %7462 = vmatprep.subr.bf16.mxu1 %v9798_v56  ;;  %v9879_v55 = vld [vmem:[%s14614_s1 + $0x524] ss:$16 sps:$4 sm:$0xff]   ;;  %v9882_v56 = vld [vmem:[%s14614_s1 + $0x52c] ss:$16 sps:$4 sm:$0xff]  }
  0x6f   :  { %6615 = vmatpush1.bf16.msra.mxu0 %v9793_v57  ;;  %7463 = vmatpush1.bf16.msra.mxu1 %v9796_v58  ;;  %v9877_v57 = vld [vmem:[%s14614_s1 + $0x520] ss:$16 sps:$4 sm:$0xff]   ;;  %v9880_v58 = vld [vmem:[%s14614_s1 + $0x528] ss:$16 sps:$4 sm:$0xff]  }
  0x70   :  { %6616 = vmatprep.subr.bf16.mxu0 %v9801_v59  ;;  %7464 = vmatprep.subr.bf16.mxu1 %v9804_v60  ;;  %v9885_v59 = vld [vmem:[%s14614_s1 + $0x544] ss:$16 sps:$4 sm:$0xff]   ;;  %v9888_v60 = vld [vmem:[%s14614_s1 + $0x54c] ss:$16 sps:$4 sm:$0xff]  }
  0x73   :  { %6617 = vmatpush1.bf16.msra.mxu0 %v9799_v61  ;;  %7465 = vmatpush1.bf16.msra.mxu1 %v9802_v62  ;;  %v9883_v61 = vld [vmem:[%s14614_s1 + $0x540] ss:$16 sps:$4 sm:$0xff]   ;;  %v9886_v62 = vld [vmem:[%s14614_s1 + $0x548] ss:$16 sps:$4 sm:$0xff]  }
  0x74   :  { %6618 = vmatprep.subr.bf16.mxu0 %v9807_v63  ;;  %7466 = vmatprep.subr.bf16.mxu1 %v9810_v0  ;;  %v9891_v63 = vld [vmem:[%s14614_s1 + $0x564] ss:$16 sps:$4 sm:$0xff]   ;;  %v9894_v0 = vld [vmem:[%s14614_s1 + $0x56c] ss:$16 sps:$4 sm:$0xff]  }
  0x77   :  { %6619 = vmatpush1.bf16.msra.mxu0 %v9805_v1  ;;  %7467 = vmatpush1.bf16.msra.mxu1 %v9808_v2  ;;  %v9889_v1 = vld [vmem:[%s14614_s1 + $0x560] ss:$16 sps:$4 sm:$0xff]   ;;  %v9892_v2 = vld [vmem:[%s14614_s1 + $0x568] ss:$16 sps:$4 sm:$0xff]  }
  0x78   :  { %6620 = vmatprep.subr.bf16.mxu0 %v9813_v3  ;;  %7468 = vmatprep.subr.bf16.mxu1 %v9816_v4  ;;  %v9897_v3 = vld [vmem:[%s14614_s1 + $0x584] ss:$16 sps:$4 sm:$0xff]   ;;  %v9900_v4 = vld [vmem:[%s14614_s1 + $0x58c] ss:$16 sps:$4 sm:$0xff]  }
  0x7b   :  { %6621 = vmatpush1.bf16.msra.mxu0 %v9811_v5  ;;  %7469 = vmatpush1.bf16.msra.mxu1 %v9814_v6  ;;  %v9895_v5 = vld [vmem:[%s14614_s1 + $0x580] ss:$16 sps:$4 sm:$0xff]   ;;  %v9898_v6 = vld [vmem:[%s14614_s1 + $0x588] ss:$16 sps:$4 sm:$0xff]  }
  0x7c   :  { %6622 = vmatprep.subr.bf16.mxu0 %v9819_v7  ;;  %7470 = vmatprep.subr.bf16.mxu1 %v9822_v8  ;;  %v9903_v7 = vld [vmem:[%s14614_s1 + $0x5a4] ss:$16 sps:$4 sm:$0xff]   ;;  %v9906_v8 = vld [vmem:[%s14614_s1 + $0x5ac] ss:$16 sps:$4 sm:$0xff]  }
  0x7f   :  { %6623 = vmatpush1.bf16.msra.mxu0 %v9817_v9  ;;  %7471 = vmatpush1.bf16.msra.mxu1 %v9820_v10  ;;  %v9901_v9 = vld [vmem:[%s14614_s1 + $0x5a0] ss:$16 sps:$4 sm:$0xff]   ;;  %v9904_v10 = vld [vmem:[%s14614_s1 + $0x5a8] ss:$16 sps:$4 sm:$0xff]  }
  0x80   :  { %6645 = vmatprep.subr.bf16.mxu0 %v9825_v11  ;;  %7493 = vmatprep.subr.bf16.mxu1 %v9828_v12  ;;  %v9909_v11 = vld [vmem:[%s14614_s1 + $0x5c4] ss:$16 sps:$4 sm:$0xff]   ;;  %v9912_v12 = vld [vmem:[%s14614_s1 + $0x5cc] ss:$16 sps:$4 sm:$0xff]  }
  0x82   :  { %6625 = vmatmul.mubr.bf16.vlgmr.msra.gmra.mrb[0].mxu0 %v8305_v15  ;;  %7473 = vmatmul.mubr.bf16.vlgmr.msra.gmra.mrb[0].mxu1 %v8305_v15  ;;  %v9915_v15 = vld [vmem:[%s14614_s1 + $0x5e4] ss:$16 sps:$4 sm:$0xff]  }
  0x83   :  { %6646 = vmatpush1.bf16.msra.mxu0 %v9823_v13  ;;  %7494 = vmatpush1.bf16.msra.mxu1 %v9826_v14  ;;  %v9907_v13 = vld [vmem:[%s14614_s1 + $0x5c0] ss:$16 sps:$4 sm:$0xff]   ;;  %v9910_v14 = vld [vmem:[%s14614_s1 + $0x5c8] ss:$16 sps:$4 sm:$0xff]  }
  0x84   :  { %6647 = vmatprep.subr.bf16.mxu0 %v9831_v18  ;;  %7495 = vmatprep.subr.bf16.mxu1 %v9834_v19  ;;  %v9916_v18 = vld [vmem:[%s14614_s1 + $0x5e8] ss:$16 sps:$4 sm:$0xff]   ;;  %v9921_v19 = vld [vmem:[%s14614_s1 + $0x604] ss:$16 sps:$4 sm:$0xff]  }
  0x85   :  { %6634 = vmatprep.mubr.bf16.mxu0 %v8338_v20  ;;  %7482 = vmatprep.mubr.bf16.mxu1 %v8338_v20  ;;  %v9924_v20 = vld [vmem:[%s14614_s1 + $0x60c] ss:$16 sps:$4 sm:$0xff]  }
  0x87   :  { %6648 = vmatpush1.bf16.msra.mxu0 %v9829_v21  ;;  %7496 = vmatpush1.bf16.msra.mxu1 %v9832_v22  ;;  %v45_v21 = vld [vmem:[%s14615_s0 + $0x110] sm:$0xff]  ;;  %v8307_v22 = vcombine.low %v11631_v25, %v11636_v27  ;;  %v9930_v27 = vld [vmem:[%s14614_s1 + $0x62c] ss:$16 sps:$4 sm:$0xff]  }
  0x88   :  { %6649 = vmatprep.subr.bf16.mxu0 %v9837_v23  ;;  %7497 = vmatprep.subr.bf16.mxu1 %v9840_v24  ;;  %v61_v23 = vld [vmem:[%s14615_s0 + $0x190] sm:$0xff] }
  0x89   :  { %v9919_v24 = vld [vmem:[%s14614_s1 + $0x600] ss:$16 sps:$4 sm:$0xff]   ;;  %v9927_v25 = vld [vmem:[%s14614_s1 + $0x624] ss:$16 sps:$4 sm:$0xff]  }
  0x8a   :  { %6635 = vmatmul.mubr.bf16.gmra.mrb[4].mxu0 %v8337_v26  ;;  %7483 = vmatmul.mubr.bf16.gmra.mrb[4].mxu1 %v8337_v26  ;;  %v9922_v26 = vld [vmem:[%s14614_s1 + $0x608] ss:$16 sps:$4 sm:$0xff]  }
  0x8b   :  { %6650 = vmatpush1.bf16.msra.mxu0 %v9835_v28  ;;  %7498 = vmatpush1.bf16.msra.mxu1 %v9838_v29  ;;  %v8340_v28 = vcombine.high %v45_v21, %v61_v23  ;;  %v9925_v29 = vld [vmem:[%s14614_s1 + $0x620] ss:$16 sps:$4 sm:$0xff]  }
  0x8c   :  { %6651 = vmatprep.subr.bf16.mxu0 %v9843_v30  ;;  %7499 = vmatprep.subr.bf16.mxu1 %v9846_v31  ;;  %v9928_v30 = vld [vmem:[%s14614_s1 + $0x628] ss:$16 sps:$4 sm:$0xff]   ;;  %v9933_v31 = vld [vmem:[%s14614_s1 + $0x644] ss:$16 sps:$4 sm:$0xff]  }
  0x8d   :  { %6677 = vmatprep.mubr.bf16.mxu0 %v8308_v32  ;;  %7525 = vmatprep.mubr.bf16.mxu1 %v8308_v32  ;;  %v9936_v32 = vld [vmem:[%s14614_s1 + $0x64c] ss:$16 sps:$4 sm:$0xff]  }
  0x8f   :  { %6652 = vmatpush1.bf16.msra.mxu0 %v9841_v33  ;;  %7500 = vmatpush1.bf16.msra.mxu1 %v9844_v34  ;;  %v11843_v33 = vld [vmem:[%s14615_s0 + $0x18] sm:$0xff]  ;;  %v8339_v34 = vcombine.low %v45_v21, %v61_v23  ;;  %v10003_v21 = vld [vmem:[%s14614_s1 + $0x7c0] ss:$16 sps:$4 sm:$0xff]   ;;  %v10011_v23 = vld [vmem:[%s14614_s1 + $0x7e4] ss:$16 sps:$4 sm:$0xff]  }
  0x90   :  { %6653 = vmatprep.subr.bf16.mxu0 %v9849_v35  ;;  %7501 = vmatprep.subr.bf16.mxu1 %v9852_v36  ;;  %v11848_v35 = vld [vmem:[%s14615_s0 + $0x98] sm:$0xff]  ;;  %v9931_v36 = vld [vmem:[%s14614_s1 + $0x640] ss:$16 sps:$4 sm:$0xff]  }
  0x93   :  { %6654 = vmatpush1.bf16.msra.mxu0 %v9847_v37  ;;  %7502 = vmatpush1.bf16.msra.mxu1 %v9850_v38  ;;  %v9934_v37 = vld [vmem:[%s14614_s1 + $0x648] ss:$16 sps:$4 sm:$0xff]   ;;  %v9939_v38 = vld [vmem:[%s14614_s1 + $0x664] ss:$16 sps:$4 sm:$0xff]  }
  0x94   :  { %6655 = vmatprep.subr.bf16.mxu0 %v9855_v39  ;;  %7503 = vmatprep.subr.bf16.mxu1 %v9858_v40  ;;  %v9942_v39 = vld [vmem:[%s14614_s1 + $0x66c] ss:$16 sps:$4 sm:$0xff]   ;;  %v8310_v40 = vcombine.high %v11843_v33, %v11848_v35 }
  0x97   :  { %6656 = vmatpush1.bf16.msra.mxu0 %v9853_v41  ;;  %7504 = vmatpush1.bf16.msra.mxu1 %v9856_v42  ;;  %v9937_v41 = vld [vmem:[%s14614_s1 + $0x660] ss:$16 sps:$4 sm:$0xff]   ;;  %v9940_v42 = vld [vmem:[%s14614_s1 + $0x668] ss:$16 sps:$4 sm:$0xff]  }
  0x98   :  { %6657 = vmatprep.subr.bf16.mxu0 %v9861_v43  ;;  %7505 = vmatprep.subr.bf16.mxu1 %v9864_v44  ;;  %v9945_v43 = vld [vmem:[%s14614_s1 + $0x684] ss:$16 sps:$4 sm:$0xff]   ;;  %v9948_v44 = vld [vmem:[%s14614_s1 + $0x68c] ss:$16 sps:$4 sm:$0xff]  }
  0x9b   :  { %6658 = vmatpush1.bf16.msra.mxu0 %v9859_v45  ;;  %7506 = vmatpush1.bf16.msra.mxu1 %v9862_v46  ;;  %v9943_v45 = vld [vmem:[%s14614_s1 + $0x680] ss:$16 sps:$4 sm:$0xff]   ;;  %v9946_v46 = vld [vmem:[%s14614_s1 + $0x688] ss:$16 sps:$4 sm:$0xff]  }
  0x9c   :  { %6659 = vmatprep.subr.bf16.mxu0 %v9867_v47  ;;  %7507 = vmatprep.subr.bf16.mxu1 %v9870_v48  ;;  %v9951_v47 = vld [vmem:[%s14614_s1 + $0x6a4] ss:$16 sps:$4 sm:$0xff]   ;;  %v9954_v48 = vld [vmem:[%s14614_s1 + $0x6ac] ss:$16 sps:$4 sm:$0xff]  }
  0x9f   :  { %6660 = vmatpush1.bf16.msra.mxu0 %v9865_v49  ;;  %7508 = vmatpush1.bf16.msra.mxu1 %v9868_v50  ;;  %v9949_v49 = vld [vmem:[%s14614_s1 + $0x6a0] ss:$16 sps:$4 sm:$0xff]   ;;  %v9952_v50 = vld [vmem:[%s14614_s1 + $0x6a8] ss:$16 sps:$4 sm:$0xff]  }
  0xa0   :  { %6661 = vmatprep.subr.bf16.mxu0 %v9873_v51  ;;  %7509 = vmatprep.subr.bf16.mxu1 %v9876_v52  ;;  %v9957_v51 = vld [vmem:[%s14614_s1 + $0x6c4] ss:$16 sps:$4 sm:$0xff]   ;;  %v9960_v52 = vld [vmem:[%s14614_s1 + $0x6cc] ss:$16 sps:$4 sm:$0xff]  }
  0xa3   :  { %6662 = vmatpush1.bf16.msra.mxu0 %v9871_v53  ;;  %7510 = vmatpush1.bf16.msra.mxu1 %v9874_v54  ;;  %v9955_v53 = vld [vmem:[%s14614_s1 + $0x6c0] ss:$16 sps:$4 sm:$0xff]   ;;  %v9958_v54 = vld [vmem:[%s14614_s1 + $0x6c8] ss:$16 sps:$4 sm:$0xff]  }
  0xa4   :  { %6663 = vmatprep.subr.bf16.mxu0 %v9879_v55  ;;  %7511 = vmatprep.subr.bf16.mxu1 %v9882_v56  ;;  %v9963_v55 = vld [vmem:[%s14614_s1 + $0x6e4] ss:$16 sps:$4 sm:$0xff]   ;;  %v9966_v56 = vld [vmem:[%s14614_s1 + $0x6ec] ss:$16 sps:$4 sm:$0xff]  }
  0xa7   :  { %6664 = vmatpush1.bf16.msra.mxu0 %v9877_v57  ;;  %7512 = vmatpush1.bf16.msra.mxu1 %v9880_v58  ;;  %v9961_v57 = vld [vmem:[%s14614_s1 + $0x6e0] ss:$16 sps:$4 sm:$0xff]   ;;  %v9964_v58 = vld [vmem:[%s14614_s1 + $0x6e8] ss:$16 sps:$4 sm:$0xff]  }
  0xa8   :  { %6665 = vmatprep.subr.bf16.mxu0 %v9885_v59  ;;  %7513 = vmatprep.subr.bf16.mxu1 %v9888_v60  ;;  %v9969_v59 = vld [vmem:[%s14614_s1 + $0x704] ss:$16 sps:$4 sm:$0xff]   ;;  %v9972_v60 = vld [vmem:[%s14614_s1 + $0x70c] ss:$16 sps:$4 sm:$0xff]  }
  0xab   :  { %6666 = vmatpush1.bf16.msra.mxu0 %v9883_v61  ;;  %7514 = vmatpush1.bf16.msra.mxu1 %v9886_v62  ;;  %v9967_v61 = vld [vmem:[%s14614_s1 + $0x700] ss:$16 sps:$4 sm:$0xff]   ;;  %v9970_v62 = vld [vmem:[%s14614_s1 + $0x708] ss:$16 sps:$4 sm:$0xff]  }
  0xac   :  { %6667 = vmatprep.subr.bf16.mxu0 %v9891_v63  ;;  %7515 = vmatprep.subr.bf16.mxu1 %v9894_v0  ;;  %v9975_v63 = vld [vmem:[%s14614_s1 + $0x724] ss:$16 sps:$4 sm:$0xff]   ;;  %v9978_v0 = vld [vmem:[%s14614_s1 + $0x72c] ss:$16 sps:$4 sm:$0xff]  }
  0xaf   :  { %6668 = vmatpush1.bf16.msra.mxu0 %v9889_v1  ;;  %7516 = vmatpush1.bf16.msra.mxu1 %v9892_v2  ;;  %v9973_v1 = vld [vmem:[%s14614_s1 + $0x720] ss:$16 sps:$4 sm:$0xff]   ;;  %v9976_v2 = vld [vmem:[%s14614_s1 + $0x728] ss:$16 sps:$4 sm:$0xff]  }
  0xb0   :  { %6669 = vmatprep.subr.bf16.mxu0 %v9897_v3  ;;  %7517 = vmatprep.subr.bf16.mxu1 %v9900_v4  ;;  %v9981_v3 = vld [vmem:[%s14614_s1 + $0x744] ss:$16 sps:$4 sm:$0xff]   ;;  %v9984_v4 = vld [vmem:[%s14614_s1 + $0x74c] ss:$16 sps:$4 sm:$0xff]  }
  0xb3   :  { %6670 = vmatpush1.bf16.msra.mxu0 %v9895_v5  ;;  %7518 = vmatpush1.bf16.msra.mxu1 %v9898_v6  ;;  %v9979_v5 = vld [vmem:[%s14614_s1 + $0x740] ss:$16 sps:$4 sm:$0xff]   ;;  %v9982_v6 = vld [vmem:[%s14614_s1 + $0x748] ss:$16 sps:$4 sm:$0xff]  }
  0xb4   :  { %6671 = vmatprep.subr.bf16.mxu0 %v9903_v7  ;;  %7519 = vmatprep.subr.bf16.mxu1 %v9906_v8  ;;  %v9987_v7 = vld [vmem:[%s14614_s1 + $0x764] ss:$16 sps:$4 sm:$0xff]   ;;  %v9990_v8 = vld [vmem:[%s14614_s1 + $0x76c] ss:$16 sps:$4 sm:$0xff]  }
  0xb7   :  { %6672 = vmatpush1.bf16.msra.mxu0 %v9901_v9  ;;  %7520 = vmatpush1.bf16.msra.mxu1 %v9904_v10  ;;  %v9985_v9 = vld [vmem:[%s14614_s1 + $0x760] ss:$16 sps:$4 sm:$0xff]   ;;  %v9988_v10 = vld [vmem:[%s14614_s1 + $0x768] ss:$16 sps:$4 sm:$0xff]  }
  0xb8   :  { %6673 = vmatprep.subr.bf16.mxu0 %v9909_v11  ;;  %7521 = vmatprep.subr.bf16.mxu1 %v9912_v12  ;;  %v9993_v11 = vld [vmem:[%s14614_s1 + $0x784] ss:$16 sps:$4 sm:$0xff]   ;;  %v9996_v12 = vld [vmem:[%s14614_s1 + $0x78c] ss:$16 sps:$4 sm:$0xff]  }
  0xbb   :  { %6674 = vmatpush1.bf16.msra.mxu0 %v9907_v13  ;;  %7522 = vmatpush1.bf16.msra.mxu1 %v9910_v14  ;;  %v9991_v13 = vld [vmem:[%s14614_s1 + $0x780] ss:$16 sps:$4 sm:$0xff]   ;;  %v9994_v14 = vld [vmem:[%s14614_s1 + $0x788] ss:$16 sps:$4 sm:$0xff]  }
  0xbc   :  { %6675 = vmatprep.subr.bf16.mxu0 %v9915_v15  ;;  %7523 = vmatprep.subr.bf16.mxu1 %v9918_v16  ;;  %v9999_v15 = vld [vmem:[%s14614_s1 + $0x7a4] ss:$16 sps:$4 sm:$0xff]   ;;  %v10002_v16 = vld [vmem:[%s14614_s1 + $0x7ac] ss:$16 sps:$4 sm:$0xff]  }
  0xbf   :  { %6676 = vmatpush1.bf16.msra.mxu0 %v9913_v17  ;;  %7524 = vmatpush1.bf16.msra.mxu1 %v9916_v18  ;;  %v9997_v17 = vld [vmem:[%s14614_s1 + $0x7a0] ss:$16 sps:$4 sm:$0xff]   ;;  %v10000_v18 = vld [vmem:[%s14614_s1 + $0x7a8] ss:$16 sps:$4 sm:$0xff]  }
  0xc0   :  { %6698 = vmatprep.subr.bf16.mxu0 %v9921_v19  ;;  %7546 = vmatprep.subr.bf16.mxu1 %v9924_v20  ;;  %v10005_v19 = vld [vmem:[%s14614_s1 + $0x7c4] ss:$16 sps:$4 sm:$0xff]   ;;  %v10008_v20 = vld [vmem:[%s14614_s1 + $0x7cc] ss:$16 sps:$4 sm:$0xff]  }
  0xc2   :  { %6678 = vmatmul.mubr.bf16.vlgmr.msra.gmra.mrb[0].mxu0 %v8307_v22  ;;  %7526 = vmatmul.mubr.bf16.vlgmr.msra.gmra.mrb[0].mxu1 %v8307_v22  ;;  %v10006_v22 = vld [vmem:[%s14614_s1 + $0x7c8] ss:$16 sps:$4 sm:$0xff]  }
  0xc3   :  { %6699 = vmatpush1.bf16.msra.mxu0 %v9919_v24  ;;  %7547 = vmatpush1.bf16.msra.mxu1 %v9922_v26  ;;  %v10014_v24 = vld [vmem:[%s14614_s1 + $0x7ec] ss:$16 sps:$4 sm:$0xff]   ;;  %v10009_v26 = vld [vmem:[%s14614_s1 + $0x7e0] ss:$16 sps:$4 sm:$0xff]  }
  0xc4   :  { %6700 = vmatprep.subr.bf16.mxu0 %v9927_v25  ;;  %7548 = vmatprep.subr.bf16.mxu1 %v9930_v27  ;;  %v10012_v25 = vld [vmem:[%s14614_s1 + $0x7e8] ss:$16 sps:$4 sm:$0xff]   ;;  %v10017_v27 = vld [vmem:[%s14614_s1 + $0x804] ss:$16 sps:$4 sm:$0xff]  }
  0xc5   :  { %6687 = vmatprep.mubr.bf16.mxu0 %v8340_v28  ;;  %7535 = vmatprep.mubr.bf16.mxu1 %v8340_v28  ;;  %v10020_v28 = vld [vmem:[%s14614_s1 + $0x80c] ss:$16 sps:$4 sm:$0xff]  }
  0xc7   :  { %6701 = vmatpush1.bf16.msra.mxu0 %v9925_v29  ;;  %7549 = vmatpush1.bf16.msra.mxu1 %v9928_v30  ;;  %v46_v29 = vld [vmem:[%s14615_s0 + $0x118] sm:$0xff]  ;;  %v8309_v30 = vcombine.low %v11843_v33, %v11848_v35 }
  0xc8   :  { %6702 = vmatprep.subr.bf16.mxu0 %v9933_v31  ;;  %7550 = vmatprep.subr.bf16.mxu1 %v9936_v32  ;;  %v62_v31 = vld [vmem:[%s14615_s0 + $0x198] sm:$0xff]  ;;  %v10015_v32 = vld [vmem:[%s14614_s1 + $0x800] ss:$16 sps:$4 sm:$0xff]  }
  0xc9   :  { %v10026_v33 = vld [vmem:[%s14614_s1 + $0x82c] ss:$16 sps:$4 sm:$0xff]   ;;  %v8342_v35 = vcombine.high %v46_v29, %v62_v31 }
  0xca   :  { %6688 = vmatmul.mubr.bf16.gmra.mrb[4].mxu0 %v8339_v34  ;;  %7536 = vmatmul.mubr.bf16.gmra.mrb[4].mxu1 %v8339_v34  ;;  %v10018_v34 = vld [vmem:[%s14614_s1 + $0x808] ss:$16 sps:$4 sm:$0xff]  }
  0xcb   :  { %6703 = vmatpush1.bf16.msra.mxu0 %v9931_v36  ;;  %7551 = vmatpush1.bf16.msra.mxu1 %v9934_v37  ;;  %v10023_v36 = vld [vmem:[%s14614_s1 + $0x824] ss:$16 sps:$4 sm:$0xff]   ;;  %v10021_v37 = vld [vmem:[%s14614_s1 + $0x820] ss:$16 sps:$4 sm:$0xff]  }
  0xcc   :  { %6704 = vmatprep.subr.bf16.mxu0 %v9939_v38  ;;  %7552 = vmatprep.subr.bf16.mxu1 %v9942_v39  ;;  %v10024_v38 = vld [vmem:[%s14614_s1 + $0x828] ss:$16 sps:$4 sm:$0xff]   ;;  %v10029_v39 = vld [vmem:[%s14614_s1 + $0x844] ss:$16 sps:$4 sm:$0xff]  }
  0xcd   :  { %6730 = vmatprep.mubr.bf16.mxu0 %v8310_v40  ;;  %7578 = vmatprep.mubr.bf16.mxu1 %v8310_v40  ;;  %v10032_v40 = vld [vmem:[%s14614_s1 + $0x84c] ss:$16 sps:$4 sm:$0xff]  }
  0xcf   :  { %6705 = vmatpush1.bf16.msra.mxu0 %v9937_v41  ;;  %7553 = vmatpush1.bf16.msra.mxu1 %v9940_v42  ;;  %v12055_v41 = vld [vmem:[%s14615_s0 + $0x20] sm:$0xff]  ;;  %v8341_v42 = vcombine.low %v46_v29, %v62_v31 }
  0xd0   :  { %6706 = vmatprep.subr.bf16.mxu0 %v9945_v43  ;;  %7554 = vmatprep.subr.bf16.mxu1 %v9948_v44  ;;  %v12060_v43 = vld [vmem:[%s14615_s0 + $0xa0] sm:$0xff] }
  0xd1   :  { %v10027_v44 = vld [vmem:[%s14614_s1 + $0x840] ss:$16 sps:$4 sm:$0xff]   ;;  %v10107_v31 = vld [vmem:[%s14614_s1 + $0x9e4] ss:$16 sps:$4 sm:$0xff]  }
  0xd2   :  { %v10099_v29 = vld [vmem:[%s14614_s1 + $0x9c0] ss:$16 sps:$4 sm:$0xff]  }
  0xd3   :  { %6707 = vmatpush1.bf16.msra.mxu0 %v9943_v45  ;;  %7555 = vmatpush1.bf16.msra.mxu1 %v9946_v46  ;;  %v10030_v45 = vld [vmem:[%s14614_s1 + $0x848] ss:$16 sps:$4 sm:$0xff]   ;;  %v10035_v46 = vld [vmem:[%s14614_s1 + $0x864] ss:$16 sps:$4 sm:$0xff]  }
  0xd4   :  { %6708 = vmatprep.subr.bf16.mxu0 %v9951_v47  ;;  %7556 = vmatprep.subr.bf16.mxu1 %v9954_v48  ;;  %v10038_v47 = vld [vmem:[%s14614_s1 + $0x86c] ss:$16 sps:$4 sm:$0xff]   ;;  %v8312_v48 = vcombine.high %v12055_v41, %v12060_v43 }
  0xd7   :  { %6709 = vmatpush1.bf16.msra.mxu0 %v9949_v49  ;;  %7557 = vmatpush1.bf16.msra.mxu1 %v9952_v50  ;;  %v10033_v49 = vld [vmem:[%s14614_s1 + $0x860] ss:$16 sps:$4 sm:$0xff]   ;;  %v10036_v50 = vld [vmem:[%s14614_s1 + $0x868] ss:$16 sps:$4 sm:$0xff]  }
  0xd8   :  { %6710 = vmatprep.subr.bf16.mxu0 %v9957_v51  ;;  %7558 = vmatprep.subr.bf16.mxu1 %v9960_v52  ;;  %v10041_v51 = vld [vmem:[%s14614_s1 + $0x884] ss:$16 sps:$4 sm:$0xff]   ;;  %v10044_v52 = vld [vmem:[%s14614_s1 + $0x88c] ss:$16 sps:$4 sm:$0xff]  }
  0xdb   :  { %6711 = vmatpush1.bf16.msra.mxu0 %v9955_v53  ;;  %7559 = vmatpush1.bf16.msra.mxu1 %v9958_v54  ;;  %v10039_v53 = vld [vmem:[%s14614_s1 + $0x880] ss:$16 sps:$4 sm:$0xff]   ;;  %v10042_v54 = vld [vmem:[%s14614_s1 + $0x888] ss:$16 sps:$4 sm:$0xff]  }
  0xdc   :  { %6712 = vmatprep.subr.bf16.mxu0 %v9963_v55  ;;  %7560 = vmatprep.subr.bf16.mxu1 %v9966_v56  ;;  %v10047_v55 = vld [vmem:[%s14614_s1 + $0x8a4] ss:$16 sps:$4 sm:$0xff]   ;;  %v10050_v56 = vld [vmem:[%s14614_s1 + $0x8ac] ss:$16 sps:$4 sm:$0xff]  }
  0xdf   :  { %6713 = vmatpush1.bf16.msra.mxu0 %v9961_v57  ;;  %7561 = vmatpush1.bf16.msra.mxu1 %v9964_v58  ;;  %v10045_v57 = vld [vmem:[%s14614_s1 + $0x8a0] ss:$16 sps:$4 sm:$0xff]   ;;  %v10048_v58 = vld [vmem:[%s14614_s1 + $0x8a8] ss:$16 sps:$4 sm:$0xff]  }
  0xe0   :  { %6714 = vmatprep.subr.bf16.mxu0 %v9969_v59  ;;  %7562 = vmatprep.subr.bf16.mxu1 %v9972_v60  ;;  %v10053_v59 = vld [vmem:[%s14614_s1 + $0x8c4] ss:$16 sps:$4 sm:$0xff]   ;;  %v10056_v60 = vld [vmem:[%s14614_s1 + $0x8cc] ss:$16 sps:$4 sm:$0xff]  }
  0xe3   :  { %6715 = vmatpush1.bf16.msra.mxu0 %v9967_v61  ;;  %7563 = vmatpush1.bf16.msra.mxu1 %v9970_v62  ;;  %v10051_v61 = vld [vmem:[%s14614_s1 + $0x8c0] ss:$16 sps:$4 sm:$0xff]   ;;  %v10054_v62 = vld [vmem:[%s14614_s1 + $0x8c8] ss:$16 sps:$4 sm:$0xff]  }
  0xe4   :  { %6716 = vmatprep.subr.bf16.mxu0 %v9975_v63  ;;  %7564 = vmatprep.subr.bf16.mxu1 %v9978_v0  ;;  %v10059_v63 = vld [vmem:[%s14614_s1 + $0x8e4] ss:$16 sps:$4 sm:$0xff]   ;;  %v10062_v0 = vld [vmem:[%s14614_s1 + $0x8ec] ss:$16 sps:$4 sm:$0xff]  }
  0xe7   :  { %6717 = vmatpush1.bf16.msra.mxu0 %v9973_v1  ;;  %7565 = vmatpush1.bf16.msra.mxu1 %v9976_v2  ;;  %v10057_v1 = vld [vmem:[%s14614_s1 + $0x8e0] ss:$16 sps:$4 sm:$0xff]   ;;  %v10060_v2 = vld [vmem:[%s14614_s1 + $0x8e8] ss:$16 sps:$4 sm:$0xff]  }
  0xe8   :  { %6718 = vmatprep.subr.bf16.mxu0 %v9981_v3  ;;  %7566 = vmatprep.subr.bf16.mxu1 %v9984_v4  ;;  %v10065_v3 = vld [vmem:[%s14614_s1 + $0x904] ss:$16 sps:$4 sm:$0xff]   ;;  %v10068_v4 = vld [vmem:[%s14614_s1 + $0x90c] ss:$16 sps:$4 sm:$0xff]  }
  0xeb   :  { %6719 = vmatpush1.bf16.msra.mxu0 %v9979_v5  ;;  %7567 = vmatpush1.bf16.msra.mxu1 %v9982_v6  ;;  %v10063_v5 = vld [vmem:[%s14614_s1 + $0x900] ss:$16 sps:$4 sm:$0xff]   ;;  %v10066_v6 = vld [vmem:[%s14614_s1 + $0x908] ss:$16 sps:$4 sm:$0xff]  }
  0xec   :  { %6720 = vmatprep.subr.bf16.mxu0 %v9987_v7  ;;  %7568 = vmatprep.subr.bf16.mxu1 %v9990_v8  ;;  %v10071_v7 = vld [vmem:[%s14614_s1 + $0x924] ss:$16 sps:$4 sm:$0xff]   ;;  %v10074_v8 = vld [vmem:[%s14614_s1 + $0x92c] ss:$16 sps:$4 sm:$0xff]  }
  0xef   :  { %6721 = vmatpush1.bf16.msra.mxu0 %v9985_v9  ;;  %7569 = vmatpush1.bf16.msra.mxu1 %v9988_v10  ;;  %v10069_v9 = vld [vmem:[%s14614_s1 + $0x920] ss:$16 sps:$4 sm:$0xff]   ;;  %v10072_v10 = vld [vmem:[%s14614_s1 + $0x928] ss:$16 sps:$4 sm:$0xff]  }
  0xf0   :  { %6722 = vmatprep.subr.bf16.mxu0 %v9993_v11  ;;  %7570 = vmatprep.subr.bf16.mxu1 %v9996_v12  ;;  %v10077_v11 = vld [vmem:[%s14614_s1 + $0x944] ss:$16 sps:$4 sm:$0xff]   ;;  %v10080_v12 = vld [vmem:[%s14614_s1 + $0x94c] ss:$16 sps:$4 sm:$0xff]  }
  0xf3   :  { %6723 = vmatpush1.bf16.msra.mxu0 %v9991_v13  ;;  %7571 = vmatpush1.bf16.msra.mxu1 %v9994_v14  ;;  %v10075_v13 = vld [vmem:[%s14614_s1 + $0x940] ss:$16 sps:$4 sm:$0xff]   ;;  %v10078_v14 = vld [vmem:[%s14614_s1 + $0x948] ss:$16 sps:$4 sm:$0xff]  }
  0xf4   :  { %6724 = vmatprep.subr.bf16.mxu0 %v9999_v15  ;;  %7572 = vmatprep.subr.bf16.mxu1 %v10002_v16  ;;  %v10083_v15 = vld [vmem:[%s14614_s1 + $0x964] ss:$16 sps:$4 sm:$0xff]   ;;  %v10086_v16 = vld [vmem:[%s14614_s1 + $0x96c] ss:$16 sps:$4 sm:$0xff]  }
  0xf7   :  { %6725 = vmatpush1.bf16.msra.mxu0 %v9997_v17  ;;  %7573 = vmatpush1.bf16.msra.mxu1 %v10000_v18  ;;  %v10081_v17 = vld [vmem:[%s14614_s1 + $0x960] ss:$16 sps:$4 sm:$0xff]   ;;  %v10084_v18 = vld [vmem:[%s14614_s1 + $0x968] ss:$16 sps:$4 sm:$0xff]  }
  0xf8   :  { %6726 = vmatprep.subr.bf16.mxu0 %v10005_v19  ;;  %7574 = vmatprep.subr.bf16.mxu1 %v10008_v20  ;;  %v10089_v19 = vld [vmem:[%s14614_s1 + $0x984] ss:$16 sps:$4 sm:$0xff]   ;;  %v10092_v20 = vld [vmem:[%s14614_s1 + $0x98c] ss:$16 sps:$4 sm:$0xff]  }
  0xfb   :  { %6727 = vmatpush1.bf16.msra.mxu0 %v10003_v21  ;;  %7575 = vmatpush1.bf16.msra.mxu1 %v10006_v22  ;;  %v10087_v21 = vld [vmem:[%s14614_s1 + $0x980] ss:$16 sps:$4 sm:$0xff]   ;;  %v10090_v22 = vld [vmem:[%s14614_s1 + $0x988] ss:$16 sps:$4 sm:$0xff]  }
  0xfc   :  { %6728 = vmatprep.subr.bf16.mxu0 %v10011_v23  ;;  %7576 = vmatprep.subr.bf16.mxu1 %v10014_v24  ;;  %v10095_v23 = vld [vmem:[%s14614_s1 + $0x9a4] ss:$16 sps:$4 sm:$0xff]   ;;  %v10098_v24 = vld [vmem:[%s14614_s1 + $0x9ac] ss:$16 sps:$4 sm:$0xff]  }
  0xff   :  { %6729 = vmatpush1.bf16.msra.mxu0 %v10009_v26  ;;  %7577 = vmatpush1.bf16.msra.mxu1 %v10012_v25  ;;  %v10093_v26 = vld [vmem:[%s14614_s1 + $0x9a0] ss:$16 sps:$4 sm:$0xff]   ;;  %v10096_v25 = vld [vmem:[%s14614_s1 + $0x9a8] ss:$16 sps:$4 sm:$0xff]  }
 0x100   :  { %6751 = vmatprep.subr.bf16.mxu0 %v10017_v27  ;;  %7599 = vmatprep.subr.bf16.mxu1 %v10020_v28  ;;  %v10101_v27 = vld [vmem:[%s14614_s1 + $0x9c4] ss:$16 sps:$4 sm:$0xff]   ;;  %v10104_v28 = vld [vmem:[%s14614_s1 + $0x9cc] ss:$16 sps:$4 sm:$0xff]  }
 0x102   :  { %6731 = vmatmul.mubr.bf16.vlgmr.msra.gmra.mrb[0].mxu0 %v8309_v30  ;;  %7579 = vmatmul.mubr.bf16.vlgmr.msra.gmra.mrb[0].mxu1 %v8309_v30  ;;  %v10102_v30 = vld [vmem:[%s14614_s1 + $0x9c8] ss:$16 sps:$4 sm:$0xff]  }
 0x103   :  { %6752 = vmatpush1.bf16.msra.mxu0 %v10015_v32  ;;  %7600 = vmatpush1.bf16.msra.mxu1 %v10018_v34  ;;  %v10110_v32 = vld [vmem:[%s14614_s1 + $0x9ec] ss:$16 sps:$4 sm:$0xff]   ;;  %v10105_v34 = vld [vmem:[%s14614_s1 + $0x9e0] ss:$16 sps:$4 sm:$0xff]  }
 0x104   :  { %6753 = vmatprep.subr.bf16.mxu0 %v10023_v36  ;;  %7601 = vmatprep.subr.bf16.mxu1 %v10026_v33  ;;  %v10108_v36 = vld [vmem:[%s14614_s1 + $0x9e8] ss:$16 sps:$4 sm:$0xff]   ;;  %v10113_v33 = vld [vmem:[%s14614_s1 + $0xa04] ss:$16 sps:$4 sm:$0xff]  }
 0x105   :  { %6740 = vmatprep.mubr.bf16.mxu0 %v8342_v35  ;;  %7588 = vmatprep.mubr.bf16.mxu1 %v8342_v35  ;;  %v10116_v35 = vld [vmem:[%s14614_s1 + $0xa0c] ss:$16 sps:$4 sm:$0xff]  }
 0x107   :  { %6754 = vmatpush1.bf16.msra.mxu0 %v10021_v37  ;;  %7602 = vmatpush1.bf16.msra.mxu1 %v10024_v38  ;;  %v47_v37 = vld [vmem:[%s14615_s0 + $0x120] sm:$0xff] }
 0x108   :  { %6755 = vmatprep.subr.bf16.mxu0 %v10029_v39  ;;  %7603 = vmatprep.subr.bf16.mxu1 %v10032_v40  ;;  %v63_v38 = vld [vmem:[%s14615_s0 + $0x1a0] sm:$0xff]  ;;  %v8311_v39 = vcombine.low %v12055_v41, %v12060_v43  ;;  %v10122_v41 = vld [vmem:[%s14614_s1 + $0xa2c] ss:$16 sps:$4 sm:$0xff]  }
 0x109   :  { %v10111_v40 = vld [vmem:[%s14614_s1 + $0xa00] ss:$16 sps:$4 sm:$0xff]  }
 0x10a   :  { %6741 = vmatmul.mubr.bf16.gmra.mrb[4].mxu0 %v8341_v42  ;;  %7589 = vmatmul.mubr.bf16.gmra.mrb[4].mxu1 %v8341_v42  ;;  %v10114_v42 = vld [vmem:[%s14614_s1 + $0xa08] ss:$16 sps:$4 sm:$0xff]   ;;  %v10117_v43 = vld [vmem:[%s14614_s1 + $0xa20] ss:$16 sps:$4 sm:$0xff]  }
 0x10b   :  { %6756 = vmatpush1.bf16.msra.mxu0 %v10027_v44  ;;  %7604 = vmatpush1.bf16.msra.mxu1 %v10030_v45  ;;  %v10119_v44 = vld [vmem:[%s14614_s1 + $0xa24] ss:$16 sps:$4 sm:$0xff]   ;;  %v10120_v45 = vld [vmem:[%s14614_s1 + $0xa28] ss:$16 sps:$4 sm:$0xff]  }
 0x10c   :  { %6757 = vmatprep.subr.bf16.mxu0 %v10035_v46  ;;  %7605 = vmatprep.subr.bf16.mxu1 %v10038_v47  ;;  %v8344_v46 = vcombine.high %v47_v37, %v63_v38  ;;  %v10125_v47 = vld [vmem:[%s14614_s1 + $0xa44] ss:$16 sps:$4 sm:$0xff]  }
 0x10d   :  { %6783 = vmatprep.mubr.bf16.mxu0 %v8312_v48  ;;  %7631 = vmatprep.mubr.bf16.mxu1 %v8312_v48  ;;  %v10128_v48 = vld [vmem:[%s14614_s1 + $0xa4c] ss:$16 sps:$4 sm:$0xff]  }
 0x10f   :  { %6758 = vmatpush1.bf16.msra.mxu0 %v10033_v49  ;;  %7606 = vmatpush1.bf16.msra.mxu1 %v10036_v50  ;;  %v12267_v49 = vld [vmem:[%s14615_s0 + $0x28] sm:$0xff] }
 0x110   :  { %6759 = vmatprep.subr.bf16.mxu0 %v10041_v51  ;;  %7607 = vmatprep.subr.bf16.mxu1 %v10044_v52  ;;  %v12272_v50 = vld [vmem:[%s14615_s0 + $0xa8] sm:$0xff]  ;;  %v8343_v51 = vcombine.low %v47_v37, %v63_v38  ;;  %v10123_v52 = vld [vmem:[%s14614_s1 + $0xa40] ss:$16 sps:$4 sm:$0xff]  }
 0x111   :  { %v10195_v37 = vld [vmem:[%s14614_s1 + $0xbc0] ss:$16 sps:$4 sm:$0xff]   ;;  %v10198_v38 = vld [vmem:[%s14614_s1 + $0xbc8] ss:$16 sps:$4 sm:$0xff]  }
 0x113   :  { %6760 = vmatpush1.bf16.msra.mxu0 %v10039_v53  ;;  %7608 = vmatpush1.bf16.msra.mxu1 %v10042_v54  ;;  %v10126_v53 = vld [vmem:[%s14614_s1 + $0xa48] ss:$16 sps:$4 sm:$0xff]   ;;  %v10131_v54 = vld [vmem:[%s14614_s1 + $0xa64] ss:$16 sps:$4 sm:$0xff]  }
 0x114   :  { %6761 = vmatprep.subr.bf16.mxu0 %v10047_v55  ;;  %7609 = vmatprep.subr.bf16.mxu1 %v10050_v56  ;;  %v10134_v55 = vld [vmem:[%s14614_s1 + $0xa6c] ss:$16 sps:$4 sm:$0xff]   ;;  %v8314_v56 = vcombine.high %v12267_v49, %v12272_v50 }
 0x117   :  { %6762 = vmatpush1.bf16.msra.mxu0 %v10045_v57  ;;  %7610 = vmatpush1.bf16.msra.mxu1 %v10048_v58  ;;  %v10129_v57 = vld [vmem:[%s14614_s1 + $0xa60] ss:$16 sps:$4 sm:$0xff]   ;;  %v10132_v58 = vld [vmem:[%s14614_s1 + $0xa68] ss:$16 sps:$4 sm:$0xff]  }
 0x118   :  { %6763 = vmatprep.subr.bf16.mxu0 %v10053_v59  ;;  %7611 = vmatprep.subr.bf16.mxu1 %v10056_v60  ;;  %v10137_v59 = vld [vmem:[%s14614_s1 + $0xa84] ss:$16 sps:$4 sm:$0xff]   ;;  %v10140_v60 = vld [vmem:[%s14614_s1 + $0xa8c] ss:$16 sps:$4 sm:$0xff]  }
 0x11b   :  { %6764 = vmatpush1.bf16.msra.mxu0 %v10051_v61  ;;  %7612 = vmatpush1.bf16.msra.mxu1 %v10054_v62  ;;  %v10135_v61 = vld [vmem:[%s14614_s1 + $0xa80] ss:$16 sps:$4 sm:$0xff]   ;;  %v10138_v62 = vld [vmem:[%s14614_s1 + $0xa88] ss:$16 sps:$4 sm:$0xff]  }
 0x11c   :  { %6765 = vmatprep.subr.bf16.mxu0 %v10059_v63  ;;  %7613 = vmatprep.subr.bf16.mxu1 %v10062_v0  ;;  %v10143_v63 = vld [vmem:[%s14614_s1 + $0xaa4] ss:$16 sps:$4 sm:$0xff]   ;;  %v10146_v0 = vld [vmem:[%s14614_s1 + $0xaac] ss:$16 sps:$4 sm:$0xff]  }
 0x11f   :  { %6766 = vmatpush1.bf16.msra.mxu0 %v10057_v1  ;;  %7614 = vmatpush1.bf16.msra.mxu1 %v10060_v2  ;;  %v10141_v1 = vld [vmem:[%s14614_s1 + $0xaa0] ss:$16 sps:$4 sm:$0xff]   ;;  %v10144_v2 = vld [vmem:[%s14614_s1 + $0xaa8] ss:$16 sps:$4 sm:$0xff]  }
 0x120   :  { %6767 = vmatprep.subr.bf16.mxu0 %v10065_v3  ;;  %7615 = vmatprep.subr.bf16.mxu1 %v10068_v4  ;;  %v10149_v3 = vld [vmem:[%s14614_s1 + $0xac4] ss:$16 sps:$4 sm:$0xff]   ;;  %v10152_v4 = vld [vmem:[%s14614_s1 + $0xacc] ss:$16 sps:$4 sm:$0xff]  }
 0x123   :  { %6768 = vmatpush1.bf16.msra.mxu0 %v10063_v5  ;;  %7616 = vmatpush1.bf16.msra.mxu1 %v10066_v6  ;;  %v10147_v5 = vld [vmem:[%s14614_s1 + $0xac0] ss:$16 sps:$4 sm:$0xff]   ;;  %v10150_v6 = vld [vmem:[%s14614_s1 + $0xac8] ss:$16 sps:$4 sm:$0xff]  }
 0x124   :  { %6769 = vmatprep.subr.bf16.mxu0 %v10071_v7  ;;  %7617 = vmatprep.subr.bf16.mxu1 %v10074_v8  ;;  %v10155_v7 = vld [vmem:[%s14614_s1 + $0xae4] ss:$16 sps:$4 sm:$0xff]   ;;  %v10158_v8 = vld [vmem:[%s14614_s1 + $0xaec] ss:$16 sps:$4 sm:$0xff]  }
 0x127   :  { %6770 = vmatpush1.bf16.msra.mxu0 %v10069_v9  ;;  %7618 = vmatpush1.bf16.msra.mxu1 %v10072_v10  ;;  %v10153_v9 = vld [vmem:[%s14614_s1 + $0xae0] ss:$16 sps:$4 sm:$0xff]   ;;  %v10156_v10 = vld [vmem:[%s14614_s1 + $0xae8] ss:$16 sps:$4 sm:$0xff]  }
 0x128   :  { %6771 = vmatprep.subr.bf16.mxu0 %v10077_v11  ;;  %7619 = vmatprep.subr.bf16.mxu1 %v10080_v12  ;;  %v10161_v11 = vld [vmem:[%s14614_s1 + $0xb04] ss:$16 sps:$4 sm:$0xff]   ;;  %v10164_v12 = vld [vmem:[%s14614_s1 + $0xb0c] ss:$16 sps:$4 sm:$0xff]  }
 0x12b   :  { %6772 = vmatpush1.bf16.msra.mxu0 %v10075_v13  ;;  %7620 = vmatpush1.bf16.msra.mxu1 %v10078_v14  ;;  %v10159_v13 = vld [vmem:[%s14614_s1 + $0xb00] ss:$16 sps:$4 sm:$0xff]   ;;  %v10162_v14 = vld [vmem:[%s14614_s1 + $0xb08] ss:$16 sps:$4 sm:$0xff]  }
 0x12c   :  { %6773 = vmatprep.subr.bf16.mxu0 %v10083_v15  ;;  %7621 = vmatprep.subr.bf16.mxu1 %v10086_v16  ;;  %v10167_v15 = vld [vmem:[%s14614_s1 + $0xb24] ss:$16 sps:$4 sm:$0xff]   ;;  %v10170_v16 = vld [vmem:[%s14614_s1 + $0xb2c] ss:$16 sps:$4 sm:$0xff]  }
 0x12f   :  { %6774 = vmatpush1.bf16.msra.mxu0 %v10081_v17  ;;  %7622 = vmatpush1.bf16.msra.mxu1 %v10084_v18  ;;  %v10165_v17 = vld [vmem:[%s14614_s1 + $0xb20] ss:$16 sps:$4 sm:$0xff]   ;;  %v10168_v18 = vld [vmem:[%s14614_s1 + $0xb28] ss:$16 sps:$4 sm:$0xff]  }
 0x130   :  { %6775 = vmatprep.subr.bf16.mxu0 %v10089_v19  ;;  %7623 = vmatprep.subr.bf16.mxu1 %v10092_v20  ;;  %v10173_v19 = vld [vmem:[%s14614_s1 + $0xb44] ss:$16 sps:$4 sm:$0xff]   ;;  %v10176_v20 = vld [vmem:[%s14614_s1 + $0xb4c] ss:$16 sps:$4 sm:$0xff]  }
 0x133   :  { %6776 = vmatpush1.bf16.msra.mxu0 %v10087_v21  ;;  %7624 = vmatpush1.bf16.msra.mxu1 %v10090_v22  ;;  %v10171_v21 = vld [vmem:[%s14614_s1 + $0xb40] ss:$16 sps:$4 sm:$0xff]   ;;  %v10174_v22 = vld [vmem:[%s14614_s1 + $0xb48] ss:$16 sps:$4 sm:$0xff]  }
 0x134   :  { %6777 = vmatprep.subr.bf16.mxu0 %v10095_v23  ;;  %7625 = vmatprep.subr.bf16.mxu1 %v10098_v24  ;;  %v10179_v23 = vld [vmem:[%s14614_s1 + $0xb64] ss:$16 sps:$4 sm:$0xff]   ;;  %v10182_v24 = vld [vmem:[%s14614_s1 + $0xb6c] ss:$16 sps:$4 sm:$0xff]  }
 0x137   :  { %6778 = vmatpush1.bf16.msra.mxu0 %v10093_v26  ;;  %7626 = vmatpush1.bf16.msra.mxu1 %v10096_v25  ;;  %v10177_v26 = vld [vmem:[%s14614_s1 + $0xb60] ss:$16 sps:$4 sm:$0xff]   ;;  %v10180_v25 = vld [vmem:[%s14614_s1 + $0xb68] ss:$16 sps:$4 sm:$0xff]  }
 0x138   :  { %6779 = vmatprep.subr.bf16.mxu0 %v10101_v27  ;;  %7627 = vmatprep.subr.bf16.mxu1 %v10104_v28  ;;  %v10185_v27 = vld [vmem:[%s14614_s1 + $0xb84] ss:$16 sps:$4 sm:$0xff]   ;;  %v10188_v28 = vld [vmem:[%s14614_s1 + $0xb8c] ss:$16 sps:$4 sm:$0xff]  }
 0x13b   :  { %6780 = vmatpush1.bf16.msra.mxu0 %v10099_v29  ;;  %7628 = vmatpush1.bf16.msra.mxu1 %v10102_v30  ;;  %v10183_v29 = vld [vmem:[%s14614_s1 + $0xb80] ss:$16 sps:$4 sm:$0xff]   ;;  %v10186_v30 = vld [vmem:[%s14614_s1 + $0xb88] ss:$16 sps:$4 sm:$0xff]  }
 0x13c   :  { %6781 = vmatprep.subr.bf16.mxu0 %v10107_v31  ;;  %7629 = vmatprep.subr.bf16.mxu1 %v10110_v32  ;;  %v10191_v31 = vld [vmem:[%s14614_s1 + $0xba4] ss:$16 sps:$4 sm:$0xff]   ;;  %v10194_v32 = vld [vmem:[%s14614_s1 + $0xbac] ss:$16 sps:$4 sm:$0xff]  }
 0x13f   :  { %6782 = vmatpush1.bf16.msra.mxu0 %v10105_v34  ;;  %7630 = vmatpush1.bf16.msra.mxu1 %v10108_v36  ;;  %v10189_v34 = vld [vmem:[%s14614_s1 + $0xba0] ss:$16 sps:$4 sm:$0xff]   ;;  %v10192_v36 = vld [vmem:[%s14614_s1 + $0xba8] ss:$16 sps:$4 sm:$0xff]  }
 0x140   :  { %6804 = vmatprep.subr.bf16.mxu0 %v10113_v33  ;;  %7652 = vmatprep.subr.bf16.mxu1 %v10116_v35  ;;  %v10197_v33 = vld [vmem:[%s14614_s1 + $0xbc4] ss:$16 sps:$4 sm:$0xff]   ;;  %v10200_v35 = vld [vmem:[%s14614_s1 + $0xbcc] ss:$16 sps:$4 sm:$0xff]  }
 0x142   :  { %6784 = vmatmul.mubr.bf16.vlgmr.msra.gmra.mrb[0].mxu0 %v8311_v39  ;;  %7632 = vmatmul.mubr.bf16.vlgmr.msra.gmra.mrb[0].mxu1 %v8311_v39  ;;  %v10203_v39 = vld [vmem:[%s14614_s1 + $0xbe4] ss:$16 sps:$4 sm:$0xff]  }
 0x143   :  { %6805 = vmatpush1.bf16.msra.mxu0 %v10111_v40  ;;  %7653 = vmatpush1.bf16.msra.mxu1 %v10114_v42  ;;  %v10206_v40 = vld [vmem:[%s14614_s1 + $0xbec] ss:$16 sps:$4 sm:$0xff]   ;;  %v10201_v42 = vld [vmem:[%s14614_s1 + $0xbe0] ss:$16 sps:$4 sm:$0xff]  }
 0x144   :  { %6806 = vmatprep.subr.bf16.mxu0 %v10119_v44  ;;  %7654 = vmatprep.subr.bf16.mxu1 %v10122_v41  ;;  %v10204_v44 = vld [vmem:[%s14614_s1 + $0xbe8] ss:$16 sps:$4 sm:$0xff]   ;;  %v10209_v41 = vld [vmem:[%s14614_s1 + $0xc04] ss:$16 sps:$4 sm:$0xff]  }
 0x145   :  { %6793 = vmatprep.mubr.bf16.mxu0 %v8344_v46  ;;  %7641 = vmatprep.mubr.bf16.mxu1 %v8344_v46  ;;  %v64_v46 = vld [vmem:[%s14615_s0 + $0x1a8] sm:$0xff] }
 0x147   :  { %6807 = vmatpush1.bf16.msra.mxu0 %v10117_v43  ;;  %7655 = vmatpush1.bf16.msra.mxu1 %v10120_v45  ;;  %v10212_v43 = vld [vmem:[%s14614_s1 + $0xc0c] ss:$16 sps:$4 sm:$0xff]  }
 0x148   :  { %6808 = vmatprep.subr.bf16.mxu0 %v10125_v47  ;;  %7656 = vmatprep.subr.bf16.mxu1 %v10128_v48  ;;  %v48_v45 = vld [vmem:[%s14615_s0 + $0x128] sm:$0xff]  ;;  %v8313_v47 = vcombine.low %v12267_v49, %v12272_v50  ;;  %v10207_v48 = vld [vmem:[%s14614_s1 + $0xc00] ss:$16 sps:$4 sm:$0xff]  }
 0x149   :  { %v10218_v49 = vld [vmem:[%s14614_s1 + $0xc2c] ss:$16 sps:$4 sm:$0xff]   ;;  %v10213_v50 = vld [vmem:[%s14614_s1 + $0xc20] ss:$16 sps:$4 sm:$0xff]  }
 0x14a   :  { %6794 = vmatmul.mubr.bf16.gmra.mrb[4].mxu0 %v8343_v51  ;;  %7642 = vmatmul.mubr.bf16.gmra.mrb[4].mxu1 %v8343_v51  ;;  %v10210_v51 = vld [vmem:[%s14614_s1 + $0xc08] ss:$16 sps:$4 sm:$0xff]  }
 0x14b   :  { %6809 = vmatpush1.bf16.msra.mxu0 %v10123_v52  ;;  %7657 = vmatpush1.bf16.msra.mxu1 %v10126_v53  ;;  %v10215_v52 = vld [vmem:[%s14614_s1 + $0xc24] ss:$16 sps:$4 sm:$0xff]   ;;  %v10216_v53 = vld [vmem:[%s14614_s1 + $0xc28] ss:$16 sps:$4 sm:$0xff]  }
 0x14c   :  { %6810 = vmatprep.subr.bf16.mxu0 %v10131_v54  ;;  %7658 = vmatprep.subr.bf16.mxu1 %v10134_v55  ;;  %v8346_v54 = vcombine.high %v48_v45, %v64_v46  ;;  %v10221_v55 = vld [vmem:[%s14614_s1 + $0xc44] ss:$16 sps:$4 sm:$0xff]  }
 0x14d   :  { %6836 = vmatprep.mubr.bf16.mxu0 %v8314_v56  ;;  %7684 = vmatprep.mubr.bf16.mxu1 %v8314_v56  ;;  %v10224_v56 = vld [vmem:[%s14614_s1 + $0xc4c] ss:$16 sps:$4 sm:$0xff]  }
 0x14f   :  { %6811 = vmatpush1.bf16.msra.mxu0 %v10129_v57  ;;  %7659 = vmatpush1.bf16.msra.mxu1 %v10132_v58  ;;  %v12479_v57 = vld [vmem:[%s14615_s0 + $0x30] sm:$0xff] }
 0x150   :  { %6812 = vmatprep.subr.bf16.mxu0 %v10137_v59  ;;  %7660 = vmatprep.subr.bf16.mxu1 %v10140_v60  ;;  %v12484_v58 = vld [vmem:[%s14615_s0 + $0xb0] sm:$0xff]  ;;  %v8345_v59 = vcombine.low %v48_v45, %v64_v46  ;;  %v10294_v46 = vld [vmem:[%s14614_s1 + $0xdc8] ss:$16 sps:$4 sm:$0xff]  }
 0x151   :  { %v10219_v60 = vld [vmem:[%s14614_s1 + $0xc40] ss:$16 sps:$4 sm:$0xff]  }
 0x152   :  { %v10291_v45 = vld [vmem:[%s14614_s1 + $0xdc0] ss:$16 sps:$4 sm:$0xff]  }
 0x153   :  { %6813 = vmatpush1.bf16.msra.mxu0 %v10135_v61  ;;  %7661 = vmatpush1.bf16.msra.mxu1 %v10138_v62  ;;  %v10222_v61 = vld [vmem:[%s14614_s1 + $0xc48] ss:$16 sps:$4 sm:$0xff]   ;;  %v10227_v62 = vld [vmem:[%s14614_s1 + $0xc64] ss:$16 sps:$4 sm:$0xff]  }
 0x154   :  { %6814 = vmatprep.subr.bf16.mxu0 %v10143_v63  ;;  %7662 = vmatprep.subr.bf16.mxu1 %v10146_v0  ;;  %v10230_v63 = vld [vmem:[%s14614_s1 + $0xc6c] ss:$16 sps:$4 sm:$0xff]   ;;  %v8316_v0 = vcombine.high %v12479_v57, %v12484_v58 }
 0x157   :  { %6815 = vmatpush1.bf16.msra.mxu0 %v10141_v1  ;;  %7663 = vmatpush1.bf16.msra.mxu1 %v10144_v2  ;;  %v10225_v1 = vld [vmem:[%s14614_s1 + $0xc60] ss:$16 sps:$4 sm:$0xff]   ;;  %v10228_v2 = vld [vmem:[%s14614_s1 + $0xc68] ss:$16 sps:$4 sm:$0xff]  }
 0x158   :  { %6816 = vmatprep.subr.bf16.mxu0 %v10149_v3  ;;  %7664 = vmatprep.subr.bf16.mxu1 %v10152_v4  ;;  %v10233_v3 = vld [vmem:[%s14614_s1 + $0xc84] ss:$16 sps:$4 sm:$0xff]   ;;  %v10236_v4 = vld [vmem:[%s14614_s1 + $0xc8c] ss:$16 sps:$4 sm:$0xff]  }
 0x15b   :  { %6817 = vmatpush1.bf16.msra.mxu0 %v10147_v5  ;;  %7665 = vmatpush1.bf16.msra.mxu1 %v10150_v6  ;;  %v10231_v5 = vld [vmem:[%s14614_s1 + $0xc80] ss:$16 sps:$4 sm:$0xff]   ;;  %v10234_v6 = vld [vmem:[%s14614_s1 + $0xc88] ss:$16 sps:$4 sm:$0xff]  }
 0x15c   :  { %6818 = vmatprep.subr.bf16.mxu0 %v10155_v7  ;;  %7666 = vmatprep.subr.bf16.mxu1 %v10158_v8  ;;  %v10239_v7 = vld [vmem:[%s14614_s1 + $0xca4] ss:$16 sps:$4 sm:$0xff]   ;;  %v10242_v8 = vld [vmem:[%s14614_s1 + $0xcac] ss:$16 sps:$4 sm:$0xff]  }
 0x15f   :  { %6819 = vmatpush1.bf16.msra.mxu0 %v10153_v9  ;;  %7667 = vmatpush1.bf16.msra.mxu1 %v10156_v10  ;;  %v10237_v9 = vld [vmem:[%s14614_s1 + $0xca0] ss:$16 sps:$4 sm:$0xff]   ;;  %v10240_v10 = vld [vmem:[%s14614_s1 + $0xca8] ss:$16 sps:$4 sm:$0xff]  }
 0x160   :  { %6820 = vmatprep.subr.bf16.mxu0 %v10161_v11  ;;  %7668 = vmatprep.subr.bf16.mxu1 %v10164_v12  ;;  %v10245_v11 = vld [vmem:[%s14614_s1 + $0xcc4] ss:$16 sps:$4 sm:$0xff]   ;;  %v10248_v12 = vld [vmem:[%s14614_s1 + $0xccc] ss:$16 sps:$4 sm:$0xff]  }
 0x163   :  { %6821 = vmatpush1.bf16.msra.mxu0 %v10159_v13  ;;  %7669 = vmatpush1.bf16.msra.mxu1 %v10162_v14  ;;  %v10243_v13 = vld [vmem:[%s14614_s1 + $0xcc0] ss:$16 sps:$4 sm:$0xff]   ;;  %v10246_v14 = vld [vmem:[%s14614_s1 + $0xcc8] ss:$16 sps:$4 sm:$0xff]  }
 0x164   :  { %6822 = vmatprep.subr.bf16.mxu0 %v10167_v15  ;;  %7670 = vmatprep.subr.bf16.mxu1 %v10170_v16  ;;  %v10251_v15 = vld [vmem:[%s14614_s1 + $0xce4] ss:$16 sps:$4 sm:$0xff]   ;;  %v10254_v16 = vld [vmem:[%s14614_s1 + $0xcec] ss:$16 sps:$4 sm:$0xff]  }
 0x167   :  { %6823 = vmatpush1.bf16.msra.mxu0 %v10165_v17  ;;  %7671 = vmatpush1.bf16.msra.mxu1 %v10168_v18  ;;  %v10249_v17 = vld [vmem:[%s14614_s1 + $0xce0] ss:$16 sps:$4 sm:$0xff]   ;;  %v10252_v18 = vld [vmem:[%s14614_s1 + $0xce8] ss:$16 sps:$4 sm:$0xff]  }
 0x168   :  { %6824 = vmatprep.subr.bf16.mxu0 %v10173_v19  ;;  %7672 = vmatprep.subr.bf16.mxu1 %v10176_v20  ;;  %v10257_v19 = vld [vmem:[%s14614_s1 + $0xd04] ss:$16 sps:$4 sm:$0xff]   ;;  %v10260_v20 = vld [vmem:[%s14614_s1 + $0xd0c] ss:$16 sps:$4 sm:$0xff]  }
 0x16b   :  { %6825 = vmatpush1.bf16.msra.mxu0 %v10171_v21  ;;  %7673 = vmatpush1.bf16.msra.mxu1 %v10174_v22  ;;  %v10255_v21 = vld [vmem:[%s14614_s1 + $0xd00] ss:$16 sps:$4 sm:$0xff]   ;;  %v10258_v22 = vld [vmem:[%s14614_s1 + $0xd08] ss:$16 sps:$4 sm:$0xff]  }
 0x16c   :  { %6826 = vmatprep.subr.bf16.mxu0 %v10179_v23  ;;  %7674 = vmatprep.subr.bf16.mxu1 %v10182_v24  ;;  %v10263_v23 = vld [vmem:[%s14614_s1 + $0xd24] ss:$16 sps:$4 sm:$0xff]   ;;  %v10266_v24 = vld [vmem:[%s14614_s1 + $0xd2c] ss:$16 sps:$4 sm:$0xff]  }
 0x16f   :  { %6827 = vmatpush1.bf16.msra.mxu0 %v10177_v26  ;;  %7675 = vmatpush1.bf16.msra.mxu1 %v10180_v25  ;;  %v10261_v26 = vld [vmem:[%s14614_s1 + $0xd20] ss:$16 sps:$4 sm:$0xff]   ;;  %v10264_v25 = vld [vmem:[%s14614_s1 + $0xd28] ss:$16 sps:$4 sm:$0xff]  }
 0x170   :  { %6828 = vmatprep.subr.bf16.mxu0 %v10185_v27  ;;  %7676 = vmatprep.subr.bf16.mxu1 %v10188_v28  ;;  %v10269_v27 = vld [vmem:[%s14614_s1 + $0xd44] ss:$16 sps:$4 sm:$0xff]   ;;  %v10272_v28 = vld [vmem:[%s14614_s1 + $0xd4c] ss:$16 sps:$4 sm:$0xff]  }
 0x173   :  { %6829 = vmatpush1.bf16.msra.mxu0 %v10183_v29  ;;  %7677 = vmatpush1.bf16.msra.mxu1 %v10186_v30  ;;  %v10267_v29 = vld [vmem:[%s14614_s1 + $0xd40] ss:$16 sps:$4 sm:$0xff]   ;;  %v10270_v30 = vld [vmem:[%s14614_s1 + $0xd48] ss:$16 sps:$4 sm:$0xff]  }
 0x174   :  { %6830 = vmatprep.subr.bf16.mxu0 %v10191_v31  ;;  %7678 = vmatprep.subr.bf16.mxu1 %v10194_v32  ;;  %v10275_v31 = vld [vmem:[%s14614_s1 + $0xd64] ss:$16 sps:$4 sm:$0xff]   ;;  %v10278_v32 = vld [vmem:[%s14614_s1 + $0xd6c] ss:$16 sps:$4 sm:$0xff]  }
 0x177   :  { %6831 = vmatpush1.bf16.msra.mxu0 %v10189_v34  ;;  %7679 = vmatpush1.bf16.msra.mxu1 %v10192_v36  ;;  %v10273_v34 = vld [vmem:[%s14614_s1 + $0xd60] ss:$16 sps:$4 sm:$0xff]   ;;  %v10276_v36 = vld [vmem:[%s14614_s1 + $0xd68] ss:$16 sps:$4 sm:$0xff]  }
 0x178   :  { %6832 = vmatprep.subr.bf16.mxu0 %v10197_v33  ;;  %7680 = vmatprep.subr.bf16.mxu1 %v10200_v35  ;;  %v10281_v33 = vld [vmem:[%s14614_s1 + $0xd84] ss:$16 sps:$4 sm:$0xff]   ;;  %v10284_v35 = vld [vmem:[%s14614_s1 + $0xd8c] ss:$16 sps:$4 sm:$0xff]  }
 0x17b   :  { %6833 = vmatpush1.bf16.msra.mxu0 %v10195_v37  ;;  %7681 = vmatpush1.bf16.msra.mxu1 %v10198_v38  ;;  %v10279_v37 = vld [vmem:[%s14614_s1 + $0xd80] ss:$16 sps:$4 sm:$0xff]   ;;  %v10282_v38 = vld [vmem:[%s14614_s1 + $0xd88] ss:$16 sps:$4 sm:$0xff]  }
 0x17c   :  { %6834 = vmatprep.subr.bf16.mxu0 %v10203_v39  ;;  %7682 = vmatprep.subr.bf16.mxu1 %v10206_v40  ;;  %v10287_v39 = vld [vmem:[%s14614_s1 + $0xda4] ss:$16 sps:$4 sm:$0xff]   ;;  %v10290_v40 = vld [vmem:[%s14614_s1 + $0xdac] ss:$16 sps:$4 sm:$0xff]  }
 0x17f   :  { %6835 = vmatpush1.bf16.msra.mxu0 %v10201_v42  ;;  %7683 = vmatpush1.bf16.msra.mxu1 %v10204_v44  ;;  %v10285_v42 = vld [vmem:[%s14614_s1 + $0xda0] ss:$16 sps:$4 sm:$0xff]   ;;  %v10288_v44 = vld [vmem:[%s14614_s1 + $0xda8] ss:$16 sps:$4 sm:$0xff]  }
 0x180   :  { %6857 = vmatprep.subr.bf16.mxu0 %v10209_v41  ;;  %7705 = vmatprep.subr.bf16.mxu1 %v10212_v43  ;;  %v10293_v41 = vld [vmem:[%s14614_s1 + $0xdc4] ss:$16 sps:$4 sm:$0xff]   ;;  %v10296_v43 = vld [vmem:[%s14614_s1 + $0xdcc] ss:$16 sps:$4 sm:$0xff]  }
 0x182   :  { %6837 = vmatmul.mubr.bf16.vlgmr.msra.gmra.mrb[0].mxu0 %v8313_v47  ;;  %7685 = vmatmul.mubr.bf16.vlgmr.msra.gmra.mrb[0].mxu1 %v8313_v47  ;;  %v10299_v47 = vld [vmem:[%s14614_s1 + $0xde4] ss:$16 sps:$4 sm:$0xff]  }
 0x183   :  { %6858 = vmatpush1.bf16.msra.mxu0 %v10207_v48  ;;  %7706 = vmatpush1.bf16.msra.mxu1 %v10210_v51  ;;  %v10302_v48 = vld [vmem:[%s14614_s1 + $0xdec] ss:$16 sps:$4 sm:$0xff]   ;;  %v10297_v51 = vld [vmem:[%s14614_s1 + $0xde0] ss:$16 sps:$4 sm:$0xff]  }
 0x184   :  { %6859 = vmatprep.subr.bf16.mxu0 %v10215_v52  ;;  %7707 = vmatprep.subr.bf16.mxu1 %v10218_v49  ;;  %v10300_v52 = vld [vmem:[%s14614_s1 + $0xde8] ss:$16 sps:$4 sm:$0xff]   ;;  %v10305_v49 = vld [vmem:[%s14614_s1 + $0xe04] ss:$16 sps:$4 sm:$0xff]  }
 0x185   :  { %6846 = vmatprep.mubr.bf16.mxu0 %v8346_v54  ;;  %7694 = vmatprep.mubr.bf16.mxu1 %v8346_v54  ;;  %v65_v54 = vld [vmem:[%s14615_s0 + $0x1b0] sm:$0xff] }
 0x187   :  { %6860 = vmatpush1.bf16.msra.mxu0 %v10213_v50  ;;  %7708 = vmatpush1.bf16.msra.mxu1 %v10216_v53  ;;  %v10308_v50 = vld [vmem:[%s14614_s1 + $0xe0c] ss:$16 sps:$4 sm:$0xff]   ;;  %v49_v53 = vld [vmem:[%s14615_s0 + $0x130] sm:$0xff] }
 0x188   :  { %6861 = vmatprep.subr.bf16.mxu0 %v10221_v55  ;;  %7709 = vmatprep.subr.bf16.mxu1 %v10224_v56  ;;  %v8315_v55 = vcombine.low %v12479_v57, %v12484_v58  ;;  %v10303_v56 = vld [vmem:[%s14614_s1 + $0xe00] ss:$16 sps:$4 sm:$0xff]   ;;  %v10314_v57 = vld [vmem:[%s14614_s1 + $0xe2c] ss:$16 sps:$4 sm:$0xff]  }
 0x189   :  { %v10309_v58 = vld [vmem:[%s14614_s1 + $0xe20] ss:$16 sps:$4 sm:$0xff]  }
 0x18a   :  { %6847 = vmatmul.mubr.bf16.gmra.mrb[4].mxu0 %v8345_v59  ;;  %7695 = vmatmul.mubr.bf16.gmra.mrb[4].mxu1 %v8345_v59  ;;  %v10306_v59 = vld [vmem:[%s14614_s1 + $0xe08] ss:$16 sps:$4 sm:$0xff]  }
 0x18b   :  { %6862 = vmatpush1.bf16.msra.mxu0 %v10219_v60  ;;  %7710 = vmatpush1.bf16.msra.mxu1 %v10222_v61  ;;  %v10311_v60 = vld [vmem:[%s14614_s1 + $0xe24] ss:$16 sps:$4 sm:$0xff]   ;;  %v10312_v61 = vld [vmem:[%s14614_s1 + $0xe28] ss:$16 sps:$4 sm:$0xff]  }
 0x18c   :  { %6863 = vmatprep.subr.bf16.mxu0 %v10227_v62  ;;  %7711 = vmatprep.subr.bf16.mxu1 %v10230_v63  ;;  %v8348_v62 = vcombine.high %v49_v53, %v65_v54  ;;  %v10317_v63 = vld [vmem:[%s14614_s1 + $0xe44] ss:$16 sps:$4 sm:$0xff]  }
 0x18d   :  { %6889 = vmatprep.mubr.bf16.mxu0 %v8316_v0  ;;  %7737 = vmatprep.mubr.bf16.mxu1 %v8316_v0  ;;  %v10320_v0 = vld [vmem:[%s14614_s1 + $0xe4c] ss:$16 sps:$4 sm:$0xff]  }
 0x18f   :  { %6864 = vmatpush1.bf16.msra.mxu0 %v10225_v1  ;;  %7712 = vmatpush1.bf16.msra.mxu1 %v10228_v2  ;;  %v12691_v1 = vld [vmem:[%s14615_s0 + $0x38] sm:$0xff] }
 0x190   :  { %6865 = vmatprep.subr.bf16.mxu0 %v10233_v3  ;;  %7713 = vmatprep.subr.bf16.mxu1 %v10236_v4  ;;  %v12696_v2 = vld [vmem:[%s14615_s0 + $0xb8] sm:$0xff]  ;;  %v8347_v3 = vcombine.low %v49_v53, %v65_v54  ;;  %v10315_v4 = vld [vmem:[%s14614_s1 + $0xe40] ss:$16 sps:$4 sm:$0xff]  }
 0x191   :  { %v10387_v53 = vld [vmem:[%s14614_s1 + $0xfc0] ss:$16 sps:$4 sm:$0xff]   ;;  %v10390_v54 = vld [vmem:[%s14614_s1 + $0xfc8] ss:$16 sps:$4 sm:$0xff]  }
 0x193   :  { %6866 = vmatpush1.bf16.msra.mxu0 %v10231_v5  ;;  %7714 = vmatpush1.bf16.msra.mxu1 %v10234_v6  ;;  %v10318_v5 = vld [vmem:[%s14614_s1 + $0xe48] ss:$16 sps:$4 sm:$0xff]   ;;  %v10323_v6 = vld [vmem:[%s14614_s1 + $0xe64] ss:$16 sps:$4 sm:$0xff]  }
 0x194   :  { %6867 = vmatprep.subr.bf16.mxu0 %v10239_v7  ;;  %7715 = vmatprep.subr.bf16.mxu1 %v10242_v8  ;;  %v10326_v7 = vld [vmem:[%s14614_s1 + $0xe6c] ss:$16 sps:$4 sm:$0xff]   ;;  %v8318_v8 = vcombine.high %v12691_v1, %v12696_v2 }
 0x197   :  { %6868 = vmatpush1.bf16.msra.mxu0 %v10237_v9  ;;  %7716 = vmatpush1.bf16.msra.mxu1 %v10240_v10  ;;  %v10321_v9 = vld [vmem:[%s14614_s1 + $0xe60] ss:$16 sps:$4 sm:$0xff]   ;;  %v10324_v10 = vld [vmem:[%s14614_s1 + $0xe68] ss:$16 sps:$4 sm:$0xff]  }
 0x198   :  { %6869 = vmatprep.subr.bf16.mxu0 %v10245_v11  ;;  %7717 = vmatprep.subr.bf16.mxu1 %v10248_v12  ;;  %v10329_v11 = vld [vmem:[%s14614_s1 + $0xe84] ss:$16 sps:$4 sm:$0xff]   ;;  %v10332_v12 = vld [vmem:[%s14614_s1 + $0xe8c] ss:$16 sps:$4 sm:$0xff]  }
 0x19b   :  { %6870 = vmatpush1.bf16.msra.mxu0 %v10243_v13  ;;  %7718 = vmatpush1.bf16.msra.mxu1 %v10246_v14  ;;  %v10327_v13 = vld [vmem:[%s14614_s1 + $0xe80] ss:$16 sps:$4 sm:$0xff]   ;;  %v10330_v14 = vld [vmem:[%s14614_s1 + $0xe88] ss:$16 sps:$4 sm:$0xff]  }
 0x19c   :  { %6871 = vmatprep.subr.bf16.mxu0 %v10251_v15  ;;  %7719 = vmatprep.subr.bf16.mxu1 %v10254_v16  ;;  %v10335_v15 = vld [vmem:[%s14614_s1 + $0xea4] ss:$16 sps:$4 sm:$0xff]   ;;  %v10338_v16 = vld [vmem:[%s14614_s1 + $0xeac] ss:$16 sps:$4 sm:$0xff]  }
 0x19f   :  { %6872 = vmatpush1.bf16.msra.mxu0 %v10249_v17  ;;  %7720 = vmatpush1.bf16.msra.mxu1 %v10252_v18  ;;  %v10333_v17 = vld [vmem:[%s14614_s1 + $0xea0] ss:$16 sps:$4 sm:$0xff]   ;;  %v10336_v18 = vld [vmem:[%s14614_s1 + $0xea8] ss:$16 sps:$4 sm:$0xff]  }
 0x1a0   :  { %6873 = vmatprep.subr.bf16.mxu0 %v10257_v19  ;;  %7721 = vmatprep.subr.bf16.mxu1 %v10260_v20  ;;  %v10341_v19 = vld [vmem:[%s14614_s1 + $0xec4] ss:$16 sps:$4 sm:$0xff]   ;;  %v10344_v20 = vld [vmem:[%s14614_s1 + $0xecc] ss:$16 sps:$4 sm:$0xff]  }
 0x1a3   :  { %6874 = vmatpush1.bf16.msra.mxu0 %v10255_v21  ;;  %7722 = vmatpush1.bf16.msra.mxu1 %v10258_v22  ;;  %v10339_v21 = vld [vmem:[%s14614_s1 + $0xec0] ss:$16 sps:$4 sm:$0xff]   ;;  %v10342_v22 = vld [vmem:[%s14614_s1 + $0xec8] ss:$16 sps:$4 sm:$0xff]  }
 0x1a4   :  { %6875 = vmatprep.subr.bf16.mxu0 %v10263_v23  ;;  %7723 = vmatprep.subr.bf16.mxu1 %v10266_v24  ;;  %v10347_v23 = vld [vmem:[%s14614_s1 + $0xee4] ss:$16 sps:$4 sm:$0xff]   ;;  %v10350_v24 = vld [vmem:[%s14614_s1 + $0xeec] ss:$16 sps:$4 sm:$0xff]  }
 0x1a7   :  { %6876 = vmatpush1.bf16.msra.mxu0 %v10261_v26  ;;  %7724 = vmatpush1.bf16.msra.mxu1 %v10264_v25  ;;  %v10345_v26 = vld [vmem:[%s14614_s1 + $0xee0] ss:$16 sps:$4 sm:$0xff]   ;;  %v10348_v25 = vld [vmem:[%s14614_s1 + $0xee8] ss:$16 sps:$4 sm:$0xff]  }
 0x1a8   :  { %6877 = vmatprep.subr.bf16.mxu0 %v10269_v27  ;;  %7725 = vmatprep.subr.bf16.mxu1 %v10272_v28  ;;  %v10353_v27 = vld [vmem:[%s14614_s1 + $0xf04] ss:$16 sps:$4 sm:$0xff]   ;;  %v10356_v28 = vld [vmem:[%s14614_s1 + $0xf0c] ss:$16 sps:$4 sm:$0xff]  }
 0x1ab   :  { %6878 = vmatpush1.bf16.msra.mxu0 %v10267_v29  ;;  %7726 = vmatpush1.bf16.msra.mxu1 %v10270_v30  ;;  %v10351_v29 = vld [vmem:[%s14614_s1 + $0xf00] ss:$16 sps:$4 sm:$0xff]   ;;  %v10354_v30 = vld [vmem:[%s14614_s1 + $0xf08] ss:$16 sps:$4 sm:$0xff]  }
 0x1ac   :  { %6879 = vmatprep.subr.bf16.mxu0 %v10275_v31  ;;  %7727 = vmatprep.subr.bf16.mxu1 %v10278_v32  ;;  %v10359_v31 = vld [vmem:[%s14614_s1 + $0xf24] ss:$16 sps:$4 sm:$0xff]   ;;  %v10362_v32 = vld [vmem:[%s14614_s1 + $0xf2c] ss:$16 sps:$4 sm:$0xff]  }
 0x1af   :  { %6880 = vmatpush1.bf16.msra.mxu0 %v10273_v34  ;;  %7728 = vmatpush1.bf16.msra.mxu1 %v10276_v36  ;;  %v10357_v34 = vld [vmem:[%s14614_s1 + $0xf20] ss:$16 sps:$4 sm:$0xff]   ;;  %v10360_v36 = vld [vmem:[%s14614_s1 + $0xf28] ss:$16 sps:$4 sm:$0xff]  }
 0x1b0   :  { %6881 = vmatprep.subr.bf16.mxu0 %v10281_v33  ;;  %7729 = vmatprep.subr.bf16.mxu1 %v10284_v35  ;;  %v10365_v33 = vld [vmem:[%s14614_s1 + $0xf44] ss:$16 sps:$4 sm:$0xff]   ;;  %v10368_v35 = vld [vmem:[%s14614_s1 + $0xf4c] ss:$16 sps:$4 sm:$0xff]  }
 0x1b3   :  { %6882 = vmatpush1.bf16.msra.mxu0 %v10279_v37  ;;  %7730 = vmatpush1.bf16.msra.mxu1 %v10282_v38  ;;  %v10363_v37 = vld [vmem:[%s14614_s1 + $0xf40] ss:$16 sps:$4 sm:$0xff]   ;;  %v10366_v38 = vld [vmem:[%s14614_s1 + $0xf48] ss:$16 sps:$4 sm:$0xff]  }
 0x1b4   :  { %6883 = vmatprep.subr.bf16.mxu0 %v10287_v39  ;;  %7731 = vmatprep.subr.bf16.mxu1 %v10290_v40  ;;  %v10371_v39 = vld [vmem:[%s14614_s1 + $0xf64] ss:$16 sps:$4 sm:$0xff]   ;;  %v10374_v40 = vld [vmem:[%s14614_s1 + $0xf6c] ss:$16 sps:$4 sm:$0xff]  }
 0x1b7   :  { %6884 = vmatpush1.bf16.msra.mxu0 %v10285_v42  ;;  %7732 = vmatpush1.bf16.msra.mxu1 %v10288_v44  ;;  %v10369_v42 = vld [vmem:[%s14614_s1 + $0xf60] ss:$16 sps:$4 sm:$0xff]   ;;  %v10372_v44 = vld [vmem:[%s14614_s1 + $0xf68] ss:$16 sps:$4 sm:$0xff]  }
 0x1b8   :  { %6885 = vmatprep.subr.bf16.mxu0 %v10293_v41  ;;  %7733 = vmatprep.subr.bf16.mxu1 %v10296_v43  ;;  %v10377_v41 = vld [vmem:[%s14614_s1 + $0xf84] ss:$16 sps:$4 sm:$0xff]   ;;  %v10380_v43 = vld [vmem:[%s14614_s1 + $0xf8c] ss:$16 sps:$4 sm:$0xff]  }
 0x1bb   :  { %6886 = vmatpush1.bf16.msra.mxu0 %v10291_v45  ;;  %7734 = vmatpush1.bf16.msra.mxu1 %v10294_v46  ;;  %v10375_v45 = vld [vmem:[%s14614_s1 + $0xf80] ss:$16 sps:$4 sm:$0xff]   ;;  %v10378_v46 = vld [vmem:[%s14614_s1 + $0xf88] ss:$16 sps:$4 sm:$0xff]  }
 0x1bc   :  { %6887 = vmatprep.subr.bf16.mxu0 %v10299_v47  ;;  %7735 = vmatprep.subr.bf16.mxu1 %v10302_v48  ;;  %v10383_v47 = vld [vmem:[%s14614_s1 + $0xfa4] ss:$16 sps:$4 sm:$0xff]   ;;  %v10386_v48 = vld [vmem:[%s14614_s1 + $0xfac] ss:$16 sps:$4 sm:$0xff]  }
 0x1bf   :  { %6888 = vmatpush1.bf16.msra.mxu0 %v10297_v51  ;;  %7736 = vmatpush1.bf16.msra.mxu1 %v10300_v52  ;;  %v10381_v51 = vld [vmem:[%s14614_s1 + $0xfa0] ss:$16 sps:$4 sm:$0xff]   ;;  %v10384_v52 = vld [vmem:[%s14614_s1 + $0xfa8] ss:$16 sps:$4 sm:$0xff]  }
 0x1c0   :  { %6910 = vmatprep.subr.bf16.mxu0 %v10305_v49  ;;  %7758 = vmatprep.subr.bf16.mxu1 %v10308_v50  ;;  %v10389_v49 = vld [vmem:[%s14614_s1 + $0xfc4] ss:$16 sps:$4 sm:$0xff]   ;;  %v10392_v50 = vld [vmem:[%s14614_s1 + $0xfcc] ss:$16 sps:$4 sm:$0xff]  }
 0x1c2   :  { %6890 = vmatmul.mubr.bf16.vlgmr.msra.gmra.mrb[0].mxu0 %v8315_v55  ;;  %7738 = vmatmul.mubr.bf16.vlgmr.msra.gmra.mrb[0].mxu1 %v8315_v55  ;;  %v10395_v55 = vld [vmem:[%s14614_s1 + $0xfe4] ss:$16 sps:$4 sm:$0xff]  }
 0x1c3   :  { %6911 = vmatpush1.bf16.msra.mxu0 %v10303_v56  ;;  %7759 = vmatpush1.bf16.msra.mxu1 %v10306_v59  ;;  %v10398_v56 = vld [vmem:[%s14614_s1 + $0xfec] ss:$16 sps:$4 sm:$0xff]   ;;  %v10393_v59 = vld [vmem:[%s14614_s1 + $0xfe0] ss:$16 sps:$4 sm:$0xff]  }
 0x1c4   :  { %6912 = vmatprep.subr.bf16.mxu0 %v10311_v60  ;;  %7760 = vmatprep.subr.bf16.mxu1 %v10314_v57  ;;  %v10396_v60 = vld [vmem:[%s14614_s1 + $0xfe8] ss:$16 sps:$4 sm:$0xff]   ;;  %v10401_v57 = vld [vmem:[%s14614_s1 + $0x1004] ss:$16 sps:$4 sm:$0xff]  }
 0x1c5   :  { %6899 = vmatprep.mubr.bf16.mxu0 %v8348_v62  ;;  %7747 = vmatprep.mubr.bf16.mxu1 %v8348_v62  ;;  %v66_v62 = vld [vmem:[%s14615_s0 + $0x1b8] sm:$0xff] }
 0x1c7   :  { %6913 = vmatpush1.bf16.msra.mxu0 %v10309_v58  ;;  %7761 = vmatpush1.bf16.msra.mxu1 %v10312_v61  ;;  %v10404_v58 = vld [vmem:[%s14614_s1 + $0x100c] ss:$16 sps:$4 sm:$0xff]  }
 0x1c8   :  { %6914 = vmatprep.subr.bf16.mxu0 %v10317_v63  ;;  %7762 = vmatprep.subr.bf16.mxu1 %v10320_v0  ;;  %v50_v61 = vld [vmem:[%s14615_s0 + $0x138] sm:$0xff]  ;;  %v8317_v63 = vcombine.low %v12691_v1, %v12696_v2  ;;  %v10399_v0 = vld [vmem:[%s14614_s1 + $0x1000] ss:$16 sps:$4 sm:$0xff]  }
 0x1c9   :  { %v10410_v1 = vld [vmem:[%s14614_s1 + $0x102c] ss:$16 sps:$4 sm:$0xff]   ;;  %v10405_v2 = vld [vmem:[%s14614_s1 + $0x1020] ss:$16 sps:$4 sm:$0xff]  }
 0x1ca   :  { %6900 = vmatmul.mubr.bf16.gmra.mrb[4].mxu0 %v8347_v3  ;;  %7748 = vmatmul.mubr.bf16.gmra.mrb[4].mxu1 %v8347_v3  ;;  %v10402_v3 = vld [vmem:[%s14614_s1 + $0x1008] ss:$16 sps:$4 sm:$0xff]  }
 0x1cb   :  { %6915 = vmatpush1.bf16.msra.mxu0 %v10315_v4  ;;  %7763 = vmatpush1.bf16.msra.mxu1 %v10318_v5  ;;  %v10407_v4 = vld [vmem:[%s14614_s1 + $0x1024] ss:$16 sps:$4 sm:$0xff]   ;;  %v10408_v5 = vld [vmem:[%s14614_s1 + $0x1028] ss:$16 sps:$4 sm:$0xff]  }
 0x1cc   :  { %6916 = vmatprep.subr.bf16.mxu0 %v10323_v6  ;;  %7764 = vmatprep.subr.bf16.mxu1 %v10326_v7  ;;  %v8350_v6 = vcombine.high %v50_v61, %v66_v62  ;;  %v10413_v7 = vld [vmem:[%s14614_s1 + $0x1044] ss:$16 sps:$4 sm:$0xff]  }
 0x1cd   :  { %6942 = vmatprep.mubr.bf16.mxu0 %v8318_v8  ;;  %7790 = vmatprep.mubr.bf16.mxu1 %v8318_v8  ;;  %v10416_v8 = vld [vmem:[%s14614_s1 + $0x104c] ss:$16 sps:$4 sm:$0xff]  }
 0x1cf   :  { %6917 = vmatpush1.bf16.msra.mxu0 %v10321_v9  ;;  %7765 = vmatpush1.bf16.msra.mxu1 %v10324_v10  ;;  %v12903_v9 = vld [vmem:[%s14615_s0 + $0x40] sm:$0xff] }
 0x1d0   :  { %6918 = vmatprep.subr.bf16.mxu0 %v10329_v11  ;;  %7766 = vmatprep.subr.bf16.mxu1 %v10332_v12  ;;  %v12908_v10 = vld [vmem:[%s14615_s0 + $0xc0] sm:$0xff]  ;;  %v8349_v11 = vcombine.low %v50_v61, %v66_v62  ;;  %v10486_v62 = vld [vmem:[%s14614_s1 + $0x11c8] ss:$16 sps:$4 sm:$0xff]  }
 0x1d1   :  { %v10411_v12 = vld [vmem:[%s14614_s1 + $0x1040] ss:$16 sps:$4 sm:$0xff]  }
 0x1d2   :  { %v10483_v61 = vld [vmem:[%s14614_s1 + $0x11c0] ss:$16 sps:$4 sm:$0xff]  }
 0x1d3   :  { %6919 = vmatpush1.bf16.msra.mxu0 %v10327_v13  ;;  %7767 = vmatpush1.bf16.msra.mxu1 %v10330_v14  ;;  %v10414_v13 = vld [vmem:[%s14614_s1 + $0x1048] ss:$16 sps:$4 sm:$0xff]   ;;  %v10419_v14 = vld [vmem:[%s14614_s1 + $0x1064] ss:$16 sps:$4 sm:$0xff]  }
 0x1d4   :  { %6920 = vmatprep.subr.bf16.mxu0 %v10335_v15  ;;  %7768 = vmatprep.subr.bf16.mxu1 %v10338_v16  ;;  %v10422_v15 = vld [vmem:[%s14614_s1 + $0x106c] ss:$16 sps:$4 sm:$0xff]   ;;  %v8320_v16 = vcombine.high %v12903_v9, %v12908_v10 }
 0x1d7   :  { %6921 = vmatpush1.bf16.msra.mxu0 %v10333_v17  ;;  %7769 = vmatpush1.bf16.msra.mxu1 %v10336_v18  ;;  %v10417_v17 = vld [vmem:[%s14614_s1 + $0x1060] ss:$16 sps:$4 sm:$0xff]   ;;  %v10420_v18 = vld [vmem:[%s14614_s1 + $0x1068] ss:$16 sps:$4 sm:$0xff]  }
 0x1d8   :  { %6922 = vmatprep.subr.bf16.mxu0 %v10341_v19  ;;  %7770 = vmatprep.subr.bf16.mxu1 %v10344_v20  ;;  %v10425_v19 = vld [vmem:[%s14614_s1 + $0x1084] ss:$16 sps:$4 sm:$0xff]   ;;  %v10428_v20 = vld [vmem:[%s14614_s1 + $0x108c] ss:$16 sps:$4 sm:$0xff]  }
 0x1db   :  { %6923 = vmatpush1.bf16.msra.mxu0 %v10339_v21  ;;  %7771 = vmatpush1.bf16.msra.mxu1 %v10342_v22  ;;  %v10423_v21 = vld [vmem:[%s14614_s1 + $0x1080] ss:$16 sps:$4 sm:$0xff]   ;;  %v10426_v22 = vld [vmem:[%s14614_s1 + $0x1088] ss:$16 sps:$4 sm:$0xff]  }
 0x1dc   :  { %6924 = vmatprep.subr.bf16.mxu0 %v10347_v23  ;;  %7772 = vmatprep.subr.bf16.mxu1 %v10350_v24  ;;  %v10431_v23 = vld [vmem:[%s14614_s1 + $0x10a4] ss:$16 sps:$4 sm:$0xff]   ;;  %v10434_v24 = vld [vmem:[%s14614_s1 + $0x10ac] ss:$16 sps:$4 sm:$0xff]  }
 0x1df   :  { %6925 = vmatpush1.bf16.msra.mxu0 %v10345_v26  ;;  %7773 = vmatpush1.bf16.msra.mxu1 %v10348_v25  ;;  %v10429_v26 = vld [vmem:[%s14614_s1 + $0x10a0] ss:$16 sps:$4 sm:$0xff]   ;;  %v10432_v25 = vld [vmem:[%s14614_s1 + $0x10a8] ss:$16 sps:$4 sm:$0xff]  }
 0x1e0   :  { %6926 = vmatprep.subr.bf16.mxu0 %v10353_v27  ;;  %7774 = vmatprep.subr.bf16.mxu1 %v10356_v28  ;;  %v10437_v27 = vld [vmem:[%s14614_s1 + $0x10c4] ss:$16 sps:$4 sm:$0xff]   ;;  %v10440_v28 = vld [vmem:[%s14614_s1 + $0x10cc] ss:$16 sps:$4 sm:$0xff]  }
 0x1e3   :  { %6927 = vmatpush1.bf16.msra.mxu0 %v10351_v29  ;;  %7775 = vmatpush1.bf16.msra.mxu1 %v10354_v30  ;;  %v10435_v29 = vld [vmem:[%s14614_s1 + $0x10c0] ss:$16 sps:$4 sm:$0xff]   ;;  %v10438_v30 = vld [vmem:[%s14614_s1 + $0x10c8] ss:$16 sps:$4 sm:$0xff]  }
 0x1e4   :  { %6928 = vmatprep.subr.bf16.mxu0 %v10359_v31  ;;  %7776 = vmatprep.subr.bf16.mxu1 %v10362_v32  ;;  %v10443_v31 = vld [vmem:[%s14614_s1 + $0x10e4] ss:$16 sps:$4 sm:$0xff]   ;;  %v10446_v32 = vld [vmem:[%s14614_s1 + $0x10ec] ss:$16 sps:$4 sm:$0xff]  }
 0x1e7   :  { %6929 = vmatpush1.bf16.msra.mxu0 %v10357_v34  ;;  %7777 = vmatpush1.bf16.msra.mxu1 %v10360_v36  ;;  %v10441_v34 = vld [vmem:[%s14614_s1 + $0x10e0] ss:$16 sps:$4 sm:$0xff]   ;;  %v10444_v36 = vld [vmem:[%s14614_s1 + $0x10e8] ss:$16 sps:$4 sm:$0xff]  }
 0x1e8   :  { %6930 = vmatprep.subr.bf16.mxu0 %v10365_v33  ;;  %7778 = vmatprep.subr.bf16.mxu1 %v10368_v35  ;;  %v10449_v33 = vld [vmem:[%s14614_s1 + $0x1104] ss:$16 sps:$4 sm:$0xff]   ;;  %v10452_v35 = vld [vmem:[%s14614_s1 + $0x110c] ss:$16 sps:$4 sm:$0xff]  }
 0x1eb   :  { %6931 = vmatpush1.bf16.msra.mxu0 %v10363_v37  ;;  %7779 = vmatpush1.bf16.msra.mxu1 %v10366_v38  ;;  %v10447_v37 = vld [vmem:[%s14614_s1 + $0x1100] ss:$16 sps:$4 sm:$0xff]   ;;  %v10450_v38 = vld [vmem:[%s14614_s1 + $0x1108] ss:$16 sps:$4 sm:$0xff]  }
 0x1ec   :  { %6932 = vmatprep.subr.bf16.mxu0 %v10371_v39  ;;  %7780 = vmatprep.subr.bf16.mxu1 %v10374_v40  ;;  %v10455_v39 = vld [vmem:[%s14614_s1 + $0x1124] ss:$16 sps:$4 sm:$0xff]   ;;  %v10458_v40 = vld [vmem:[%s14614_s1 + $0x112c] ss:$16 sps:$4 sm:$0xff]  }
 0x1ef   :  { %6933 = vmatpush1.bf16.msra.mxu0 %v10369_v42  ;;  %7781 = vmatpush1.bf16.msra.mxu1 %v10372_v44  ;;  %v10453_v42 = vld [vmem:[%s14614_s1 + $0x1120] ss:$16 sps:$4 sm:$0xff]   ;;  %v10456_v44 = vld [vmem:[%s14614_s1 + $0x1128] ss:$16 sps:$4 sm:$0xff]  }
 0x1f0   :  { %6934 = vmatprep.subr.bf16.mxu0 %v10377_v41  ;;  %7782 = vmatprep.subr.bf16.mxu1 %v10380_v43  ;;  %v10461_v41 = vld [vmem:[%s14614_s1 + $0x1144] ss:$16 sps:$4 sm:$0xff]   ;;  %v10464_v43 = vld [vmem:[%s14614_s1 + $0x114c] ss:$16 sps:$4 sm:$0xff]  }
 0x1f3   :  { %6935 = vmatpush1.bf16.msra.mxu0 %v10375_v45  ;;  %7783 = vmatpush1.bf16.msra.mxu1 %v10378_v46  ;;  %v10459_v45 = vld [vmem:[%s14614_s1 + $0x1140] ss:$16 sps:$4 sm:$0xff]   ;;  %v10462_v46 = vld [vmem:[%s14614_s1 + $0x1148] ss:$16 sps:$4 sm:$0xff]  }
 0x1f4   :  { %6936 = vmatprep.subr.bf16.mxu0 %v10383_v47  ;;  %7784 = vmatprep.subr.bf16.mxu1 %v10386_v48  ;;  %v10467_v47 = vld [vmem:[%s14614_s1 + $0x1164] ss:$16 sps:$4 sm:$0xff]   ;;  %v10470_v48 = vld [vmem:[%s14614_s1 + $0x116c] ss:$16 sps:$4 sm:$0xff]  }
 0x1f7   :  { %6937 = vmatpush1.bf16.msra.mxu0 %v10381_v51  ;;  %7785 = vmatpush1.bf16.msra.mxu1 %v10384_v52  ;;  %v10465_v51 = vld [vmem:[%s14614_s1 + $0x1160] ss:$16 sps:$4 sm:$0xff]   ;;  %v10468_v52 = vld [vmem:[%s14614_s1 + $0x1168] ss:$16 sps:$4 sm:$0xff]  }
 0x1f8   :  { %6938 = vmatprep.subr.bf16.mxu0 %v10389_v49  ;;  %7786 = vmatprep.subr.bf16.mxu1 %v10392_v50  ;;  %v10473_v49 = vld [vmem:[%s14614_s1 + $0x1184] ss:$16 sps:$4 sm:$0xff]   ;;  %v10476_v50 = vld [vmem:[%s14614_s1 + $0x118c] ss:$16 sps:$4 sm:$0xff]  }
 0x1fb   :  { %6939 = vmatpush1.bf16.msra.mxu0 %v10387_v53  ;;  %7787 = vmatpush1.bf16.msra.mxu1 %v10390_v54  ;;  %v10471_v53 = vld [vmem:[%s14614_s1 + $0x1180] ss:$16 sps:$4 sm:$0xff]   ;;  %v10474_v54 = vld [vmem:[%s14614_s1 + $0x1188] ss:$16 sps:$4 sm:$0xff]  }
 0x1fc   :  { %6940 = vmatprep.subr.bf16.mxu0 %v10395_v55  ;;  %7788 = vmatprep.subr.bf16.mxu1 %v10398_v56  ;;  %v10479_v55 = vld [vmem:[%s14614_s1 + $0x11a4] ss:$16 sps:$4 sm:$0xff]   ;;  %v10482_v56 = vld [vmem:[%s14614_s1 + $0x11ac] ss:$16 sps:$4 sm:$0xff]  }
 0x1ff   :  { %6941 = vmatpush1.bf16.msra.mxu0 %v10393_v59  ;;  %7789 = vmatpush1.bf16.msra.mxu1 %v10396_v60  ;;  %v10477_v59 = vld [vmem:[%s14614_s1 + $0x11a0] ss:$16 sps:$4 sm:$0xff]   ;;  %v10480_v60 = vld [vmem:[%s14614_s1 + $0x11a8] ss:$16 sps:$4 sm:$0xff]  }
 0x200   :  { %6963 = vmatprep.subr.bf16.mxu0 %v10401_v57  ;;  %7811 = vmatprep.subr.bf16.mxu1 %v10404_v58  ;;  %v10485_v57 = vld [vmem:[%s14614_s1 + $0x11c4] ss:$16 sps:$4 sm:$0xff]   ;;  %v10488_v58 = vld [vmem:[%s14614_s1 + $0x11cc] ss:$16 sps:$4 sm:$0xff]  }
 0x202   :  { %6943 = vmatmul.mubr.bf16.vlgmr.msra.gmra.mrb[0].mxu0 %v8317_v63  ;;  %7791 = vmatmul.mubr.bf16.vlgmr.msra.gmra.mrb[0].mxu1 %v8317_v63  ;;  %v10491_v63 = vld [vmem:[%s14614_s1 + $0x11e4] ss:$16 sps:$4 sm:$0xff]  }
 0x203   :  { %6964 = vmatpush1.bf16.msra.mxu0 %v10399_v0  ;;  %7812 = vmatpush1.bf16.msra.mxu1 %v10402_v3  ;;  %v10494_v0 = vld [vmem:[%s14614_s1 + $0x11ec] ss:$16 sps:$4 sm:$0xff]   ;;  %v10489_v3 = vld [vmem:[%s14614_s1 + $0x11e0] ss:$16 sps:$4 sm:$0xff]  }
 0x204   :  { %6965 = vmatprep.subr.bf16.mxu0 %v10407_v4  ;;  %7813 = vmatprep.subr.bf16.mxu1 %v10410_v1  ;;  %v10492_v4 = vld [vmem:[%s14614_s1 + $0x11e8] ss:$16 sps:$4 sm:$0xff]   ;;  %v10497_v1 = vld [vmem:[%s14614_s1 + $0x1204] ss:$16 sps:$4 sm:$0xff]  }
 0x205   :  { %6952 = vmatprep.mubr.bf16.mxu0 %v8350_v6  ;;  %7800 = vmatprep.mubr.bf16.mxu1 %v8350_v6  ;;  %v67_v6 = vld [vmem:[%s14615_s0 + $0x1c0] sm:$0xff] }
 0x207   :  { %6966 = vmatpush1.bf16.msra.mxu0 %v10405_v2  ;;  %7814 = vmatpush1.bf16.msra.mxu1 %v10408_v5  ;;  %v10500_v2 = vld [vmem:[%s14614_s1 + $0x120c] ss:$16 sps:$4 sm:$0xff]   ;;  %v51_v5 = vld [vmem:[%s14615_s0 + $0x140] sm:$0xff] }
 0x208   :  { %6967 = vmatprep.subr.bf16.mxu0 %v10413_v7  ;;  %7815 = vmatprep.subr.bf16.mxu1 %v10416_v8  ;;  %v8319_v7 = vcombine.low %v12903_v9, %v12908_v10  ;;  %v10495_v8 = vld [vmem:[%s14614_s1 + $0x1200] ss:$16 sps:$4 sm:$0xff]   ;;  %v10506_v9 = vld [vmem:[%s14614_s1 + $0x122c] ss:$16 sps:$4 sm:$0xff]  }
 0x209   :  { %v10501_v10 = vld [vmem:[%s14614_s1 + $0x1220] ss:$16 sps:$4 sm:$0xff]  }
 0x20a   :  { %6953 = vmatmul.mubr.bf16.gmra.mrb[4].mxu0 %v8349_v11  ;;  %7801 = vmatmul.mubr.bf16.gmra.mrb[4].mxu1 %v8349_v11  ;;  %v10498_v11 = vld [vmem:[%s14614_s1 + $0x1208] ss:$16 sps:$4 sm:$0xff]  }
 0x20b   :  { %6968 = vmatpush1.bf16.msra.mxu0 %v10411_v12  ;;  %7816 = vmatpush1.bf16.msra.mxu1 %v10414_v13  ;;  %v10503_v12 = vld [vmem:[%s14614_s1 + $0x1224] ss:$16 sps:$4 sm:$0xff]   ;;  %v10504_v13 = vld [vmem:[%s14614_s1 + $0x1228] ss:$16 sps:$4 sm:$0xff]  }
 0x20c   :  { %6969 = vmatprep.subr.bf16.mxu0 %v10419_v14  ;;  %7817 = vmatprep.subr.bf16.mxu1 %v10422_v15  ;;  %v8352_v14 = vcombine.high %v51_v5, %v67_v6  ;;  %v10509_v15 = vld [vmem:[%s14614_s1 + $0x1244] ss:$16 sps:$4 sm:$0xff]  }
 0x20d   :  { %6995 = vmatprep.mubr.bf16.mxu0 %v8320_v16  ;;  %7843 = vmatprep.mubr.bf16.mxu1 %v8320_v16  ;;  %v10512_v16 = vld [vmem:[%s14614_s1 + $0x124c] ss:$16 sps:$4 sm:$0xff]  }
 0x20f   :  { %6970 = vmatpush1.bf16.msra.mxu0 %v10417_v17  ;;  %7818 = vmatpush1.bf16.msra.mxu1 %v10420_v18  ;;  %v13115_v17 = vld [vmem:[%s14615_s0 + $0x48] sm:$0xff] }
 0x210   :  { %6971 = vmatprep.subr.bf16.mxu0 %v10425_v19  ;;  %7819 = vmatprep.subr.bf16.mxu1 %v10428_v20  ;;  %v13120_v18 = vld [vmem:[%s14615_s0 + $0xc8] sm:$0xff]  ;;  %v8351_v19 = vcombine.low %v51_v5, %v67_v6  ;;  %v10507_v20 = vld [vmem:[%s14614_s1 + $0x1240] ss:$16 sps:$4 sm:$0xff]  }
 0x211   :  { %v10579_v5 = vld [vmem:[%s14614_s1 + $0x13c0] ss:$16 sps:$4 sm:$0xff]   ;;  %v10582_v6 = vld [vmem:[%s14614_s1 + $0x13c8] ss:$16 sps:$4 sm:$0xff]  }
 0x213   :  { %6972 = vmatpush1.bf16.msra.mxu0 %v10423_v21  ;;  %7820 = vmatpush1.bf16.msra.mxu1 %v10426_v22  ;;  %v10510_v21 = vld [vmem:[%s14614_s1 + $0x1248] ss:$16 sps:$4 sm:$0xff]   ;;  %v10515_v22 = vld [vmem:[%s14614_s1 + $0x1264] ss:$16 sps:$4 sm:$0xff]  }
 0x214   :  { %6973 = vmatprep.subr.bf16.mxu0 %v10431_v23  ;;  %7821 = vmatprep.subr.bf16.mxu1 %v10434_v24  ;;  %v10518_v23 = vld [vmem:[%s14614_s1 + $0x126c] ss:$16 sps:$4 sm:$0xff]   ;;  %v8322_v24 = vcombine.high %v13115_v17, %v13120_v18 }
 0x217   :  { %6974 = vmatpush1.bf16.msra.mxu0 %v10429_v26  ;;  %7822 = vmatpush1.bf16.msra.mxu1 %v10432_v25  ;;  %v10513_v26 = vld [vmem:[%s14614_s1 + $0x1260] ss:$16 sps:$4 sm:$0xff]   ;;  %v10516_v25 = vld [vmem:[%s14614_s1 + $0x1268] ss:$16 sps:$4 sm:$0xff]  }
 0x218   :  { %6975 = vmatprep.subr.bf16.mxu0 %v10437_v27  ;;  %7823 = vmatprep.subr.bf16.mxu1 %v10440_v28  ;;  %v10521_v27 = vld [vmem:[%s14614_s1 + $0x1284] ss:$16 sps:$4 sm:$0xff]   ;;  %v10524_v28 = vld [vmem:[%s14614_s1 + $0x128c] ss:$16 sps:$4 sm:$0xff]  }
 0x21b   :  { %6976 = vmatpush1.bf16.msra.mxu0 %v10435_v29  ;;  %7824 = vmatpush1.bf16.msra.mxu1 %v10438_v30  ;;  %v10519_v29 = vld [vmem:[%s14614_s1 + $0x1280] ss:$16 sps:$4 sm:$0xff]   ;;  %v10522_v30 = vld [vmem:[%s14614_s1 + $0x1288] ss:$16 sps:$4 sm:$0xff]  }
 0x21c   :  { %6977 = vmatprep.subr.bf16.mxu0 %v10443_v31  ;;  %7825 = vmatprep.subr.bf16.mxu1 %v10446_v32  ;;  %v10527_v31 = vld [vmem:[%s14614_s1 + $0x12a4] ss:$16 sps:$4 sm:$0xff]   ;;  %v10530_v32 = vld [vmem:[%s14614_s1 + $0x12ac] ss:$16 sps:$4 sm:$0xff]  }
 0x21f   :  { %6978 = vmatpush1.bf16.msra.mxu0 %v10441_v34  ;;  %7826 = vmatpush1.bf16.msra.mxu1 %v10444_v36  ;;  %v10525_v34 = vld [vmem:[%s14614_s1 + $0x12a0] ss:$16 sps:$4 sm:$0xff]   ;;  %v10528_v36 = vld [vmem:[%s14614_s1 + $0x12a8] ss:$16 sps:$4 sm:$0xff]  }
 0x220   :  { %6979 = vmatprep.subr.bf16.mxu0 %v10449_v33  ;;  %7827 = vmatprep.subr.bf16.mxu1 %v10452_v35  ;;  %v10533_v33 = vld [vmem:[%s14614_s1 + $0x12c4] ss:$16 sps:$4 sm:$0xff]   ;;  %v10536_v35 = vld [vmem:[%s14614_s1 + $0x12cc] ss:$16 sps:$4 sm:$0xff]  }
 0x223   :  { %6980 = vmatpush1.bf16.msra.mxu0 %v10447_v37  ;;  %7828 = vmatpush1.bf16.msra.mxu1 %v10450_v38  ;;  %v10531_v37 = vld [vmem:[%s14614_s1 + $0x12c0] ss:$16 sps:$4 sm:$0xff]   ;;  %v10534_v38 = vld [vmem:[%s14614_s1 + $0x12c8] ss:$16 sps:$4 sm:$0xff]  }
 0x224   :  { %6981 = vmatprep.subr.bf16.mxu0 %v10455_v39  ;;  %7829 = vmatprep.subr.bf16.mxu1 %v10458_v40  ;;  %v10539_v39 = vld [vmem:[%s14614_s1 + $0x12e4] ss:$16 sps:$4 sm:$0xff]   ;;  %v10542_v40 = vld [vmem:[%s14614_s1 + $0x12ec] ss:$16 sps:$4 sm:$0xff]  }
 0x227   :  { %6982 = vmatpush1.bf16.msra.mxu0 %v10453_v42  ;;  %7830 = vmatpush1.bf16.msra.mxu1 %v10456_v44  ;;  %v10537_v42 = vld [vmem:[%s14614_s1 + $0x12e0] ss:$16 sps:$4 sm:$0xff]   ;;  %v10540_v44 = vld [vmem:[%s14614_s1 + $0x12e8] ss:$16 sps:$4 sm:$0xff]  }
 0x228   :  { %6983 = vmatprep.subr.bf16.mxu0 %v10461_v41  ;;  %7831 = vmatprep.subr.bf16.mxu1 %v10464_v43  ;;  %v10545_v41 = vld [vmem:[%s14614_s1 + $0x1304] ss:$16 sps:$4 sm:$0xff]   ;;  %v10548_v43 = vld [vmem:[%s14614_s1 + $0x130c] ss:$16 sps:$4 sm:$0xff]  }
 0x22b   :  { %6984 = vmatpush1.bf16.msra.mxu0 %v10459_v45  ;;  %7832 = vmatpush1.bf16.msra.mxu1 %v10462_v46  ;;  %v10543_v45 = vld [vmem:[%s14614_s1 + $0x1300] ss:$16 sps:$4 sm:$0xff]   ;;  %v10546_v46 = vld [vmem:[%s14614_s1 + $0x1308] ss:$16 sps:$4 sm:$0xff]  }
 0x22c   :  { %6985 = vmatprep.subr.bf16.mxu0 %v10467_v47  ;;  %7833 = vmatprep.subr.bf16.mxu1 %v10470_v48  ;;  %v10551_v47 = vld [vmem:[%s14614_s1 + $0x1324] ss:$16 sps:$4 sm:$0xff]   ;;  %v10554_v48 = vld [vmem:[%s14614_s1 + $0x132c] ss:$16 sps:$4 sm:$0xff]  }
 0x22f   :  { %6986 = vmatpush1.bf16.msra.mxu0 %v10465_v51  ;;  %7834 = vmatpush1.bf16.msra.mxu1 %v10468_v52  ;;  %v10549_v51 = vld [vmem:[%s14614_s1 + $0x1320] ss:$16 sps:$4 sm:$0xff]   ;;  %v10552_v52 = vld [vmem:[%s14614_s1 + $0x1328] ss:$16 sps:$4 sm:$0xff]  }
 0x230   :  { %6987 = vmatprep.subr.bf16.mxu0 %v10473_v49  ;;  %7835 = vmatprep.subr.bf16.mxu1 %v10476_v50  ;;  %v10557_v49 = vld [vmem:[%s14614_s1 + $0x1344] ss:$16 sps:$4 sm:$0xff]   ;;  %v10560_v50 = vld [vmem:[%s14614_s1 + $0x134c] ss:$16 sps:$4 sm:$0xff]  }
 0x233   :  { %6988 = vmatpush1.bf16.msra.mxu0 %v10471_v53  ;;  %7836 = vmatpush1.bf16.msra.mxu1 %v10474_v54  ;;  %v10555_v53 = vld [vmem:[%s14614_s1 + $0x1340] ss:$16 sps:$4 sm:$0xff]   ;;  %v10558_v54 = vld [vmem:[%s14614_s1 + $0x1348] ss:$16 sps:$4 sm:$0xff]  }
 0x234   :  { %6989 = vmatprep.subr.bf16.mxu0 %v10479_v55  ;;  %7837 = vmatprep.subr.bf16.mxu1 %v10482_v56  ;;  %v10563_v55 = vld [vmem:[%s14614_s1 + $0x1364] ss:$16 sps:$4 sm:$0xff]   ;;  %v10566_v56 = vld [vmem:[%s14614_s1 + $0x136c] ss:$16 sps:$4 sm:$0xff]  }
 0x237   :  { %6990 = vmatpush1.bf16.msra.mxu0 %v10477_v59  ;;  %7838 = vmatpush1.bf16.msra.mxu1 %v10480_v60  ;;  %v10561_v59 = vld [vmem:[%s14614_s1 + $0x1360] ss:$16 sps:$4 sm:$0xff]   ;;  %v10564_v60 = vld [vmem:[%s14614_s1 + $0x1368] ss:$16 sps:$4 sm:$0xff]  }
 0x238   :  { %6991 = vmatprep.subr.bf16.mxu0 %v10485_v57  ;;  %7839 = vmatprep.subr.bf16.mxu1 %v10488_v58  ;;  %v10569_v57 = vld [vmem:[%s14614_s1 + $0x1384] ss:$16 sps:$4 sm:$0xff]   ;;  %v10572_v58 = vld [vmem:[%s14614_s1 + $0x138c] ss:$16 sps:$4 sm:$0xff]  }
 0x23b   :  { %6992 = vmatpush1.bf16.msra.mxu0 %v10483_v61  ;;  %7840 = vmatpush1.bf16.msra.mxu1 %v10486_v62  ;;  %v10567_v61 = vld [vmem:[%s14614_s1 + $0x1380] ss:$16 sps:$4 sm:$0xff]   ;;  %v10570_v62 = vld [vmem:[%s14614_s1 + $0x1388] ss:$16 sps:$4 sm:$0xff]  }
 0x23c   :  { %6993 = vmatprep.subr.bf16.mxu0 %v10491_v63  ;;  %7841 = vmatprep.subr.bf16.mxu1 %v10494_v0  ;;  %v10575_v63 = vld [vmem:[%s14614_s1 + $0x13a4] ss:$16 sps:$4 sm:$0xff]   ;;  %v10578_v0 = vld [vmem:[%s14614_s1 + $0x13ac] ss:$16 sps:$4 sm:$0xff]  }
 0x23f   :  { %6994 = vmatpush1.bf16.msra.mxu0 %v10489_v3  ;;  %7842 = vmatpush1.bf16.msra.mxu1 %v10492_v4  ;;  %v10573_v3 = vld [vmem:[%s14614_s1 + $0x13a0] ss:$16 sps:$4 sm:$0xff]   ;;  %v10576_v4 = vld [vmem:[%s14614_s1 + $0x13a8] ss:$16 sps:$4 sm:$0xff]  }
 0x240   :  { %7016 = vmatprep.subr.bf16.mxu0 %v10497_v1  ;;  %7864 = vmatprep.subr.bf16.mxu1 %v10500_v2  ;;  %v10581_v1 = vld [vmem:[%s14614_s1 + $0x13c4] ss:$16 sps:$4 sm:$0xff]   ;;  %v10584_v2 = vld [vmem:[%s14614_s1 + $0x13cc] ss:$16 sps:$4 sm:$0xff]  }
 0x242   :  { %6996 = vmatmul.mubr.bf16.vlgmr.msra.gmra.mrb[0].mxu0 %v8319_v7  ;;  %7844 = vmatmul.mubr.bf16.vlgmr.msra.gmra.mrb[0].mxu1 %v8319_v7  ;;  %v10587_v7 = vld [vmem:[%s14614_s1 + $0x13e4] ss:$16 sps:$4 sm:$0xff]  }
 0x243   :  { %7017 = vmatpush1.bf16.msra.mxu0 %v10495_v8  ;;  %7865 = vmatpush1.bf16.msra.mxu1 %v10498_v11  ;;  %v10590_v8 = vld [vmem:[%s14614_s1 + $0x13ec] ss:$16 sps:$4 sm:$0xff]   ;;  %v10585_v11 = vld [vmem:[%s14614_s1 + $0x13e0] ss:$16 sps:$4 sm:$0xff]  }
 0x244   :  { %7018 = vmatprep.subr.bf16.mxu0 %v10503_v12  ;;  %7866 = vmatprep.subr.bf16.mxu1 %v10506_v9  ;;  %v10588_v12 = vld [vmem:[%s14614_s1 + $0x13e8] ss:$16 sps:$4 sm:$0xff]   ;;  %v10593_v9 = vld [vmem:[%s14614_s1 + $0x1404] ss:$16 sps:$4 sm:$0xff]  }
 0x245   :  { %7005 = vmatprep.mubr.bf16.mxu0 %v8352_v14  ;;  %7853 = vmatprep.mubr.bf16.mxu1 %v8352_v14  ;;  %v52_v14 = vld [vmem:[%s14615_s0 + $0x148] sm:$0xff] }
 0x247   :  { %7019 = vmatpush1.bf16.msra.mxu0 %v10501_v10  ;;  %7867 = vmatpush1.bf16.msra.mxu1 %v10504_v13  ;;  %v10596_v10 = vld [vmem:[%s14614_s1 + $0x140c] ss:$16 sps:$4 sm:$0xff]   ;;  %v8321_v13 = vcombine.low %v13115_v17, %v13120_v18  ;;  %v10599_v17 = vld [vmem:[%s14614_s1 + $0x1424] ss:$16 sps:$4 sm:$0xff]  }
 0x248   :  { %7020 = vmatprep.subr.bf16.mxu0 %v10509_v15  ;;  %7868 = vmatprep.subr.bf16.mxu1 %v10512_v16  ;;  %v68_v15 = vld [vmem:[%s14615_s0 + $0x1c8] sm:$0xff]  ;;  %v10591_v16 = vld [vmem:[%s14614_s1 + $0x1400] ss:$16 sps:$4 sm:$0xff]  }
 0x249   :  { %v10602_v18 = vld [vmem:[%s14614_s1 + $0x142c] ss:$16 sps:$4 sm:$0xff]  }
 0x24a   :  { %7006 = vmatmul.mubr.bf16.gmra.mrb[4].mxu0 %v8351_v19  ;;  %7854 = vmatmul.mubr.bf16.gmra.mrb[4].mxu1 %v8351_v19  ;;  %v10594_v19 = vld [vmem:[%s14614_s1 + $0x1408] ss:$16 sps:$4 sm:$0xff]  }
 0x24b   :  { %7021 = vmatpush1.bf16.msra.mxu0 %v10507_v20  ;;  %7869 = vmatpush1.bf16.msra.mxu1 %v10510_v21  ;;  %v8354_v20 = vcombine.high %v52_v14, %v68_v15  ;;  %v10597_v21 = vld [vmem:[%s14614_s1 + $0x1420] ss:$16 sps:$4 sm:$0xff]  }
 0x24c   :  { %7022 = vmatprep.subr.bf16.mxu0 %v10515_v22  ;;  %7870 = vmatprep.subr.bf16.mxu1 %v10518_v23  ;;  %v10600_v22 = vld [vmem:[%s14614_s1 + $0x1428] ss:$16 sps:$4 sm:$0xff]   ;;  %v10605_v23 = vld [vmem:[%s14614_s1 + $0x1444] ss:$16 sps:$4 sm:$0xff]  }
 0x24d   :  { %7048 = vmatprep.mubr.bf16.mxu0 %v8322_v24  ;;  %7896 = vmatprep.mubr.bf16.mxu1 %v8322_v24  ;;  %v10608_v24 = vld [vmem:[%s14614_s1 + $0x144c] ss:$16 sps:$4 sm:$0xff]  }
 0x24f   :  { %7023 = vmatpush1.bf16.msra.mxu0 %v10513_v26  ;;  %7871 = vmatpush1.bf16.msra.mxu1 %v10516_v25  ;;  %v8353_v26 = vcombine.low %v52_v14, %v68_v15  ;;  %v13327_v25 = vld [vmem:[%s14615_s0 + $0x50] sm:$0xff]  ;;  %v10678_v14 = vld [vmem:[%s14614_s1 + $0x15c8] ss:$16 sps:$4 sm:$0xff]  }
 0x250   :  { %7024 = vmatprep.subr.bf16.mxu0 %v10521_v27  ;;  %7872 = vmatprep.subr.bf16.mxu1 %v10524_v28  ;;  %v13332_v27 = vld [vmem:[%s14615_s0 + $0xd0] sm:$0xff] }
 0x251   :  { %v10603_v28 = vld [vmem:[%s14614_s1 + $0x1440] ss:$16 sps:$4 sm:$0xff]   ;;  %v10683_v15 = vld [vmem:[%s14614_s1 + $0x15e4] ss:$16 sps:$4 sm:$0xff]  }
 0x253   :  { %7025 = vmatpush1.bf16.msra.mxu0 %v10519_v29  ;;  %7873 = vmatpush1.bf16.msra.mxu1 %v10522_v30  ;;  %v10606_v29 = vld [vmem:[%s14614_s1 + $0x1448] ss:$16 sps:$4 sm:$0xff]   ;;  %v10611_v30 = vld [vmem:[%s14614_s1 + $0x1464] ss:$16 sps:$4 sm:$0xff]  }
 0x254   :  { %7026 = vmatprep.subr.bf16.mxu0 %v10527_v31  ;;  %7874 = vmatprep.subr.bf16.mxu1 %v10530_v32  ;;  %v10614_v31 = vld [vmem:[%s14614_s1 + $0x146c] ss:$16 sps:$4 sm:$0xff]   ;;  %v8324_v32 = vcombine.high %v13327_v25, %v13332_v27 }
 0x257   :  { %7027 = vmatpush1.bf16.msra.mxu0 %v10525_v34  ;;  %7875 = vmatpush1.bf16.msra.mxu1 %v10528_v36  ;;  %v10609_v34 = vld [vmem:[%s14614_s1 + $0x1460] ss:$16 sps:$4 sm:$0xff]   ;;  %v10612_v36 = vld [vmem:[%s14614_s1 + $0x1468] ss:$16 sps:$4 sm:$0xff]  }
 0x258   :  { %7028 = vmatprep.subr.bf16.mxu0 %v10533_v33  ;;  %7876 = vmatprep.subr.bf16.mxu1 %v10536_v35  ;;  %v10617_v33 = vld [vmem:[%s14614_s1 + $0x1484] ss:$16 sps:$4 sm:$0xff]   ;;  %v10620_v35 = vld [vmem:[%s14614_s1 + $0x148c] ss:$16 sps:$4 sm:$0xff]  }
 0x25b   :  { %7029 = vmatpush1.bf16.msra.mxu0 %v10531_v37  ;;  %7877 = vmatpush1.bf16.msra.mxu1 %v10534_v38  ;;  %v10615_v37 = vld [vmem:[%s14614_s1 + $0x1480] ss:$16 sps:$4 sm:$0xff]   ;;  %v10618_v38 = vld [vmem:[%s14614_s1 + $0x1488] ss:$16 sps:$4 sm:$0xff]  }
 0x25c   :  { %7030 = vmatprep.subr.bf16.mxu0 %v10539_v39  ;;  %7878 = vmatprep.subr.bf16.mxu1 %v10542_v40  ;;  %v10623_v39 = vld [vmem:[%s14614_s1 + $0x14a4] ss:$16 sps:$4 sm:$0xff]   ;;  %v10626_v40 = vld [vmem:[%s14614_s1 + $0x14ac] ss:$16 sps:$4 sm:$0xff]  }
 0x25f   :  { %7031 = vmatpush1.bf16.msra.mxu0 %v10537_v42  ;;  %7879 = vmatpush1.bf16.msra.mxu1 %v10540_v44  ;;  %v10621_v42 = vld [vmem:[%s14614_s1 + $0x14a0] ss:$16 sps:$4 sm:$0xff]   ;;  %v10624_v44 = vld [vmem:[%s14614_s1 + $0x14a8] ss:$16 sps:$4 sm:$0xff]  }
 0x260   :  { %7032 = vmatprep.subr.bf16.mxu0 %v10545_v41  ;;  %7880 = vmatprep.subr.bf16.mxu1 %v10548_v43  ;;  %v10629_v41 = vld [vmem:[%s14614_s1 + $0x14c4] ss:$16 sps:$4 sm:$0xff]   ;;  %v10632_v43 = vld [vmem:[%s14614_s1 + $0x14cc] ss:$16 sps:$4 sm:$0xff]  }
 0x263   :  { %7033 = vmatpush1.bf16.msra.mxu0 %v10543_v45  ;;  %7881 = vmatpush1.bf16.msra.mxu1 %v10546_v46  ;;  %v10627_v45 = vld [vmem:[%s14614_s1 + $0x14c0] ss:$16 sps:$4 sm:$0xff]   ;;  %v10630_v46 = vld [vmem:[%s14614_s1 + $0x14c8] ss:$16 sps:$4 sm:$0xff]  }
 0x264   :  { %7034 = vmatprep.subr.bf16.mxu0 %v10551_v47  ;;  %7882 = vmatprep.subr.bf16.mxu1 %v10554_v48  ;;  %v10635_v47 = vld [vmem:[%s14614_s1 + $0x14e4] ss:$16 sps:$4 sm:$0xff]   ;;  %v10638_v48 = vld [vmem:[%s14614_s1 + $0x14ec] ss:$16 sps:$4 sm:$0xff]  }
 0x267   :  { %7035 = vmatpush1.bf16.msra.mxu0 %v10549_v51  ;;  %7883 = vmatpush1.bf16.msra.mxu1 %v10552_v52  ;;  %v10633_v51 = vld [vmem:[%s14614_s1 + $0x14e0] ss:$16 sps:$4 sm:$0xff]   ;;  %v10636_v52 = vld [vmem:[%s14614_s1 + $0x14e8] ss:$16 sps:$4 sm:$0xff]  }
 0x268   :  { %7036 = vmatprep.subr.bf16.mxu0 %v10557_v49  ;;  %7884 = vmatprep.subr.bf16.mxu1 %v10560_v50  ;;  %v10641_v49 = vld [vmem:[%s14614_s1 + $0x1504] ss:$16 sps:$4 sm:$0xff]   ;;  %v10644_v50 = vld [vmem:[%s14614_s1 + $0x150c] ss:$16 sps:$4 sm:$0xff]  }
 0x26b   :  { %7037 = vmatpush1.bf16.msra.mxu0 %v10555_v53  ;;  %7885 = vmatpush1.bf16.msra.mxu1 %v10558_v54  ;;  %v10639_v53 = vld [vmem:[%s14614_s1 + $0x1500] ss:$16 sps:$4 sm:$0xff]   ;;  %v10642_v54 = vld [vmem:[%s14614_s1 + $0x1508] ss:$16 sps:$4 sm:$0xff]  }
 0x26c   :  { %7038 = vmatprep.subr.bf16.mxu0 %v10563_v55  ;;  %7886 = vmatprep.subr.bf16.mxu1 %v10566_v56  ;;  %v10647_v55 = vld [vmem:[%s14614_s1 + $0x1524] ss:$16 sps:$4 sm:$0xff]   ;;  %v10650_v56 = vld [vmem:[%s14614_s1 + $0x152c] ss:$16 sps:$4 sm:$0xff]  }
 0x26f   :  { %7039 = vmatpush1.bf16.msra.mxu0 %v10561_v59  ;;  %7887 = vmatpush1.bf16.msra.mxu1 %v10564_v60  ;;  %v10645_v59 = vld [vmem:[%s14614_s1 + $0x1520] ss:$16 sps:$4 sm:$0xff]   ;;  %v10648_v60 = vld [vmem:[%s14614_s1 + $0x1528] ss:$16 sps:$4 sm:$0xff]  }
 0x270   :  { %7040 = vmatprep.subr.bf16.mxu0 %v10569_v57  ;;  %7888 = vmatprep.subr.bf16.mxu1 %v10572_v58  ;;  %v10653_v57 = vld [vmem:[%s14614_s1 + $0x1544] ss:$16 sps:$4 sm:$0xff]   ;;  %v10656_v58 = vld [vmem:[%s14614_s1 + $0x154c] ss:$16 sps:$4 sm:$0xff]  }
 0x273   :  { %7041 = vmatpush1.bf16.msra.mxu0 %v10567_v61  ;;  %7889 = vmatpush1.bf16.msra.mxu1 %v10570_v62  ;;  %v10651_v61 = vld [vmem:[%s14614_s1 + $0x1540] ss:$16 sps:$4 sm:$0xff]   ;;  %v10654_v62 = vld [vmem:[%s14614_s1 + $0x1548] ss:$16 sps:$4 sm:$0xff]  }
 0x274   :  { %7042 = vmatprep.subr.bf16.mxu0 %v10575_v63  ;;  %7890 = vmatprep.subr.bf16.mxu1 %v10578_v0  ;;  %v10659_v63 = vld [vmem:[%s14614_s1 + $0x1564] ss:$16 sps:$4 sm:$0xff]   ;;  %v10662_v0 = vld [vmem:[%s14614_s1 + $0x156c] ss:$16 sps:$4 sm:$0xff]  }
 0x277   :  { %7043 = vmatpush1.bf16.msra.mxu0 %v10573_v3  ;;  %7891 = vmatpush1.bf16.msra.mxu1 %v10576_v4  ;;  %v10657_v3 = vld [vmem:[%s14614_s1 + $0x1560] ss:$16 sps:$4 sm:$0xff]   ;;  %v10660_v4 = vld [vmem:[%s14614_s1 + $0x1568] ss:$16 sps:$4 sm:$0xff]  }
 0x278   :  { %7044 = vmatprep.subr.bf16.mxu0 %v10581_v1  ;;  %7892 = vmatprep.subr.bf16.mxu1 %v10584_v2  ;;  %v10665_v1 = vld [vmem:[%s14614_s1 + $0x1584] ss:$16 sps:$4 sm:$0xff]   ;;  %v10668_v2 = vld [vmem:[%s14614_s1 + $0x158c] ss:$16 sps:$4 sm:$0xff]  }
 0x27b   :  { %7045 = vmatpush1.bf16.msra.mxu0 %v10579_v5  ;;  %7893 = vmatpush1.bf16.msra.mxu1 %v10582_v6  ;;  %v10663_v5 = vld [vmem:[%s14614_s1 + $0x1580] ss:$16 sps:$4 sm:$0xff]   ;;  %v10666_v6 = vld [vmem:[%s14614_s1 + $0x1588] ss:$16 sps:$4 sm:$0xff]  }
 0x27c   :  { %7046 = vmatprep.subr.bf16.mxu0 %v10587_v7  ;;  %7894 = vmatprep.subr.bf16.mxu1 %v10590_v8  ;;  %v10671_v7 = vld [vmem:[%s14614_s1 + $0x15a4] ss:$16 sps:$4 sm:$0xff]   ;;  %v10674_v8 = vld [vmem:[%s14614_s1 + $0x15ac] ss:$16 sps:$4 sm:$0xff]  }
 0x27f   :  { %7047 = vmatpush1.bf16.msra.mxu0 %v10585_v11  ;;  %7895 = vmatpush1.bf16.msra.mxu1 %v10588_v12  ;;  %v10669_v11 = vld [vmem:[%s14614_s1 + $0x15a0] ss:$16 sps:$4 sm:$0xff]   ;;  %v10672_v12 = vld [vmem:[%s14614_s1 + $0x15a8] ss:$16 sps:$4 sm:$0xff]  }
 0x280   :  { %7069 = vmatprep.subr.bf16.mxu0 %v10593_v9  ;;  %7917 = vmatprep.subr.bf16.mxu1 %v10596_v10  ;;  %v10677_v9 = vld [vmem:[%s14614_s1 + $0x15c4] ss:$16 sps:$4 sm:$0xff]   ;;  %v10680_v10 = vld [vmem:[%s14614_s1 + $0x15cc] ss:$16 sps:$4 sm:$0xff]  }
 0x282   :  { %7049 = vmatmul.mubr.bf16.vlgmr.msra.gmra.mrb[0].mxu0 %v8321_v13  ;;  %7897 = vmatmul.mubr.bf16.vlgmr.msra.gmra.mrb[0].mxu1 %v8321_v13  ;;  %v10675_v13 = vld [vmem:[%s14614_s1 + $0x15c0] ss:$16 sps:$4 sm:$0xff]  }
 0x283   :  { %7070 = vmatpush1.bf16.msra.mxu0 %v10591_v16  ;;  %7918 = vmatpush1.bf16.msra.mxu1 %v10594_v19  ;;  %v10686_v16 = vld [vmem:[%s14614_s1 + $0x15ec] ss:$16 sps:$4 sm:$0xff]   ;;  %v10681_v19 = vld [vmem:[%s14614_s1 + $0x15e0] ss:$16 sps:$4 sm:$0xff]  }
 0x284   :  { %7071 = vmatprep.subr.bf16.mxu0 %v10599_v17  ;;  %7919 = vmatprep.subr.bf16.mxu1 %v10602_v18  ;;  %v10684_v17 = vld [vmem:[%s14614_s1 + $0x15e8] ss:$16 sps:$4 sm:$0xff]   ;;  %v10689_v18 = vld [vmem:[%s14614_s1 + $0x1604] ss:$16 sps:$4 sm:$0xff]  }
 0x285   :  { %7058 = vmatprep.mubr.bf16.mxu0 %v8354_v20  ;;  %7906 = vmatprep.mubr.bf16.mxu1 %v8354_v20  ;;  %v10692_v20 = vld [vmem:[%s14614_s1 + $0x160c] ss:$16 sps:$4 sm:$0xff]  }
 0x287   :  { %7072 = vmatpush1.bf16.msra.mxu0 %v10597_v21  ;;  %7920 = vmatpush1.bf16.msra.mxu1 %v10600_v22  ;;  %v8323_v21 = vcombine.low %v13327_v25, %v13332_v27  ;;  %v53_v22 = vld [vmem:[%s14615_s0 + $0x150] sm:$0xff]  ;;  %v10698_v27 = vld [vmem:[%s14614_s1 + $0x162c] ss:$16 sps:$4 sm:$0xff]  }
 0x288   :  { %7073 = vmatprep.subr.bf16.mxu0 %v10605_v23  ;;  %7921 = vmatprep.subr.bf16.mxu1 %v10608_v24  ;;  %v69_v23 = vld [vmem:[%s14615_s0 + $0x1d0] sm:$0xff] }
 0x289   :  { %v10687_v24 = vld [vmem:[%s14614_s1 + $0x1600] ss:$16 sps:$4 sm:$0xff]   ;;  %v10695_v25 = vld [vmem:[%s14614_s1 + $0x1624] ss:$16 sps:$4 sm:$0xff]  }
 0x28a   :  { %7059 = vmatmul.mubr.bf16.gmra.mrb[4].mxu0 %v8353_v26  ;;  %7907 = vmatmul.mubr.bf16.gmra.mrb[4].mxu1 %v8353_v26  ;;  %v10690_v26 = vld [vmem:[%s14614_s1 + $0x1608] ss:$16 sps:$4 sm:$0xff]  }
 0x28b   :  { %7074 = vmatpush1.bf16.msra.mxu0 %v10603_v28  ;;  %7922 = vmatpush1.bf16.msra.mxu1 %v10606_v29  ;;  %v8356_v28 = vcombine.high %v53_v22, %v69_v23  ;;  %v10693_v29 = vld [vmem:[%s14614_s1 + $0x1620] ss:$16 sps:$4 sm:$0xff]  }
 0x28c   :  { %7075 = vmatprep.subr.bf16.mxu0 %v10611_v30  ;;  %7923 = vmatprep.subr.bf16.mxu1 %v10614_v31  ;;  %v10696_v30 = vld [vmem:[%s14614_s1 + $0x1628] ss:$16 sps:$4 sm:$0xff]   ;;  %v10701_v31 = vld [vmem:[%s14614_s1 + $0x1644] ss:$16 sps:$4 sm:$0xff]  }
 0x28d   :  { %7101 = vmatprep.mubr.bf16.mxu0 %v8324_v32  ;;  %7949 = vmatprep.mubr.bf16.mxu1 %v8324_v32  ;;  %v10704_v32 = vld [vmem:[%s14614_s1 + $0x164c] ss:$16 sps:$4 sm:$0xff]  }
 0x28f   :  { %7076 = vmatpush1.bf16.msra.mxu0 %v10609_v34  ;;  %7924 = vmatpush1.bf16.msra.mxu1 %v10612_v36  ;;  %v8355_v34 = vcombine.low %v53_v22, %v69_v23  ;;  %v13539_v36 = vld [vmem:[%s14615_s0 + $0x58] sm:$0xff]  ;;  %v10779_v23 = vld [vmem:[%s14614_s1 + $0x17e4] ss:$16 sps:$4 sm:$0xff]  }
 0x290   :  { %7077 = vmatprep.subr.bf16.mxu0 %v10617_v33  ;;  %7925 = vmatprep.subr.bf16.mxu1 %v10620_v35  ;;  %v13544_v33 = vld [vmem:[%s14615_s0 + $0xd8] sm:$0xff]  ;;  %v10699_v35 = vld [vmem:[%s14614_s1 + $0x1640] ss:$16 sps:$4 sm:$0xff]  }
 0x291   :  { %v10774_v22 = vld [vmem:[%s14614_s1 + $0x17c8] ss:$16 sps:$4 sm:$0xff]  }
 0x293   :  { %7078 = vmatpush1.bf16.msra.mxu0 %v10615_v37  ;;  %7926 = vmatpush1.bf16.msra.mxu1 %v10618_v38  ;;  %v10702_v37 = vld [vmem:[%s14614_s1 + $0x1648] ss:$16 sps:$4 sm:$0xff]   ;;  %v10707_v38 = vld [vmem:[%s14614_s1 + $0x1664] ss:$16 sps:$4 sm:$0xff]  }
 0x294   :  { %7079 = vmatprep.subr.bf16.mxu0 %v10623_v39  ;;  %7927 = vmatprep.subr.bf16.mxu1 %v10626_v40  ;;  %v10710_v39 = vld [vmem:[%s14614_s1 + $0x166c] ss:$16 sps:$4 sm:$0xff]   ;;  %v8326_v40 = vcombine.high %v13539_v36, %v13544_v33 }
 0x297   :  { %7080 = vmatpush1.bf16.msra.mxu0 %v10621_v42  ;;  %7928 = vmatpush1.bf16.msra.mxu1 %v10624_v44  ;;  %v10705_v42 = vld [vmem:[%s14614_s1 + $0x1660] ss:$16 sps:$4 sm:$0xff]   ;;  %v10708_v44 = vld [vmem:[%s14614_s1 + $0x1668] ss:$16 sps:$4 sm:$0xff]  }
 0x298   :  { %7081 = vmatprep.subr.bf16.mxu0 %v10629_v41  ;;  %7929 = vmatprep.subr.bf16.mxu1 %v10632_v43  ;;  %v10713_v41 = vld [vmem:[%s14614_s1 + $0x1684] ss:$16 sps:$4 sm:$0xff]   ;;  %v10716_v43 = vld [vmem:[%s14614_s1 + $0x168c] ss:$16 sps:$4 sm:$0xff]  }
 0x29b   :  { %7082 = vmatpush1.bf16.msra.mxu0 %v10627_v45  ;;  %7930 = vmatpush1.bf16.msra.mxu1 %v10630_v46  ;;  %v10711_v45 = vld [vmem:[%s14614_s1 + $0x1680] ss:$16 sps:$4 sm:$0xff]   ;;  %v10714_v46 = vld [vmem:[%s14614_s1 + $0x1688] ss:$16 sps:$4 sm:$0xff]  }
 0x29c   :  { %7083 = vmatprep.subr.bf16.mxu0 %v10635_v47  ;;  %7931 = vmatprep.subr.bf16.mxu1 %v10638_v48  ;;  %v10719_v47 = vld [vmem:[%s14614_s1 + $0x16a4] ss:$16 sps:$4 sm:$0xff]   ;;  %v10722_v48 = vld [vmem:[%s14614_s1 + $0x16ac] ss:$16 sps:$4 sm:$0xff]  }
 0x29f   :  { %7084 = vmatpush1.bf16.msra.mxu0 %v10633_v51  ;;  %7932 = vmatpush1.bf16.msra.mxu1 %v10636_v52  ;;  %v10717_v51 = vld [vmem:[%s14614_s1 + $0x16a0] ss:$16 sps:$4 sm:$0xff]   ;;  %v10720_v52 = vld [vmem:[%s14614_s1 + $0x16a8] ss:$16 sps:$4 sm:$0xff]  }
 0x2a0   :  { %7085 = vmatprep.subr.bf16.mxu0 %v10641_v49  ;;  %7933 = vmatprep.subr.bf16.mxu1 %v10644_v50  ;;  %v10725_v49 = vld [vmem:[%s14614_s1 + $0x16c4] ss:$16 sps:$4 sm:$0xff]   ;;  %v10728_v50 = vld [vmem:[%s14614_s1 + $0x16cc] ss:$16 sps:$4 sm:$0xff]  }
 0x2a3   :  { %7086 = vmatpush1.bf16.msra.mxu0 %v10639_v53  ;;  %7934 = vmatpush1.bf16.msra.mxu1 %v10642_v54  ;;  %v10723_v53 = vld [vmem:[%s14614_s1 + $0x16c0] ss:$16 sps:$4 sm:$0xff]   ;;  %v10726_v54 = vld [vmem:[%s14614_s1 + $0x16c8] ss:$16 sps:$4 sm:$0xff]  }
 0x2a4   :  { %7087 = vmatprep.subr.bf16.mxu0 %v10647_v55  ;;  %7935 = vmatprep.subr.bf16.mxu1 %v10650_v56  ;;  %v10731_v55 = vld [vmem:[%s14614_s1 + $0x16e4] ss:$16 sps:$4 sm:$0xff]   ;;  %v10734_v56 = vld [vmem:[%s14614_s1 + $0x16ec] ss:$16 sps:$4 sm:$0xff]  }
 0x2a7   :  { %7088 = vmatpush1.bf16.msra.mxu0 %v10645_v59  ;;  %7936 = vmatpush1.bf16.msra.mxu1 %v10648_v60  ;;  %v10729_v59 = vld [vmem:[%s14614_s1 + $0x16e0] ss:$16 sps:$4 sm:$0xff]   ;;  %v10732_v60 = vld [vmem:[%s14614_s1 + $0x16e8] ss:$16 sps:$4 sm:$0xff]  }
 0x2a8   :  { %7089 = vmatprep.subr.bf16.mxu0 %v10653_v57  ;;  %7937 = vmatprep.subr.bf16.mxu1 %v10656_v58  ;;  %v10737_v57 = vld [vmem:[%s14614_s1 + $0x1704] ss:$16 sps:$4 sm:$0xff]   ;;  %v10740_v58 = vld [vmem:[%s14614_s1 + $0x170c] ss:$16 sps:$4 sm:$0xff]  }
 0x2ab   :  { %7090 = vmatpush1.bf16.msra.mxu0 %v10651_v61  ;;  %7938 = vmatpush1.bf16.msra.mxu1 %v10654_v62  ;;  %v10735_v61 = vld [vmem:[%s14614_s1 + $0x1700] ss:$16 sps:$4 sm:$0xff]   ;;  %v10738_v62 = vld [vmem:[%s14614_s1 + $0x1708] ss:$16 sps:$4 sm:$0xff]  }
 0x2ac   :  { %7091 = vmatprep.subr.bf16.mxu0 %v10659_v63  ;;  %7939 = vmatprep.subr.bf16.mxu1 %v10662_v0  ;;  %v10743_v63 = vld [vmem:[%s14614_s1 + $0x1724] ss:$16 sps:$4 sm:$0xff]   ;;  %v10746_v0 = vld [vmem:[%s14614_s1 + $0x172c] ss:$16 sps:$4 sm:$0xff]  }
 0x2af   :  { %7092 = vmatpush1.bf16.msra.mxu0 %v10657_v3  ;;  %7940 = vmatpush1.bf16.msra.mxu1 %v10660_v4  ;;  %v10741_v3 = vld [vmem:[%s14614_s1 + $0x1720] ss:$16 sps:$4 sm:$0xff]   ;;  %v10744_v4 = vld [vmem:[%s14614_s1 + $0x1728] ss:$16 sps:$4 sm:$0xff]  }
 0x2b0   :  { %7093 = vmatprep.subr.bf16.mxu0 %v10665_v1  ;;  %7941 = vmatprep.subr.bf16.mxu1 %v10668_v2  ;;  %v10749_v1 = vld [vmem:[%s14614_s1 + $0x1744] ss:$16 sps:$4 sm:$0xff]   ;;  %v10752_v2 = vld [vmem:[%s14614_s1 + $0x174c] ss:$16 sps:$4 sm:$0xff]  }
 0x2b3   :  { %7094 = vmatpush1.bf16.msra.mxu0 %v10663_v5  ;;  %7942 = vmatpush1.bf16.msra.mxu1 %v10666_v6  ;;  %v10747_v5 = vld [vmem:[%s14614_s1 + $0x1740] ss:$16 sps:$4 sm:$0xff]   ;;  %v10750_v6 = vld [vmem:[%s14614_s1 + $0x1748] ss:$16 sps:$4 sm:$0xff]  }
 0x2b4   :  { %7095 = vmatprep.subr.bf16.mxu0 %v10671_v7  ;;  %7943 = vmatprep.subr.bf16.mxu1 %v10674_v8  ;;  %v10755_v7 = vld [vmem:[%s14614_s1 + $0x1764] ss:$16 sps:$4 sm:$0xff]   ;;  %v10758_v8 = vld [vmem:[%s14614_s1 + $0x176c] ss:$16 sps:$4 sm:$0xff]  }
 0x2b7   :  { %7096 = vmatpush1.bf16.msra.mxu0 %v10669_v11  ;;  %7944 = vmatpush1.bf16.msra.mxu1 %v10672_v12  ;;  %v10753_v11 = vld [vmem:[%s14614_s1 + $0x1760] ss:$16 sps:$4 sm:$0xff]   ;;  %v10756_v12 = vld [vmem:[%s14614_s1 + $0x1768] ss:$16 sps:$4 sm:$0xff]  }
 0x2b8   :  { %7097 = vmatprep.subr.bf16.mxu0 %v10677_v9  ;;  %7945 = vmatprep.subr.bf16.mxu1 %v10680_v10  ;;  %v10761_v9 = vld [vmem:[%s14614_s1 + $0x1784] ss:$16 sps:$4 sm:$0xff]   ;;  %v10764_v10 = vld [vmem:[%s14614_s1 + $0x178c] ss:$16 sps:$4 sm:$0xff]  }
 0x2bb   :  { %7098 = vmatpush1.bf16.msra.mxu0 %v10675_v13  ;;  %7946 = vmatpush1.bf16.msra.mxu1 %v10678_v14  ;;  %v10759_v13 = vld [vmem:[%s14614_s1 + $0x1780] ss:$16 sps:$4 sm:$0xff]   ;;  %v10762_v14 = vld [vmem:[%s14614_s1 + $0x1788] ss:$16 sps:$4 sm:$0xff]  }
 0x2bc   :  { %7099 = vmatprep.subr.bf16.mxu0 %v10683_v15  ;;  %7947 = vmatprep.subr.bf16.mxu1 %v10686_v16  ;;  %v10767_v15 = vld [vmem:[%s14614_s1 + $0x17a4] ss:$16 sps:$4 sm:$0xff]   ;;  %v10770_v16 = vld [vmem:[%s14614_s1 + $0x17ac] ss:$16 sps:$4 sm:$0xff]  }
 0x2bf   :  { %7100 = vmatpush1.bf16.msra.mxu0 %v10681_v19  ;;  %7948 = vmatpush1.bf16.msra.mxu1 %v10684_v17  ;;  %v10765_v19 = vld [vmem:[%s14614_s1 + $0x17a0] ss:$16 sps:$4 sm:$0xff]   ;;  %v10768_v17 = vld [vmem:[%s14614_s1 + $0x17a8] ss:$16 sps:$4 sm:$0xff]  }
 0x2c0   :  { %7122 = vmatprep.subr.bf16.mxu0 %v10689_v18  ;;  %7970 = vmatprep.subr.bf16.mxu1 %v10692_v20  ;;  %v10773_v18 = vld [vmem:[%s14614_s1 + $0x17c4] ss:$16 sps:$4 sm:$0xff]   ;;  %v10776_v20 = vld [vmem:[%s14614_s1 + $0x17cc] ss:$16 sps:$4 sm:$0xff]  }
 0x2c2   :  { %7102 = vmatmul.mubr.bf16.vlgmr.msra.gmra.mrb[0].mxu0 %v8323_v21  ;;  %7950 = vmatmul.mubr.bf16.vlgmr.msra.gmra.mrb[0].mxu1 %v8323_v21  ;;  %v10771_v21 = vld [vmem:[%s14614_s1 + $0x17c0] ss:$16 sps:$4 sm:$0xff]  }
 0x2c3   :  { %7123 = vmatpush1.bf16.msra.mxu0 %v10687_v24  ;;  %7971 = vmatpush1.bf16.msra.mxu1 %v10690_v26  ;;  %v10782_v24 = vld [vmem:[%s14614_s1 + $0x17ec] ss:$16 sps:$4 sm:$0xff]   ;;  %v10777_v26 = vld [vmem:[%s14614_s1 + $0x17e0] ss:$16 sps:$4 sm:$0xff]  }
 0x2c4   :  { %7124 = vmatprep.subr.bf16.mxu0 %v10695_v25  ;;  %7972 = vmatprep.subr.bf16.mxu1 %v10698_v27  ;;  %v10780_v25 = vld [vmem:[%s14614_s1 + $0x17e8] ss:$16 sps:$4 sm:$0xff]   ;;  %v10785_v27 = vld [vmem:[%s14614_s1 + $0x1804] ss:$16 sps:$4 sm:$0xff]  }
 0x2c5   :  { %7111 = vmatprep.mubr.bf16.mxu0 %v8356_v28  ;;  %7959 = vmatprep.mubr.bf16.mxu1 %v8356_v28  ;;  %v10788_v28 = vld [vmem:[%s14614_s1 + $0x180c] ss:$16 sps:$4 sm:$0xff]  }
 0x2c7   :  { %7125 = vmatpush1.bf16.msra.mxu0 %v10693_v29  ;;  %7973 = vmatpush1.bf16.msra.mxu1 %v10696_v30  ;;  %v8325_v29 = vcombine.low %v13539_v36, %v13544_v33  ;;  %v54_v30 = vld [vmem:[%s14615_s0 + $0x158] sm:$0xff]  ;;  %v10791_v36 = vld [vmem:[%s14614_s1 + $0x1824] ss:$16 sps:$4 sm:$0xff]  }
 0x2c8   :  { %7126 = vmatprep.subr.bf16.mxu0 %v10701_v31  ;;  %7974 = vmatprep.subr.bf16.mxu1 %v10704_v32  ;;  %v70_v31 = vld [vmem:[%s14615_s0 + $0x1d8] sm:$0xff]  ;;  %v10783_v32 = vld [vmem:[%s14614_s1 + $0x1800] ss:$16 sps:$4 sm:$0xff]  }
 0x2c9   :  { %v10794_v33 = vld [vmem:[%s14614_s1 + $0x182c] ss:$16 sps:$4 sm:$0xff]  }
 0x2ca   :  { %7112 = vmatmul.mubr.bf16.gmra.mrb[4].mxu0 %v8355_v34  ;;  %7960 = vmatmul.mubr.bf16.gmra.mrb[4].mxu1 %v8355_v34  ;;  %v10786_v34 = vld [vmem:[%s14614_s1 + $0x1808] ss:$16 sps:$4 sm:$0xff]  }
 0x2cb   :  { %7127 = vmatpush1.bf16.msra.mxu0 %v10699_v35  ;;  %7975 = vmatpush1.bf16.msra.mxu1 %v10702_v37  ;;  %v8358_v35 = vcombine.high %v54_v30, %v70_v31  ;;  %v10789_v37 = vld [vmem:[%s14614_s1 + $0x1820] ss:$16 sps:$4 sm:$0xff]  }
 0x2cc   :  { %7128 = vmatprep.subr.bf16.mxu0 %v10707_v38  ;;  %7976 = vmatprep.subr.bf16.mxu1 %v10710_v39  ;;  %v10792_v38 = vld [vmem:[%s14614_s1 + $0x1828] ss:$16 sps:$4 sm:$0xff]   ;;  %v10797_v39 = vld [vmem:[%s14614_s1 + $0x1844] ss:$16 sps:$4 sm:$0xff]  }
 0x2cd   :  { %7154 = vmatprep.mubr.bf16.mxu0 %v8326_v40  ;;  %8002 = vmatprep.mubr.bf16.mxu1 %v8326_v40  ;;  %v10800_v40 = vld [vmem:[%s14614_s1 + $0x184c] ss:$16 sps:$4 sm:$0xff]  }
 0x2cf   :  { %7129 = vmatpush1.bf16.msra.mxu0 %v10705_v42  ;;  %7977 = vmatpush1.bf16.msra.mxu1 %v10708_v44  ;;  %v8357_v42 = vcombine.low %v54_v30, %v70_v31  ;;  %v13751_v44 = vld [vmem:[%s14615_s0 + $0x60] sm:$0xff]  ;;  %v10870_v30 = vld [vmem:[%s14614_s1 + $0x19c8] ss:$16 sps:$4 sm:$0xff]  }
 0x2d0   :  { %7130 = vmatprep.subr.bf16.mxu0 %v10713_v41  ;;  %7978 = vmatprep.subr.bf16.mxu1 %v10716_v43  ;;  %v13756_v41 = vld [vmem:[%s14615_s0 + $0xe0] sm:$0xff] }
 0x2d1   :  { %v10795_v43 = vld [vmem:[%s14614_s1 + $0x1840] ss:$16 sps:$4 sm:$0xff]   ;;  %v10875_v31 = vld [vmem:[%s14614_s1 + $0x19e4] ss:$16 sps:$4 sm:$0xff]  }
 0x2d3   :  { %7131 = vmatpush1.bf16.msra.mxu0 %v10711_v45  ;;  %7979 = vmatpush1.bf16.msra.mxu1 %v10714_v46  ;;  %v10798_v45 = vld [vmem:[%s14614_s1 + $0x1848] ss:$16 sps:$4 sm:$0xff]   ;;  %v10803_v46 = vld [vmem:[%s14614_s1 + $0x1864] ss:$16 sps:$4 sm:$0xff]  }
 0x2d4   :  { %7132 = vmatprep.subr.bf16.mxu0 %v10719_v47  ;;  %7980 = vmatprep.subr.bf16.mxu1 %v10722_v48  ;;  %v10806_v47 = vld [vmem:[%s14614_s1 + $0x186c] ss:$16 sps:$4 sm:$0xff]   ;;  %v8328_v48 = vcombine.high %v13751_v44, %v13756_v41 }
 0x2d7   :  { %7133 = vmatpush1.bf16.msra.mxu0 %v10717_v51  ;;  %7981 = vmatpush1.bf16.msra.mxu1 %v10720_v52  ;;  %v10801_v51 = vld [vmem:[%s14614_s1 + $0x1860] ss:$16 sps:$4 sm:$0xff]   ;;  %v10804_v52 = vld [vmem:[%s14614_s1 + $0x1868] ss:$16 sps:$4 sm:$0xff]  }
 0x2d8   :  { %7134 = vmatprep.subr.bf16.mxu0 %v10725_v49  ;;  %7982 = vmatprep.subr.bf16.mxu1 %v10728_v50  ;;  %v10809_v49 = vld [vmem:[%s14614_s1 + $0x1884] ss:$16 sps:$4 sm:$0xff]   ;;  %v10812_v50 = vld [vmem:[%s14614_s1 + $0x188c] ss:$16 sps:$4 sm:$0xff]  }
 0x2db   :  { %7135 = vmatpush1.bf16.msra.mxu0 %v10723_v53  ;;  %7983 = vmatpush1.bf16.msra.mxu1 %v10726_v54  ;;  %v10807_v53 = vld [vmem:[%s14614_s1 + $0x1880] ss:$16 sps:$4 sm:$0xff]   ;;  %v10810_v54 = vld [vmem:[%s14614_s1 + $0x1888] ss:$16 sps:$4 sm:$0xff]  }
 0x2dc   :  { %7136 = vmatprep.subr.bf16.mxu0 %v10731_v55  ;;  %7984 = vmatprep.subr.bf16.mxu1 %v10734_v56  ;;  %v10815_v55 = vld [vmem:[%s14614_s1 + $0x18a4] ss:$16 sps:$4 sm:$0xff]   ;;  %v10818_v56 = vld [vmem:[%s14614_s1 + $0x18ac] ss:$16 sps:$4 sm:$0xff]  }
 0x2df   :  { %7137 = vmatpush1.bf16.msra.mxu0 %v10729_v59  ;;  %7985 = vmatpush1.bf16.msra.mxu1 %v10732_v60  ;;  %v10813_v59 = vld [vmem:[%s14614_s1 + $0x18a0] ss:$16 sps:$4 sm:$0xff]   ;;  %v10816_v60 = vld [vmem:[%s14614_s1 + $0x18a8] ss:$16 sps:$4 sm:$0xff]  }
 0x2e0   :  { %7138 = vmatprep.subr.bf16.mxu0 %v10737_v57  ;;  %7986 = vmatprep.subr.bf16.mxu1 %v10740_v58  ;;  %v10821_v57 = vld [vmem:[%s14614_s1 + $0x18c4] ss:$16 sps:$4 sm:$0xff]   ;;  %v10824_v58 = vld [vmem:[%s14614_s1 + $0x18cc] ss:$16 sps:$4 sm:$0xff]  }
 0x2e3   :  { %7139 = vmatpush1.bf16.msra.mxu0 %v10735_v61  ;;  %7987 = vmatpush1.bf16.msra.mxu1 %v10738_v62  ;;  %v10819_v61 = vld [vmem:[%s14614_s1 + $0x18c0] ss:$16 sps:$4 sm:$0xff]   ;;  %v10822_v62 = vld [vmem:[%s14614_s1 + $0x18c8] ss:$16 sps:$4 sm:$0xff]  }
 0x2e4   :  { %7140 = vmatprep.subr.bf16.mxu0 %v10743_v63  ;;  %7988 = vmatprep.subr.bf16.mxu1 %v10746_v0  ;;  %v10827_v63 = vld [vmem:[%s14614_s1 + $0x18e4] ss:$16 sps:$4 sm:$0xff]   ;;  %v10830_v0 = vld [vmem:[%s14614_s1 + $0x18ec] ss:$16 sps:$4 sm:$0xff]  }
 0x2e7   :  { %7141 = vmatpush1.bf16.msra.mxu0 %v10741_v3  ;;  %7989 = vmatpush1.bf16.msra.mxu1 %v10744_v4  ;;  %v10825_v3 = vld [vmem:[%s14614_s1 + $0x18e0] ss:$16 sps:$4 sm:$0xff]   ;;  %v10828_v4 = vld [vmem:[%s14614_s1 + $0x18e8] ss:$16 sps:$4 sm:$0xff]  }
 0x2e8   :  { %7142 = vmatprep.subr.bf16.mxu0 %v10749_v1  ;;  %7990 = vmatprep.subr.bf16.mxu1 %v10752_v2  ;;  %v10833_v1 = vld [vmem:[%s14614_s1 + $0x1904] ss:$16 sps:$4 sm:$0xff]   ;;  %v10836_v2 = vld [vmem:[%s14614_s1 + $0x190c] ss:$16 sps:$4 sm:$0xff]  }
 0x2eb   :  { %7143 = vmatpush1.bf16.msra.mxu0 %v10747_v5  ;;  %7991 = vmatpush1.bf16.msra.mxu1 %v10750_v6  ;;  %v10831_v5 = vld [vmem:[%s14614_s1 + $0x1900] ss:$16 sps:$4 sm:$0xff]   ;;  %v10834_v6 = vld [vmem:[%s14614_s1 + $0x1908] ss:$16 sps:$4 sm:$0xff]  }
 0x2ec   :  { %7144 = vmatprep.subr.bf16.mxu0 %v10755_v7  ;;  %7992 = vmatprep.subr.bf16.mxu1 %v10758_v8  ;;  %v10839_v7 = vld [vmem:[%s14614_s1 + $0x1924] ss:$16 sps:$4 sm:$0xff]   ;;  %v10842_v8 = vld [vmem:[%s14614_s1 + $0x192c] ss:$16 sps:$4 sm:$0xff]  }
 0x2ef   :  { %7145 = vmatpush1.bf16.msra.mxu0 %v10753_v11  ;;  %7993 = vmatpush1.bf16.msra.mxu1 %v10756_v12  ;;  %v10837_v11 = vld [vmem:[%s14614_s1 + $0x1920] ss:$16 sps:$4 sm:$0xff]   ;;  %v10840_v12 = vld [vmem:[%s14614_s1 + $0x1928] ss:$16 sps:$4 sm:$0xff]  }
 0x2f0   :  { %7146 = vmatprep.subr.bf16.mxu0 %v10761_v9  ;;  %7994 = vmatprep.subr.bf16.mxu1 %v10764_v10  ;;  %v10845_v9 = vld [vmem:[%s14614_s1 + $0x1944] ss:$16 sps:$4 sm:$0xff]   ;;  %v10848_v10 = vld [vmem:[%s14614_s1 + $0x194c] ss:$16 sps:$4 sm:$0xff]  }
 0x2f3   :  { %7147 = vmatpush1.bf16.msra.mxu0 %v10759_v13  ;;  %7995 = vmatpush1.bf16.msra.mxu1 %v10762_v14  ;;  %v10843_v13 = vld [vmem:[%s14614_s1 + $0x1940] ss:$16 sps:$4 sm:$0xff]   ;;  %v10846_v14 = vld [vmem:[%s14614_s1 + $0x1948] ss:$16 sps:$4 sm:$0xff]  }
 0x2f4   :  { %7148 = vmatprep.subr.bf16.mxu0 %v10767_v15  ;;  %7996 = vmatprep.subr.bf16.mxu1 %v10770_v16  ;;  %v10851_v15 = vld [vmem:[%s14614_s1 + $0x1964] ss:$16 sps:$4 sm:$0xff]   ;;  %v10854_v16 = vld [vmem:[%s14614_s1 + $0x196c] ss:$16 sps:$4 sm:$0xff]  }
 0x2f7   :  { %7149 = vmatpush1.bf16.msra.mxu0 %v10765_v19  ;;  %7997 = vmatpush1.bf16.msra.mxu1 %v10768_v17  ;;  %v10849_v19 = vld [vmem:[%s14614_s1 + $0x1960] ss:$16 sps:$4 sm:$0xff]   ;;  %v10852_v17 = vld [vmem:[%s14614_s1 + $0x1968] ss:$16 sps:$4 sm:$0xff]  }
 0x2f8   :  { %7150 = vmatprep.subr.bf16.mxu0 %v10773_v18  ;;  %7998 = vmatprep.subr.bf16.mxu1 %v10776_v20  ;;  %v10857_v18 = vld [vmem:[%s14614_s1 + $0x1984] ss:$16 sps:$4 sm:$0xff]   ;;  %v10860_v20 = vld [vmem:[%s14614_s1 + $0x198c] ss:$16 sps:$4 sm:$0xff]  }
 0x2fb   :  { %7151 = vmatpush1.bf16.msra.mxu0 %v10771_v21  ;;  %7999 = vmatpush1.bf16.msra.mxu1 %v10774_v22  ;;  %v10855_v21 = vld [vmem:[%s14614_s1 + $0x1980] ss:$16 sps:$4 sm:$0xff]   ;;  %v10858_v22 = vld [vmem:[%s14614_s1 + $0x1988] ss:$16 sps:$4 sm:$0xff]  }
 0x2fc   :  { %7152 = vmatprep.subr.bf16.mxu0 %v10779_v23  ;;  %8000 = vmatprep.subr.bf16.mxu1 %v10782_v24  ;;  %v10863_v23 = vld [vmem:[%s14614_s1 + $0x19a4] ss:$16 sps:$4 sm:$0xff]   ;;  %v10866_v24 = vld [vmem:[%s14614_s1 + $0x19ac] ss:$16 sps:$4 sm:$0xff]  }
 0x2ff   :  { %7153 = vmatpush1.bf16.msra.mxu0 %v10777_v26  ;;  %8001 = vmatpush1.bf16.msra.mxu1 %v10780_v25  ;;  %v10861_v26 = vld [vmem:[%s14614_s1 + $0x19a0] ss:$16 sps:$4 sm:$0xff]   ;;  %v10864_v25 = vld [vmem:[%s14614_s1 + $0x19a8] ss:$16 sps:$4 sm:$0xff]  }
 0x300   :  { %7175 = vmatprep.subr.bf16.mxu0 %v10785_v27  ;;  %8023 = vmatprep.subr.bf16.mxu1 %v10788_v28  ;;  %v10869_v27 = vld [vmem:[%s14614_s1 + $0x19c4] ss:$16 sps:$4 sm:$0xff]   ;;  %v10872_v28 = vld [vmem:[%s14614_s1 + $0x19cc] ss:$16 sps:$4 sm:$0xff]  }
 0x302   :  { %7155 = vmatmul.mubr.bf16.vlgmr.msra.gmra.mrb[0].mxu0 %v8325_v29  ;;  %8003 = vmatmul.mubr.bf16.vlgmr.msra.gmra.mrb[0].mxu1 %v8325_v29  ;;  %v10867_v29 = vld [vmem:[%s14614_s1 + $0x19c0] ss:$16 sps:$4 sm:$0xff]  }
 0x303   :  { %7176 = vmatpush1.bf16.msra.mxu0 %v10783_v32  ;;  %8024 = vmatpush1.bf16.msra.mxu1 %v10786_v34  ;;  %v10878_v32 = vld [vmem:[%s14614_s1 + $0x19ec] ss:$16 sps:$4 sm:$0xff]   ;;  %v10873_v34 = vld [vmem:[%s14614_s1 + $0x19e0] ss:$16 sps:$4 sm:$0xff]  }
 0x304   :  { %7177 = vmatprep.subr.bf16.mxu0 %v10791_v36  ;;  %8025 = vmatprep.subr.bf16.mxu1 %v10794_v33  ;;  %v10876_v36 = vld [vmem:[%s14614_s1 + $0x19e8] ss:$16 sps:$4 sm:$0xff]   ;;  %v10881_v33 = vld [vmem:[%s14614_s1 + $0x1a04] ss:$16 sps:$4 sm:$0xff]  }
 0x305   :  { %7164 = vmatprep.mubr.bf16.mxu0 %v8358_v35  ;;  %8012 = vmatprep.mubr.bf16.mxu1 %v8358_v35  ;;  %v10884_v35 = vld [vmem:[%s14614_s1 + $0x1a0c] ss:$16 sps:$4 sm:$0xff]  }
 0x307   :  { %7178 = vmatpush1.bf16.msra.mxu0 %v10789_v37  ;;  %8026 = vmatpush1.bf16.msra.mxu1 %v10792_v38  ;;  %v8327_v37 = vcombine.low %v13751_v44, %v13756_v41  ;;  %v55_v38 = vld [vmem:[%s14615_s0 + $0x160] sm:$0xff]  ;;  %v10890_v41 = vld [vmem:[%s14614_s1 + $0x1a2c] ss:$16 sps:$4 sm:$0xff]  }
 0x308   :  { %7179 = vmatprep.subr.bf16.mxu0 %v10797_v39  ;;  %8027 = vmatprep.subr.bf16.mxu1 %v10800_v40  ;;  %v71_v39 = vld [vmem:[%s14615_s0 + $0x1e0] sm:$0xff] }
 0x309   :  { %v10879_v40 = vld [vmem:[%s14614_s1 + $0x1a00] ss:$16 sps:$4 sm:$0xff]   ;;  %v10887_v44 = vld [vmem:[%s14614_s1 + $0x1a24] ss:$16 sps:$4 sm:$0xff]  }
 0x30a   :  { %7165 = vmatmul.mubr.bf16.gmra.mrb[4].mxu0 %v8357_v42  ;;  %8013 = vmatmul.mubr.bf16.gmra.mrb[4].mxu1 %v8357_v42  ;;  %v10882_v42 = vld [vmem:[%s14614_s1 + $0x1a08] ss:$16 sps:$4 sm:$0xff]  }
 0x30b   :  { %7180 = vmatpush1.bf16.msra.mxu0 %v10795_v43  ;;  %8028 = vmatpush1.bf16.msra.mxu1 %v10798_v45  ;;  %v8360_v43 = vcombine.high %v55_v38, %v71_v39  ;;  %v10885_v45 = vld [vmem:[%s14614_s1 + $0x1a20] ss:$16 sps:$4 sm:$0xff]  }
 0x30c   :  { %7181 = vmatprep.subr.bf16.mxu0 %v10803_v46  ;;  %8029 = vmatprep.subr.bf16.mxu1 %v10806_v47  ;;  %v10888_v46 = vld [vmem:[%s14614_s1 + $0x1a28] ss:$16 sps:$4 sm:$0xff]   ;;  %v10893_v47 = vld [vmem:[%s14614_s1 + $0x1a44] ss:$16 sps:$4 sm:$0xff]  }
 0x30d   :  { %7207 = vmatprep.mubr.bf16.mxu0 %v8328_v48  ;;  %8055 = vmatprep.mubr.bf16.mxu1 %v8328_v48  ;;  %v10896_v48 = vld [vmem:[%s14614_s1 + $0x1a4c] ss:$16 sps:$4 sm:$0xff]  }
 0x30f   :  { %7182 = vmatpush1.bf16.msra.mxu0 %v10801_v51  ;;  %8030 = vmatpush1.bf16.msra.mxu1 %v10804_v52  ;;  %v8359_v51 = vcombine.low %v55_v38, %v71_v39  ;;  %v13963_v52 = vld [vmem:[%s14615_s0 + $0x68] sm:$0xff]  ;;  %v10971_v39 = vld [vmem:[%s14614_s1 + $0x1be4] ss:$16 sps:$4 sm:$0xff]  }
 0x310   :  { %7183 = vmatprep.subr.bf16.mxu0 %v10809_v49  ;;  %8031 = vmatprep.subr.bf16.mxu1 %v10812_v50  ;;  %v13968_v49 = vld [vmem:[%s14615_s0 + $0xe8] sm:$0xff]  ;;  %v10891_v50 = vld [vmem:[%s14614_s1 + $0x1a40] ss:$16 sps:$4 sm:$0xff]  }
 0x311   :  { %v10966_v38 = vld [vmem:[%s14614_s1 + $0x1bc8] ss:$16 sps:$4 sm:$0xff]  }
 0x313   :  { %7184 = vmatpush1.bf16.msra.mxu0 %v10807_v53  ;;  %8032 = vmatpush1.bf16.msra.mxu1 %v10810_v54  ;;  %v10894_v53 = vld [vmem:[%s14614_s1 + $0x1a48] ss:$16 sps:$4 sm:$0xff]   ;;  %v10899_v54 = vld [vmem:[%s14614_s1 + $0x1a64] ss:$16 sps:$4 sm:$0xff]  }
 0x314   :  { %7185 = vmatprep.subr.bf16.mxu0 %v10815_v55  ;;  %8033 = vmatprep.subr.bf16.mxu1 %v10818_v56  ;;  %v10902_v55 = vld [vmem:[%s14614_s1 + $0x1a6c] ss:$16 sps:$4 sm:$0xff]   ;;  %v8330_v56 = vcombine.high %v13963_v52, %v13968_v49 }
 0x317   :  { %7186 = vmatpush1.bf16.msra.mxu0 %v10813_v59  ;;  %8034 = vmatpush1.bf16.msra.mxu1 %v10816_v60  ;;  %v10897_v59 = vld [vmem:[%s14614_s1 + $0x1a60] ss:$16 sps:$4 sm:$0xff]   ;;  %v10900_v60 = vld [vmem:[%s14614_s1 + $0x1a68] ss:$16 sps:$4 sm:$0xff]  }
 0x318   :  { %7187 = vmatprep.subr.bf16.mxu0 %v10821_v57  ;;  %8035 = vmatprep.subr.bf16.mxu1 %v10824_v58  ;;  %v10905_v57 = vld [vmem:[%s14614_s1 + $0x1a84] ss:$16 sps:$4 sm:$0xff]   ;;  %v10908_v58 = vld [vmem:[%s14614_s1 + $0x1a8c] ss:$16 sps:$4 sm:$0xff]  }
 0x31b   :  { %7188 = vmatpush1.bf16.msra.mxu0 %v10819_v61  ;;  %8036 = vmatpush1.bf16.msra.mxu1 %v10822_v62  ;;  %v10903_v61 = vld [vmem:[%s14614_s1 + $0x1a80] ss:$16 sps:$4 sm:$0xff]   ;;  %v10906_v62 = vld [vmem:[%s14614_s1 + $0x1a88] ss:$16 sps:$4 sm:$0xff]  }
 0x31c   :  { %7189 = vmatprep.subr.bf16.mxu0 %v10827_v63  ;;  %8037 = vmatprep.subr.bf16.mxu1 %v10830_v0  ;;  %v10911_v63 = vld [vmem:[%s14614_s1 + $0x1aa4] ss:$16 sps:$4 sm:$0xff]   ;;  %v10914_v0 = vld [vmem:[%s14614_s1 + $0x1aac] ss:$16 sps:$4 sm:$0xff]  }
 0x31f   :  { %7190 = vmatpush1.bf16.msra.mxu0 %v10825_v3  ;;  %8038 = vmatpush1.bf16.msra.mxu1 %v10828_v4  ;;  %v10909_v3 = vld [vmem:[%s14614_s1 + $0x1aa0] ss:$16 sps:$4 sm:$0xff]   ;;  %v10912_v4 = vld [vmem:[%s14614_s1 + $0x1aa8] ss:$16 sps:$4 sm:$0xff]  }
 0x320   :  { %7191 = vmatprep.subr.bf16.mxu0 %v10833_v1  ;;  %8039 = vmatprep.subr.bf16.mxu1 %v10836_v2  ;;  %v10917_v1 = vld [vmem:[%s14614_s1 + $0x1ac4] ss:$16 sps:$4 sm:$0xff]   ;;  %v10920_v2 = vld [vmem:[%s14614_s1 + $0x1acc] ss:$16 sps:$4 sm:$0xff]  }
 0x323   :  { %7192 = vmatpush1.bf16.msra.mxu0 %v10831_v5  ;;  %8040 = vmatpush1.bf16.msra.mxu1 %v10834_v6  ;;  %v10915_v5 = vld [vmem:[%s14614_s1 + $0x1ac0] ss:$16 sps:$4 sm:$0xff]   ;;  %v10918_v6 = vld [vmem:[%s14614_s1 + $0x1ac8] ss:$16 sps:$4 sm:$0xff]  }
 0x324   :  { %7193 = vmatprep.subr.bf16.mxu0 %v10839_v7  ;;  %8041 = vmatprep.subr.bf16.mxu1 %v10842_v8  ;;  %v10923_v7 = vld [vmem:[%s14614_s1 + $0x1ae4] ss:$16 sps:$4 sm:$0xff]   ;;  %v10926_v8 = vld [vmem:[%s14614_s1 + $0x1aec] ss:$16 sps:$4 sm:$0xff]  }
 0x327   :  { %7194 = vmatpush1.bf16.msra.mxu0 %v10837_v11  ;;  %8042 = vmatpush1.bf16.msra.mxu1 %v10840_v12  ;;  %v10921_v11 = vld [vmem:[%s14614_s1 + $0x1ae0] ss:$16 sps:$4 sm:$0xff]   ;;  %v10924_v12 = vld [vmem:[%s14614_s1 + $0x1ae8] ss:$16 sps:$4 sm:$0xff]  }
 0x328   :  { %7195 = vmatprep.subr.bf16.mxu0 %v10845_v9  ;;  %8043 = vmatprep.subr.bf16.mxu1 %v10848_v10  ;;  %v10929_v9 = vld [vmem:[%s14614_s1 + $0x1b04] ss:$16 sps:$4 sm:$0xff]   ;;  %v10932_v10 = vld [vmem:[%s14614_s1 + $0x1b0c] ss:$16 sps:$4 sm:$0xff]  }
 0x32b   :  { %7196 = vmatpush1.bf16.msra.mxu0 %v10843_v13  ;;  %8044 = vmatpush1.bf16.msra.mxu1 %v10846_v14  ;;  %v10927_v13 = vld [vmem:[%s14614_s1 + $0x1b00] ss:$16 sps:$4 sm:$0xff]   ;;  %v10930_v14 = vld [vmem:[%s14614_s1 + $0x1b08] ss:$16 sps:$4 sm:$0xff]  }
 0x32c   :  { %7197 = vmatprep.subr.bf16.mxu0 %v10851_v15  ;;  %8045 = vmatprep.subr.bf16.mxu1 %v10854_v16  ;;  %v10935_v15 = vld [vmem:[%s14614_s1 + $0x1b24] ss:$16 sps:$4 sm:$0xff]   ;;  %v10938_v16 = vld [vmem:[%s14614_s1 + $0x1b2c] ss:$16 sps:$4 sm:$0xff]  }
 0x32f   :  { %7198 = vmatpush1.bf16.msra.mxu0 %v10849_v19  ;;  %8046 = vmatpush1.bf16.msra.mxu1 %v10852_v17  ;;  %v10933_v19 = vld [vmem:[%s14614_s1 + $0x1b20] ss:$16 sps:$4 sm:$0xff]   ;;  %v10936_v17 = vld [vmem:[%s14614_s1 + $0x1b28] ss:$16 sps:$4 sm:$0xff]  }
 0x330   :  { %7199 = vmatprep.subr.bf16.mxu0 %v10857_v18  ;;  %8047 = vmatprep.subr.bf16.mxu1 %v10860_v20  ;;  %v10941_v18 = vld [vmem:[%s14614_s1 + $0x1b44] ss:$16 sps:$4 sm:$0xff]   ;;  %v10944_v20 = vld [vmem:[%s14614_s1 + $0x1b4c] ss:$16 sps:$4 sm:$0xff]  }
 0x333   :  { %7200 = vmatpush1.bf16.msra.mxu0 %v10855_v21  ;;  %8048 = vmatpush1.bf16.msra.mxu1 %v10858_v22  ;;  %v10939_v21 = vld [vmem:[%s14614_s1 + $0x1b40] ss:$16 sps:$4 sm:$0xff]   ;;  %v10942_v22 = vld [vmem:[%s14614_s1 + $0x1b48] ss:$16 sps:$4 sm:$0xff]  }
 0x334   :  { %7201 = vmatprep.subr.bf16.mxu0 %v10863_v23  ;;  %8049 = vmatprep.subr.bf16.mxu1 %v10866_v24  ;;  %v10947_v23 = vld [vmem:[%s14614_s1 + $0x1b64] ss:$16 sps:$4 sm:$0xff]   ;;  %v10950_v24 = vld [vmem:[%s14614_s1 + $0x1b6c] ss:$16 sps:$4 sm:$0xff]  }
 0x337   :  { %7202 = vmatpush1.bf16.msra.mxu0 %v10861_v26  ;;  %8050 = vmatpush1.bf16.msra.mxu1 %v10864_v25  ;;  %v10945_v26 = vld [vmem:[%s14614_s1 + $0x1b60] ss:$16 sps:$4 sm:$0xff]   ;;  %v10948_v25 = vld [vmem:[%s14614_s1 + $0x1b68] ss:$16 sps:$4 sm:$0xff]  }
 0x338   :  { %7203 = vmatprep.subr.bf16.mxu0 %v10869_v27  ;;  %8051 = vmatprep.subr.bf16.mxu1 %v10872_v28  ;;  %v10953_v27 = vld [vmem:[%s14614_s1 + $0x1b84] ss:$16 sps:$4 sm:$0xff]   ;;  %v10956_v28 = vld [vmem:[%s14614_s1 + $0x1b8c] ss:$16 sps:$4 sm:$0xff]  }
 0x33b   :  { %7204 = vmatpush1.bf16.msra.mxu0 %v10867_v29  ;;  %8052 = vmatpush1.bf16.msra.mxu1 %v10870_v30  ;;  %v10951_v29 = vld [vmem:[%s14614_s1 + $0x1b80] ss:$16 sps:$4 sm:$0xff]   ;;  %v10954_v30 = vld [vmem:[%s14614_s1 + $0x1b88] ss:$16 sps:$4 sm:$0xff]  }
 0x33c   :  { %7205 = vmatprep.subr.bf16.mxu0 %v10875_v31  ;;  %8053 = vmatprep.subr.bf16.mxu1 %v10878_v32  ;;  %v10959_v31 = vld [vmem:[%s14614_s1 + $0x1ba4] ss:$16 sps:$4 sm:$0xff]   ;;  %v10962_v32 = vld [vmem:[%s14614_s1 + $0x1bac] ss:$16 sps:$4 sm:$0xff]  }
 0x33f   :  { %7206 = vmatpush1.bf16.msra.mxu0 %v10873_v34  ;;  %8054 = vmatpush1.bf16.msra.mxu1 %v10876_v36  ;;  %v10957_v34 = vld [vmem:[%s14614_s1 + $0x1ba0] ss:$16 sps:$4 sm:$0xff]   ;;  %v10960_v36 = vld [vmem:[%s14614_s1 + $0x1ba8] ss:$16 sps:$4 sm:$0xff]  }
 0x340   :  { %7228 = vmatprep.subr.bf16.mxu0 %v10881_v33  ;;  %8076 = vmatprep.subr.bf16.mxu1 %v10884_v35  ;;  %v10965_v33 = vld [vmem:[%s14614_s1 + $0x1bc4] ss:$16 sps:$4 sm:$0xff]   ;;  %v10968_v35 = vld [vmem:[%s14614_s1 + $0x1bcc] ss:$16 sps:$4 sm:$0xff]  }
 0x342   :  { %7208 = vmatmul.mubr.bf16.vlgmr.msra.gmra.mrb[0].mxu0 %v8327_v37  ;;  %8056 = vmatmul.mubr.bf16.vlgmr.msra.gmra.mrb[0].mxu1 %v8327_v37  ;;  %v10963_v37 = vld [vmem:[%s14614_s1 + $0x1bc0] ss:$16 sps:$4 sm:$0xff]  }
 0x343   :  { %7229 = vmatpush1.bf16.msra.mxu0 %v10879_v40  ;;  %8077 = vmatpush1.bf16.msra.mxu1 %v10882_v42  ;;  %v10974_v40 = vld [vmem:[%s14614_s1 + $0x1bec] ss:$16 sps:$4 sm:$0xff]   ;;  %v10969_v42 = vld [vmem:[%s14614_s1 + $0x1be0] ss:$16 sps:$4 sm:$0xff]  }
 0x344   :  { %7230 = vmatprep.subr.bf16.mxu0 %v10887_v44  ;;  %8078 = vmatprep.subr.bf16.mxu1 %v10890_v41  ;;  %v10972_v44 = vld [vmem:[%s14614_s1 + $0x1be8] ss:$16 sps:$4 sm:$0xff]   ;;  %v10977_v41 = vld [vmem:[%s14614_s1 + $0x1c04] ss:$16 sps:$4 sm:$0xff]  }
 0x345   :  { %7217 = vmatprep.mubr.bf16.mxu0 %v8360_v43  ;;  %8065 = vmatprep.mubr.bf16.mxu1 %v8360_v43  ;;  %v10980_v43 = vld [vmem:[%s14614_s1 + $0x1c0c] ss:$16 sps:$4 sm:$0xff]  }
 0x347   :  { %7231 = vmatpush1.bf16.msra.mxu0 %v10885_v45  ;;  %8079 = vmatpush1.bf16.msra.mxu1 %v10888_v46  ;;  %v8329_v45 = vcombine.low %v13963_v52, %v13968_v49  ;;  %v56_v46 = vld [vmem:[%s14615_s0 + $0x168] sm:$0xff]  ;;  %v10983_v52 = vld [vmem:[%s14614_s1 + $0x1c24] ss:$16 sps:$4 sm:$0xff]  }
 0x348   :  { %7232 = vmatprep.subr.bf16.mxu0 %v10893_v47  ;;  %8080 = vmatprep.subr.bf16.mxu1 %v10896_v48  ;;  %v72_v47 = vld [vmem:[%s14615_s0 + $0x1e8] sm:$0xff]  ;;  %v10975_v48 = vld [vmem:[%s14614_s1 + $0x1c00] ss:$16 sps:$4 sm:$0xff]  }
 0x349   :  { %v10986_v49 = vld [vmem:[%s14614_s1 + $0x1c2c] ss:$16 sps:$4 sm:$0xff]  }
 0x34a   :  { %7218 = vmatmul.mubr.bf16.gmra.mrb[4].mxu0 %v8359_v51  ;;  %8066 = vmatmul.mubr.bf16.gmra.mrb[4].mxu1 %v8359_v51  ;;  %v10978_v51 = vld [vmem:[%s14614_s1 + $0x1c08] ss:$16 sps:$4 sm:$0xff]  }
 0x34b   :  { %7233 = vmatpush1.bf16.msra.mxu0 %v10891_v50  ;;  %8081 = vmatpush1.bf16.msra.mxu1 %v10894_v53  ;;  %v8362_v50 = vcombine.high %v56_v46, %v72_v47  ;;  %v10981_v53 = vld [vmem:[%s14614_s1 + $0x1c20] ss:$16 sps:$4 sm:$0xff]  }
 0x34c   :  { %7234 = vmatprep.subr.bf16.mxu0 %v10899_v54  ;;  %8082 = vmatprep.subr.bf16.mxu1 %v10902_v55  ;;  %v10984_v54 = vld [vmem:[%s14614_s1 + $0x1c28] ss:$16 sps:$4 sm:$0xff]   ;;  %v10989_v55 = vld [vmem:[%s14614_s1 + $0x1c44] ss:$16 sps:$4 sm:$0xff]  }
 0x34d   :  { %7260 = vmatprep.mubr.bf16.mxu0 %v8330_v56  ;;  %8108 = vmatprep.mubr.bf16.mxu1 %v8330_v56  ;;  %v10992_v56 = vld [vmem:[%s14614_s1 + $0x1c4c] ss:$16 sps:$4 sm:$0xff]  }
 0x34f   :  { %7235 = vmatpush1.bf16.msra.mxu0 %v10897_v59  ;;  %8083 = vmatpush1.bf16.msra.mxu1 %v10900_v60  ;;  %v8361_v59 = vcombine.low %v56_v46, %v72_v47  ;;  %v14175_v60 = vld [vmem:[%s14615_s0 + $0x70] sm:$0xff]  ;;  %v11062_v46 = vld [vmem:[%s14614_s1 + $0x1dc8] ss:$16 sps:$4 sm:$0xff]  }
 0x350   :  { %7236 = vmatprep.subr.bf16.mxu0 %v10905_v57  ;;  %8084 = vmatprep.subr.bf16.mxu1 %v10908_v58  ;;  %v14180_v57 = vld [vmem:[%s14615_s0 + $0xf0] sm:$0xff] }
 0x351   :  { %v10987_v58 = vld [vmem:[%s14614_s1 + $0x1c40] ss:$16 sps:$4 sm:$0xff]   ;;  %v11067_v47 = vld [vmem:[%s14614_s1 + $0x1de4] ss:$16 sps:$4 sm:$0xff]  }
 0x353   :  { %7237 = vmatpush1.bf16.msra.mxu0 %v10903_v61  ;;  %8085 = vmatpush1.bf16.msra.mxu1 %v10906_v62  ;;  %v10990_v61 = vld [vmem:[%s14614_s1 + $0x1c48] ss:$16 sps:$4 sm:$0xff]   ;;  %v10995_v62 = vld [vmem:[%s14614_s1 + $0x1c64] ss:$16 sps:$4 sm:$0xff]  }
 0x354   :  { %7238 = vmatprep.subr.bf16.mxu0 %v10911_v63  ;;  %8086 = vmatprep.subr.bf16.mxu1 %v10914_v0  ;;  %v10998_v63 = vld [vmem:[%s14614_s1 + $0x1c6c] ss:$16 sps:$4 sm:$0xff]   ;;  %v8332_v0 = vcombine.high %v14175_v60, %v14180_v57 }
 0x357   :  { %7239 = vmatpush1.bf16.msra.mxu0 %v10909_v3  ;;  %8087 = vmatpush1.bf16.msra.mxu1 %v10912_v4  ;;  %v10993_v3 = vld [vmem:[%s14614_s1 + $0x1c60] ss:$16 sps:$4 sm:$0xff]   ;;  %v10996_v4 = vld [vmem:[%s14614_s1 + $0x1c68] ss:$16 sps:$4 sm:$0xff]  }
 0x358   :  { %7240 = vmatprep.subr.bf16.mxu0 %v10917_v1  ;;  %8088 = vmatprep.subr.bf16.mxu1 %v10920_v2  ;;  %v11001_v1 = vld [vmem:[%s14614_s1 + $0x1c84] ss:$16 sps:$4 sm:$0xff]   ;;  %v11004_v2 = vld [vmem:[%s14614_s1 + $0x1c8c] ss:$16 sps:$4 sm:$0xff]  }
 0x35b   :  { %7241 = vmatpush1.bf16.msra.mxu0 %v10915_v5  ;;  %8089 = vmatpush1.bf16.msra.mxu1 %v10918_v6  ;;  %v10999_v5 = vld [vmem:[%s14614_s1 + $0x1c80] ss:$16 sps:$4 sm:$0xff]   ;;  %v11002_v6 = vld [vmem:[%s14614_s1 + $0x1c88] ss:$16 sps:$4 sm:$0xff]  }
 0x35c   :  { %7242 = vmatprep.subr.bf16.mxu0 %v10923_v7  ;;  %8090 = vmatprep.subr.bf16.mxu1 %v10926_v8  ;;  %v11007_v7 = vld [vmem:[%s14614_s1 + $0x1ca4] ss:$16 sps:$4 sm:$0xff]   ;;  %v11010_v8 = vld [vmem:[%s14614_s1 + $0x1cac] ss:$16 sps:$4 sm:$0xff]  }
 0x35f   :  { %7243 = vmatpush1.bf16.msra.mxu0 %v10921_v11  ;;  %8091 = vmatpush1.bf16.msra.mxu1 %v10924_v12  ;;  %v11005_v11 = vld [vmem:[%s14614_s1 + $0x1ca0] ss:$16 sps:$4 sm:$0xff]   ;;  %v11008_v12 = vld [vmem:[%s14614_s1 + $0x1ca8] ss:$16 sps:$4 sm:$0xff]  }
 0x360   :  { %7244 = vmatprep.subr.bf16.mxu0 %v10929_v9  ;;  %8092 = vmatprep.subr.bf16.mxu1 %v10932_v10  ;;  %v11013_v9 = vld [vmem:[%s14614_s1 + $0x1cc4] ss:$16 sps:$4 sm:$0xff]   ;;  %v11016_v10 = vld [vmem:[%s14614_s1 + $0x1ccc] ss:$16 sps:$4 sm:$0xff]  }
 0x363   :  { %7245 = vmatpush1.bf16.msra.mxu0 %v10927_v13  ;;  %8093 = vmatpush1.bf16.msra.mxu1 %v10930_v14  ;;  %v11011_v13 = vld [vmem:[%s14614_s1 + $0x1cc0] ss:$16 sps:$4 sm:$0xff]   ;;  %v11014_v14 = vld [vmem:[%s14614_s1 + $0x1cc8] ss:$16 sps:$4 sm:$0xff]  }
 0x364   :  { %7246 = vmatprep.subr.bf16.mxu0 %v10935_v15  ;;  %8094 = vmatprep.subr.bf16.mxu1 %v10938_v16  ;;  %v11019_v15 = vld [vmem:[%s14614_s1 + $0x1ce4] ss:$16 sps:$4 sm:$0xff]   ;;  %v11022_v16 = vld [vmem:[%s14614_s1 + $0x1cec] ss:$16 sps:$4 sm:$0xff]  }
 0x367   :  { %7247 = vmatpush1.bf16.msra.mxu0 %v10933_v19  ;;  %8095 = vmatpush1.bf16.msra.mxu1 %v10936_v17  ;;  %v11017_v19 = vld [vmem:[%s14614_s1 + $0x1ce0] ss:$16 sps:$4 sm:$0xff]   ;;  %v11020_v17 = vld [vmem:[%s14614_s1 + $0x1ce8] ss:$16 sps:$4 sm:$0xff]  }
 0x368   :  { %7248 = vmatprep.subr.bf16.mxu0 %v10941_v18  ;;  %8096 = vmatprep.subr.bf16.mxu1 %v10944_v20  ;;  %v11025_v18 = vld [vmem:[%s14614_s1 + $0x1d04] ss:$16 sps:$4 sm:$0xff]   ;;  %v11028_v20 = vld [vmem:[%s14614_s1 + $0x1d0c] ss:$16 sps:$4 sm:$0xff]  }
 0x36b   :  { %7249 = vmatpush1.bf16.msra.mxu0 %v10939_v21  ;;  %8097 = vmatpush1.bf16.msra.mxu1 %v10942_v22  ;;  %v11023_v21 = vld [vmem:[%s14614_s1 + $0x1d00] ss:$16 sps:$4 sm:$0xff]   ;;  %v11026_v22 = vld [vmem:[%s14614_s1 + $0x1d08] ss:$16 sps:$4 sm:$0xff]  }
 0x36c   :  { %7250 = vmatprep.subr.bf16.mxu0 %v10947_v23  ;;  %8098 = vmatprep.subr.bf16.mxu1 %v10950_v24  ;;  %v11031_v23 = vld [vmem:[%s14614_s1 + $0x1d24] ss:$16 sps:$4 sm:$0xff]   ;;  %v11034_v24 = vld [vmem:[%s14614_s1 + $0x1d2c] ss:$16 sps:$4 sm:$0xff]  }
 0x36f   :  { %7251 = vmatpush1.bf16.msra.mxu0 %v10945_v26  ;;  %8099 = vmatpush1.bf16.msra.mxu1 %v10948_v25  ;;  %v11029_v26 = vld [vmem:[%s14614_s1 + $0x1d20] ss:$16 sps:$4 sm:$0xff]   ;;  %v11032_v25 = vld [vmem:[%s14614_s1 + $0x1d28] ss:$16 sps:$4 sm:$0xff]  }
 0x370   :  { %7252 = vmatprep.subr.bf16.mxu0 %v10953_v27  ;;  %8100 = vmatprep.subr.bf16.mxu1 %v10956_v28  ;;  %v11037_v27 = vld [vmem:[%s14614_s1 + $0x1d44] ss:$16 sps:$4 sm:$0xff]   ;;  %v11040_v28 = vld [vmem:[%s14614_s1 + $0x1d4c] ss:$16 sps:$4 sm:$0xff]  }
 0x373   :  { %7253 = vmatpush1.bf16.msra.mxu0 %v10951_v29  ;;  %8101 = vmatpush1.bf16.msra.mxu1 %v10954_v30  ;;  %v11035_v29 = vld [vmem:[%s14614_s1 + $0x1d40] ss:$16 sps:$4 sm:$0xff]   ;;  %v11038_v30 = vld [vmem:[%s14614_s1 + $0x1d48] ss:$16 sps:$4 sm:$0xff]  }
 0x374   :  { %7254 = vmatprep.subr.bf16.mxu0 %v10959_v31  ;;  %8102 = vmatprep.subr.bf16.mxu1 %v10962_v32  ;;  %v11043_v31 = vld [vmem:[%s14614_s1 + $0x1d64] ss:$16 sps:$4 sm:$0xff]   ;;  %v11046_v32 = vld [vmem:[%s14614_s1 + $0x1d6c] ss:$16 sps:$4 sm:$0xff]  }
 0x377   :  { %7255 = vmatpush1.bf16.msra.mxu0 %v10957_v34  ;;  %8103 = vmatpush1.bf16.msra.mxu1 %v10960_v36  ;;  %v11041_v34 = vld [vmem:[%s14614_s1 + $0x1d60] ss:$16 sps:$4 sm:$0xff]   ;;  %v11044_v36 = vld [vmem:[%s14614_s1 + $0x1d68] ss:$16 sps:$4 sm:$0xff]  }
 0x378   :  { %7256 = vmatprep.subr.bf16.mxu0 %v10965_v33  ;;  %8104 = vmatprep.subr.bf16.mxu1 %v10968_v35  ;;  %v11049_v33 = vld [vmem:[%s14614_s1 + $0x1d84] ss:$16 sps:$4 sm:$0xff]   ;;  %v11052_v35 = vld [vmem:[%s14614_s1 + $0x1d8c] ss:$16 sps:$4 sm:$0xff]  }
 0x37b   :  { %7257 = vmatpush1.bf16.msra.mxu0 %v10963_v37  ;;  %8105 = vmatpush1.bf16.msra.mxu1 %v10966_v38  ;;  %v11047_v37 = vld [vmem:[%s14614_s1 + $0x1d80] ss:$16 sps:$4 sm:$0xff]   ;;  %v11050_v38 = vld [vmem:[%s14614_s1 + $0x1d88] ss:$16 sps:$4 sm:$0xff]  }
 0x37c   :  { %7258 = vmatprep.subr.bf16.mxu0 %v10971_v39  ;;  %8106 = vmatprep.subr.bf16.mxu1 %v10974_v40  ;;  %v11055_v39 = vld [vmem:[%s14614_s1 + $0x1da4] ss:$16 sps:$4 sm:$0xff]   ;;  %v11058_v40 = vld [vmem:[%s14614_s1 + $0x1dac] ss:$16 sps:$4 sm:$0xff]  }
 0x37f   :  { %7259 = vmatpush1.bf16.msra.mxu0 %v10969_v42  ;;  %8107 = vmatpush1.bf16.msra.mxu1 %v10972_v44  ;;  %v11053_v42 = vld [vmem:[%s14614_s1 + $0x1da0] ss:$16 sps:$4 sm:$0xff]   ;;  %v11056_v44 = vld [vmem:[%s14614_s1 + $0x1da8] ss:$16 sps:$4 sm:$0xff]  }
 0x380   :  { %7281 = vmatprep.subr.bf16.mxu0 %v10977_v41  ;;  %8129 = vmatprep.subr.bf16.mxu1 %v10980_v43  ;;  %v11061_v41 = vld [vmem:[%s14614_s1 + $0x1dc4] ss:$16 sps:$4 sm:$0xff]   ;;  %v11064_v43 = vld [vmem:[%s14614_s1 + $0x1dcc] ss:$16 sps:$4 sm:$0xff]  }
 0x382   :  { %7261 = vmatmul.mubr.bf16.vlgmr.msra.gmra.mrb[0].mxu0 %v8329_v45  ;;  %8109 = vmatmul.mubr.bf16.vlgmr.msra.gmra.mrb[0].mxu1 %v8329_v45  ;;  %v11059_v45 = vld [vmem:[%s14614_s1 + $0x1dc0] ss:$16 sps:$4 sm:$0xff]  }
 0x383   :  { %7282 = vmatpush1.bf16.msra.mxu0 %v10975_v48  ;;  %8130 = vmatpush1.bf16.msra.mxu1 %v10978_v51  ;;  %v11070_v48 = vld [vmem:[%s14614_s1 + $0x1dec] ss:$16 sps:$4 sm:$0xff]   ;;  %v11065_v51 = vld [vmem:[%s14614_s1 + $0x1de0] ss:$16 sps:$4 sm:$0xff]  }
 0x384   :  { %7283 = vmatprep.subr.bf16.mxu0 %v10983_v52  ;;  %8131 = vmatprep.subr.bf16.mxu1 %v10986_v49  ;;  %v11068_v52 = vld [vmem:[%s14614_s1 + $0x1de8] ss:$16 sps:$4 sm:$0xff]   ;;  %v11073_v49 = vld [vmem:[%s14614_s1 + $0x1e04] ss:$16 sps:$4 sm:$0xff]  }
 0x385   :  { %7270 = vmatprep.mubr.bf16.mxu0 %v8362_v50  ;;  %8118 = vmatprep.mubr.bf16.mxu1 %v8362_v50  ;;  %v11076_v50 = vld [vmem:[%s14614_s1 + $0x1e0c] ss:$16 sps:$4 sm:$0xff]  }
 0x387   :  { %7284 = vmatpush1.bf16.msra.mxu0 %v10981_v53  ;;  %8132 = vmatpush1.bf16.msra.mxu1 %v10984_v54  ;;  %v8331_v53 = vcombine.low %v14175_v60, %v14180_v57  ;;  %v57_v54 = vld [vmem:[%s14615_s0 + $0x170] sm:$0xff]  ;;  %v11082_v57 = vld [vmem:[%s14614_s1 + $0x1e2c] ss:$16 sps:$4 sm:$0xff]  }
 0x388   :  { %7285 = vmatprep.subr.bf16.mxu0 %v10989_v55  ;;  %8133 = vmatprep.subr.bf16.mxu1 %v10992_v56  ;;  %v73_v55 = vld [vmem:[%s14615_s0 + $0x1f0] sm:$0xff] }
 0x389   :  { %v11071_v56 = vld [vmem:[%s14614_s1 + $0x1e00] ss:$16 sps:$4 sm:$0xff]   ;;  %v11079_v60 = vld [vmem:[%s14614_s1 + $0x1e24] ss:$16 sps:$4 sm:$0xff]  }
 0x38a   :  { %7271 = vmatmul.mubr.bf16.gmra.mrb[4].mxu0 %v8361_v59  ;;  %8119 = vmatmul.mubr.bf16.gmra.mrb[4].mxu1 %v8361_v59  ;;  %v11074_v59 = vld [vmem:[%s14614_s1 + $0x1e08] ss:$16 sps:$4 sm:$0xff]  }
 0x38b   :  { %7286 = vmatpush1.bf16.msra.mxu0 %v10987_v58  ;;  %8134 = vmatpush1.bf16.msra.mxu1 %v10990_v61  ;;  %v8364_v58 = vcombine.high %v57_v54, %v73_v55  ;;  %v11077_v61 = vld [vmem:[%s14614_s1 + $0x1e20] ss:$16 sps:$4 sm:$0xff]  }
 0x38c   :  { %7287 = vmatprep.subr.bf16.mxu0 %v10995_v62  ;;  %8135 = vmatprep.subr.bf16.mxu1 %v10998_v63  ;;  %v11080_v62 = vld [vmem:[%s14614_s1 + $0x1e28] ss:$16 sps:$4 sm:$0xff]   ;;  %v11085_v63 = vld [vmem:[%s14614_s1 + $0x1e44] ss:$16 sps:$4 sm:$0xff]  }
 0x38d   :  { %7313 = vmatprep.mubr.bf16.mxu0 %v8332_v0  ;;  %8161 = vmatprep.mubr.bf16.mxu1 %v8332_v0  ;;  %v11088_v0 = vld [vmem:[%s14614_s1 + $0x1e4c] ss:$16 sps:$4 sm:$0xff]  }
 0x38f   :  { %7288 = vmatpush1.bf16.msra.mxu0 %v10993_v3  ;;  %8136 = vmatpush1.bf16.msra.mxu1 %v10996_v4  ;;  %v8363_v3 = vcombine.low %v57_v54, %v73_v55  ;;  %v14387_v4 = vld [vmem:[%s14615_s0 + $0x78] sm:$0xff]  ;;  %v11163_v55 = vld [vmem:[%s14614_s1 + $0x1fe4] ss:$16 sps:$4 sm:$0xff]  }
 0x390   :  { %7289 = vmatprep.subr.bf16.mxu0 %v11001_v1  ;;  %8137 = vmatprep.subr.bf16.mxu1 %v11004_v2  ;;  %v14392_v1 = vld [vmem:[%s14615_s0 + $0xf8] sm:$0xff]  ;;  %v11083_v2 = vld [vmem:[%s14614_s1 + $0x1e40] ss:$16 sps:$4 sm:$0xff]  }
 0x391   :  { %v11158_v54 = vld [vmem:[%s14614_s1 + $0x1fc8] ss:$16 sps:$4 sm:$0xff]  }
 0x393   :  { %7290 = vmatpush1.bf16.msra.mxu0 %v10999_v5  ;;  %8138 = vmatpush1.bf16.msra.mxu1 %v11002_v6  ;;  %v11086_v5 = vld [vmem:[%s14614_s1 + $0x1e48] ss:$16 sps:$4 sm:$0xff]   ;;  %v11091_v6 = vld [vmem:[%s14614_s1 + $0x1e64] ss:$16 sps:$4 sm:$0xff]  }
 0x394   :  { %7291 = vmatprep.subr.bf16.mxu0 %v11007_v7  ;;  %8139 = vmatprep.subr.bf16.mxu1 %v11010_v8  ;;  %v11094_v7 = vld [vmem:[%s14614_s1 + $0x1e6c] ss:$16 sps:$4 sm:$0xff]   ;;  %v8334_v8 = vcombine.high %v14387_v4, %v14392_v1 }
 0x397   :  { %7292 = vmatpush1.bf16.msra.mxu0 %v11005_v11  ;;  %8140 = vmatpush1.bf16.msra.mxu1 %v11008_v12  ;;  %v11089_v11 = vld [vmem:[%s14614_s1 + $0x1e60] ss:$16 sps:$4 sm:$0xff]   ;;  %v11092_v12 = vld [vmem:[%s14614_s1 + $0x1e68] ss:$16 sps:$4 sm:$0xff]  }
 0x398   :  { %7293 = vmatprep.subr.bf16.mxu0 %v11013_v9  ;;  %8141 = vmatprep.subr.bf16.mxu1 %v11016_v10  ;;  %v11097_v9 = vld [vmem:[%s14614_s1 + $0x1e84] ss:$16 sps:$4 sm:$0xff]   ;;  %v11100_v10 = vld [vmem:[%s14614_s1 + $0x1e8c] ss:$16 sps:$4 sm:$0xff]  }
 0x39b   :  { %7294 = vmatpush1.bf16.msra.mxu0 %v11011_v13  ;;  %8142 = vmatpush1.bf16.msra.mxu1 %v11014_v14  ;;  %v11095_v13 = vld [vmem:[%s14614_s1 + $0x1e80] ss:$16 sps:$4 sm:$0xff]   ;;  %v11098_v14 = vld [vmem:[%s14614_s1 + $0x1e88] ss:$16 sps:$4 sm:$0xff]  }
 0x39c   :  { %7295 = vmatprep.subr.bf16.mxu0 %v11019_v15  ;;  %8143 = vmatprep.subr.bf16.mxu1 %v11022_v16  ;;  %v11103_v15 = vld [vmem:[%s14614_s1 + $0x1ea4] ss:$16 sps:$4 sm:$0xff]   ;;  %v11106_v16 = vld [vmem:[%s14614_s1 + $0x1eac] ss:$16 sps:$4 sm:$0xff]  }
 0x39f   :  { %7296 = vmatpush1.bf16.msra.mxu0 %v11017_v19  ;;  %8144 = vmatpush1.bf16.msra.mxu1 %v11020_v17  ;;  %v11101_v19 = vld [vmem:[%s14614_s1 + $0x1ea0] ss:$16 sps:$4 sm:$0xff]   ;;  %v11104_v17 = vld [vmem:[%s14614_s1 + $0x1ea8] ss:$16 sps:$4 sm:$0xff]  }
 0x3a0   :  { %7297 = vmatprep.subr.bf16.mxu0 %v11025_v18  ;;  %8145 = vmatprep.subr.bf16.mxu1 %v11028_v20  ;;  %v11109_v18 = vld [vmem:[%s14614_s1 + $0x1ec4] ss:$16 sps:$4 sm:$0xff]   ;;  %v11112_v20 = vld [vmem:[%s14614_s1 + $0x1ecc] ss:$16 sps:$4 sm:$0xff]  }
 0x3a3   :  { %7298 = vmatpush1.bf16.msra.mxu0 %v11023_v21  ;;  %8146 = vmatpush1.bf16.msra.mxu1 %v11026_v22  ;;  %v11107_v21 = vld [vmem:[%s14614_s1 + $0x1ec0] ss:$16 sps:$4 sm:$0xff]   ;;  %v11110_v22 = vld [vmem:[%s14614_s1 + $0x1ec8] ss:$16 sps:$4 sm:$0xff]  }
 0x3a4   :  { %7299 = vmatprep.subr.bf16.mxu0 %v11031_v23  ;;  %8147 = vmatprep.subr.bf16.mxu1 %v11034_v24  ;;  %v11115_v23 = vld [vmem:[%s14614_s1 + $0x1ee4] ss:$16 sps:$4 sm:$0xff]   ;;  %v11118_v24 = vld [vmem:[%s14614_s1 + $0x1eec] ss:$16 sps:$4 sm:$0xff]  }
 0x3a7   :  { %7300 = vmatpush1.bf16.msra.mxu0 %v11029_v26  ;;  %8148 = vmatpush1.bf16.msra.mxu1 %v11032_v25  ;;  %v11113_v26 = vld [vmem:[%s14614_s1 + $0x1ee0] ss:$16 sps:$4 sm:$0xff]   ;;  %v11116_v25 = vld [vmem:[%s14614_s1 + $0x1ee8] ss:$16 sps:$4 sm:$0xff]  }
 0x3a8   :  { %7301 = vmatprep.subr.bf16.mxu0 %v11037_v27  ;;  %8149 = vmatprep.subr.bf16.mxu1 %v11040_v28  ;;  %v11121_v27 = vld [vmem:[%s14614_s1 + $0x1f04] ss:$16 sps:$4 sm:$0xff]   ;;  %v11124_v28 = vld [vmem:[%s14614_s1 + $0x1f0c] ss:$16 sps:$4 sm:$0xff]  }
 0x3ab   :  { %7302 = vmatpush1.bf16.msra.mxu0 %v11035_v29  ;;  %8150 = vmatpush1.bf16.msra.mxu1 %v11038_v30  ;;  %v11119_v29 = vld [vmem:[%s14614_s1 + $0x1f00] ss:$16 sps:$4 sm:$0xff]   ;;  %v11122_v30 = vld [vmem:[%s14614_s1 + $0x1f08] ss:$16 sps:$4 sm:$0xff]  }
 0x3ac   :  { %7303 = vmatprep.subr.bf16.mxu0 %v11043_v31  ;;  %8151 = vmatprep.subr.bf16.mxu1 %v11046_v32  ;;  %v11127_v31 = vld [vmem:[%s14614_s1 + $0x1f24] ss:$16 sps:$4 sm:$0xff]   ;;  %v11130_v32 = vld [vmem:[%s14614_s1 + $0x1f2c] ss:$16 sps:$4 sm:$0xff]  }
 0x3af   :  { %7304 = vmatpush1.bf16.msra.mxu0 %v11041_v34  ;;  %8152 = vmatpush1.bf16.msra.mxu1 %v11044_v36  ;;  %v11125_v34 = vld [vmem:[%s14614_s1 + $0x1f20] ss:$16 sps:$4 sm:$0xff]   ;;  %v11128_v36 = vld [vmem:[%s14614_s1 + $0x1f28] ss:$16 sps:$4 sm:$0xff]  }
 0x3b0   :  { %7305 = vmatprep.subr.bf16.mxu0 %v11049_v33  ;;  %8153 = vmatprep.subr.bf16.mxu1 %v11052_v35  ;;  %v11133_v33 = vld [vmem:[%s14614_s1 + $0x1f44] ss:$16 sps:$4 sm:$0xff]   ;;  %v11136_v35 = vld [vmem:[%s14614_s1 + $0x1f4c] ss:$16 sps:$4 sm:$0xff]  }
 0x3b3   :  { %7306 = vmatpush1.bf16.msra.mxu0 %v11047_v37  ;;  %8154 = vmatpush1.bf16.msra.mxu1 %v11050_v38  ;;  %v11131_v37 = vld [vmem:[%s14614_s1 + $0x1f40] ss:$16 sps:$4 sm:$0xff]   ;;  %v11134_v38 = vld [vmem:[%s14614_s1 + $0x1f48] ss:$16 sps:$4 sm:$0xff]  }
 0x3b4   :  { %7307 = vmatprep.subr.bf16.mxu0 %v11055_v39  ;;  %8155 = vmatprep.subr.bf16.mxu1 %v11058_v40  ;;  %v11139_v39 = vld [vmem:[%s14614_s1 + $0x1f64] ss:$16 sps:$4 sm:$0xff]   ;;  %v11142_v40 = vld [vmem:[%s14614_s1 + $0x1f6c] ss:$16 sps:$4 sm:$0xff]  }
 0x3b7   :  { %7308 = vmatpush1.bf16.msra.mxu0 %v11053_v42  ;;  %8156 = vmatpush1.bf16.msra.mxu1 %v11056_v44  ;;  %v11137_v42 = vld [vmem:[%s14614_s1 + $0x1f60] ss:$16 sps:$4 sm:$0xff]   ;;  %v11140_v44 = vld [vmem:[%s14614_s1 + $0x1f68] ss:$16 sps:$4 sm:$0xff]  }
 0x3b8   :  { %7309 = vmatprep.subr.bf16.mxu0 %v11061_v41  ;;  %8157 = vmatprep.subr.bf16.mxu1 %v11064_v43  ;;  %v11145_v41 = vld [vmem:[%s14614_s1 + $0x1f84] ss:$16 sps:$4 sm:$0xff]   ;;  %v11148_v43 = vld [vmem:[%s14614_s1 + $0x1f8c] ss:$16 sps:$4 sm:$0xff]  }
 0x3bb   :  { %7310 = vmatpush1.bf16.msra.mxu0 %v11059_v45  ;;  %8158 = vmatpush1.bf16.msra.mxu1 %v11062_v46  ;;  %v11143_v45 = vld [vmem:[%s14614_s1 + $0x1f80] ss:$16 sps:$4 sm:$0xff]   ;;  %v11146_v46 = vld [vmem:[%s14614_s1 + $0x1f88] ss:$16 sps:$4 sm:$0xff]  }
 0x3bc   :  { %7311 = vmatprep.subr.bf16.mxu0 %v11067_v47  ;;  %8159 = vmatprep.subr.bf16.mxu1 %v11070_v48  ;;  %v11151_v47 = vld [vmem:[%s14614_s1 + $0x1fa4] ss:$16 sps:$4 sm:$0xff]   ;;  %v11154_v48 = vld [vmem:[%s14614_s1 + $0x1fac] ss:$16 sps:$4 sm:$0xff]  }
 0x3bf   :  { %7312 = vmatpush1.bf16.msra.mxu0 %v11065_v51  ;;  %8160 = vmatpush1.bf16.msra.mxu1 %v11068_v52  ;;  %v11149_v51 = vld [vmem:[%s14614_s1 + $0x1fa0] ss:$16 sps:$4 sm:$0xff]   ;;  %v11152_v52 = vld [vmem:[%s14614_s1 + $0x1fa8] ss:$16 sps:$4 sm:$0xff]  }
 0x3c0   :  { %7334 = vmatprep.subr.bf16.mxu0 %v11073_v49  ;;  %8182 = vmatprep.subr.bf16.mxu1 %v11076_v50  ;;  %v11157_v49 = vld [vmem:[%s14614_s1 + $0x1fc4] ss:$16 sps:$4 sm:$0xff]   ;;  %v11160_v50 = vld [vmem:[%s14614_s1 + $0x1fcc] ss:$16 sps:$4 sm:$0xff]  }
 0x3c2   :  { %7314 = vmatmul.mubr.bf16.vlgmr.msra.gmra.mrb[0].mxu0 %v8331_v53  ;;  %8162 = vmatmul.mubr.bf16.vlgmr.msra.gmra.mrb[0].mxu1 %v8331_v53  ;;  %v11155_v53 = vld [vmem:[%s14614_s1 + $0x1fc0] ss:$16 sps:$4 sm:$0xff]  }
 0x3c3   :  { %7335 = vmatpush1.bf16.msra.mxu0 %v11071_v56  ;;  %8183 = vmatpush1.bf16.msra.mxu1 %v11074_v59  ;;  %v11166_v56 = vld [vmem:[%s14614_s1 + $0x1fec] ss:$16 sps:$4 sm:$0xff]   ;;  %v11161_v59 = vld [vmem:[%s14614_s1 + $0x1fe0] ss:$16 sps:$4 sm:$0xff]  }
 0x3c4   :  { %7336 = vmatprep.subr.bf16.mxu0 %v11079_v60  ;;  %8184 = vmatprep.subr.bf16.mxu1 %v11082_v57  ;;  %v11164_v60 = vld [vmem:[%s14614_s1 + $0x1fe8] ss:$16 sps:$4 sm:$0xff]  }
 0x3c5   :  { %7323 = vmatprep.mubr.bf16.mxu0 %v8364_v58  ;;  %8171 = vmatprep.mubr.bf16.mxu1 %v8364_v58  ;;  %v58_v57 = vld [vmem:[%s14615_s0 + $0x178] sm:$0xff] }
 0x3c6   :  { %v74_v58 = vld [vmem:[%s14615_s0 + $0x1f8] sm:$0xff] }
 0x3c7   :  { %7337 = vmatpush1.bf16.msra.mxu0 %v11077_v61  ;;  %8185 = vmatpush1.bf16.msra.mxu1 %v11080_v62  ;;  %v8333_v61 = vcombine.low %v14387_v4, %v14392_v1  ;;  %v8366_v62 = vcombine.high %v58_v57, %v74_v58 }
 0x3c8   :  { %7338 = vmatprep.subr.bf16.mxu0 %v11085_v63  ;;  %8186 = vmatprep.subr.bf16.mxu1 %v11088_v0  ;;  %v8365_v63 = vcombine.low %v58_v57, %v74_v58 }
 0x3ca   :  { %7324 = vmatmul.mubr.bf16.gmra.mrb[4].mxu0 %v8363_v3  ;;  %8172 = vmatmul.mubr.bf16.gmra.mrb[4].mxu1 %v8363_v3 }
 0x3cb   :  { %7339 = vmatpush1.bf16.msra.mxu0 %v11083_v2  ;;  %8187 = vmatpush1.bf16.msra.mxu1 %v11086_v5 }
 0x3cc   :  { %7340 = vmatprep.subr.bf16.mxu0 %v11091_v6  ;;  %8188 = vmatprep.subr.bf16.mxu1 %v11094_v7 }
 0x3cd   :  { %7366 = vmatprep.mubr.bf16.mxu0 %v8334_v8  ;;  %8214 = vmatprep.mubr.bf16.mxu1 %v8334_v8 }
 0x3cf   :  { %7341 = vmatpush1.bf16.msra.mxu0 %v11089_v11  ;;  %8189 = vmatpush1.bf16.msra.mxu1 %v11092_v12 }
 0x3d0   :  { %7342 = vmatprep.subr.bf16.mxu0 %v11097_v9  ;;  %8190 = vmatprep.subr.bf16.mxu1 %v11100_v10 }
 0x3d3   :  { %7343 = vmatpush1.bf16.msra.mxu0 %v11095_v13  ;;  %8191 = vmatpush1.bf16.msra.mxu1 %v11098_v14 }
 0x3d4   :  { %7344 = vmatprep.subr.bf16.mxu0 %v11103_v15  ;;  %8192 = vmatprep.subr.bf16.mxu1 %v11106_v16 }
 0x3d7   :  { %7345 = vmatpush1.bf16.msra.mxu0 %v11101_v19  ;;  %8193 = vmatpush1.bf16.msra.mxu1 %v11104_v17 }
 0x3d8   :  { %7346 = vmatprep.subr.bf16.mxu0 %v11109_v18  ;;  %8194 = vmatprep.subr.bf16.mxu1 %v11112_v20 }
 0x3db   :  { %7347 = vmatpush1.bf16.msra.mxu0 %v11107_v21  ;;  %8195 = vmatpush1.bf16.msra.mxu1 %v11110_v22 }
 0x3dc   :  { %7348 = vmatprep.subr.bf16.mxu0 %v11115_v23  ;;  %8196 = vmatprep.subr.bf16.mxu1 %v11118_v24 }
 0x3df   :  { %7349 = vmatpush1.bf16.msra.mxu0 %v11113_v26  ;;  %8197 = vmatpush1.bf16.msra.mxu1 %v11116_v25 }
 0x3e0   :  { %7350 = vmatprep.subr.bf16.mxu0 %v11121_v27  ;;  %8198 = vmatprep.subr.bf16.mxu1 %v11124_v28 }
 0x3e3   :  { %7351 = vmatpush1.bf16.msra.mxu0 %v11119_v29  ;;  %8199 = vmatpush1.bf16.msra.mxu1 %v11122_v30 }
 0x3e4   :  { %7352 = vmatprep.subr.bf16.mxu0 %v11127_v31  ;;  %8200 = vmatprep.subr.bf16.mxu1 %v11130_v32 }
 0x3e7   :  { %7353 = vmatpush1.bf16.msra.mxu0 %v11125_v34  ;;  %8201 = vmatpush1.bf16.msra.mxu1 %v11128_v36 }
 0x3e8   :  { %7354 = vmatprep.subr.bf16.mxu0 %v11133_v33  ;;  %8202 = vmatprep.subr.bf16.mxu1 %v11136_v35 }
 0x3eb   :  { %7355 = vmatpush1.bf16.msra.mxu0 %v11131_v37  ;;  %8203 = vmatpush1.bf16.msra.mxu1 %v11134_v38 }
 0x3ec   :  { %7356 = vmatprep.subr.bf16.mxu0 %v11139_v39  ;;  %8204 = vmatprep.subr.bf16.mxu1 %v11142_v40 }
 0x3ef   :  { %7357 = vmatpush1.bf16.msra.mxu0 %v11137_v42  ;;  %8205 = vmatpush1.bf16.msra.mxu1 %v11140_v44 }
 0x3f0   :  { %7358 = vmatprep.subr.bf16.mxu0 %v11145_v41  ;;  %8206 = vmatprep.subr.bf16.mxu1 %v11148_v43 }
 0x3f3   :  { %7359 = vmatpush1.bf16.msra.mxu0 %v11143_v45  ;;  %8207 = vmatpush1.bf16.msra.mxu1 %v11146_v46 }
 0x3f4   :  { %7360 = vmatprep.subr.bf16.mxu0 %v11151_v47  ;;  %8208 = vmatprep.subr.bf16.mxu1 %v11154_v48 }
 0x3f7   :  { %7361 = vmatpush1.bf16.msra.mxu0 %v11149_v51  ;;  %8209 = vmatpush1.bf16.msra.mxu1 %v11152_v52 }
 0x3f8   :  { %7362 = vmatprep.subr.bf16.mxu0 %v11157_v49  ;;  %8210 = vmatprep.subr.bf16.mxu1 %v11160_v50 }
 0x3fb   :  { %7363 = vmatpush1.bf16.msra.mxu0 %v11155_v53  ;;  %8211 = vmatpush1.bf16.msra.mxu1 %v11158_v54 }
 0x3fc   :  { %7364 = vmatprep.subr.bf16.mxu0 %v11163_v55  ;;  %8212 = vmatprep.subr.bf16.mxu1 %v11166_v56 }
 0x3ff   :  { %7365 = vmatpush1.bf16.msra.mxu0 %v11161_v59  ;;  %8213 = vmatpush1.bf16.msra.mxu1 %v11164_v60 }
 0x402   :  { %7367 = vmatmul.mubr.bf16.vlgmr.msra.gmra.mrb[0].mxu0 %v8333_v61  ;;  %8215 = vmatmul.mubr.bf16.vlgmr.msra.gmra.mrb[0].mxu1 %v8333_v61 }
 0x403   :  { %7376 = vmatprep.mubr.bf16.mxu0 %v8366_v62  ;;  %8224 = vmatprep.mubr.bf16.mxu1 %v8366_v62 }
 0x40a   :  { %7377 = vmatmul.mubr.bf16.gmra.mrb[4].mxu0 %v8365_v63  ;;  %8225 = vmatmul.mubr.bf16.gmra.mrb[4].mxu1 %v8365_v63 }
 0x4d5   :  { %v7368_v0 = vpop.f32.mrb[0].mxu0  ;;  %v8216_v3 = vpop.f32.mrb[0].mxu1 }
 0x4d6   :  { %vm8235_vm0 = vcmp.ge.f32.partialorder %v7368_v0, 0.0  ;;  %v8251_v2 = vmul.f32 0.2, %v7368_v0  ;;  %vm8237_vm1 = vcmp.ge.f32.partialorder %v8216_v3, 0.0  ;;  %v8253_v5 = vmul.f32 0.2, %v8216_v3 }
 0x4d7   :  { %v7370_v6 = vpop.f32.mrb[1].mxu0  ;;  %v8218_v7 = vpop.f32.mrb[1].mxu1 }
 0x4d8   :  { %v8267_v8 = vsel %vm8235_vm0, %v7368_v0, %v8251_v2  ;;  %v8269_v4 = vsel %vm8237_vm1, %v8216_v3, %v8253_v5  ;;  %vm8236_vm2 = vcmp.ge.f32.partialorder %v7370_v6, 0.0  ;;  %v8252_v1 = vmul.f32 0.2, %v7370_v6  ;;  %v7372_v11 = vpop.f32.mrb[2].mxu0  ;;  %v8220_v12 = vpop.f32.mrb[2].mxu1 }
 0x4d9   :  { %8283 = vst [vmem:[%s14616_s2] sm:$0xff] %v8267_v8  ;;  %8285 = vst [vmem:[%s14616_s2 + $0x10] sm:$0xff] %v8269_v4  ;;  %vm8238_vm3 = vcmp.ge.f32.partialorder %v8218_v7, 0.0  ;;  %v8254_v9 = vmul.f32 0.2, %v8218_v7  ;;  %vm8239_vm4 = vcmp.ge.f32.partialorder %v7372_v11, 0.0  ;;  %vm8241_vm5 = vcmp.ge.f32.partialorder %v8220_v12, 0.0 }
 0x4da   :  { %v8255_v10 = vmul.f32 0.2, %v7372_v11  ;;  %v8268_v13 = vsel %vm8236_vm2, %v7370_v6, %v8252_v1  ;;  %v8257_v14 = vmul.f32 0.2, %v8220_v12  ;;  %v7374_v15 = vpop.f32.mrb[3].mxu0  ;;  %v8222_v16 = vpop.f32.mrb[3].mxu1 }
 0x4db   :  { %8284 = vst [vmem:[%s14616_s2 + $0x8] sm:$0xff] %v8268_v13  ;;  %v8270_v19 = vsel %vm8238_vm3, %v8218_v7, %v8254_v9  ;;  %vm8240_vm6 = vcmp.ge.f32.partialorder %v7374_v15, 0.0  ;;  %v8256_v18 = vmul.f32 0.2, %v7374_v15  ;;  %vm8242_vm7 = vcmp.ge.f32.partialorder %v8222_v16, 0.0 }
 0x4dc   :  { %v8271_v17 = vsel %vm8239_vm4, %v7372_v11, %v8255_v10  ;;  %8286 = vst [vmem:[%s14616_s2 + $0x18] sm:$0xff] %v8270_v19  ;;  %v8273_v20 = vsel %vm8241_vm5, %v8220_v12, %v8257_v14  ;;  %v8258_v21 = vmul.f32 0.2, %v8222_v16 }
 0x4dd   :  { %8287 = vst [vmem:[%s14616_s2 + $0x20] sm:$0xff] %v8271_v17  ;;  %8289 = vst [vmem:[%s14616_s2 + $0x30] sm:$0xff] %v8273_v20  ;;  %v8272_v22 = vsel %vm8240_vm6, %v7374_v15, %v8256_v18  ;;  %v7378_v23 = vpop.f32.mrb[4].mxu0  ;;  %v8226_v24 = vpop.f32.mrb[4].mxu1 }
 0x4de   :  { %8288 = vst [vmem:[%s14616_s2 + $0x28] sm:$0xff] %v8272_v22  ;;  %v8274_v26 = vsel %vm8242_vm7, %v8222_v16, %v8258_v21  ;;  %vm8243_vm8 = vcmp.ge.f32.partialorder %v7378_v23, 0.0  ;;  %v8259_v25 = vmul.f32 0.2, %v7378_v23  ;;  %vm8245_vm9 = vcmp.ge.f32.partialorder %v8226_v24, 0.0  ;;  %v7380_v27 = vpop.f32.mrb[5].mxu0 }
 0x4df   :  { %v8228_v28 = vpop.f32.mrb[5].mxu1  ;;  %8290 = vst [vmem:[%s14616_s2 + $0x38] sm:$0xff] %v8274_v26  ;;  %v8261_v29 = vmul.f32 0.2, %v8226_v24  ;;  %vm8244_vm10 = vcmp.ge.f32.partialorder %v7380_v27, 0.0  ;;  %v7382_v34 = vpop.f32.mrb[6].mxu0 }
 0x4e0   :  { %v8260_v30 = vmul.f32 0.2, %v7380_v27  ;;  %vm8246_vm11 = vcmp.ge.f32.partialorder %v8228_v28, 0.0  ;;  %v8275_v31 = vsel %vm8243_vm8, %v7378_v23, %v8259_v25  ;;  %v8262_v32 = vmul.f32 0.2, %v8228_v28  ;;  %v8230_v36 = vpop.f32.mrb[6].mxu1 }
 0x4e1   :  { %8291 = vst [vmem:[%s14616_s2 + $0x40] sm:$0xff] %v8275_v31  ;;  %v8277_v33 = vsel %vm8245_vm9, %v8226_v24, %v8261_v29  ;;  %vm8247_vm12 = vcmp.ge.f32.partialorder %v7382_v34, 0.0  ;;  %v8263_v37 = vmul.f32 0.2, %v7382_v34  ;;  %v7384_v38 = vpop.f32.mrb[7].mxu0  ;;  %v8232_v39 = vpop.f32.mrb[7].mxu1 }
 0x4e2   :  { %v8276_v35 = vsel %vm8244_vm10, %v7380_v27, %v8260_v30  ;;  %8293 = vst [vmem:[%s14616_s2 + $0x50] sm:$0xff] %v8277_v33  ;;  %v8278_v40 = vsel %vm8246_vm11, %v8228_v28, %v8262_v32  ;;  %vm8249_vm13 = vcmp.ge.f32.partialorder %v8230_v36, 0.0  ;;  %v8265_v42 = vmul.f32 0.2, %v8230_v36 }
 0x4e3   :  { %8292 = vst [vmem:[%s14616_s2 + $0x48] sm:$0xff] %v8276_v35  ;;  %vm8248_vm14 = vcmp.ge.f32.partialorder %v7384_v38, 0.0  ;;  %8294 = vst [vmem:[%s14616_s2 + $0x58] sm:$0xff] %v8278_v40  ;;  %v8279_v44 = vsel %vm8247_vm12, %v7382_v34, %v8263_v37  ;;  %v8264_v41 = vmul.f32 0.2, %v7384_v38  ;;  %vm8250_vm15 = vcmp.ge.f32.partialorder %v8232_v39, 0.0 }
 0x4e4   :  { %v8266_v43 = vmul.f32 0.2, %v8232_v39  ;;  %8295 = vst [vmem:[%s14616_s2 + $0x60] sm:$0xff] %v8279_v44  ;;  %v8281_v45 = vsel %vm8249_vm13, %v8230_v36, %v8265_v42 }
 0x4e5   :  { %8297 = vst [vmem:[%s14616_s2 + $0x70] sm:$0xff] %v8281_v45  ;;  %v8280_v46 = vsel %vm8248_vm14, %v7384_v38, %v8264_v41 }
 0x4e6   :  { %v8282_v47 = vsel %vm8250_vm15, %v8232_v39, %v8266_v43  ;;  %8296 = vst [vmem:[%s14616_s2 + $0x68] sm:$0xff] %v8280_v46 }
 0x4e7   :  { %8298 = vst [vmem:[%s14616_s2 + $0x78] sm:$0xff] %v8282_v47 }

// kernel: discriminator_forward.9
= control target key start
LH: loop header
LB: loop body
LE: loop exit
PB: predicated region body
PF: predicated region fallthrough
CT: control target
= control target key end

     0   :  { %s9446_s1 = inlined_call_operand.vmem [shape: bf16[8192,128], index: 1, kind: input, shape index: {}]   ;;  %s9447_s0 = inlined_call_operand.vmem [shape: bf16[16,8192], index: 0, kind: input, shape index: {}]   ;;  %s9448_s2 = inlined_call_operand.vmem [shape: f32[16,128], index: 2, kind: output, shape index: {0}]   ;;  %s9449_s3 = inlined_call_operand.vmem [shape: f32[16,128], index: 3, kind: output, shape index: {1}]  }
   0x1   :  { %v7118_v0 = vld [vmem:[%s9446_s1 + $0x40] sm:$0xff]   ;;  %v7122_v4 = vld [vmem:[%s9446_s1 + $0x48] sm:$0xff]   ;;  %v7126_v8 = vld [vmem:[%s9446_s1 + $0x50] sm:$0xff]  }
   0x2   :  { %v7119_v1 = vld [vmem:[%s9446_s1 + $0xc0] sm:$0xff]   ;;  %6414 = vmatprep.subr.bf16.mxu0 %v7118_v0  ;;  %v7123_v5 = vld [vmem:[%s9446_s1 + $0xc8] sm:$0xff]   ;;  %v7127_v9 = vld [vmem:[%s9446_s1 + $0xd0] sm:$0xff]  }
   0x3   :  { %v7120_v2 = vld [vmem:[%s9446_s1] sm:$0xff]   ;;  %6436 = vmatprep.subr.bf16.mxu1 %v7119_v1  ;;  %v7124_v6 = vld [vmem:[%s9446_s1 + $0x8] sm:$0xff]   ;;  %v7128_v10 = vld [vmem:[%s9446_s1 + $0x10] sm:$0xff]  }
   0x4   :  { %v7121_v3 = vld [vmem:[%s9446_s1 + $0x80] sm:$0xff]   ;;  %6415 = vmatpush3.bf16.msra.mxu0 %v7120_v2  ;;  %v7125_v7 = vld [vmem:[%s9446_s1 + $0x88] sm:$0xff]   ;;  %v7129_v11 = vld [vmem:[%s9446_s1 + $0x90] sm:$0xff]  }
   0x5   :  { %6437 = vmatpush3.bf16.msra.mxu1 %v7121_v3  ;;  %6416 = vmatprep.subr.bf16.mxu0 %v7122_v4  ;;  %v7130_v12 = vld [vmem:[%s9446_s1 + $0x58] sm:$0xff]   ;;  %v7134_v16 = vld [vmem:[%s9446_s1 + $0x60] sm:$0xff]   ;;  %v7138_v20 = vld [vmem:[%s9446_s1 + $0x68] sm:$0xff]  }
   0x6   :  { %6438 = vmatprep.subr.bf16.mxu1 %v7123_v5  ;;  %v7131_v13 = vld [vmem:[%s9446_s1 + $0xd8] sm:$0xff]   ;;  %v7135_v17 = vld [vmem:[%s9446_s1 + $0xe0] sm:$0xff]   ;;  %v7139_v21 = vld [vmem:[%s9446_s1 + $0xe8] sm:$0xff]  }
   0x7   :  { %v7132_v14 = vld [vmem:[%s9446_s1 + $0x18] sm:$0xff]   ;;  %v7136_v18 = vld [vmem:[%s9446_s1 + $0x20] sm:$0xff]   ;;  %v7140_v22 = vld [vmem:[%s9446_s1 + $0x28] sm:$0xff]  }
   0x8   :  { %6417 = vmatpush3.bf16.msra.mxu0 %v7124_v6  ;;  %v7133_v15 = vld [vmem:[%s9446_s1 + $0x98] sm:$0xff]   ;;  %v7137_v19 = vld [vmem:[%s9446_s1 + $0xa0] sm:$0xff]   ;;  %v7141_v23 = vld [vmem:[%s9446_s1 + $0xa8] sm:$0xff]  }
   0x9   :  { %6439 = vmatpush3.bf16.msra.mxu1 %v7125_v7  ;;  %6418 = vmatprep.subr.bf16.mxu0 %v7126_v8  ;;  %v7142_v24 = vld [vmem:[%s9446_s1 + $0x70] sm:$0xff]   ;;  %v7146_v28 = vld [vmem:[%s9446_s1 + $0x78] sm:$0xff]   ;;  %v14_v32 = vld [vmem:[%s9447_s0] sm:$0xff] }
   0xa   :  { %6440 = vmatprep.subr.bf16.mxu1 %v7127_v9  ;;  %v7143_v25 = vld [vmem:[%s9446_s1 + $0xf0] sm:$0xff]   ;;  %v7147_v29 = vld [vmem:[%s9446_s1 + $0xf8] sm:$0xff]   ;;  %v46_v33 = vld [vmem:[%s9447_s0 + $0x100] sm:$0xff] }
   0xb   :  { %v7144_v26 = vld [vmem:[%s9446_s1 + $0x30] sm:$0xff]   ;;  %v7148_v30 = vld [vmem:[%s9446_s1 + $0x38] sm:$0xff]   ;;  %v15_v34 = vld [vmem:[%s9447_s0 + $0x8] sm:$0xff]  ;;  %v5836_v35 = vcombine.low %v14_v32, %v46_v33  ;;  %v5837_v36 = vcombine.high %v14_v32, %v46_v33 }
   0xc   :  { %6419 = vmatpush3.bf16.msra.mxu0 %v7128_v10  ;;  %v7145_v27 = vld [vmem:[%s9446_s1 + $0xb0] sm:$0xff]   ;;  %v7149_v31 = vld [vmem:[%s9446_s1 + $0xb8] sm:$0xff]   ;;  %v47_v37 = vld [vmem:[%s9447_s0 + $0x108] sm:$0xff] }
   0xd   :  { %6441 = vmatpush3.bf16.msra.mxu1 %v7129_v11  ;;  %6420 = vmatprep.subr.bf16.mxu0 %v7130_v12  ;;  %v5838_v38 = vcombine.low %v15_v34, %v47_v37  ;;  %v5839_v39 = vcombine.high %v15_v34, %v47_v37  ;;  %v7150_v40 = vld [vmem:[%s9446_s1 + $0x140] sm:$0xff]   ;;  %v7154_v44 = vld [vmem:[%s9446_s1 + $0x148] sm:$0xff]   ;;  %v7158_v48 = vld [vmem:[%s9446_s1 + $0x150] sm:$0xff]  }
   0xe   :  { %6442 = vmatprep.subr.bf16.mxu1 %v7131_v13  ;;  %4526 = vmatprep.mubr.bf16.mxu0 %v5837_v36  ;;  %v7151_v41 = vld [vmem:[%s9446_s1 + $0x1c0] sm:$0xff]   ;;  %v7155_v45 = vld [vmem:[%s9446_s1 + $0x1c8] sm:$0xff]   ;;  %v7159_v49 = vld [vmem:[%s9446_s1 + $0x1d0] sm:$0xff]  }
   0xf   :  { %4567 = vmatprep.mubr.bf16.mxu1 %v5839_v39  ;;  %v7152_v42 = vld [vmem:[%s9446_s1 + $0x100] sm:$0xff]   ;;  %v7156_v46 = vld [vmem:[%s9446_s1 + $0x108] sm:$0xff]   ;;  %v7160_v50 = vld [vmem:[%s9446_s1 + $0x110] sm:$0xff]  }
  0x10   :  { %6421 = vmatpush3.bf16.msra.mxu0 %v7132_v14  ;;  %v7153_v43 = vld [vmem:[%s9446_s1 + $0x180] sm:$0xff]   ;;  %v7157_v47 = vld [vmem:[%s9446_s1 + $0x188] sm:$0xff]   ;;  %v7161_v51 = vld [vmem:[%s9446_s1 + $0x190] sm:$0xff]  }
  0x11   :  { %6443 = vmatpush3.bf16.msra.mxu1 %v7133_v15  ;;  %6422 = vmatprep.subr.bf16.mxu0 %v7134_v16  ;;  %v7162_v52 = vld [vmem:[%s9446_s1 + $0x158] sm:$0xff]   ;;  %v7166_v56 = vld [vmem:[%s9446_s1 + $0x160] sm:$0xff]   ;;  %v7170_v60 = vld [vmem:[%s9446_s1 + $0x168] sm:$0xff]  }
  0x12   :  { %6444 = vmatprep.subr.bf16.mxu1 %v7135_v17  ;;  %v7163_v53 = vld [vmem:[%s9446_s1 + $0x1d8] sm:$0xff]   ;;  %v7167_v57 = vld [vmem:[%s9446_s1 + $0x1e0] sm:$0xff]   ;;  %v7171_v61 = vld [vmem:[%s9446_s1 + $0x1e8] sm:$0xff]  }
  0x13   :  { %v7164_v54 = vld [vmem:[%s9446_s1 + $0x118] sm:$0xff]   ;;  %v7168_v58 = vld [vmem:[%s9446_s1 + $0x120] sm:$0xff]   ;;  %v7172_v62 = vld [vmem:[%s9446_s1 + $0x128] sm:$0xff]  }
  0x14   :  { %6423 = vmatpush3.bf16.msra.mxu0 %v7136_v18  ;;  %v7165_v55 = vld [vmem:[%s9446_s1 + $0x198] sm:$0xff]   ;;  %v7169_v59 = vld [vmem:[%s9446_s1 + $0x1a0] sm:$0xff]   ;;  %v7173_v63 = vld [vmem:[%s9446_s1 + $0x1a8] sm:$0xff]  }
  0x15   :  { %6445 = vmatpush3.bf16.msra.mxu1 %v7137_v19  ;;  %6424 = vmatprep.subr.bf16.mxu0 %v7138_v20  ;;  %v7174_v0 = vld [vmem:[%s9446_s1 + $0x170] sm:$0xff]   ;;  %v7178_v4 = vld [vmem:[%s9446_s1 + $0x178] sm:$0xff]   ;;  %v7182_v16 = vld [vmem:[%s9446_s1 + $0x240] sm:$0xff]  }
  0x16   :  { %6446 = vmatprep.subr.bf16.mxu1 %v7139_v21  ;;  %v7175_v1 = vld [vmem:[%s9446_s1 + $0x1f0] sm:$0xff]   ;;  %v7179_v5 = vld [vmem:[%s9446_s1 + $0x1f8] sm:$0xff]   ;;  %v7183_v17 = vld [vmem:[%s9446_s1 + $0x2c0] sm:$0xff]  }
  0x17   :  { %v7176_v2 = vld [vmem:[%s9446_s1 + $0x130] sm:$0xff]   ;;  %v7180_v6 = vld [vmem:[%s9446_s1 + $0x138] sm:$0xff]   ;;  %v7184_v18 = vld [vmem:[%s9446_s1 + $0x200] sm:$0xff]  }
  0x18   :  { %6425 = vmatpush3.bf16.msra.mxu0 %v7140_v22  ;;  %v7177_v3 = vld [vmem:[%s9446_s1 + $0x1b0] sm:$0xff]   ;;  %v7181_v7 = vld [vmem:[%s9446_s1 + $0x1b8] sm:$0xff]   ;;  %v7185_v19 = vld [vmem:[%s9446_s1 + $0x280] sm:$0xff]  }
  0x19   :  { %6447 = vmatpush3.bf16.msra.mxu1 %v7141_v23  ;;  %6426 = vmatprep.subr.bf16.mxu0 %v7142_v24  ;;  %v16_v8 = vld [vmem:[%s9447_s0 + $0x10] sm:$0xff]  ;;  %v17_v12 = vld [vmem:[%s9447_s0 + $0x18] sm:$0xff]  ;;  %v7186_v20 = vld [vmem:[%s9446_s1 + $0x248] sm:$0xff]  }
  0x1a   :  { %6448 = vmatprep.subr.bf16.mxu1 %v7143_v25  ;;  %v48_v9 = vld [vmem:[%s9447_s0 + $0x110] sm:$0xff]  ;;  %v49_v13 = vld [vmem:[%s9447_s0 + $0x118] sm:$0xff]  ;;  %v7187_v21 = vld [vmem:[%s9446_s1 + $0x2c8] sm:$0xff]  }
  0x1b   :  { %v5840_v10 = vcombine.low %v16_v8, %v48_v9  ;;  %v5841_v11 = vcombine.high %v16_v8, %v48_v9  ;;  %v5842_v14 = vcombine.low %v17_v12, %v49_v13  ;;  %v5843_v15 = vcombine.high %v17_v12, %v49_v13  ;;  %v7188_v22 = vld [vmem:[%s9446_s1 + $0x208] sm:$0xff]   ;;  %v7190_v24 = vld [vmem:[%s9446_s1 + $0x250] sm:$0xff]   ;;  %v7198_v32 = vld [vmem:[%s9446_s1 + $0x260] sm:$0xff]  }
  0x1c   :  { %6427 = vmatpush3.bf16.msra.mxu0 %v7144_v26  ;;  %v7189_v23 = vld [vmem:[%s9446_s1 + $0x288] sm:$0xff]   ;;  %v7191_v25 = vld [vmem:[%s9446_s1 + $0x2d0] sm:$0xff]   ;;  %v7199_v33 = vld [vmem:[%s9446_s1 + $0x2e0] sm:$0xff]  }
  0x1d   :  { %6449 = vmatpush3.bf16.msra.mxu1 %v7145_v27  ;;  %6428 = vmatprep.subr.bf16.mxu0 %v7146_v28  ;;  %v7192_v26 = vld [vmem:[%s9446_s1 + $0x210] sm:$0xff]   ;;  %v7194_v28 = vld [vmem:[%s9446_s1 + $0x258] sm:$0xff]   ;;  %v7200_v34 = vld [vmem:[%s9446_s1 + $0x220] sm:$0xff]  }
  0x1e   :  { %6450 = vmatprep.subr.bf16.mxu1 %v7147_v29  ;;  %v7193_v27 = vld [vmem:[%s9446_s1 + $0x290] sm:$0xff]   ;;  %v7195_v29 = vld [vmem:[%s9446_s1 + $0x2d8] sm:$0xff]   ;;  %v7202_v36 = vld [vmem:[%s9446_s1 + $0x268] sm:$0xff]  }
  0x1f   :  { %v7203_v37 = vld [vmem:[%s9446_s1 + $0x2e8] sm:$0xff]   ;;  %v7230_v8 = vld [vmem:[%s9446_s1 + $0x360] sm:$0xff]  }
  0x20   :  { %6429 = vmatpush3.bf16.msra.mxu0 %v7148_v30  ;;  %v7196_v30 = vld [vmem:[%s9446_s1 + $0x218] sm:$0xff]   ;;  %v7205_v39 = vld [vmem:[%s9446_s1 + $0x2a8] sm:$0xff]   ;;  %v7231_v9 = vld [vmem:[%s9446_s1 + $0x3e0] sm:$0xff]  }
  0x21   :  { %6451 = vmatpush3.bf16.msra.mxu1 %v7149_v31  ;;  %6458 = vmatprep.subr.bf16.mxu0 %v7150_v40  ;;  %v7197_v31 = vld [vmem:[%s9446_s1 + $0x298] sm:$0xff]   ;;  %v7206_v40 = vld [vmem:[%s9446_s1 + $0x270] sm:$0xff]   ;;  %v7234_v12 = vld [vmem:[%s9446_s1 + $0x368] sm:$0xff]  }
  0x22   :  { %6480 = vmatprep.subr.bf16.mxu1 %v7151_v41  ;;  %v7207_v41 = vld [vmem:[%s9446_s1 + $0x2f0] sm:$0xff]   ;;  %v7235_v13 = vld [vmem:[%s9446_s1 + $0x3e8] sm:$0xff]  }
  0x23   :  { %4527 = vmatmul.mubr.bf16.vlgmr.msra.gmra.mrb[0].mxu0 %v5836_v35  ;;  %v7201_v35 = vld [vmem:[%s9446_s1 + $0x2a0] sm:$0xff]  }
  0x24   :  { %4568 = vmatmul.mubr.bf16.vlgmr.msra.gmra.mrb[0].mxu1 %v5838_v38  ;;  %6459 = vmatpush3.bf16.msra.mxu0 %v7152_v42  ;;  %v7204_v38 = vld [vmem:[%s9446_s1 + $0x228] sm:$0xff]   ;;  %v7208_v42 = vld [vmem:[%s9446_s1 + $0x230] sm:$0xff]  }
  0x25   :  { %6481 = vmatpush3.bf16.msra.mxu1 %v7153_v43  ;;  %6460 = vmatprep.subr.bf16.mxu0 %v7154_v44  ;;  %v7209_v43 = vld [vmem:[%s9446_s1 + $0x2b0] sm:$0xff]   ;;  %v7210_v44 = vld [vmem:[%s9446_s1 + $0x278] sm:$0xff]  }
  0x26   :  { %6482 = vmatprep.subr.bf16.mxu1 %v7155_v45  ;;  %4608 = vmatprep.mubr.bf16.mxu0 %v5841_v11  ;;  %v7211_v45 = vld [vmem:[%s9446_s1 + $0x2f8] sm:$0xff]   ;;  %v7233_v11 = vld [vmem:[%s9446_s1 + $0x3a0] sm:$0xff]  }
  0x27   :  { %4649 = vmatprep.mubr.bf16.mxu1 %v5843_v15  ;;  %v7237_v15 = vld [vmem:[%s9446_s1 + $0x3a8] sm:$0xff]  }
  0x28   :  { %6461 = vmatpush3.bf16.msra.mxu0 %v7156_v46  ;;  %v7212_v46 = vld [vmem:[%s9446_s1 + $0x238] sm:$0xff]  }
  0x29   :  { %6483 = vmatpush3.bf16.msra.mxu1 %v7157_v47  ;;  %6462 = vmatprep.subr.bf16.mxu0 %v7158_v48  ;;  %v7213_v47 = vld [vmem:[%s9446_s1 + $0x2b8] sm:$0xff]   ;;  %v18_v48 = vld [vmem:[%s9447_s0 + $0x20] sm:$0xff] }
  0x2a   :  { %6484 = vmatprep.subr.bf16.mxu1 %v7159_v49  ;;  %v50_v49 = vld [vmem:[%s9447_s0 + $0x120] sm:$0xff] }
  0x2c   :  { %6463 = vmatpush3.bf16.msra.mxu0 %v7160_v50  ;;  %v19_v50 = vld [vmem:[%s9447_s0 + $0x28] sm:$0xff] }
  0x2d   :  { %6485 = vmatpush3.bf16.msra.mxu1 %v7161_v51  ;;  %6464 = vmatprep.subr.bf16.mxu0 %v7162_v52  ;;  %v51_v51 = vld [vmem:[%s9447_s0 + $0x128] sm:$0xff]  ;;  %v5844_v52 = vcombine.low %v18_v48, %v50_v49 }
  0x2e   :  { %6486 = vmatprep.subr.bf16.mxu1 %v7163_v53  ;;  %v5845_v53 = vcombine.high %v18_v48, %v50_v49  ;;  %v7262_v48 = vld [vmem:[%s9446_s1 + $0x460] sm:$0xff]  }
  0x2f   :  { %v7263_v49 = vld [vmem:[%s9446_s1 + $0x4e0] sm:$0xff]  }
  0x30   :  { %6465 = vmatpush3.bf16.msra.mxu0 %v7164_v54  ;;  %v5846_v54 = vcombine.low %v19_v50, %v51_v51 }
  0x31   :  { %6487 = vmatpush3.bf16.msra.mxu1 %v7165_v55  ;;  %6466 = vmatprep.subr.bf16.mxu0 %v7166_v56  ;;  %v5847_v55 = vcombine.high %v19_v50, %v51_v51  ;;  %v7214_v56 = vld [vmem:[%s9446_s1 + $0x340] sm:$0xff]  }
  0x32   :  { %6488 = vmatprep.subr.bf16.mxu1 %v7167_v57  ;;  %v7215_v57 = vld [vmem:[%s9446_s1 + $0x3c0] sm:$0xff]  }
  0x33   :  { %v7264_v50 = vld [vmem:[%s9446_s1 + $0x420] sm:$0xff]  }
  0x34   :  { %6467 = vmatpush3.bf16.msra.mxu0 %v7168_v58  ;;  %v7216_v58 = vld [vmem:[%s9446_s1 + $0x300] sm:$0xff]  }
  0x35   :  { %6489 = vmatpush3.bf16.msra.mxu1 %v7169_v59  ;;  %6468 = vmatprep.subr.bf16.mxu0 %v7170_v60  ;;  %v7217_v59 = vld [vmem:[%s9446_s1 + $0x380] sm:$0xff]   ;;  %v7218_v60 = vld [vmem:[%s9446_s1 + $0x348] sm:$0xff]  }
  0x36   :  { %6490 = vmatprep.subr.bf16.mxu1 %v7171_v61  ;;  %v7219_v61 = vld [vmem:[%s9446_s1 + $0x3c8] sm:$0xff]   ;;  %v7265_v51 = vld [vmem:[%s9446_s1 + $0x4a0] sm:$0xff]  }
  0x38   :  { %6469 = vmatpush3.bf16.msra.mxu0 %v7172_v62  ;;  %v7220_v62 = vld [vmem:[%s9446_s1 + $0x308] sm:$0xff]  }
  0x39   :  { %6491 = vmatpush3.bf16.msra.mxu1 %v7173_v63  ;;  %6470 = vmatprep.subr.bf16.mxu0 %v7174_v0  ;;  %v7221_v63 = vld [vmem:[%s9446_s1 + $0x388] sm:$0xff]   ;;  %v7222_v0 = vld [vmem:[%s9446_s1 + $0x350] sm:$0xff]  }
  0x3a   :  { %6492 = vmatprep.subr.bf16.mxu1 %v7175_v1  ;;  %v7223_v1 = vld [vmem:[%s9446_s1 + $0x3d0] sm:$0xff]  }
  0x3c   :  { %6471 = vmatpush3.bf16.msra.mxu0 %v7176_v2  ;;  %v7224_v2 = vld [vmem:[%s9446_s1 + $0x310] sm:$0xff]  }
  0x3d   :  { %6493 = vmatpush3.bf16.msra.mxu1 %v7177_v3  ;;  %6472 = vmatprep.subr.bf16.mxu0 %v7178_v4  ;;  %v7225_v3 = vld [vmem:[%s9446_s1 + $0x390] sm:$0xff]   ;;  %v7226_v4 = vld [vmem:[%s9446_s1 + $0x358] sm:$0xff]  }
  0x3e   :  { %6494 = vmatprep.subr.bf16.mxu1 %v7179_v5  ;;  %v7227_v5 = vld [vmem:[%s9446_s1 + $0x3d8] sm:$0xff]  }
  0x40   :  { %6473 = vmatpush3.bf16.msra.mxu0 %v7180_v6  ;;  %v7228_v6 = vld [vmem:[%s9446_s1 + $0x318] sm:$0xff]  }
  0x41   :  { %6495 = vmatpush3.bf16.msra.mxu1 %v7181_v7  ;;  %6502 = vmatprep.subr.bf16.mxu0 %v7182_v16  ;;  %v7229_v7 = vld [vmem:[%s9446_s1 + $0x398] sm:$0xff]   ;;  %v7238_v16 = vld [vmem:[%s9446_s1 + $0x370] sm:$0xff]  }
  0x42   :  { %6524 = vmatprep.subr.bf16.mxu1 %v7183_v17  ;;  %v7239_v17 = vld [vmem:[%s9446_s1 + $0x3f0] sm:$0xff]  }
  0x43   :  { %4609 = vmatmul.mubr.bf16.vlgmr.msra.gmra.mrb[4].mxu0 %v5840_v10  ;;  %v7232_v10 = vld [vmem:[%s9446_s1 + $0x320] sm:$0xff]  }
  0x44   :  { %4650 = vmatmul.mubr.bf16.vlgmr.msra.gmra.mrb[4].mxu1 %v5842_v14  ;;  %6503 = vmatpush3.bf16.msra.mxu0 %v7184_v18  ;;  %v7236_v14 = vld [vmem:[%s9446_s1 + $0x328] sm:$0xff]   ;;  %v7240_v18 = vld [vmem:[%s9446_s1 + $0x330] sm:$0xff]  }
  0x45   :  { %6525 = vmatpush3.bf16.msra.mxu1 %v7185_v19  ;;  %6504 = vmatprep.subr.bf16.mxu0 %v7186_v20  ;;  %v7241_v19 = vld [vmem:[%s9446_s1 + $0x3b0] sm:$0xff]   ;;  %v7242_v20 = vld [vmem:[%s9446_s1 + $0x378] sm:$0xff]  }
  0x46   :  { %6526 = vmatprep.subr.bf16.mxu1 %v7187_v21  ;;  %4690 = vmatprep.mubr.bf16.mxu0 %v5845_v53  ;;  %v7243_v21 = vld [vmem:[%s9446_s1 + $0x3f8] sm:$0xff]   ;;  %v7267_v53 = vld [vmem:[%s9446_s1 + $0x4e8] sm:$0xff]  }
  0x47   :  { %4731 = vmatprep.mubr.bf16.mxu1 %v5847_v55  ;;  %v7269_v55 = vld [vmem:[%s9446_s1 + $0x4a8] sm:$0xff]  }
  0x48   :  { %6505 = vmatpush3.bf16.msra.mxu0 %v7188_v22  ;;  %v7244_v22 = vld [vmem:[%s9446_s1 + $0x338] sm:$0xff]  }
  0x49   :  { %6527 = vmatpush3.bf16.msra.mxu1 %v7189_v23  ;;  %6506 = vmatprep.subr.bf16.mxu0 %v7190_v24  ;;  %v7245_v23 = vld [vmem:[%s9446_s1 + $0x3b8] sm:$0xff]   ;;  %v20_v24 = vld [vmem:[%s9447_s0 + $0x30] sm:$0xff] }
  0x4a   :  { %6528 = vmatprep.subr.bf16.mxu1 %v7191_v25  ;;  %v52_v25 = vld [vmem:[%s9447_s0 + $0x130] sm:$0xff] }
  0x4c   :  { %6507 = vmatpush3.bf16.msra.mxu0 %v7192_v26  ;;  %v21_v26 = vld [vmem:[%s9447_s0 + $0x38] sm:$0xff] }
  0x4d   :  { %6529 = vmatpush3.bf16.msra.mxu1 %v7193_v27  ;;  %6508 = vmatprep.subr.bf16.mxu0 %v7194_v28  ;;  %v5848_v27 = vcombine.low %v20_v24, %v52_v25  ;;  %v5849_v28 = vcombine.high %v20_v24, %v52_v25  ;;  %v7294_v24 = vld [vmem:[%s9446_s1 + $0x560] sm:$0xff]  }
  0x4e   :  { %6530 = vmatprep.subr.bf16.mxu1 %v7195_v29  ;;  %v53_v29 = vld [vmem:[%s9447_s0 + $0x138] sm:$0xff]  ;;  %v7295_v25 = vld [vmem:[%s9446_s1 + $0x5e0] sm:$0xff]  }
  0x50   :  { %6509 = vmatpush3.bf16.msra.mxu0 %v7196_v30  ;;  %v5850_v30 = vcombine.low %v21_v26, %v53_v29 }
  0x51   :  { %6531 = vmatpush3.bf16.msra.mxu1 %v7197_v31  ;;  %6510 = vmatprep.subr.bf16.mxu0 %v7198_v32  ;;  %v5851_v31 = vcombine.high %v21_v26, %v53_v29  ;;  %v7246_v32 = vld [vmem:[%s9446_s1 + $0x440] sm:$0xff]   ;;  %v7299_v29 = vld [vmem:[%s9446_s1 + $0x5e8] sm:$0xff]  }
  0x52   :  { %6532 = vmatprep.subr.bf16.mxu1 %v7199_v33  ;;  %v7247_v33 = vld [vmem:[%s9446_s1 + $0x4c0] sm:$0xff]  }
  0x53   :  { %v7296_v26 = vld [vmem:[%s9446_s1 + $0x520] sm:$0xff]  }
  0x54   :  { %6511 = vmatpush3.bf16.msra.mxu0 %v7200_v34  ;;  %v7248_v34 = vld [vmem:[%s9446_s1 + $0x400] sm:$0xff]  }
  0x55   :  { %6533 = vmatpush3.bf16.msra.mxu1 %v7201_v35  ;;  %6512 = vmatprep.subr.bf16.mxu0 %v7202_v36  ;;  %v7249_v35 = vld [vmem:[%s9446_s1 + $0x480] sm:$0xff]   ;;  %v7250_v36 = vld [vmem:[%s9446_s1 + $0x448] sm:$0xff]  }
  0x56   :  { %6534 = vmatprep.subr.bf16.mxu1 %v7203_v37  ;;  %v7251_v37 = vld [vmem:[%s9446_s1 + $0x4c8] sm:$0xff]  }
  0x58   :  { %6513 = vmatpush3.bf16.msra.mxu0 %v7204_v38  ;;  %v7252_v38 = vld [vmem:[%s9446_s1 + $0x408] sm:$0xff]  }
  0x59   :  { %6535 = vmatpush3.bf16.msra.mxu1 %v7205_v39  ;;  %6514 = vmatprep.subr.bf16.mxu0 %v7206_v40  ;;  %v7253_v39 = vld [vmem:[%s9446_s1 + $0x488] sm:$0xff]   ;;  %v7254_v40 = vld [vmem:[%s9446_s1 + $0x450] sm:$0xff]  }
  0x5a   :  { %6536 = vmatprep.subr.bf16.mxu1 %v7207_v41  ;;  %v7255_v41 = vld [vmem:[%s9446_s1 + $0x4d0] sm:$0xff]  }
  0x5c   :  { %6515 = vmatpush3.bf16.msra.mxu0 %v7208_v42  ;;  %v7256_v42 = vld [vmem:[%s9446_s1 + $0x410] sm:$0xff]  }
  0x5d   :  { %6537 = vmatpush3.bf16.msra.mxu1 %v7209_v43  ;;  %6516 = vmatprep.subr.bf16.mxu0 %v7210_v44  ;;  %v7257_v43 = vld [vmem:[%s9446_s1 + $0x490] sm:$0xff]   ;;  %v7258_v44 = vld [vmem:[%s9446_s1 + $0x458] sm:$0xff]  }
  0x5e   :  { %6538 = vmatprep.subr.bf16.mxu1 %v7211_v45  ;;  %v7259_v45 = vld [vmem:[%s9446_s1 + $0x4d8] sm:$0xff]  }
  0x60   :  { %6517 = vmatpush3.bf16.msra.mxu0 %v7212_v46  ;;  %v7260_v46 = vld [vmem:[%s9446_s1 + $0x418] sm:$0xff]  }
  0x61   :  { %6539 = vmatpush3.bf16.msra.mxu1 %v7213_v47  ;;  %6546 = vmatprep.subr.bf16.mxu0 %v7214_v56  ;;  %v7261_v47 = vld [vmem:[%s9446_s1 + $0x498] sm:$0xff]   ;;  %v7270_v56 = vld [vmem:[%s9446_s1 + $0x470] sm:$0xff]  }
  0x62   :  { %6568 = vmatprep.subr.bf16.mxu1 %v7215_v57  ;;  %v7271_v57 = vld [vmem:[%s9446_s1 + $0x4f0] sm:$0xff]  }
  0x63   :  { %4691 = vmatmul.mubr.bf16.vlgmr.msra.gmra.mrb[8].mxu0 %v5844_v52  ;;  %v7266_v52 = vld [vmem:[%s9446_s1 + $0x468] sm:$0xff]  }
  0x64   :  { %4732 = vmatmul.mubr.bf16.vlgmr.msra.gmra.mrb[8].mxu1 %v5846_v54  ;;  %6547 = vmatpush3.bf16.msra.mxu0 %v7216_v58  ;;  %v7268_v54 = vld [vmem:[%s9446_s1 + $0x428] sm:$0xff]   ;;  %v7272_v58 = vld [vmem:[%s9446_s1 + $0x430] sm:$0xff]  }
  0x65   :  { %6569 = vmatpush3.bf16.msra.mxu1 %v7217_v59  ;;  %6548 = vmatprep.subr.bf16.mxu0 %v7218_v60  ;;  %v7273_v59 = vld [vmem:[%s9446_s1 + $0x4b0] sm:$0xff]   ;;  %v7274_v60 = vld [vmem:[%s9446_s1 + $0x478] sm:$0xff]  }
  0x66   :  { %6570 = vmatprep.subr.bf16.mxu1 %v7219_v61  ;;  %4772 = vmatprep.mubr.bf16.mxu0 %v5849_v28  ;;  %v7275_v61 = vld [vmem:[%s9446_s1 + $0x4f8] sm:$0xff]   ;;  %v7298_v28 = vld [vmem:[%s9446_s1 + $0x568] sm:$0xff]  }
  0x67   :  { %4813 = vmatprep.mubr.bf16.mxu1 %v5851_v31  ;;  %v7301_v31 = vld [vmem:[%s9446_s1 + $0x5a8] sm:$0xff]  }
  0x68   :  { %6549 = vmatpush3.bf16.msra.mxu0 %v7220_v62  ;;  %v7276_v62 = vld [vmem:[%s9446_s1 + $0x438] sm:$0xff]  }
  0x69   :  { %6571 = vmatpush3.bf16.msra.mxu1 %v7221_v63  ;;  %6550 = vmatprep.subr.bf16.mxu0 %v7222_v0  ;;  %v7277_v63 = vld [vmem:[%s9446_s1 + $0x4b8] sm:$0xff]   ;;  %v22_v0 = vld [vmem:[%s9447_s0 + $0x40] sm:$0xff] }
  0x6a   :  { %6572 = vmatprep.subr.bf16.mxu1 %v7223_v1  ;;  %v54_v1 = vld [vmem:[%s9447_s0 + $0x140] sm:$0xff] }
  0x6c   :  { %6551 = vmatpush3.bf16.msra.mxu0 %v7224_v2  ;;  %v5852_v2 = vcombine.low %v22_v0, %v54_v1 }
  0x6d   :  { %6573 = vmatpush3.bf16.msra.mxu1 %v7225_v3  ;;  %6552 = vmatprep.subr.bf16.mxu0 %v7226_v4  ;;  %v5853_v3 = vcombine.high %v22_v0, %v54_v1  ;;  %v23_v4 = vld [vmem:[%s9447_s0 + $0x48] sm:$0xff]  ;;  %v7326_v0 = vld [vmem:[%s9446_s1 + $0x660] sm:$0xff]  }
  0x6e   :  { %6574 = vmatprep.subr.bf16.mxu1 %v7227_v5  ;;  %v55_v5 = vld [vmem:[%s9447_s0 + $0x148] sm:$0xff]  ;;  %v7327_v1 = vld [vmem:[%s9446_s1 + $0x6e0] sm:$0xff]  }
  0x70   :  { %6553 = vmatpush3.bf16.msra.mxu0 %v7228_v6  ;;  %v5854_v6 = vcombine.low %v23_v4, %v55_v5 }
  0x71   :  { %6575 = vmatpush3.bf16.msra.mxu1 %v7229_v7  ;;  %6554 = vmatprep.subr.bf16.mxu0 %v7230_v8  ;;  %v5855_v7 = vcombine.high %v23_v4, %v55_v5  ;;  %v7278_v8 = vld [vmem:[%s9446_s1 + $0x540] sm:$0xff]   ;;  %v7330_v4 = vld [vmem:[%s9446_s1 + $0x668] sm:$0xff]  }
  0x72   :  { %6576 = vmatprep.subr.bf16.mxu1 %v7231_v9  ;;  %v7279_v9 = vld [vmem:[%s9446_s1 + $0x5c0] sm:$0xff]   ;;  %v7331_v5 = vld [vmem:[%s9446_s1 + $0x6e8] sm:$0xff]  }
  0x74   :  { %6555 = vmatpush3.bf16.msra.mxu0 %v7232_v10  ;;  %v7280_v10 = vld [vmem:[%s9446_s1 + $0x500] sm:$0xff]  }
  0x75   :  { %6577 = vmatpush3.bf16.msra.mxu1 %v7233_v11  ;;  %6556 = vmatprep.subr.bf16.mxu0 %v7234_v12  ;;  %v7281_v11 = vld [vmem:[%s9446_s1 + $0x580] sm:$0xff]   ;;  %v7282_v12 = vld [vmem:[%s9446_s1 + $0x548] sm:$0xff]  }
  0x76   :  { %6578 = vmatprep.subr.bf16.mxu1 %v7235_v13  ;;  %v7283_v13 = vld [vmem:[%s9446_s1 + $0x5c8] sm:$0xff]  }
  0x78   :  { %6557 = vmatpush3.bf16.msra.mxu0 %v7236_v14  ;;  %v7284_v14 = vld [vmem:[%s9446_s1 + $0x508] sm:$0xff]  }
  0x79   :  { %6579 = vmatpush3.bf16.msra.mxu1 %v7237_v15  ;;  %6558 = vmatprep.subr.bf16.mxu0 %v7238_v16  ;;  %v7285_v15 = vld [vmem:[%s9446_s1 + $0x588] sm:$0xff]   ;;  %v7286_v16 = vld [vmem:[%s9446_s1 + $0x550] sm:$0xff]  }
  0x7a   :  { %6580 = vmatprep.subr.bf16.mxu1 %v7239_v17  ;;  %v7287_v17 = vld [vmem:[%s9446_s1 + $0x5d0] sm:$0xff]  }
  0x7c   :  { %6559 = vmatpush3.bf16.msra.mxu0 %v7240_v18  ;;  %v7288_v18 = vld [vmem:[%s9446_s1 + $0x510] sm:$0xff]  }
  0x7d   :  { %6581 = vmatpush3.bf16.msra.mxu1 %v7241_v19  ;;  %6560 = vmatprep.subr.bf16.mxu0 %v7242_v20  ;;  %v7289_v19 = vld [vmem:[%s9446_s1 + $0x590] sm:$0xff]   ;;  %v7290_v20 = vld [vmem:[%s9446_s1 + $0x558] sm:$0xff]  }
  0x7e   :  { %6582 = vmatprep.subr.bf16.mxu1 %v7243_v21  ;;  %v7291_v21 = vld [vmem:[%s9446_s1 + $0x5d8] sm:$0xff]  }
  0x80   :  { %6561 = vmatpush3.bf16.msra.mxu0 %v7244_v22  ;;  %v7292_v22 = vld [vmem:[%s9446_s1 + $0x518] sm:$0xff]  }
  0x81   :  { %6583 = vmatpush3.bf16.msra.mxu1 %v7245_v23  ;;  %6590 = vmatprep.subr.bf16.mxu0 %v7246_v32  ;;  %v7293_v23 = vld [vmem:[%s9446_s1 + $0x598] sm:$0xff]   ;;  %v7302_v32 = vld [vmem:[%s9446_s1 + $0x570] sm:$0xff]  }
  0x82   :  { %6612 = vmatprep.subr.bf16.mxu1 %v7247_v33  ;;  %v7303_v33 = vld [vmem:[%s9446_s1 + $0x5f0] sm:$0xff]  }
  0x83   :  { %4773 = vmatmul.mubr.bf16.vlgmr.msra.gmra.mrb[12].mxu0 %v5848_v27  ;;  %v7297_v27 = vld [vmem:[%s9446_s1 + $0x5a0] sm:$0xff]  }
  0x84   :  { %4814 = vmatmul.mubr.bf16.vlgmr.msra.gmra.mrb[12].mxu1 %v5850_v30  ;;  %6591 = vmatpush3.bf16.msra.mxu0 %v7248_v34  ;;  %v7300_v30 = vld [vmem:[%s9446_s1 + $0x528] sm:$0xff]   ;;  %v7304_v34 = vld [vmem:[%s9446_s1 + $0x530] sm:$0xff]  }
  0x85   :  { %6613 = vmatpush3.bf16.msra.mxu1 %v7249_v35  ;;  %6592 = vmatprep.subr.bf16.mxu0 %v7250_v36  ;;  %v7305_v35 = vld [vmem:[%s9446_s1 + $0x5b0] sm:$0xff]   ;;  %v7306_v36 = vld [vmem:[%s9446_s1 + $0x578] sm:$0xff]  }
  0x86   :  { %6614 = vmatprep.subr.bf16.mxu1 %v7251_v37  ;;  %4854 = vmatprep.mubr.bf16.mxu0 %v5853_v3  ;;  %v7307_v37 = vld [vmem:[%s9446_s1 + $0x5f8] sm:$0xff]   ;;  %v7329_v3 = vld [vmem:[%s9446_s1 + $0x6a0] sm:$0xff]  }
  0x87   :  { %4895 = vmatprep.mubr.bf16.mxu1 %v5855_v7  ;;  %v7333_v7 = vld [vmem:[%s9446_s1 + $0x6a8] sm:$0xff]  }
  0x88   :  { %6593 = vmatpush3.bf16.msra.mxu0 %v7252_v38  ;;  %v7308_v38 = vld [vmem:[%s9446_s1 + $0x538] sm:$0xff]  }
  0x89   :  { %6615 = vmatpush3.bf16.msra.mxu1 %v7253_v39  ;;  %6594 = vmatprep.subr.bf16.mxu0 %v7254_v40  ;;  %v7309_v39 = vld [vmem:[%s9446_s1 + $0x5b8] sm:$0xff]   ;;  %v24_v40 = vld [vmem:[%s9447_s0 + $0x50] sm:$0xff] }
  0x8a   :  { %6616 = vmatprep.subr.bf16.mxu1 %v7255_v41  ;;  %v56_v41 = vld [vmem:[%s9447_s0 + $0x150] sm:$0xff] }
  0x8c   :  { %6595 = vmatpush3.bf16.msra.mxu0 %v7256_v42  ;;  %v25_v42 = vld [vmem:[%s9447_s0 + $0x58] sm:$0xff] }
  0x8d   :  { %6617 = vmatpush3.bf16.msra.mxu1 %v7257_v43  ;;  %6596 = vmatprep.subr.bf16.mxu0 %v7258_v44  ;;  %v57_v43 = vld [vmem:[%s9447_s0 + $0x158] sm:$0xff]  ;;  %v5856_v44 = vcombine.low %v24_v40, %v56_v41 }
  0x8e   :  { %6618 = vmatprep.subr.bf16.mxu1 %v7259_v45  ;;  %v5857_v45 = vcombine.high %v24_v40, %v56_v41  ;;  %v7357_v41 = vld [vmem:[%s9446_s1 + $0x798] sm:$0xff]  }
  0x90   :  { %6597 = vmatpush3.bf16.msra.mxu0 %v7260_v46  ;;  %v5858_v46 = vcombine.low %v25_v42, %v57_v43 }
  0x91   :  { %6619 = vmatpush3.bf16.msra.mxu1 %v7261_v47  ;;  %6598 = vmatprep.subr.bf16.mxu0 %v7262_v48  ;;  %v5859_v47 = vcombine.high %v25_v42, %v57_v43  ;;  %v7310_v48 = vld [vmem:[%s9446_s1 + $0x640] sm:$0xff]  }
  0x92   :  { %6620 = vmatprep.subr.bf16.mxu1 %v7263_v49  ;;  %v7311_v49 = vld [vmem:[%s9446_s1 + $0x6c0] sm:$0xff]  }
  0x93   :  { %v7358_v43 = vld [vmem:[%s9446_s1 + $0x760] sm:$0xff]  }
  0x94   :  { %6599 = vmatpush3.bf16.msra.mxu0 %v7264_v50  ;;  %v7312_v50 = vld [vmem:[%s9446_s1 + $0x600] sm:$0xff]  }
  0x95   :  { %6621 = vmatpush3.bf16.msra.mxu1 %v7265_v51  ;;  %6600 = vmatprep.subr.bf16.mxu0 %v7266_v52  ;;  %v7313_v51 = vld [vmem:[%s9446_s1 + $0x680] sm:$0xff]   ;;  %v7314_v52 = vld [vmem:[%s9446_s1 + $0x648] sm:$0xff]  }
  0x96   :  { %6622 = vmatprep.subr.bf16.mxu1 %v7267_v53  ;;  %v7315_v53 = vld [vmem:[%s9446_s1 + $0x6c8] sm:$0xff]  }
  0x98   :  { %6601 = vmatpush3.bf16.msra.mxu0 %v7268_v54  ;;  %v7316_v54 = vld [vmem:[%s9446_s1 + $0x608] sm:$0xff]  }
  0x99   :  { %6623 = vmatpush3.bf16.msra.mxu1 %v7269_v55  ;;  %6602 = vmatprep.subr.bf16.mxu0 %v7270_v56  ;;  %v7317_v55 = vld [vmem:[%s9446_s1 + $0x688] sm:$0xff]   ;;  %v7318_v56 = vld [vmem:[%s9446_s1 + $0x650] sm:$0xff]  }
  0x9a   :  { %6624 = vmatprep.subr.bf16.mxu1 %v7271_v57  ;;  %v7319_v57 = vld [vmem:[%s9446_s1 + $0x6d0] sm:$0xff]  }
  0x9c   :  { %6603 = vmatpush3.bf16.msra.mxu0 %v7272_v58  ;;  %v7320_v58 = vld [vmem:[%s9446_s1 + $0x610] sm:$0xff]  }
  0x9d   :  { %6625 = vmatpush3.bf16.msra.mxu1 %v7273_v59  ;;  %6604 = vmatprep.subr.bf16.mxu0 %v7274_v60  ;;  %v7321_v59 = vld [vmem:[%s9446_s1 + $0x690] sm:$0xff]   ;;  %v7322_v60 = vld [vmem:[%s9446_s1 + $0x658] sm:$0xff]  }
  0x9e   :  { %6626 = vmatprep.subr.bf16.mxu1 %v7275_v61  ;;  %v7323_v61 = vld [vmem:[%s9446_s1 + $0x6d8] sm:$0xff]  }
  0xa0   :  { %6605 = vmatpush3.bf16.msra.mxu0 %v7276_v62  ;;  %v7324_v62 = vld [vmem:[%s9446_s1 + $0x618] sm:$0xff]  }
  0xa1   :  { %6627 = vmatpush3.bf16.msra.mxu1 %v7277_v63  ;;  %6634 = vmatprep.subr.bf16.mxu0 %v7278_v8  ;;  %v7325_v63 = vld [vmem:[%s9446_s1 + $0x698] sm:$0xff]   ;;  %v7334_v8 = vld [vmem:[%s9446_s1 + $0x670] sm:$0xff]  }
  0xa2   :  { %6656 = vmatprep.subr.bf16.mxu1 %v7279_v9  ;;  %v7335_v9 = vld [vmem:[%s9446_s1 + $0x6f0] sm:$0xff]  }
  0xa3   :  { %4855 = vmatmul.mubr.bf16.vlgmr.msra.gmra.mrb[16].mxu0 %v5852_v2  ;;  %v7328_v2 = vld [vmem:[%s9446_s1 + $0x620] sm:$0xff]  }
  0xa4   :  { %4896 = vmatmul.mubr.bf16.vlgmr.msra.gmra.mrb[16].mxu1 %v5854_v6  ;;  %6635 = vmatpush3.bf16.msra.mxu0 %v7280_v10  ;;  %v7332_v6 = vld [vmem:[%s9446_s1 + $0x628] sm:$0xff]   ;;  %v7336_v10 = vld [vmem:[%s9446_s1 + $0x630] sm:$0xff]  }
  0xa5   :  { %6657 = vmatpush3.bf16.msra.mxu1 %v7281_v11  ;;  %6636 = vmatprep.subr.bf16.mxu0 %v7282_v12  ;;  %v7337_v11 = vld [vmem:[%s9446_s1 + $0x6b0] sm:$0xff]   ;;  %v7338_v12 = vld [vmem:[%s9446_s1 + $0x678] sm:$0xff]  }
  0xa6   :  { %6658 = vmatprep.subr.bf16.mxu1 %v7283_v13  ;;  %4936 = vmatprep.mubr.bf16.mxu0 %v5857_v45  ;;  %v7339_v13 = vld [vmem:[%s9446_s1 + $0x6f8] sm:$0xff]  }
  0xa7   :  { %4977 = vmatprep.mubr.bf16.mxu1 %v5859_v47 }
  0xa8   :  { %6637 = vmatpush3.bf16.msra.mxu0 %v7284_v14  ;;  %v7340_v14 = vld [vmem:[%s9446_s1 + $0x638] sm:$0xff]  }
  0xa9   :  { %6659 = vmatpush3.bf16.msra.mxu1 %v7285_v15  ;;  %6638 = vmatprep.subr.bf16.mxu0 %v7286_v16  ;;  %v7341_v15 = vld [vmem:[%s9446_s1 + $0x6b8] sm:$0xff]   ;;  %v26_v16 = vld [vmem:[%s9447_s0 + $0x60] sm:$0xff] }
  0xaa   :  { %6660 = vmatprep.subr.bf16.mxu1 %v7287_v17  ;;  %v58_v17 = vld [vmem:[%s9447_s0 + $0x160] sm:$0xff] }
  0xac   :  { %6639 = vmatpush3.bf16.msra.mxu0 %v7288_v18  ;;  %v27_v18 = vld [vmem:[%s9447_s0 + $0x68] sm:$0xff] }
  0xad   :  { %6661 = vmatpush3.bf16.msra.mxu1 %v7289_v19  ;;  %6640 = vmatprep.subr.bf16.mxu0 %v7290_v20  ;;  %v5860_v19 = vcombine.low %v26_v16, %v58_v17  ;;  %v5861_v20 = vcombine.high %v26_v16, %v58_v17  ;;  %v7376_v16 = vld [vmem:[%s9446_s1 + $0x800] sm:$0xff]  }
  0xae   :  { %6662 = vmatprep.subr.bf16.mxu1 %v7291_v21  ;;  %v59_v21 = vld [vmem:[%s9447_s0 + $0x168] sm:$0xff]  ;;  %v7377_v17 = vld [vmem:[%s9446_s1 + $0x880] sm:$0xff]  }
  0xb0   :  { %6641 = vmatpush3.bf16.msra.mxu0 %v7292_v22  ;;  %v5862_v22 = vcombine.low %v27_v18, %v59_v21 }
  0xb1   :  { %6663 = vmatpush3.bf16.msra.mxu1 %v7293_v23  ;;  %6642 = vmatprep.subr.bf16.mxu0 %v7294_v24  ;;  %v5863_v23 = vcombine.high %v27_v18, %v59_v21  ;;  %v7342_v24 = vld [vmem:[%s9446_s1 + $0x740] sm:$0xff]   ;;  %v7378_v18 = vld [vmem:[%s9446_s1 + $0x848] sm:$0xff]  }
  0xb2   :  { %6664 = vmatprep.subr.bf16.mxu1 %v7295_v25  ;;  %v7343_v25 = vld [vmem:[%s9446_s1 + $0x7c0] sm:$0xff]   ;;  %v7381_v21 = vld [vmem:[%s9446_s1 + $0x888] sm:$0xff]  }
  0xb4   :  { %6643 = vmatpush3.bf16.msra.mxu0 %v7296_v26  ;;  %v7344_v26 = vld [vmem:[%s9446_s1 + $0x700] sm:$0xff]  }
  0xb5   :  { %6665 = vmatpush3.bf16.msra.mxu1 %v7297_v27  ;;  %6644 = vmatprep.subr.bf16.mxu0 %v7298_v28  ;;  %v7345_v27 = vld [vmem:[%s9446_s1 + $0x780] sm:$0xff]   ;;  %v7346_v28 = vld [vmem:[%s9446_s1 + $0x748] sm:$0xff]  }
  0xb6   :  { %6666 = vmatprep.subr.bf16.mxu1 %v7299_v29  ;;  %v7347_v29 = vld [vmem:[%s9446_s1 + $0x7c8] sm:$0xff]  }
  0xb8   :  { %6645 = vmatpush3.bf16.msra.mxu0 %v7300_v30  ;;  %v7348_v30 = vld [vmem:[%s9446_s1 + $0x708] sm:$0xff]  }
  0xb9   :  { %6667 = vmatpush3.bf16.msra.mxu1 %v7301_v31  ;;  %6646 = vmatprep.subr.bf16.mxu0 %v7302_v32  ;;  %v7349_v31 = vld [vmem:[%s9446_s1 + $0x788] sm:$0xff]   ;;  %v7350_v32 = vld [vmem:[%s9446_s1 + $0x750] sm:$0xff]  }
  0xba   :  { %6668 = vmatprep.subr.bf16.mxu1 %v7303_v33  ;;  %v7351_v33 = vld [vmem:[%s9446_s1 + $0x7d0] sm:$0xff]  }
  0xbc   :  { %6647 = vmatpush3.bf16.msra.mxu0 %v7304_v34  ;;  %v7352_v34 = vld [vmem:[%s9446_s1 + $0x710] sm:$0xff]  }
  0xbd   :  { %6669 = vmatpush3.bf16.msra.mxu1 %v7305_v35  ;;  %6648 = vmatprep.subr.bf16.mxu0 %v7306_v36  ;;  %v7353_v35 = vld [vmem:[%s9446_s1 + $0x790] sm:$0xff]   ;;  %v7354_v36 = vld [vmem:[%s9446_s1 + $0x758] sm:$0xff]  }
  0xbe   :  { %6670 = vmatprep.subr.bf16.mxu1 %v7307_v37  ;;  %v7355_v37 = vld [vmem:[%s9446_s1 + $0x7d8] sm:$0xff]  }
  0xc0   :  { %6649 = vmatpush3.bf16.msra.mxu0 %v7308_v38 }
  0xc1   :  { %6671 = vmatpush3.bf16.msra.mxu1 %v7309_v39  ;;  %6678 = vmatprep.subr.bf16.mxu0 %v7310_v48  ;;  %v7356_v39 = vld [vmem:[%s9446_s1 + $0x718] sm:$0xff]  }
  0xc2   :  { %6700 = vmatprep.subr.bf16.mxu1 %v7311_v49  ;;  %v7360_v49 = vld [vmem:[%s9446_s1 + $0x720] sm:$0xff]  }
  0xc3   :  { %4937 = vmatmul.mubr.bf16.vlgmr.msra.gmra.mrb[20].mxu0 %v5856_v44 }
  0xc4   :  { %4978 = vmatmul.mubr.bf16.vlgmr.msra.gmra.mrb[20].mxu1 %v5858_v46  ;;  %6679 = vmatpush3.bf16.msra.mxu0 %v7312_v50  ;;  %v7359_v46 = vld [vmem:[%s9446_s1 + $0x7e0] sm:$0xff]  }
  0xc5   :  { %6701 = vmatpush3.bf16.msra.mxu1 %v7313_v51  ;;  %6680 = vmatprep.subr.bf16.mxu0 %v7314_v52  ;;  %v7361_v51 = vld [vmem:[%s9446_s1 + $0x7a0] sm:$0xff]  }
  0xc6   :  { %6702 = vmatprep.subr.bf16.mxu1 %v7315_v53  ;;  %5018 = vmatprep.mubr.bf16.mxu0 %v5861_v20  ;;  %v7380_v20 = vld [vmem:[%s9446_s1 + $0x808] sm:$0xff]  }
  0xc7   :  { %5059 = vmatprep.mubr.bf16.mxu1 %v5863_v23  ;;  %v7383_v23 = vld [vmem:[%s9446_s1 + $0x8d0] sm:$0xff]  }
  0xc8   :  { %6681 = vmatpush3.bf16.msra.mxu0 %v7316_v54  ;;  %v7362_v54 = vld [vmem:[%s9446_s1 + $0x768] sm:$0xff]  }
  0xc9   :  { %6703 = vmatpush3.bf16.msra.mxu1 %v7317_v55  ;;  %6682 = vmatprep.subr.bf16.mxu0 %v7318_v56 }
  0xca   :  { %6704 = vmatprep.subr.bf16.mxu1 %v7319_v57  ;;  %v7363_v57 = vld [vmem:[%s9446_s1 + $0x7e8] sm:$0xff]  }
  0xcc   :  { %6683 = vmatpush3.bf16.msra.mxu0 %v7320_v58 }
  0xcd   :  { %6705 = vmatpush3.bf16.msra.mxu1 %v7321_v59  ;;  %6684 = vmatprep.subr.bf16.mxu0 %v7322_v60  ;;  %v7364_v59 = vld [vmem:[%s9446_s1 + $0x728] sm:$0xff]  }
  0xce   :  { %6706 = vmatprep.subr.bf16.mxu1 %v7323_v61  ;;  %v7365_v60 = vld [vmem:[%s9446_s1 + $0x7a8] sm:$0xff]  }
  0xd0   :  { %6685 = vmatpush3.bf16.msra.mxu0 %v7324_v62  ;;  %v7366_v62 = vld [vmem:[%s9446_s1 + $0x770] sm:$0xff]  }
  0xd1   :  { %6707 = vmatpush3.bf16.msra.mxu1 %v7325_v63  ;;  %6686 = vmatprep.subr.bf16.mxu0 %v7326_v0  ;;  %v7367_v63 = vld [vmem:[%s9446_s1 + $0x7f0] sm:$0xff]  }
  0xd2   :  { %6708 = vmatprep.subr.bf16.mxu1 %v7327_v1  ;;  %v7368_v0 = vld [vmem:[%s9446_s1 + $0x730] sm:$0xff]  }
  0xd3   :  { %v7369_v1 = vld [vmem:[%s9446_s1 + $0x7b0] sm:$0xff]  }
  0xd4   :  { %6687 = vmatpush3.bf16.msra.mxu0 %v7328_v2  ;;  %v7370_v2 = vld [vmem:[%s9446_s1 + $0x778] sm:$0xff]  }
  0xd5   :  { %6709 = vmatpush3.bf16.msra.mxu1 %v7329_v3  ;;  %6688 = vmatprep.subr.bf16.mxu0 %v7330_v4  ;;  %v7371_v3 = vld [vmem:[%s9446_s1 + $0x7f8] sm:$0xff]  }
  0xd6   :  { %6710 = vmatprep.subr.bf16.mxu1 %v7331_v5  ;;  %v7372_v4 = vld [vmem:[%s9446_s1 + $0x738] sm:$0xff]  }
  0xd7   :  { %v7373_v5 = vld [vmem:[%s9446_s1 + $0x7b8] sm:$0xff]  }
  0xd8   :  { %6689 = vmatpush3.bf16.msra.mxu0 %v7332_v6  ;;  %v28_v6 = vld [vmem:[%s9447_s0 + $0x70] sm:$0xff] }
  0xd9   :  { %6711 = vmatpush3.bf16.msra.mxu1 %v7333_v7  ;;  %6690 = vmatprep.subr.bf16.mxu0 %v7334_v8  ;;  %v60_v7 = vld [vmem:[%s9447_s0 + $0x170] sm:$0xff] }
  0xda   :  { %6712 = vmatprep.subr.bf16.mxu1 %v7335_v9  ;;  %v5864_v8 = vcombine.low %v28_v6, %v60_v7  ;;  %v5865_v9 = vcombine.high %v28_v6, %v60_v7  ;;  %v7406_v6 = vld [vmem:[%s9446_s1 + $0x940] sm:$0xff]  }
  0xdb   :  { %v7407_v7 = vld [vmem:[%s9446_s1 + $0x9c0] sm:$0xff]  }
  0xdc   :  { %6691 = vmatpush3.bf16.msra.mxu0 %v7336_v10  ;;  %v29_v10 = vld [vmem:[%s9447_s0 + $0x78] sm:$0xff] }
  0xdd   :  { %6713 = vmatpush3.bf16.msra.mxu1 %v7337_v11  ;;  %6692 = vmatprep.subr.bf16.mxu0 %v7338_v12  ;;  %v61_v11 = vld [vmem:[%s9447_s0 + $0x178] sm:$0xff] }
  0xde   :  { %6714 = vmatprep.subr.bf16.mxu1 %v7339_v13  ;;  %v5866_v12 = vcombine.low %v29_v10, %v61_v11  ;;  %v5867_v13 = vcombine.high %v29_v10, %v61_v11  ;;  %v7410_v10 = vld [vmem:[%s9446_s1 + $0x948] sm:$0xff]  }
  0xdf   :  { %v7411_v11 = vld [vmem:[%s9446_s1 + $0x9c8] sm:$0xff]  }
  0xe0   :  { %6693 = vmatpush3.bf16.msra.mxu0 %v7340_v14  ;;  %v7374_v14 = vld [vmem:[%s9446_s1 + $0x840] sm:$0xff]  }
  0xe1   :  { %6715 = vmatpush3.bf16.msra.mxu1 %v7341_v15  ;;  %6722 = vmatprep.subr.bf16.mxu0 %v7342_v24  ;;  %v7375_v15 = vld [vmem:[%s9446_s1 + $0x8c0] sm:$0xff]   ;;  %v7384_v24 = vld [vmem:[%s9446_s1 + $0x810] sm:$0xff]  }
  0xe2   :  { %6744 = vmatprep.subr.bf16.mxu1 %v7343_v25  ;;  %v7385_v25 = vld [vmem:[%s9446_s1 + $0x890] sm:$0xff]  }
  0xe3   :  { %5019 = vmatmul.mubr.bf16.vlgmr.msra.gmra.mrb[24].mxu0 %v5860_v19  ;;  %v7379_v19 = vld [vmem:[%s9446_s1 + $0x8c8] sm:$0xff]  }
  0xe4   :  { %5060 = vmatmul.mubr.bf16.vlgmr.msra.gmra.mrb[24].mxu1 %v5862_v22  ;;  %6723 = vmatpush3.bf16.msra.mxu0 %v7344_v26  ;;  %v7382_v22 = vld [vmem:[%s9446_s1 + $0x850] sm:$0xff]   ;;  %v7386_v26 = vld [vmem:[%s9446_s1 + $0x858] sm:$0xff]  }
  0xe5   :  { %6745 = vmatpush3.bf16.msra.mxu1 %v7345_v27  ;;  %6724 = vmatprep.subr.bf16.mxu0 %v7346_v28  ;;  %v7387_v27 = vld [vmem:[%s9446_s1 + $0x8d8] sm:$0xff]  }
  0xe6   :  { %6746 = vmatprep.subr.bf16.mxu1 %v7347_v29  ;;  %5100 = vmatprep.mubr.bf16.mxu0 %v5865_v9  ;;  %v7388_v29 = vld [vmem:[%s9446_s1 + $0x818] sm:$0xff]   ;;  %v7409_v9 = vld [vmem:[%s9446_s1 + $0x980] sm:$0xff]  }
  0xe7   :  { %5141 = vmatprep.mubr.bf16.mxu1 %v5867_v13  ;;  %v7413_v13 = vld [vmem:[%s9446_s1 + $0x988] sm:$0xff]  }
  0xe8   :  { %6725 = vmatpush3.bf16.msra.mxu0 %v7348_v30 }
  0xe9   :  { %6747 = vmatpush3.bf16.msra.mxu1 %v7349_v31  ;;  %6726 = vmatprep.subr.bf16.mxu0 %v7350_v32  ;;  %v7389_v31 = vld [vmem:[%s9446_s1 + $0x898] sm:$0xff]  }
  0xea   :  { %6748 = vmatprep.subr.bf16.mxu1 %v7351_v33  ;;  %v7390_v33 = vld [vmem:[%s9446_s1 + $0x860] sm:$0xff]  }
  0xec   :  { %6727 = vmatpush3.bf16.msra.mxu0 %v7352_v34 }
  0xed   :  { %6749 = vmatpush3.bf16.msra.mxu1 %v7353_v35  ;;  %6728 = vmatprep.subr.bf16.mxu0 %v7354_v36  ;;  %v7391_v36 = vld [vmem:[%s9446_s1 + $0x8e0] sm:$0xff]  }
  0xee   :  { %6750 = vmatprep.subr.bf16.mxu1 %v7355_v37 }
  0xf0   :  { %6729 = vmatpush3.bf16.msra.mxu0 %v7356_v39  ;;  %v7392_v39 = vld [vmem:[%s9446_s1 + $0x820] sm:$0xff]  }
  0xf1   :  { %6751 = vmatpush3.bf16.msra.mxu1 %v7357_v41  ;;  %6730 = vmatprep.subr.bf16.mxu0 %v7358_v43 }
  0xf2   :  { %6752 = vmatprep.subr.bf16.mxu1 %v7359_v46 }
  0xf4   :  { %6731 = vmatpush3.bf16.msra.mxu0 %v7360_v49 }
  0xf5   :  { %6753 = vmatpush3.bf16.msra.mxu1 %v7361_v51  ;;  %6732 = vmatprep.subr.bf16.mxu0 %v7362_v54  ;;  %v7398_v54 = vld [vmem:[%s9446_s1 + $0x870] sm:$0xff]  }
  0xf6   :  { %v6430_v38 = vpop.f32.mrb[0].mxu0  ;;  %6754 = vmatprep.subr.bf16.mxu1 %v7363_v57  ;;  %v7401_v57 = vld [vmem:[%s9446_s1 + $0x8b0] sm:$0xff]  }
  0xf7   :  { %v6452_v40 = vpop.f32.mrb[0].mxu1  ;;  %v6431_v42 = vpop.f32.mrb[1].mxu0 }
  0xf8   :  { %v6432_v44 = vadd.f32 %v6431_v42, %v6430_v38  ;;  %v6453_v45 = vpop.f32.mrb[1].mxu1  ;;  %v6433_v48 = vpop.f32.mrb[2].mxu0  ;;  %6733 = vmatpush3.bf16.msra.mxu0 %v7364_v59  ;;  %v7393_v42 = vld [vmem:[%s9446_s1 + $0x8a0] sm:$0xff]   ;;  %v7403_v59 = vld [vmem:[%s9446_s1 + $0x8f8] sm:$0xff]  }
  0xf9   :  { %v6454_v47 = vadd.f32 %v6453_v45, %v6452_v40  ;;  %v6455_v50 = vpop.f32.mrb[2].mxu1  ;;  %v6434_v53 = vpop.f32.mrb[3].mxu0  ;;  %6755 = vmatpush3.bf16.msra.mxu1 %v7365_v60  ;;  %6734 = vmatprep.subr.bf16.mxu0 %v7366_v62  ;;  %v7394_v45 = vld [vmem:[%s9446_s1 + $0x868] sm:$0xff]   ;;  %v7404_v60 = vld [vmem:[%s9446_s1 + $0x838] sm:$0xff]   ;;  %v30_v62 = vld [vmem:[%s9447_s0 + $0x80] sm:$0xff] }
  0xfa   :  { %v6435_v55 = vadd.f32 %v6434_v53, %v6433_v48  ;;  %v6456_v56 = vpop.f32.mrb[3].mxu1  ;;  %6756 = vmatprep.subr.bf16.mxu1 %v7367_v63  ;;  %v7395_v48 = vld [vmem:[%s9446_s1 + $0x8e8] sm:$0xff]   ;;  %v62_v63 = vld [vmem:[%s9447_s0 + $0x180] sm:$0xff] }
  0xfb   :  { %v8474_v52 = vadd.f32 %v6454_v47, %v6432_v44  ;;  %v6457_v58 = vadd.f32 %v6456_v56, %v6455_v50  ;;  %v7396_v50 = vld [vmem:[%s9446_s1 + $0x828] sm:$0xff]   ;;  %v7400_v56 = vld [vmem:[%s9446_s1 + $0x830] sm:$0xff]  }
  0xfc   :  { %6735 = vmatpush3.bf16.msra.mxu0 %v7368_v0  ;;  %v31_v0 = vld [vmem:[%s9447_s0 + $0x88] sm:$0xff] }
  0xfd   :  { %v8488_v61 = vadd.f32 %v6457_v58, %v6435_v55  ;;  %6757 = vmatpush3.bf16.msra.mxu1 %v7369_v1  ;;  %6736 = vmatprep.subr.bf16.mxu0 %v7370_v2  ;;  %v7399_v55 = vld [vmem:[%s9446_s1 + $0x8f0] sm:$0xff]   ;;  %v7402_v58 = vld [vmem:[%s9446_s1 + $0x878] sm:$0xff]   ;;  %v63_v1 = vld [vmem:[%s9447_s0 + $0x188] sm:$0xff]  ;;  %v5868_v2 = vcombine.low %v30_v62, %v62_v63 }
  0xfe   :  { %6758 = vmatprep.subr.bf16.mxu1 %v7371_v3  ;;  %v5869_v3 = vcombine.high %v30_v62, %v62_v63  ;;  %v7438_v62 = vld [vmem:[%s9446_s1 + $0xa40] sm:$0xff]  }
  0xff   :  { %v7439_v63 = vld [vmem:[%s9446_s1 + $0xac0] sm:$0xff]  }
 0x100   :  { %6737 = vmatpush3.bf16.msra.mxu0 %v7372_v4  ;;  %v5870_v4 = vcombine.low %v31_v0, %v63_v1 }
 0x101   :  { %6759 = vmatpush3.bf16.msra.mxu1 %v7373_v5  ;;  %6766 = vmatprep.subr.bf16.mxu0 %v7374_v14  ;;  %v5871_v5 = vcombine.high %v31_v0, %v63_v1  ;;  %v7414_v14 = vld [vmem:[%s9446_s1 + $0x950] sm:$0xff]   ;;  %v7440_v0 = vld [vmem:[%s9446_s1 + $0xa00] sm:$0xff]  }
 0x102   :  { %6788 = vmatprep.subr.bf16.mxu1 %v7375_v15  ;;  %v7415_v15 = vld [vmem:[%s9446_s1 + $0x9d0] sm:$0xff]   ;;  %v7441_v1 = vld [vmem:[%s9446_s1 + $0xa80] sm:$0xff]  }
 0x103   :  { %5101 = vmatmul.mubr.bf16.vlgmr.msra.gmra.mrb[28].mxu0 %v5864_v8  ;;  %v7408_v8 = vld [vmem:[%s9446_s1 + $0x900] sm:$0xff]  }
 0x104   :  { %5142 = vmatmul.mubr.bf16.vlgmr.msra.gmra.mrb[28].mxu1 %v5866_v12  ;;  %6767 = vmatpush3.bf16.msra.mxu0 %v7376_v16  ;;  %v7412_v12 = vld [vmem:[%s9446_s1 + $0x908] sm:$0xff]   ;;  %v7416_v16 = vld [vmem:[%s9446_s1 + $0x910] sm:$0xff]  }
 0x105   :  { %6789 = vmatpush3.bf16.msra.mxu1 %v7377_v17  ;;  %6768 = vmatprep.subr.bf16.mxu0 %v7378_v18  ;;  %v7417_v17 = vld [vmem:[%s9446_s1 + $0x990] sm:$0xff]   ;;  %v7418_v18 = vld [vmem:[%s9446_s1 + $0x958] sm:$0xff]  }
 0x106   :  { %6790 = vmatprep.subr.bf16.mxu1 %v7379_v19  ;;  %5182 = vmatprep.mubr.bf16.mxu0 %v5869_v3  ;;  %v7419_v19 = vld [vmem:[%s9446_s1 + $0x9d8] sm:$0xff]   ;;  %v7443_v3 = vld [vmem:[%s9446_s1 + $0xac8] sm:$0xff]  }
 0x107   :  { %5223 = vmatprep.mubr.bf16.mxu1 %v5871_v5  ;;  %v7445_v5 = vld [vmem:[%s9446_s1 + $0xa88] sm:$0xff]  }
 0x108   :  { %6769 = vmatpush3.bf16.msra.mxu0 %v7380_v20  ;;  %v7420_v20 = vld [vmem:[%s9446_s1 + $0x918] sm:$0xff]  }
 0x109   :  { %6791 = vmatpush3.bf16.msra.mxu1 %v7381_v21  ;;  %6770 = vmatprep.subr.bf16.mxu0 %v7382_v22  ;;  %v7421_v22 = vld [vmem:[%s9446_s1 + $0x998] sm:$0xff]  }
 0x10a   :  { %6792 = vmatprep.subr.bf16.mxu1 %v7383_v23 }
 0x10c   :  { %6771 = vmatpush3.bf16.msra.mxu0 %v7384_v24  ;;  %v7422_v24 = vld [vmem:[%s9446_s1 + $0x960] sm:$0xff]  }
 0x10d   :  { %6793 = vmatpush3.bf16.msra.mxu1 %v7385_v25  ;;  %6772 = vmatprep.subr.bf16.mxu0 %v7386_v26  ;;  %v7423_v26 = vld [vmem:[%s9446_s1 + $0x9e0] sm:$0xff]  }
 0x10e   :  { %6794 = vmatprep.subr.bf16.mxu1 %v7387_v27 }
 0x110   :  { %6773 = vmatpush3.bf16.msra.mxu0 %v7388_v29  ;;  %v7424_v29 = vld [vmem:[%s9446_s1 + $0x920] sm:$0xff]  }
 0x111   :  { %6795 = vmatpush3.bf16.msra.mxu1 %v7389_v31  ;;  %6774 = vmatprep.subr.bf16.mxu0 %v7390_v33 }
 0x112   :  { %6796 = vmatprep.subr.bf16.mxu1 %v7391_v36 }
 0x114   :  { %6775 = vmatpush3.bf16.msra.mxu0 %v7392_v39 }
 0x115   :  { %6797 = vmatpush3.bf16.msra.mxu1 %v7393_v42  ;;  %6776 = vmatprep.subr.bf16.mxu0 %v7394_v45  ;;  %v7430_v45 = vld [vmem:[%s9446_s1 + $0x970] sm:$0xff]  }
 0x116   :  { %v6474_v28 = vpop.f32.mrb[4].mxu0  ;;  %6798 = vmatprep.subr.bf16.mxu1 %v7395_v48  ;;  %v7432_v48 = vld [vmem:[%s9446_s1 + $0x930] sm:$0xff]  }
 0x117   :  { %v6496_v30 = vpop.f32.mrb[4].mxu1  ;;  %v6475_v32 = vpop.f32.mrb[5].mxu0 }
 0x118   :  { %v6476_v34 = vadd.f32 %v6475_v32, %v6474_v28  ;;  %v6497_v35 = vpop.f32.mrb[5].mxu1  ;;  %v6477_v38 = vpop.f32.mrb[6].mxu0  ;;  %6777 = vmatpush3.bf16.msra.mxu0 %v7396_v50  ;;  %v7425_v32 = vld [vmem:[%s9446_s1 + $0x9a0] sm:$0xff]   ;;  %v7434_v50 = vld [vmem:[%s9446_s1 + $0x978] sm:$0xff]  }
 0x119   :  { %v6498_v37 = vadd.f32 %v6497_v35, %v6496_v30  ;;  %v6499_v41 = vpop.f32.mrb[6].mxu1  ;;  %v6478_v43 = vpop.f32.mrb[7].mxu0  ;;  %6778 = vmatprep.subr.bf16.mxu0 %v7398_v54  ;;  %v7426_v35 = vld [vmem:[%s9446_s1 + $0x968] sm:$0xff]   ;;  %v32_v54 = vld [vmem:[%s9447_s0 + $0x90] sm:$0xff] }
 0x11a   :  { %v4611_v40 = vadd.f32 %v6476_v34, %v8474_v52  ;;  %v6479_v46 = vadd.f32 %v6478_v43, %v6477_v38  ;;  %v6500_v47 = vpop.f32.mrb[7].mxu1  ;;  %v7397_v52 = vld [vmem:[%s9446_s1 + $0x8a8] sm:$0xff]  }
 0x11b   :  { %v6501_v49 = vadd.f32 %v6500_v47, %v6499_v41  ;;  %6799 = vmatpush3.bf16.msra.mxu1 %v7397_v52  ;;  %v7427_v38 = vld [vmem:[%s9446_s1 + $0x9e8] sm:$0xff]   ;;  %v7431_v47 = vld [vmem:[%s9446_s1 + $0x9f0] sm:$0xff]   ;;  %v7436_v52 = vld [vmem:[%s9446_s1 + $0x938] sm:$0xff]  }
 0x11c   :  { %v8587_v44 = vadd.f32 %v6498_v37, %v4611_v40  ;;  %v4614_v51 = vadd.f32 %v6479_v46, %v8488_v61  ;;  %6800 = vmatprep.subr.bf16.mxu1 %v7399_v55  ;;  %6779 = vmatpush3.bf16.msra.mxu0 %v7400_v56  ;;  %v7405_v61 = vld [vmem:[%s9446_s1 + $0x8b8] sm:$0xff]   ;;  %v7428_v41 = vld [vmem:[%s9446_s1 + $0x928] sm:$0xff]   ;;  %v64_v55 = vld [vmem:[%s9447_s0 + $0x190] sm:$0xff] }
 0x11d   :  { %6780 = vmatprep.subr.bf16.mxu0 %v7402_v58  ;;  %v7429_v43 = vld [vmem:[%s9446_s1 + $0x9a8] sm:$0xff]   ;;  %v33_v56 = vld [vmem:[%s9447_s0 + $0x98] sm:$0xff]  ;;  %v5873_v58 = vcombine.high %v32_v54, %v64_v55 }
 0x11e   :  { %v8602_v53 = vadd.f32 %v6501_v49, %v4614_v51  ;;  %v7433_v49 = vld [vmem:[%s9446_s1 + $0x9b0] sm:$0xff]   ;;  %v7435_v51 = vld [vmem:[%s9446_s1 + $0x9f8] sm:$0xff]  }
 0x11f   :  { %6801 = vmatpush3.bf16.msra.mxu1 %v7401_v57  ;;  %v5872_v57 = vcombine.low %v32_v54, %v64_v55  ;;  %v7470_v54 = vld [vmem:[%s9446_s1 + $0xb40] sm:$0xff]  }
 0x120   :  { %6802 = vmatprep.subr.bf16.mxu1 %v7403_v59  ;;  %6781 = vmatpush3.bf16.msra.mxu0 %v7404_v60  ;;  %v65_v59 = vld [vmem:[%s9447_s0 + $0x198] sm:$0xff]  ;;  %v7471_v55 = vld [vmem:[%s9446_s1 + $0xbc0] sm:$0xff]  }
 0x121   :  { %6810 = vmatprep.subr.bf16.mxu0 %v7406_v6  ;;  %v5874_v60 = vcombine.low %v33_v56, %v65_v59  ;;  %v7446_v6 = vld [vmem:[%s9446_s1 + $0xa50] sm:$0xff]  }
 0x123   :  { %6803 = vmatpush3.bf16.msra.mxu1 %v7405_v61  ;;  %5183 = vmatmul.mubr.bf16.vlgmr.msra.gmra.mrb[32].mxu0 %v5868_v2  ;;  %v5875_v61 = vcombine.high %v33_v56, %v65_v59  ;;  %v7442_v2 = vld [vmem:[%s9446_s1 + $0xa48] sm:$0xff]   ;;  %v7472_v56 = vld [vmem:[%s9446_s1 + $0xb00] sm:$0xff]  }
 0x124   :  { %6832 = vmatprep.subr.bf16.mxu1 %v7407_v7  ;;  %6811 = vmatpush3.bf16.msra.mxu0 %v7408_v8  ;;  %v7447_v7 = vld [vmem:[%s9446_s1 + $0xad0] sm:$0xff]   ;;  %v7475_v59 = vld [vmem:[%s9446_s1 + $0xbc8] sm:$0xff]  }
 0x125   :  { %6812 = vmatprep.subr.bf16.mxu0 %v7410_v10  ;;  %5264 = vmatprep.mubr.bf16.mxu0 %v5873_v58  ;;  %v7448_v8 = vld [vmem:[%s9446_s1 + $0xa10] sm:$0xff]   ;;  %v7450_v10 = vld [vmem:[%s9446_s1 + $0xa58] sm:$0xff]   ;;  %v7474_v58 = vld [vmem:[%s9446_s1 + $0xb48] sm:$0xff]  }
 0x126   :  { %5224 = vmatmul.mubr.bf16.vlgmr.msra.gmra.mrb[32].mxu1 %v5870_v4  ;;  %v7444_v4 = vld [vmem:[%s9446_s1 + $0xa08] sm:$0xff]  }
 0x127   :  { %6833 = vmatpush3.bf16.msra.mxu1 %v7409_v9  ;;  %5305 = vmatprep.mubr.bf16.mxu1 %v5875_v61  ;;  %v7449_v9 = vld [vmem:[%s9446_s1 + $0xa90] sm:$0xff]   ;;  %v7477_v61 = vld [vmem:[%s9446_s1 + $0xb88] sm:$0xff]  }
 0x128   :  { %6834 = vmatprep.subr.bf16.mxu1 %v7411_v11  ;;  %6813 = vmatpush3.bf16.msra.mxu0 %v7412_v12  ;;  %v7451_v11 = vld [vmem:[%s9446_s1 + $0xad8] sm:$0xff]  }
 0x129   :  { %6814 = vmatprep.subr.bf16.mxu0 %v7414_v14 }
 0x12b   :  { %6835 = vmatpush3.bf16.msra.mxu1 %v7413_v13  ;;  %v7452_v13 = vld [vmem:[%s9446_s1 + $0xa18] sm:$0xff]  }
 0x12c   :  { %6836 = vmatprep.subr.bf16.mxu1 %v7415_v15  ;;  %6815 = vmatpush3.bf16.msra.mxu0 %v7416_v16  ;;  %v7453_v15 = vld [vmem:[%s9446_s1 + $0xa98] sm:$0xff]  }
 0x12d   :  { %6816 = vmatprep.subr.bf16.mxu0 %v7418_v18 }
 0x12f   :  { %6837 = vmatpush3.bf16.msra.mxu1 %v7417_v17  ;;  %v7454_v17 = vld [vmem:[%s9446_s1 + $0xa60] sm:$0xff]  }
 0x130   :  { %6838 = vmatprep.subr.bf16.mxu1 %v7419_v19  ;;  %6817 = vmatpush3.bf16.msra.mxu0 %v7420_v20  ;;  %v7455_v20 = vld [vmem:[%s9446_s1 + $0xae0] sm:$0xff]  }
 0x131   :  { %6818 = vmatprep.subr.bf16.mxu0 %v7422_v24 }
 0x133   :  { %6839 = vmatpush3.bf16.msra.mxu1 %v7421_v22 }
 0x134   :  { %6840 = vmatprep.subr.bf16.mxu1 %v7423_v26  ;;  %6819 = vmatpush3.bf16.msra.mxu0 %v7424_v29  ;;  %v7457_v26 = vld [vmem:[%s9446_s1 + $0xaa0] sm:$0xff]   ;;  %v7458_v29 = vld [vmem:[%s9446_s1 + $0xa68] sm:$0xff]  }
 0x135   :  { %6820 = vmatprep.subr.bf16.mxu0 %v7426_v35 }
 0x136   :  { %v6518_v21 = vpop.f32.mrb[8].mxu0 }
 0x137   :  { %v6540_v23 = vpop.f32.mrb[8].mxu1  ;;  %v6519_v25 = vpop.f32.mrb[9].mxu0  ;;  %6841 = vmatpush3.bf16.msra.mxu1 %v7425_v32  ;;  %v7459_v32 = vld [vmem:[%s9446_s1 + $0xae8] sm:$0xff]  }
 0x138   :  { %v6520_v27 = vadd.f32 %v6519_v25, %v6518_v21  ;;  %v6541_v28 = vpop.f32.mrb[9].mxu1  ;;  %v6521_v31 = vpop.f32.mrb[10].mxu0  ;;  %6842 = vmatprep.subr.bf16.mxu1 %v7427_v38  ;;  %6821 = vmatpush3.bf16.msra.mxu0 %v7428_v41  ;;  %v7462_v38 = vld [vmem:[%s9446_s1 + $0xa70] sm:$0xff]  }
 0x139   :  { %v6542_v30 = vadd.f32 %v6541_v28, %v6540_v23  ;;  %v6543_v34 = vpop.f32.mrb[10].mxu1  ;;  %v6522_v36 = vpop.f32.mrb[11].mxu0  ;;  %6822 = vmatprep.subr.bf16.mxu0 %v7430_v45  ;;  %v7456_v23 = vld [vmem:[%s9446_s1 + $0xa20] sm:$0xff]   ;;  %v7465_v41 = vld [vmem:[%s9446_s1 + $0xab0] sm:$0xff]   ;;  %v7469_v45 = vld [vmem:[%s9446_s1 + $0xab8] sm:$0xff]  }
 0x13a   :  { %v4693_v33 = vadd.f32 %v6520_v27, %v8587_v44  ;;  %v6523_v39 = vadd.f32 %v6522_v36, %v6521_v31  ;;  %v6544_v40 = vpop.f32.mrb[11].mxu1  ;;  %v7461_v36 = vld [vmem:[%s9446_s1 + $0xaa8] sm:$0xff]  }
 0x13b   :  { %v6545_v42 = vadd.f32 %v6544_v40, %v6543_v34  ;;  %6843 = vmatpush3.bf16.msra.mxu1 %v7429_v43  ;;  %v7460_v34 = vld [vmem:[%s9446_s1 + $0xa28] sm:$0xff]   ;;  %v7464_v40 = vld [vmem:[%s9446_s1 + $0xa30] sm:$0xff]   ;;  %v7467_v43 = vld [vmem:[%s9446_s1 + $0xaf8] sm:$0xff]  }
 0x13c   :  { %v8704_v37 = vadd.f32 %v6542_v30, %v4693_v33  ;;  %v4696_v44 = vadd.f32 %v6523_v39, %v8602_v53  ;;  %6844 = vmatprep.subr.bf16.mxu1 %v7431_v47  ;;  %6823 = vmatpush3.bf16.msra.mxu0 %v7432_v48  ;;  %v7437_v53 = vld [vmem:[%s9446_s1 + $0x9b8] sm:$0xff]   ;;  %v7463_v39 = vld [vmem:[%s9446_s1 + $0xaf0] sm:$0xff]   ;;  %v66_v47 = vld [vmem:[%s9447_s0 + $0x1a0] sm:$0xff] }
 0x13d   :  { %6824 = vmatprep.subr.bf16.mxu0 %v7434_v50  ;;  %v35_v50 = vld [vmem:[%s9447_s0 + $0xa8] sm:$0xff] }
 0x13e   :  { %v8719_v46 = vadd.f32 %v6545_v42, %v4696_v44  ;;  %v7466_v42 = vld [vmem:[%s9446_s1 + $0xa78] sm:$0xff]  }
 0x13f   :  { %6845 = vmatpush3.bf16.msra.mxu1 %v7433_v49  ;;  %v7468_v44 = vld [vmem:[%s9446_s1 + $0xa38] sm:$0xff]  }
 0x140   :  { %6846 = vmatprep.subr.bf16.mxu1 %v7435_v51  ;;  %6825 = vmatpush3.bf16.msra.mxu0 %v7436_v52  ;;  %v67_v51 = vld [vmem:[%s9447_s0 + $0x1a8] sm:$0xff] }
 0x141   :  { %6854 = vmatprep.subr.bf16.mxu0 %v7438_v62  ;;  %v5878_v52 = vcombine.low %v35_v50, %v67_v51  ;;  %v7478_v62 = vld [vmem:[%s9446_s1 + $0xb50] sm:$0xff]  }
 0x143   :  { %6847 = vmatpush3.bf16.msra.mxu1 %v7437_v53  ;;  %5265 = vmatmul.mubr.bf16.vlgmr.msra.gmra.mrb[36].mxu0 %v5872_v57  ;;  %v5879_v53 = vcombine.high %v35_v50, %v67_v51  ;;  %v7473_v57 = vld [vmem:[%s9446_s1 + $0xb80] sm:$0xff]   ;;  %v7506_v50 = vld [vmem:[%s9446_s1 + $0xc48] sm:$0xff]  }
 0x144   :  { %6876 = vmatprep.subr.bf16.mxu1 %v7439_v63  ;;  %6855 = vmatpush3.bf16.msra.mxu0 %v7440_v0  ;;  %v7479_v63 = vld [vmem:[%s9446_s1 + $0xbd0] sm:$0xff]   ;;  %v7507_v51 = vld [vmem:[%s9446_s1 + $0xcc8] sm:$0xff]  }
 0x145   :  { %6856 = vmatprep.subr.bf16.mxu0 %v7442_v2  ;;  %v7480_v0 = vld [vmem:[%s9446_s1 + $0xb10] sm:$0xff]   ;;  %v7482_v2 = vld [vmem:[%s9446_s1 + $0xb58] sm:$0xff]  }
 0x146   :  { %5306 = vmatmul.mubr.bf16.vlgmr.msra.gmra.mrb[36].mxu1 %v5874_v60  ;;  %v7476_v60 = vld [vmem:[%s9446_s1 + $0xb08] sm:$0xff]  }
 0x147   :  { %6877 = vmatpush3.bf16.msra.mxu1 %v7441_v1  ;;  %5387 = vmatprep.mubr.bf16.mxu1 %v5879_v53  ;;  %v7481_v1 = vld [vmem:[%s9446_s1 + $0xb90] sm:$0xff]   ;;  %v7509_v53 = vld [vmem:[%s9446_s1 + $0xc88] sm:$0xff]  }
 0x148   :  { %6878 = vmatprep.subr.bf16.mxu1 %v7443_v3  ;;  %6857 = vmatpush3.bf16.msra.mxu0 %v7444_v4  ;;  %v7483_v3 = vld [vmem:[%s9446_s1 + $0xbd8] sm:$0xff]  }
 0x149   :  { %6858 = vmatprep.subr.bf16.mxu0 %v7446_v6 }
 0x14b   :  { %6879 = vmatpush3.bf16.msra.mxu1 %v7445_v5  ;;  %v7484_v5 = vld [vmem:[%s9446_s1 + $0xb18] sm:$0xff]  }
 0x14c   :  { %6880 = vmatprep.subr.bf16.mxu1 %v7447_v7  ;;  %6859 = vmatpush3.bf16.msra.mxu0 %v7448_v8  ;;  %v7485_v7 = vld [vmem:[%s9446_s1 + $0xb98] sm:$0xff]  }
 0x14d   :  { %6860 = vmatprep.subr.bf16.mxu0 %v7450_v10 }
 0x14f   :  { %6881 = vmatpush3.bf16.msra.mxu1 %v7449_v9  ;;  %v7486_v9 = vld [vmem:[%s9446_s1 + $0xb60] sm:$0xff]  }
 0x150   :  { %6882 = vmatprep.subr.bf16.mxu1 %v7451_v11  ;;  %6861 = vmatpush3.bf16.msra.mxu0 %v7452_v13 }
 0x151   :  { %6862 = vmatprep.subr.bf16.mxu0 %v7454_v17 }
 0x153   :  { %6883 = vmatpush3.bf16.msra.mxu1 %v7453_v15  ;;  %v7488_v15 = vld [vmem:[%s9446_s1 + $0xb20] sm:$0xff]  }
 0x154   :  { %6884 = vmatprep.subr.bf16.mxu1 %v7455_v20  ;;  %6863 = vmatpush3.bf16.msra.mxu0 %v7456_v23 }
 0x155   :  { %6864 = vmatprep.subr.bf16.mxu0 %v7458_v29 }
 0x156   :  { %v6562_v12 = vpop.f32.mrb[12].mxu0 }
 0x157   :  { %v6584_v14 = vpop.f32.mrb[12].mxu1  ;;  %v6563_v16 = vpop.f32.mrb[13].mxu0  ;;  %6885 = vmatpush3.bf16.msra.mxu1 %v7457_v26  ;;  %v7492_v26 = vld [vmem:[%s9446_s1 + $0xb28] sm:$0xff]  }
 0x158   :  { %v6564_v18 = vadd.f32 %v6563_v16, %v6562_v12  ;;  %v6585_v19 = vpop.f32.mrb[13].mxu1  ;;  %v6565_v22 = vpop.f32.mrb[14].mxu0  ;;  %6886 = vmatprep.subr.bf16.mxu1 %v7459_v32  ;;  %6865 = vmatpush3.bf16.msra.mxu0 %v7460_v34  ;;  %v7487_v12 = vld [vmem:[%s9446_s1 + $0xbe0] sm:$0xff]   ;;  %v7496_v32 = vld [vmem:[%s9446_s1 + $0xb30] sm:$0xff]   ;;  %v7498_v34 = vld [vmem:[%s9446_s1 + $0xb78] sm:$0xff]  }
 0x159   :  { %v6586_v21 = vadd.f32 %v6585_v19, %v6584_v14  ;;  %v6587_v25 = vpop.f32.mrb[14].mxu1  ;;  %v6566_v27 = vpop.f32.mrb[15].mxu0  ;;  %6866 = vmatprep.subr.bf16.mxu0 %v7462_v38  ;;  %v36_v38 = vld [vmem:[%s9447_s0 + $0xb0] sm:$0xff] }
 0x15a   :  { %v4775_v24 = vadd.f32 %v6564_v18, %v8704_v37  ;;  %v6567_v30 = vadd.f32 %v6566_v27, %v6565_v22  ;;  %v6588_v31 = vpop.f32.mrb[15].mxu1  ;;  %v7489_v18 = vld [vmem:[%s9446_s1 + $0xba0] sm:$0xff]  }
 0x15b   :  { %v6589_v33 = vadd.f32 %v6588_v31, %v6587_v25  ;;  %6887 = vmatpush3.bf16.msra.mxu1 %v7461_v36  ;;  %v7495_v31 = vld [vmem:[%s9446_s1 + $0xbf0] sm:$0xff]   ;;  %v7500_v36 = vld [vmem:[%s9446_s1 + $0xb38] sm:$0xff]  }
 0x15c   :  { %v8815_v28 = vadd.f32 %v6586_v21, %v4775_v24  ;;  %v4778_v35 = vadd.f32 %v6567_v30, %v8719_v46  ;;  %6888 = vmatprep.subr.bf16.mxu1 %v7463_v39  ;;  %6867 = vmatpush3.bf16.msra.mxu0 %v7464_v40  ;;  %v34_v46 = vld [vmem:[%s9447_s0 + $0xa0] sm:$0xff]  ;;  %v7490_v21 = vld [vmem:[%s9446_s1 + $0xb68] sm:$0xff]   ;;  %v7494_v30 = vld [vmem:[%s9446_s1 + $0xb70] sm:$0xff]  }
 0x15d   :  { %6868 = vmatprep.subr.bf16.mxu0 %v7466_v42  ;;  %v5876_v48 = vcombine.low %v34_v46, %v66_v47  ;;  %v5877_v49 = vcombine.high %v34_v46, %v66_v47  ;;  %v7491_v24 = vld [vmem:[%s9446_s1 + $0xbe8] sm:$0xff]   ;;  %v68_v39 = vld [vmem:[%s9447_s0 + $0x1b0] sm:$0xff]  ;;  %v37_v40 = vld [vmem:[%s9447_s0 + $0xb8] sm:$0xff] }
 0x15e   :  { %v8830_v37 = vadd.f32 %v6589_v33, %v4778_v35  ;;  %v7497_v33 = vld [vmem:[%s9446_s1 + $0xbb0] sm:$0xff]   ;;  %v7499_v35 = vld [vmem:[%s9446_s1 + $0xbf8] sm:$0xff]   ;;  %v5880_v42 = vcombine.low %v36_v38, %v68_v39  ;;  %v7502_v46 = vld [vmem:[%s9446_s1 + $0xc40] sm:$0xff]  }
 0x15f   :  { %6889 = vmatpush3.bf16.msra.mxu1 %v7465_v41  ;;  %5346 = vmatprep.mubr.bf16.mxu0 %v5877_v49  ;;  %v69_v41 = vld [vmem:[%s9447_s0 + $0x1b8] sm:$0xff]  ;;  %v7503_v47 = vld [vmem:[%s9446_s1 + $0xcc0] sm:$0xff]  }
 0x160   :  { %6890 = vmatprep.subr.bf16.mxu1 %v7467_v43  ;;  %6869 = vmatpush3.bf16.msra.mxu0 %v7468_v44  ;;  %v5881_v43 = vcombine.high %v36_v38, %v68_v39  ;;  %v5882_v44 = vcombine.low %v37_v40, %v69_v41  ;;  %v7505_v49 = vld [vmem:[%s9446_s1 + $0xc80] sm:$0xff]  }
 0x161   :  { %6898 = vmatprep.subr.bf16.mxu0 %v7470_v54  ;;  %v7510_v54 = vld [vmem:[%s9446_s1 + $0xc50] sm:$0xff]   ;;  %v7534_v38 = vld [vmem:[%s9446_s1 + $0xd40] sm:$0xff]  }
 0x162   :  { %v7535_v39 = vld [vmem:[%s9446_s1 + $0xdc0] sm:$0xff]  }
 0x163   :  { %6891 = vmatpush3.bf16.msra.mxu1 %v7469_v45  ;;  %5347 = vmatmul.mubr.bf16.vlgmr.msra.gmra.mrb[40].mxu0 %v5876_v48  ;;  %v5883_v45 = vcombine.high %v37_v40, %v69_v41  ;;  %v7504_v48 = vld [vmem:[%s9446_s1 + $0xc00] sm:$0xff]  }
 0x164   :  { %6920 = vmatprep.subr.bf16.mxu1 %v7471_v55  ;;  %6899 = vmatpush3.bf16.msra.mxu0 %v7472_v56  ;;  %v7511_v55 = vld [vmem:[%s9446_s1 + $0xcd0] sm:$0xff]   ;;  %v7536_v40 = vld [vmem:[%s9446_s1 + $0xd00] sm:$0xff]  }
 0x165   :  { %6900 = vmatprep.subr.bf16.mxu0 %v7474_v58  ;;  %5428 = vmatprep.mubr.bf16.mxu0 %v5881_v43  ;;  %v7512_v56 = vld [vmem:[%s9446_s1 + $0xc10] sm:$0xff]   ;;  %v7514_v58 = vld [vmem:[%s9446_s1 + $0xc58] sm:$0xff]   ;;  %v7537_v41 = vld [vmem:[%s9446_s1 + $0xd80] sm:$0xff]  }
 0x166   :  { %5388 = vmatmul.mubr.bf16.vlgmr.msra.gmra.mrb[40].mxu1 %v5878_v52  ;;  %v7508_v52 = vld [vmem:[%s9446_s1 + $0xc08] sm:$0xff]  }
 0x167   :  { %6921 = vmatpush3.bf16.msra.mxu1 %v7473_v57  ;;  %5469 = vmatprep.mubr.bf16.mxu1 %v5883_v45  ;;  %v7513_v57 = vld [vmem:[%s9446_s1 + $0xc90] sm:$0xff]   ;;  %v7539_v43 = vld [vmem:[%s9446_s1 + $0xdc8] sm:$0xff]  }
 0x168   :  { %6922 = vmatprep.subr.bf16.mxu1 %v7475_v59  ;;  %6901 = vmatpush3.bf16.msra.mxu0 %v7476_v60  ;;  %v7515_v59 = vld [vmem:[%s9446_s1 + $0xcd8] sm:$0xff]   ;;  %v7541_v45 = vld [vmem:[%s9446_s1 + $0xd88] sm:$0xff]  }
 0x169   :  { %6902 = vmatprep.subr.bf16.mxu0 %v7478_v62  ;;  %v7516_v60 = vld [vmem:[%s9446_s1 + $0xc18] sm:$0xff]  }
 0x16a   :  { %v7517_v62 = vld [vmem:[%s9446_s1 + $0xc98] sm:$0xff]  }
 0x16b   :  { %6923 = vmatpush3.bf16.msra.mxu1 %v7477_v61 }
 0x16c   :  { %6924 = vmatprep.subr.bf16.mxu1 %v7479_v63  ;;  %6903 = vmatpush3.bf16.msra.mxu0 %v7480_v0  ;;  %v7518_v0 = vld [vmem:[%s9446_s1 + $0xc60] sm:$0xff]  }
 0x16d   :  { %6904 = vmatprep.subr.bf16.mxu0 %v7482_v2  ;;  %v7519_v2 = vld [vmem:[%s9446_s1 + $0xce0] sm:$0xff]  }
 0x16f   :  { %6925 = vmatpush3.bf16.msra.mxu1 %v7481_v1 }
 0x170   :  { %6926 = vmatprep.subr.bf16.mxu1 %v7483_v3  ;;  %6905 = vmatpush3.bf16.msra.mxu0 %v7484_v5  ;;  %v7520_v5 = vld [vmem:[%s9446_s1 + $0xc20] sm:$0xff]  }
 0x171   :  { %6906 = vmatprep.subr.bf16.mxu0 %v7486_v9 }
 0x173   :  { %6927 = vmatpush3.bf16.msra.mxu1 %v7485_v7 }
 0x174   :  { %6928 = vmatprep.subr.bf16.mxu1 %v7487_v12  ;;  %6907 = vmatpush3.bf16.msra.mxu0 %v7488_v15 }
 0x175   :  { %6908 = vmatprep.subr.bf16.mxu0 %v7490_v21  ;;  %v7526_v21 = vld [vmem:[%s9446_s1 + $0xc70] sm:$0xff]  }
 0x176   :  { %v6606_v4 = vpop.f32.mrb[16].mxu0 }
 0x177   :  { %v6628_v6 = vpop.f32.mrb[16].mxu1  ;;  %v6607_v8 = vpop.f32.mrb[17].mxu0  ;;  %6929 = vmatpush3.bf16.msra.mxu1 %v7489_v18 }
 0x178   :  { %v6608_v10 = vadd.f32 %v6607_v8, %v6606_v4  ;;  %v6629_v11 = vpop.f32.mrb[17].mxu1  ;;  %v6609_v14 = vpop.f32.mrb[18].mxu0  ;;  %6930 = vmatprep.subr.bf16.mxu1 %v7491_v24  ;;  %6909 = vmatpush3.bf16.msra.mxu0 %v7492_v26  ;;  %v7521_v8 = vld [vmem:[%s9446_s1 + $0xca0] sm:$0xff]   ;;  %v7528_v24 = vld [vmem:[%s9446_s1 + $0xc30] sm:$0xff]   ;;  %v7530_v26 = vld [vmem:[%s9446_s1 + $0xc78] sm:$0xff]  }
 0x179   :  { %v6630_v13 = vadd.f32 %v6629_v11, %v6628_v6  ;;  %v6631_v17 = vpop.f32.mrb[18].mxu1  ;;  %v6610_v19 = vpop.f32.mrb[19].mxu0  ;;  %6910 = vmatprep.subr.bf16.mxu0 %v7494_v30  ;;  %v7522_v11 = vld [vmem:[%s9446_s1 + $0xc68] sm:$0xff]   ;;  %v38_v30 = vld [vmem:[%s9447_s0 + $0xc0] sm:$0xff] }
 0x17a   :  { %v4857_v16 = vadd.f32 %v6608_v10, %v8815_v28  ;;  %v6611_v22 = vadd.f32 %v6610_v19, %v6609_v14  ;;  %v6632_v23 = vpop.f32.mrb[19].mxu1  ;;  %v7493_v28 = vld [vmem:[%s9446_s1 + $0xba8] sm:$0xff]  }
 0x17b   :  { %v6633_v25 = vadd.f32 %v6632_v23, %v6631_v17  ;;  %6931 = vmatpush3.bf16.msra.mxu1 %v7493_v28  ;;  %v7523_v14 = vld [vmem:[%s9446_s1 + $0xce8] sm:$0xff]   ;;  %v7527_v23 = vld [vmem:[%s9446_s1 + $0xcf0] sm:$0xff]   ;;  %v7532_v28 = vld [vmem:[%s9446_s1 + $0xc38] sm:$0xff]  }
 0x17c   :  { %v8929_v20 = vadd.f32 %v6630_v13, %v4857_v16  ;;  %v4860_v27 = vadd.f32 %v6611_v22, %v8830_v37  ;;  %6932 = vmatprep.subr.bf16.mxu1 %v7495_v31  ;;  %6911 = vmatpush3.bf16.msra.mxu0 %v7496_v32  ;;  %v7501_v37 = vld [vmem:[%s9446_s1 + $0xbb8] sm:$0xff]   ;;  %v7524_v17 = vld [vmem:[%s9446_s1 + $0xc28] sm:$0xff]   ;;  %v70_v31 = vld [vmem:[%s9447_s0 + $0x1c0] sm:$0xff] }
 0x17d   :  { %6912 = vmatprep.subr.bf16.mxu0 %v7498_v34  ;;  %v7525_v19 = vld [vmem:[%s9446_s1 + $0xca8] sm:$0xff]   ;;  %v5885_v34 = vcombine.high %v38_v30, %v70_v31 }
 0x17e   :  { %v8944_v29 = vadd.f32 %v6633_v25, %v4860_v27  ;;  %v7529_v25 = vld [vmem:[%s9446_s1 + $0xcb0] sm:$0xff]   ;;  %v7531_v27 = vld [vmem:[%s9446_s1 + $0xcf8] sm:$0xff]   ;;  %v39_v32 = vld [vmem:[%s9447_s0 + $0xc8] sm:$0xff] }
 0x17f   :  { %6933 = vmatpush3.bf16.msra.mxu1 %v7497_v33  ;;  %v5884_v33 = vcombine.low %v38_v30, %v70_v31  ;;  %v7566_v30 = vld [vmem:[%s9446_s1 + $0xe40] sm:$0xff]  }
 0x180   :  { %6934 = vmatprep.subr.bf16.mxu1 %v7499_v35  ;;  %6913 = vmatpush3.bf16.msra.mxu0 %v7500_v36  ;;  %v71_v35 = vld [vmem:[%s9447_s0 + $0x1c8] sm:$0xff]  ;;  %v7567_v31 = vld [vmem:[%s9446_s1 + $0xec0] sm:$0xff]  }
 0x181   :  { %6942 = vmatprep.subr.bf16.mxu0 %v7502_v46  ;;  %v5886_v36 = vcombine.low %v39_v32, %v71_v35  ;;  %v7542_v46 = vld [vmem:[%s9446_s1 + $0xd50] sm:$0xff]  }
 0x183   :  { %6935 = vmatpush3.bf16.msra.mxu1 %v7501_v37  ;;  %5429 = vmatmul.mubr.bf16.vlgmr.msra.gmra.mrb[44].mxu0 %v5880_v42  ;;  %v5887_v37 = vcombine.high %v39_v32, %v71_v35  ;;  %v7538_v42 = vld [vmem:[%s9446_s1 + $0xd48] sm:$0xff]   ;;  %v7568_v32 = vld [vmem:[%s9446_s1 + $0xe00] sm:$0xff]  }
 0x184   :  { %6964 = vmatprep.subr.bf16.mxu1 %v7503_v47  ;;  %6943 = vmatpush3.bf16.msra.mxu0 %v7504_v48  ;;  %v7543_v47 = vld [vmem:[%s9446_s1 + $0xdd0] sm:$0xff]   ;;  %v7571_v35 = vld [vmem:[%s9446_s1 + $0xec8] sm:$0xff]  }
 0x185   :  { %6944 = vmatprep.subr.bf16.mxu0 %v7506_v50  ;;  %5510 = vmatprep.mubr.bf16.mxu0 %v5885_v34  ;;  %v7544_v48 = vld [vmem:[%s9446_s1 + $0xd10] sm:$0xff]   ;;  %v7546_v50 = vld [vmem:[%s9446_s1 + $0xd58] sm:$0xff]   ;;  %v7570_v34 = vld [vmem:[%s9446_s1 + $0xe48] sm:$0xff]  }
 0x186   :  { %5470 = vmatmul.mubr.bf16.vlgmr.msra.gmra.mrb[44].mxu1 %v5882_v44  ;;  %v7540_v44 = vld [vmem:[%s9446_s1 + $0xd08] sm:$0xff]  }
 0x187   :  { %6965 = vmatpush3.bf16.msra.mxu1 %v7505_v49  ;;  %5551 = vmatprep.mubr.bf16.mxu1 %v5887_v37  ;;  %v7545_v49 = vld [vmem:[%s9446_s1 + $0xd90] sm:$0xff]   ;;  %v7573_v37 = vld [vmem:[%s9446_s1 + $0xe88] sm:$0xff]  }
 0x188   :  { %6966 = vmatprep.subr.bf16.mxu1 %v7507_v51  ;;  %6945 = vmatpush3.bf16.msra.mxu0 %v7508_v52  ;;  %v7547_v51 = vld [vmem:[%s9446_s1 + $0xdd8] sm:$0xff]  }
 0x189   :  { %6946 = vmatprep.subr.bf16.mxu0 %v7510_v54 }
 0x18b   :  { %6967 = vmatpush3.bf16.msra.mxu1 %v7509_v53  ;;  %v7548_v53 = vld [vmem:[%s9446_s1 + $0xd18] sm:$0xff]  }
 0x18c   :  { %6968 = vmatprep.subr.bf16.mxu1 %v7511_v55  ;;  %6947 = vmatpush3.bf16.msra.mxu0 %v7512_v56  ;;  %v7549_v55 = vld [vmem:[%s9446_s1 + $0xd98] sm:$0xff]  }
 0x18d   :  { %6948 = vmatprep.subr.bf16.mxu0 %v7514_v58 }
 0x18f   :  { %6969 = vmatpush3.bf16.msra.mxu1 %v7513_v57  ;;  %v7550_v57 = vld [vmem:[%s9446_s1 + $0xd60] sm:$0xff]  }
 0x190   :  { %6970 = vmatprep.subr.bf16.mxu1 %v7515_v59  ;;  %6949 = vmatpush3.bf16.msra.mxu0 %v7516_v60  ;;  %v7551_v60 = vld [vmem:[%s9446_s1 + $0xde0] sm:$0xff]  }
 0x191   :  { %6950 = vmatprep.subr.bf16.mxu0 %v7518_v0 }
 0x193   :  { %6971 = vmatpush3.bf16.msra.mxu1 %v7517_v62 }
 0x194   :  { %6972 = vmatprep.subr.bf16.mxu1 %v7519_v2  ;;  %6951 = vmatpush3.bf16.msra.mxu0 %v7520_v5  ;;  %v7553_v2 = vld [vmem:[%s9446_s1 + $0xda0] sm:$0xff]   ;;  %v7554_v5 = vld [vmem:[%s9446_s1 + $0xd68] sm:$0xff]  }
 0x195   :  { %6952 = vmatprep.subr.bf16.mxu0 %v7522_v11 }
 0x196   :  { %v6650_v61 = vpop.f32.mrb[20].mxu0 }
 0x197   :  { %v6672_v63 = vpop.f32.mrb[20].mxu1  ;;  %v6651_v1 = vpop.f32.mrb[21].mxu0  ;;  %6973 = vmatpush3.bf16.msra.mxu1 %v7521_v8  ;;  %v7555_v8 = vld [vmem:[%s9446_s1 + $0xde8] sm:$0xff]  }
 0x198   :  { %v6652_v3 = vadd.f32 %v6651_v1, %v6650_v61  ;;  %v6673_v4 = vpop.f32.mrb[21].mxu1  ;;  %v6653_v7 = vpop.f32.mrb[22].mxu0  ;;  %6974 = vmatprep.subr.bf16.mxu1 %v7523_v14  ;;  %6953 = vmatpush3.bf16.msra.mxu0 %v7524_v17  ;;  %v7558_v14 = vld [vmem:[%s9446_s1 + $0xd70] sm:$0xff]  }
 0x199   :  { %v6674_v6 = vadd.f32 %v6673_v4, %v6672_v63  ;;  %v6675_v10 = vpop.f32.mrb[22].mxu1  ;;  %v6654_v12 = vpop.f32.mrb[23].mxu0  ;;  %6954 = vmatprep.subr.bf16.mxu0 %v7526_v21  ;;  %v7552_v63 = vld [vmem:[%s9446_s1 + $0xd20] sm:$0xff]   ;;  %v7561_v17 = vld [vmem:[%s9446_s1 + $0xdb0] sm:$0xff]   ;;  %v7565_v21 = vld [vmem:[%s9446_s1 + $0xdb8] sm:$0xff]  }
 0x19a   :  { %v4939_v9 = vadd.f32 %v6652_v3, %v8929_v20  ;;  %v6655_v15 = vadd.f32 %v6654_v12, %v6653_v7  ;;  %v6676_v16 = vpop.f32.mrb[23].mxu1  ;;  %v7557_v12 = vld [vmem:[%s9446_s1 + $0xda8] sm:$0xff]  }
 0x19b   :  { %v6677_v18 = vadd.f32 %v6676_v16, %v6675_v10  ;;  %6975 = vmatpush3.bf16.msra.mxu1 %v7525_v19  ;;  %v7556_v10 = vld [vmem:[%s9446_s1 + $0xd28] sm:$0xff]   ;;  %v7560_v16 = vld [vmem:[%s9446_s1 + $0xd30] sm:$0xff]   ;;  %v7563_v19 = vld [vmem:[%s9446_s1 + $0xdf8] sm:$0xff]  }
 0x19c   :  { %v9046_v13 = vadd.f32 %v6674_v6, %v4939_v9  ;;  %v4942_v20 = vadd.f32 %v6655_v15, %v8944_v29  ;;  %6976 = vmatprep.subr.bf16.mxu1 %v7527_v23  ;;  %6955 = vmatpush3.bf16.msra.mxu0 %v7528_v24  ;;  %v7533_v29 = vld [vmem:[%s9446_s1 + $0xcb8] sm:$0xff]   ;;  %v7559_v15 = vld [vmem:[%s9446_s1 + $0xdf0] sm:$0xff]  }
 0x19d   :  { %6956 = vmatprep.subr.bf16.mxu0 %v7530_v26  ;;  %v72_v23 = vld [vmem:[%s9447_s0 + $0x1d0] sm:$0xff]  ;;  %v41_v26 = vld [vmem:[%s9447_s0 + $0xd8] sm:$0xff] }
 0x19e   :  { %v9061_v22 = vadd.f32 %v6677_v18, %v4942_v20  ;;  %v7562_v18 = vld [vmem:[%s9446_s1 + $0xd78] sm:$0xff]  }
 0x19f   :  { %6977 = vmatpush3.bf16.msra.mxu1 %v7529_v25  ;;  %v7564_v20 = vld [vmem:[%s9446_s1 + $0xd38] sm:$0xff]  }
 0x1a0   :  { %6978 = vmatprep.subr.bf16.mxu1 %v7531_v27  ;;  %6957 = vmatpush3.bf16.msra.mxu0 %v7532_v28  ;;  %v73_v27 = vld [vmem:[%s9447_s0 + $0x1d8] sm:$0xff] }
 0x1a1   :  { %6986 = vmatprep.subr.bf16.mxu0 %v7534_v38  ;;  %v5890_v28 = vcombine.low %v41_v26, %v73_v27  ;;  %v7574_v38 = vld [vmem:[%s9446_s1 + $0xe50] sm:$0xff]  }
 0x1a3   :  { %6979 = vmatpush3.bf16.msra.mxu1 %v7533_v29  ;;  %5511 = vmatmul.mubr.bf16.vlgmr.msra.gmra.mrb[48].mxu0 %v5884_v33  ;;  %v5891_v29 = vcombine.high %v41_v26, %v73_v27  ;;  %v7569_v33 = vld [vmem:[%s9446_s1 + $0xe80] sm:$0xff]   ;;  %v7602_v26 = vld [vmem:[%s9446_s1 + $0xf48] sm:$0xff]  }
 0x1a4   :  { %7008 = vmatprep.subr.bf16.mxu1 %v7535_v39  ;;  %6987 = vmatpush3.bf16.msra.mxu0 %v7536_v40  ;;  %v7575_v39 = vld [vmem:[%s9446_s1 + $0xed0] sm:$0xff]   ;;  %v7603_v27 = vld [vmem:[%s9446_s1 + $0xfc8] sm:$0xff]  }
 0x1a5   :  { %6988 = vmatprep.subr.bf16.mxu0 %v7538_v42  ;;  %v7576_v40 = vld [vmem:[%s9446_s1 + $0xe10] sm:$0xff]   ;;  %v7578_v42 = vld [vmem:[%s9446_s1 + $0xe58] sm:$0xff]  }
 0x1a6   :  { %5552 = vmatmul.mubr.bf16.vlgmr.msra.gmra.mrb[48].mxu1 %v5886_v36  ;;  %v7572_v36 = vld [vmem:[%s9446_s1 + $0xe08] sm:$0xff]  }
 0x1a7   :  { %7009 = vmatpush3.bf16.msra.mxu1 %v7537_v41  ;;  %5633 = vmatprep.mubr.bf16.mxu1 %v5891_v29  ;;  %v7577_v41 = vld [vmem:[%s9446_s1 + $0xe90] sm:$0xff]   ;;  %v7605_v29 = vld [vmem:[%s9446_s1 + $0xf88] sm:$0xff]  }
 0x1a8   :  { %7010 = vmatprep.subr.bf16.mxu1 %v7539_v43  ;;  %6989 = vmatpush3.bf16.msra.mxu0 %v7540_v44  ;;  %v7579_v43 = vld [vmem:[%s9446_s1 + $0xed8] sm:$0xff]  }
 0x1a9   :  { %6990 = vmatprep.subr.bf16.mxu0 %v7542_v46 }
 0x1ab   :  { %7011 = vmatpush3.bf16.msra.mxu1 %v7541_v45  ;;  %v7580_v45 = vld [vmem:[%s9446_s1 + $0xe18] sm:$0xff]  }
 0x1ac   :  { %7012 = vmatprep.subr.bf16.mxu1 %v7543_v47  ;;  %6991 = vmatpush3.bf16.msra.mxu0 %v7544_v48  ;;  %v7581_v47 = vld [vmem:[%s9446_s1 + $0xe98] sm:$0xff]  }
 0x1ad   :  { %6992 = vmatprep.subr.bf16.mxu0 %v7546_v50 }
 0x1af   :  { %7013 = vmatpush3.bf16.msra.mxu1 %v7545_v49  ;;  %v7582_v49 = vld [vmem:[%s9446_s1 + $0xe60] sm:$0xff]  }
 0x1b0   :  { %7014 = vmatprep.subr.bf16.mxu1 %v7547_v51  ;;  %6993 = vmatpush3.bf16.msra.mxu0 %v7548_v53 }
 0x1b1   :  { %6994 = vmatprep.subr.bf16.mxu0 %v7550_v57 }
 0x1b3   :  { %7015 = vmatpush3.bf16.msra.mxu1 %v7549_v55  ;;  %v7584_v55 = vld [vmem:[%s9446_s1 + $0xe20] sm:$0xff]  }
 0x1b4   :  { %7016 = vmatprep.subr.bf16.mxu1 %v7551_v60  ;;  %6995 = vmatpush3.bf16.msra.mxu0 %v7552_v63 }
 0x1b5   :  { %6996 = vmatprep.subr.bf16.mxu0 %v7554_v5 }
 0x1b6   :  { %v6694_v52 = vpop.f32.mrb[24].mxu0 }
 0x1b7   :  { %v6716_v54 = vpop.f32.mrb[24].mxu1  ;;  %v6695_v56 = vpop.f32.mrb[25].mxu0  ;;  %7017 = vmatpush3.bf16.msra.mxu1 %v7553_v2  ;;  %v7588_v2 = vld [vmem:[%s9446_s1 + $0xe28] sm:$0xff]  }
 0x1b8   :  { %v6696_v58 = vadd.f32 %v6695_v56, %v6694_v52  ;;  %v6717_v59 = vpop.f32.mrb[25].mxu1  ;;  %v6697_v62 = vpop.f32.mrb[26].mxu0  ;;  %7018 = vmatprep.subr.bf16.mxu1 %v7555_v8  ;;  %6997 = vmatpush3.bf16.msra.mxu0 %v7556_v10  ;;  %v7583_v52 = vld [vmem:[%s9446_s1 + $0xee0] sm:$0xff]   ;;  %v7592_v8 = vld [vmem:[%s9446_s1 + $0xe30] sm:$0xff]   ;;  %v7594_v10 = vld [vmem:[%s9446_s1 + $0xe78] sm:$0xff]  }
 0x1b9   :  { %v6718_v61 = vadd.f32 %v6717_v59, %v6716_v54  ;;  %v6719_v1 = vpop.f32.mrb[26].mxu1  ;;  %v6698_v3 = vpop.f32.mrb[27].mxu0  ;;  %6998 = vmatprep.subr.bf16.mxu0 %v7558_v14  ;;  %v42_v14 = vld [vmem:[%s9447_s0 + $0xe0] sm:$0xff] }
 0x1ba   :  { %v5021_v0 = vadd.f32 %v6696_v58, %v9046_v13  ;;  %v6699_v6 = vadd.f32 %v6698_v3, %v6697_v62  ;;  %v6720_v7 = vpop.f32.mrb[27].mxu1  ;;  %v7585_v58 = vld [vmem:[%s9446_s1 + $0xea0] sm:$0xff]  }
 0x1bb   :  { %v6721_v9 = vadd.f32 %v6720_v7, %v6719_v1  ;;  %7019 = vmatpush3.bf16.msra.mxu1 %v7557_v12  ;;  %v7591_v7 = vld [vmem:[%s9446_s1 + $0xef0] sm:$0xff]   ;;  %v7596_v12 = vld [vmem:[%s9446_s1 + $0xe38] sm:$0xff]  }
 0x1bc   :  { %v9157_v4 = vadd.f32 %v6718_v61, %v5021_v0  ;;  %v5024_v11 = vadd.f32 %v6699_v6, %v9061_v22  ;;  %7020 = vmatprep.subr.bf16.mxu1 %v7559_v15  ;;  %6999 = vmatpush3.bf16.msra.mxu0 %v7560_v16  ;;  %v40_v22 = vld [vmem:[%s9447_s0 + $0xd0] sm:$0xff]  ;;  %v7586_v61 = vld [vmem:[%s9446_s1 + $0xe68] sm:$0xff]   ;;  %v74_v15 = vld [vmem:[%s9447_s0 + $0x1e0] sm:$0xff] }
 0x1bd   :  { %7000 = vmatprep.subr.bf16.mxu0 %v7562_v18  ;;  %v5888_v24 = vcombine.low %v40_v22, %v72_v23  ;;  %v5889_v25 = vcombine.high %v40_v22, %v72_v23  ;;  %v7587_v0 = vld [vmem:[%s9446_s1 + $0xee8] sm:$0xff]   ;;  %v7590_v6 = vld [vmem:[%s9446_s1 + $0xe70] sm:$0xff]   ;;  %v5892_v18 = vcombine.low %v42_v14, %v74_v15  ;;  %v7598_v22 = vld [vmem:[%s9446_s1 + $0xf40] sm:$0xff]  }
 0x1be   :  { %v9172_v13 = vadd.f32 %v6721_v9, %v5024_v11  ;;  %v7593_v9 = vld [vmem:[%s9446_s1 + $0xeb0] sm:$0xff]   ;;  %v7595_v11 = vld [vmem:[%s9446_s1 + $0xef8] sm:$0xff]   ;;  %v43_v16 = vld [vmem:[%s9447_s0 + $0xe8] sm:$0xff] }
 0x1bf   :  { %7021 = vmatpush3.bf16.msra.mxu1 %v7561_v17  ;;  %5592 = vmatprep.mubr.bf16.mxu0 %v5889_v25  ;;  %v75_v17 = vld [vmem:[%s9447_s0 + $0x1e8] sm:$0xff]  ;;  %v7599_v23 = vld [vmem:[%s9446_s1 + $0xfc0] sm:$0xff]  }
 0x1c0   :  { %7022 = vmatprep.subr.bf16.mxu1 %v7563_v19  ;;  %7001 = vmatpush3.bf16.msra.mxu0 %v7564_v20  ;;  %v5893_v19 = vcombine.high %v42_v14, %v74_v15  ;;  %v5894_v20 = vcombine.low %v43_v16, %v75_v17  ;;  %v7601_v25 = vld [vmem:[%s9446_s1 + $0xf80] sm:$0xff]  }
 0x1c1   :  { %7030 = vmatprep.subr.bf16.mxu0 %v7566_v30  ;;  %v7606_v30 = vld [vmem:[%s9446_s1 + $0xf50] sm:$0xff]  }
 0x1c3   :  { %7023 = vmatpush3.bf16.msra.mxu1 %v7565_v21  ;;  %5593 = vmatmul.mubr.bf16.vlgmr.msra.gmra.mrb[52].mxu0 %v5888_v24  ;;  %v5895_v21 = vcombine.high %v43_v16, %v75_v17  ;;  %v7600_v24 = vld [vmem:[%s9446_s1 + $0xf00] sm:$0xff]  }
 0x1c4   :  { %7052 = vmatprep.subr.bf16.mxu1 %v7567_v31  ;;  %7031 = vmatpush3.bf16.msra.mxu0 %v7568_v32  ;;  %v7607_v31 = vld [vmem:[%s9446_s1 + $0xfd0] sm:$0xff]  }
 0x1c5   :  { %7032 = vmatprep.subr.bf16.mxu0 %v7570_v34  ;;  %5674 = vmatprep.mubr.bf16.mxu0 %v5893_v19  ;;  %v7608_v32 = vld [vmem:[%s9446_s1 + $0xf10] sm:$0xff]   ;;  %v7610_v34 = vld [vmem:[%s9446_s1 + $0xf58] sm:$0xff]  }
 0x1c6   :  { %5634 = vmatmul.mubr.bf16.vlgmr.msra.gmra.mrb[52].mxu1 %v5890_v28  ;;  %v7604_v28 = vld [vmem:[%s9446_s1 + $0xf08] sm:$0xff]  }
 0x1c7   :  { %7053 = vmatpush3.bf16.msra.mxu1 %v7569_v33  ;;  %5715 = vmatprep.mubr.bf16.mxu1 %v5895_v21  ;;  %v7609_v33 = vld [vmem:[%s9446_s1 + $0xf90] sm:$0xff]  }
 0x1c8   :  { %7054 = vmatprep.subr.bf16.mxu1 %v7571_v35  ;;  %7033 = vmatpush3.bf16.msra.mxu0 %v7572_v36  ;;  %v7611_v35 = vld [vmem:[%s9446_s1 + $0xfd8] sm:$0xff]  }
 0x1c9   :  { %7034 = vmatprep.subr.bf16.mxu0 %v7574_v38  ;;  %v7612_v36 = vld [vmem:[%s9446_s1 + $0xf18] sm:$0xff]  }
 0x1ca   :  { %v7613_v38 = vld [vmem:[%s9446_s1 + $0xf98] sm:$0xff]  }
 0x1cb   :  { %7055 = vmatpush3.bf16.msra.mxu1 %v7573_v37 }
 0x1cc   :  { %7056 = vmatprep.subr.bf16.mxu1 %v7575_v39  ;;  %7035 = vmatpush3.bf16.msra.mxu0 %v7576_v40  ;;  %v7614_v40 = vld [vmem:[%s9446_s1 + $0xf60] sm:$0xff]  }
 0x1cd   :  { %7036 = vmatprep.subr.bf16.mxu0 %v7578_v42  ;;  %v7615_v42 = vld [vmem:[%s9446_s1 + $0xfe0] sm:$0xff]  }
 0x1cf   :  { %7057 = vmatpush3.bf16.msra.mxu1 %v7577_v41 }
 0x1d0   :  { %7058 = vmatprep.subr.bf16.mxu1 %v7579_v43  ;;  %7037 = vmatpush3.bf16.msra.mxu0 %v7580_v45  ;;  %v7616_v45 = vld [vmem:[%s9446_s1 + $0xf20] sm:$0xff]  }
 0x1d1   :  { %7038 = vmatprep.subr.bf16.mxu0 %v7582_v49 }
 0x1d3   :  { %7059 = vmatpush3.bf16.msra.mxu1 %v7581_v47 }
 0x1d4   :  { %7060 = vmatprep.subr.bf16.mxu1 %v7583_v52  ;;  %7039 = vmatpush3.bf16.msra.mxu0 %v7584_v55 }
 0x1d5   :  { %7040 = vmatprep.subr.bf16.mxu0 %v7586_v61  ;;  %v7622_v61 = vld [vmem:[%s9446_s1 + $0xf70] sm:$0xff]  }
 0x1d6   :  { %v6738_v44 = vpop.f32.mrb[28].mxu0 }
 0x1d7   :  { %v6760_v46 = vpop.f32.mrb[28].mxu1  ;;  %v6739_v48 = vpop.f32.mrb[29].mxu0  ;;  %7061 = vmatpush3.bf16.msra.mxu1 %v7585_v58 }
 0x1d8   :  { %v6740_v50 = vadd.f32 %v6739_v48, %v6738_v44  ;;  %v6761_v51 = vpop.f32.mrb[29].mxu1  ;;  %v6741_v54 = vpop.f32.mrb[30].mxu0  ;;  %7062 = vmatprep.subr.bf16.mxu1 %v7587_v0  ;;  %7041 = vmatpush3.bf16.msra.mxu0 %v7588_v2  ;;  %v7617_v48 = vld [vmem:[%s9446_s1 + $0xfa0] sm:$0xff]   ;;  %v7624_v0 = vld [vmem:[%s9446_s1 + $0xf30] sm:$0xff]   ;;  %v7626_v2 = vld [vmem:[%s9446_s1 + $0xf78] sm:$0xff]  }
 0x1d9   :  { %v6762_v53 = vadd.f32 %v6761_v51, %v6760_v46  ;;  %v6763_v57 = vpop.f32.mrb[30].mxu1  ;;  %v6742_v59 = vpop.f32.mrb[31].mxu0  ;;  %7042 = vmatprep.subr.bf16.mxu0 %v7590_v6  ;;  %v7618_v51 = vld [vmem:[%s9446_s1 + $0xf68] sm:$0xff]   ;;  %v44_v6 = vld [vmem:[%s9447_s0 + $0xf0] sm:$0xff] }
 0x1da   :  { %v5103_v56 = vadd.f32 %v6740_v50, %v9157_v4  ;;  %v6743_v62 = vadd.f32 %v6742_v59, %v6741_v54  ;;  %v6764_v63 = vpop.f32.mrb[31].mxu1  ;;  %v7589_v4 = vld [vmem:[%s9446_s1 + $0xea8] sm:$0xff]  }
 0x1db   :  { %v6765_v1 = vadd.f32 %v6764_v63, %v6763_v57  ;;  %7063 = vmatpush3.bf16.msra.mxu1 %v7589_v4  ;;  %v7619_v54 = vld [vmem:[%s9446_s1 + $0xfe8] sm:$0xff]   ;;  %v7623_v63 = vld [vmem:[%s9446_s1 + $0xff0] sm:$0xff]   ;;  %v7628_v4 = vld [vmem:[%s9446_s1 + $0xf38] sm:$0xff]  }
 0x1dc   :  { %v9271_v60 = vadd.f32 %v6762_v53, %v5103_v56  ;;  %v5106_v3 = vadd.f32 %v6743_v62, %v9172_v13  ;;  %7064 = vmatprep.subr.bf16.mxu1 %v7591_v7  ;;  %7043 = vmatpush3.bf16.msra.mxu0 %v7592_v8  ;;  %v7597_v13 = vld [vmem:[%s9446_s1 + $0xeb8] sm:$0xff]   ;;  %v7620_v57 = vld [vmem:[%s9446_s1 + $0xf28] sm:$0xff]   ;;  %v76_v7 = vld [vmem:[%s9447_s0 + $0x1f0] sm:$0xff] }
 0x1dd   :  { %7044 = vmatprep.subr.bf16.mxu0 %v7594_v10  ;;  %v7621_v59 = vld [vmem:[%s9446_s1 + $0xfa8] sm:$0xff]   ;;  %v45_v8 = vld [vmem:[%s9447_s0 + $0xf8] sm:$0xff]  ;;  %v5897_v10 = vcombine.high %v44_v6, %v76_v7 }
 0x1de   :  { %v9286_v5 = vadd.f32 %v6765_v1, %v5106_v3  ;;  %v7625_v1 = vld [vmem:[%s9446_s1 + $0xfb0] sm:$0xff]   ;;  %v7627_v3 = vld [vmem:[%s9446_s1 + $0xff8] sm:$0xff]  }
 0x1df   :  { %7065 = vmatpush3.bf16.msra.mxu1 %v7593_v9  ;;  %v5896_v9 = vcombine.low %v44_v6, %v76_v7 }
 0x1e0   :  { %7066 = vmatprep.subr.bf16.mxu1 %v7595_v11  ;;  %7045 = vmatpush3.bf16.msra.mxu0 %v7596_v12  ;;  %v77_v11 = vld [vmem:[%s9447_s0 + $0x1f8] sm:$0xff] }
 0x1e1   :  { %7074 = vmatprep.subr.bf16.mxu0 %v7598_v22  ;;  %v5898_v12 = vcombine.low %v45_v8, %v77_v11 }
 0x1e3   :  { %7067 = vmatpush3.bf16.msra.mxu1 %v7597_v13  ;;  %5675 = vmatmul.mubr.bf16.vlgmr.msra.gmra.mrb[56].mxu0 %v5892_v18  ;;  %v5899_v13 = vcombine.high %v45_v8, %v77_v11 }
 0x1e4   :  { %7096 = vmatprep.subr.bf16.mxu1 %v7599_v23  ;;  %7075 = vmatpush3.bf16.msra.mxu0 %v7600_v24 }
 0x1e5   :  { %7076 = vmatprep.subr.bf16.mxu0 %v7602_v26  ;;  %5756 = vmatprep.mubr.bf16.mxu0 %v5897_v10 }
 0x1e6   :  { %5716 = vmatmul.mubr.bf16.vlgmr.msra.gmra.mrb[56].mxu1 %v5894_v20 }
 0x1e7   :  { %7097 = vmatpush3.bf16.msra.mxu1 %v7601_v25  ;;  %5797 = vmatprep.mubr.bf16.mxu1 %v5899_v13 }
 0x1e8   :  { %7098 = vmatprep.subr.bf16.mxu1 %v7603_v27  ;;  %7077 = vmatpush3.bf16.msra.mxu0 %v7604_v28 }
 0x1e9   :  { %7078 = vmatprep.subr.bf16.mxu0 %v7606_v30 }
 0x1eb   :  { %7099 = vmatpush3.bf16.msra.mxu1 %v7605_v29 }
 0x1ec   :  { %7100 = vmatprep.subr.bf16.mxu1 %v7607_v31  ;;  %7079 = vmatpush3.bf16.msra.mxu0 %v7608_v32 }
 0x1ed   :  { %7080 = vmatprep.subr.bf16.mxu0 %v7610_v34 }
 0x1ef   :  { %7101 = vmatpush3.bf16.msra.mxu1 %v7609_v33 }
 0x1f0   :  { %7102 = vmatprep.subr.bf16.mxu1 %v7611_v35  ;;  %7081 = vmatpush3.bf16.msra.mxu0 %v7612_v36 }
 0x1f1   :  { %7082 = vmatprep.subr.bf16.mxu0 %v7614_v40 }
 0x1f3   :  { %7103 = vmatpush3.bf16.msra.mxu1 %v7613_v38 }
 0x1f4   :  { %7104 = vmatprep.subr.bf16.mxu1 %v7615_v42  ;;  %7083 = vmatpush3.bf16.msra.mxu0 %v7616_v45 }
 0x1f5   :  { %7084 = vmatprep.subr.bf16.mxu0 %v7618_v51 }
 0x1f6   :  { %v6782_v37 = vpop.f32.mrb[32].mxu0 }
 0x1f7   :  { %v6783_v41 = vpop.f32.mrb[33].mxu0  ;;  %7105 = vmatpush3.bf16.msra.mxu1 %v7617_v48 }
 0x1f8   :  { %v6784_v43 = vadd.f32 %v6783_v41, %v6782_v37  ;;  %v6785_v47 = vpop.f32.mrb[34].mxu0  ;;  %7106 = vmatprep.subr.bf16.mxu1 %v7619_v54  ;;  %7085 = vmatpush3.bf16.msra.mxu0 %v7620_v57 }
 0x1f9   :  { %v6804_v39 = vpop.f32.mrb[32].mxu1  ;;  %v6786_v52 = vpop.f32.mrb[35].mxu0  ;;  %7086 = vmatprep.subr.bf16.mxu0 %v7622_v61 }
 0x1fa   :  { %v6805_v44 = vpop.f32.mrb[33].mxu1  ;;  %v5185_v49 = vadd.f32 %v6784_v43, %v9271_v60  ;;  %v6787_v55 = vadd.f32 %v6786_v52, %v6785_v47 }
 0x1fb   :  { %v6806_v46 = vadd.f32 %v6805_v44, %v6804_v39  ;;  %v6807_v50 = vpop.f32.mrb[34].mxu1  ;;  %7107 = vmatpush3.bf16.msra.mxu1 %v7621_v59 }
 0x1fc   :  { %v6808_v56 = vpop.f32.mrb[35].mxu1  ;;  %v5188_v60 = vadd.f32 %v6787_v55, %v9286_v5  ;;  %7108 = vmatprep.subr.bf16.mxu1 %v7623_v63  ;;  %7087 = vmatpush3.bf16.msra.mxu0 %v7624_v0  ;;  %v7629_v5 = vld [vmem:[%s9446_s1 + $0xfb8] sm:$0xff]  }
 0x1fd   :  { %v5226_v53 = vadd.f32 %v6806_v46, %v5185_v49  ;;  %v6809_v58 = vadd.f32 %v6808_v56, %v6807_v50  ;;  %7088 = vmatprep.subr.bf16.mxu0 %v7626_v2 }
 0x1ff   :  { %v5229_v62 = vadd.f32 %v6809_v58, %v5188_v60  ;;  %7109 = vmatpush3.bf16.msra.mxu1 %v7625_v1 }
 0x200   :  { %7110 = vmatprep.subr.bf16.mxu1 %v7627_v3  ;;  %7089 = vmatpush3.bf16.msra.mxu0 %v7628_v4 }
 0x203   :  { %7111 = vmatpush3.bf16.msra.mxu1 %v7629_v5  ;;  %5757 = vmatmul.mubr.bf16.vlgmr.msra.gmra.mrb[60].mxu0 %v5896_v9 }
 0x206   :  { %5798 = vmatmul.mubr.bf16.vlgmr.msra.gmra.mrb[60].mxu1 %v5898_v12 }
 0x216   :  { %v6826_v14 = vpop.f32.mrb[36].mxu0 }
 0x217   :  { %v6827_v16 = vpop.f32.mrb[37].mxu0 }
 0x218   :  { %v6828_v17 = vadd.f32 %v6827_v16, %v6826_v14  ;;  %v6829_v19 = vpop.f32.mrb[38].mxu0 }
 0x219   :  { %v6848_v15 = vpop.f32.mrb[36].mxu1  ;;  %v6830_v22 = vpop.f32.mrb[39].mxu0 }
 0x21a   :  { %v6849_v18 = vpop.f32.mrb[37].mxu1  ;;  %v5267_v23 = vadd.f32 %v6828_v17, %v5226_v53  ;;  %v6831_v24 = vadd.f32 %v6830_v22, %v6829_v19 }
 0x21b   :  { %v6850_v20 = vadd.f32 %v6849_v18, %v6848_v15  ;;  %v6851_v21 = vpop.f32.mrb[38].mxu1 }
 0x21c   :  { %v6852_v25 = vpop.f32.mrb[39].mxu1  ;;  %v5270_v28 = vadd.f32 %v6831_v24, %v5229_v62 }
 0x21d   :  { %v6853_v26 = vadd.f32 %v6852_v25, %v6851_v21  ;;  %v5308_v27 = vadd.f32 %v6850_v20, %v5267_v23 }
 0x21f   :  { %v5311_v29 = vadd.f32 %v6853_v26, %v5270_v28 }
 0x236   :  { %v6870_v30 = vpop.f32.mrb[40].mxu0 }
 0x237   :  { %v6871_v32 = vpop.f32.mrb[41].mxu0 }
 0x238   :  { %v6872_v33 = vadd.f32 %v6871_v32, %v6870_v30  ;;  %v6873_v35 = vpop.f32.mrb[42].mxu0 }
 0x239   :  { %v6892_v31 = vpop.f32.mrb[40].mxu1  ;;  %v6874_v38 = vpop.f32.mrb[43].mxu0 }
 0x23a   :  { %v6893_v34 = vpop.f32.mrb[41].mxu1  ;;  %v5349_v39 = vadd.f32 %v6872_v33, %v5308_v27  ;;  %v6875_v40 = vadd.f32 %v6874_v38, %v6873_v35 }
 0x23b   :  { %v6894_v36 = vadd.f32 %v6893_v34, %v6892_v31  ;;  %v6895_v37 = vpop.f32.mrb[42].mxu1 }
 0x23c   :  { %v6896_v41 = vpop.f32.mrb[43].mxu1  ;;  %v5352_v44 = vadd.f32 %v6875_v40, %v5311_v29 }
 0x23d   :  { %v6897_v42 = vadd.f32 %v6896_v41, %v6895_v37  ;;  %v5390_v43 = vadd.f32 %v6894_v36, %v5349_v39 }
 0x23f   :  { %v5393_v45 = vadd.f32 %v6897_v42, %v5352_v44 }
 0x256   :  { %v6914_v46 = vpop.f32.mrb[44].mxu0 }
 0x257   :  { %v6915_v48 = vpop.f32.mrb[45].mxu0 }
 0x258   :  { %v6916_v50 = vadd.f32 %v6915_v48, %v6914_v46  ;;  %v6917_v52 = vpop.f32.mrb[46].mxu0 }
 0x259   :  { %v6936_v47 = vpop.f32.mrb[44].mxu1  ;;  %v6918_v54 = vpop.f32.mrb[47].mxu0 }
 0x25a   :  { %v6937_v49 = vpop.f32.mrb[45].mxu1  ;;  %v5431_v56 = vadd.f32 %v6916_v50, %v5390_v43  ;;  %v6919_v57 = vadd.f32 %v6918_v54, %v6917_v52 }
 0x25b   :  { %v6938_v51 = vadd.f32 %v6937_v49, %v6936_v47  ;;  %v6939_v53 = vpop.f32.mrb[46].mxu1 }
 0x25c   :  { %v6940_v55 = vpop.f32.mrb[47].mxu1  ;;  %v5434_v60 = vadd.f32 %v6919_v57, %v5393_v45 }
 0x25d   :  { %v6941_v58 = vadd.f32 %v6940_v55, %v6939_v53  ;;  %v5472_v59 = vadd.f32 %v6938_v51, %v5431_v56 }
 0x25f   :  { %v5475_v61 = vadd.f32 %v6941_v58, %v5434_v60 }
 0x276   :  { %v6958_v62 = vpop.f32.mrb[48].mxu0 }
 0x277   :  { %v6959_v0 = vpop.f32.mrb[49].mxu0 }
 0x278   :  { %v6960_v1 = vadd.f32 %v6959_v0, %v6958_v62  ;;  %v6961_v3 = vpop.f32.mrb[50].mxu0 }
 0x279   :  { %v6980_v63 = vpop.f32.mrb[48].mxu1  ;;  %v6962_v6 = vpop.f32.mrb[51].mxu0 }
 0x27a   :  { %v6981_v2 = vpop.f32.mrb[49].mxu1  ;;  %v5513_v7 = vadd.f32 %v6960_v1, %v5472_v59  ;;  %v6963_v8 = vadd.f32 %v6962_v6, %v6961_v3 }
 0x27b   :  { %v6982_v4 = vadd.f32 %v6981_v2, %v6980_v63  ;;  %v6983_v5 = vpop.f32.mrb[50].mxu1 }
 0x27c   :  { %v6984_v9 = vpop.f32.mrb[51].mxu1  ;;  %v5516_v12 = vadd.f32 %v6963_v8, %v5475_v61 }
 0x27d   :  { %v6985_v10 = vadd.f32 %v6984_v9, %v6983_v5  ;;  %v5554_v11 = vadd.f32 %v6982_v4, %v5513_v7 }
 0x27f   :  { %v5557_v13 = vadd.f32 %v6985_v10, %v5516_v12 }
 0x296   :  { %v7002_v14 = vpop.f32.mrb[52].mxu0 }
 0x297   :  { %v7003_v16 = vpop.f32.mrb[53].mxu0 }
 0x298   :  { %v7004_v17 = vadd.f32 %v7003_v16, %v7002_v14  ;;  %v7005_v19 = vpop.f32.mrb[54].mxu0 }
 0x299   :  { %v7024_v15 = vpop.f32.mrb[52].mxu1  ;;  %v7006_v22 = vpop.f32.mrb[55].mxu0 }
 0x29a   :  { %v7025_v18 = vpop.f32.mrb[53].mxu1  ;;  %v5595_v23 = vadd.f32 %v7004_v17, %v5554_v11  ;;  %v7007_v24 = vadd.f32 %v7006_v22, %v7005_v19 }
 0x29b   :  { %v7026_v20 = vadd.f32 %v7025_v18, %v7024_v15  ;;  %v7027_v21 = vpop.f32.mrb[54].mxu1 }
 0x29c   :  { %v7028_v25 = vpop.f32.mrb[55].mxu1  ;;  %v5598_v28 = vadd.f32 %v7007_v24, %v5557_v13 }
 0x29d   :  { %v7029_v26 = vadd.f32 %v7028_v25, %v7027_v21  ;;  %v5636_v27 = vadd.f32 %v7026_v20, %v5595_v23 }
 0x29f   :  { %v5639_v29 = vadd.f32 %v7029_v26, %v5598_v28 }
 0x2b6   :  { %v7046_v30 = vpop.f32.mrb[56].mxu0 }
 0x2b7   :  { %v7047_v32 = vpop.f32.mrb[57].mxu0 }
 0x2b8   :  { %v7048_v34 = vadd.f32 %v7047_v32, %v7046_v30  ;;  %v7049_v36 = vpop.f32.mrb[58].mxu0 }
 0x2b9   :  { %v7068_v31 = vpop.f32.mrb[56].mxu1  ;;  %v7050_v38 = vpop.f32.mrb[59].mxu0 }
 0x2ba   :  { %v7069_v33 = vpop.f32.mrb[57].mxu1  ;;  %v5677_v40 = vadd.f32 %v7048_v34, %v5636_v27  ;;  %v7051_v41 = vadd.f32 %v7050_v38, %v7049_v36 }
 0x2bb   :  { %v7070_v35 = vadd.f32 %v7069_v33, %v7068_v31  ;;  %v7071_v37 = vpop.f32.mrb[58].mxu1 }
 0x2bc   :  { %v7072_v39 = vpop.f32.mrb[59].mxu1  ;;  %v5680_v44 = vadd.f32 %v7051_v41, %v5639_v29 }
 0x2bd   :  { %v7073_v42 = vadd.f32 %v7072_v39, %v7071_v37  ;;  %v5718_v43 = vadd.f32 %v7070_v35, %v5677_v40 }
 0x2bf   :  { %v5721_v45 = vadd.f32 %v7073_v42, %v5680_v44 }
 0x2d6   :  { %v7090_v46 = vpop.f32.mrb[60].mxu0 }
 0x2d7   :  { %v7091_v48 = vpop.f32.mrb[61].mxu0 }
 0x2d8   :  { %v7092_v49 = vadd.f32 %v7091_v48, %v7090_v46  ;;  %v7093_v51 = vpop.f32.mrb[62].mxu0 }
 0x2d9   :  { %v7112_v47 = vpop.f32.mrb[60].mxu1  ;;  %v7094_v54 = vpop.f32.mrb[63].mxu0 }
 0x2da   :  { %v7113_v50 = vpop.f32.mrb[61].mxu1  ;;  %v5759_v55 = vadd.f32 %v7092_v49, %v5718_v43  ;;  %v7095_v56 = vadd.f32 %v7094_v54, %v7093_v51 }
 0x2db   :  { %v7114_v52 = vadd.f32 %v7113_v50, %v7112_v47  ;;  %v7115_v53 = vpop.f32.mrb[62].mxu1 }
 0x2dc   :  { %v7116_v57 = vpop.f32.mrb[63].mxu1  ;;  %v5762_v60 = vadd.f32 %v7095_v56, %v5721_v45 }
 0x2dd   :  { %v7117_v58 = vadd.f32 %v7116_v57, %v7115_v53  ;;  %v5800_v59 = vadd.f32 %v7114_v52, %v5759_v55 }
 0x2df   :  { %vm5806_vm0 = vcmp.ge.f32.partialorder %v5800_v59, 0.0  ;;  %v5808_v61 = vmul.f32 0.2, %v5800_v59  ;;  %v5803_v62 = vadd.f32 %v7117_v58, %v5762_v60 }
 0x2e1   :  { %v5810_v63 = vsel %vm5806_vm0, %v5800_v59, %v5808_v61  ;;  %vm5807_vm1 = vcmp.ge.f32.partialorder %v5803_v62, 0.0  ;;  %v5809_v0 = vmul.f32 0.2, %v5803_v62 }
 0x2e2   :  { %5812 = vst [vmem:[%s9448_s2] sm:$0xff] %v5810_v63  ;;  %v6412_v1 = vmul.f32 -1.442695, %v5810_v63 }
 0x2e3   :  { %v5811_v2 = vsel %vm5807_vm1, %v5803_v62, %v5809_v0 }
 0x2e4   :  { %7630 = vpow2.f32 %v6412_v1  ;;  %5813 = vst [vmem:[%s9448_s2 + $0x8] sm:$0xff] %v5811_v2  ;;  %v6413_v3 = vmul.f32 -1.442695, %v5811_v2 }
 0x2e6   :  { %7632 = vpow2.f32 %v6413_v3 }
 0x2ee   :  { %v7631_v4 = vpop.eup %7630 }
 0x2ef   :  { %v5820_v5 = vadd.f32 1.0, %v7631_v4 }
 0x2f0   :  { %v7633_v6 = vpop.eup %7632 }
 0x2f1   :  { %7634 = vrcp.f32 %v5820_v5  ;;  %v5821_v7 = vadd.f32 1.0, %v7633_v6 }
 0x2f3   :  { %7636 = vrcp.f32 %v5821_v7 }
 0x2fb   :  { %v7635_v8 = vpop.eup %7634 }
 0x2fc   :  { %5826 = vst [vmem:[%s9449_s3] sm:$0xff] %v7635_v8 }
 0x2fd   :  { %v7637_v9 = vpop.eup %7636 }
 0x2fe   :  { %5827 = vst [vmem:[%s9449_s3 + $0x8] sm:$0xff] %v7637_v9 }

</bundles_post_ra>
